<compile_context>
chip_gen: v6e
topology: v6e:2x2x1
jax: 0.10.0
libtpu: 0.0.40
codegen_flags: <defaults>
</compile_context>

<pallas_src>
from typing import NamedTuple, Optional

import numpy as np
import jax
import jax.numpy as jnp
from jax.experimental import pallas as pl


# ------------------------- configuration (scaled-down) -------------------------
HIDDEN = 128                 # stands in for BERT hidden_size (768 in real model)
BATCH = 8                    # self.batch_size
NUM_ENTITIES = 3             # self.num_entities
GROUP = 1 + NUM_ENTITIES     # nodes per entity-description group (4)
NUM_NODES = 1 + 2 * GROUP    # 9 nodes per subgraph
NUM_GRAPHS = 2 * BATCH       # training: pos/neg pairs interleaved (16)
TOTAL_NODES = NUM_GRAPHS * NUM_NODES     # 144 (flattened block-diagonal graph)
GAT1_OUT, GAT1_HEADS = 32, 4             # original: GATConv(hidden, 128, heads=4)
GAT1_DIM = GAT1_OUT * GAT1_HEADS         # = 128 (concat of heads)
GAT2_OUT, GAT2_HEADS = HIDDEN, 1         # original: GATConv(128*4, hidden, heads=1)
IN_ROWS = NUM_GRAPHS + 2 * BATCH * GROUP  # 80 rows of raw [CLS] embeddings
NEG_INF = -1e9


class OutputTuple(NamedTuple):
    loss: Optional[jax.Array] = None
    scores: Optional[jax.Array] = None


# ------------------------------ fused kernel ------------------------------------
def _fused_kernel(qd_ref, eds_ref, edt_ref,
                  gmat_ref, amask_ref, scls_ref, psel_ref,
                  w1_ref, asrc1_ref, adst1_ref, b1_ref,
                  w2_ref, asrc2_ref, adst2_ref, b2_ref,
                  wq_ref, wv_ref, bc_ref,
                  probs_ref, loss_ref):
    f32 = jnp.float32
    amask = amask_ref[...]   # (144,144): 0 on edges (incl. self-loops), -1e9 otherwise

    def masked_softmax(a_dst_col, a_src_row):
        # e[i, j] = LeakyReLU_0.2(a_dst[i] + a_src[j]); softmax over incoming j.
        z = a_dst_col + a_src_row                              # (144,144)
        z = jnp.maximum(z, 0.2 * z)                            # LeakyReLU(0.2)
        z = z + amask                                          # mask non-edges
        z = z - jnp.max(z, axis=-1, keepdims=True)
        p = jnp.exp(z)
        inv = pl.reciprocal(jnp.sum(p, axis=-1, keepdims=True), approx=True)
        return p * inv

    # ---- GAT1 linear transform, fused with graph assembly ---------------------
    # x_in = [qd | eds | edt] (80,128); G (144,80) places node features into the
    # block-diagonal graph (incl. repeat_interleave(2) of the entity blocks)
    # without materializing the duplicated (16,9,128) tensor.
    x_in = jnp.concatenate([qd_ref[...], eds_ref[...], edt_ref[...]], axis=0)  # (80,128)
    hx = jnp.dot(x_in, w1_ref[...], preferred_element_type=f32)                # (80,128)
    h1 = jnp.dot(gmat_ref[...], hx, preferred_element_type=f32)                # (144,128)

    # Per-head attention logits for all 4 heads (block-diagonal att vectors).
    a_dst1 = jnp.dot(h1, adst1_ref[...], preferred_element_type=f32)           # (144,4)
    a_src1 = jnp.dot(h1, asrc1_ref[...], preferred_element_type=f32)           # (144,4)

    # Head outputs accumulated lane-dense: P_h @ (h1 masked to head-h columns)
    # has the head's values in its own 32-lane block and zeros elsewhere, so the
    # sum over heads IS the concat -- no scratch, no partial-lane stores.
    lane = jax.lax.broadcasted_iota(jnp.int32, (1, GAT1_DIM), 1)
    out1 = None
    for hd in range(GAT1_HEADS):                                               # static unroll
        p = masked_softmax(a_dst1[:, hd:hd + 1],
                           jnp.transpose(a_src1[:, hd:hd + 1]))                # (144,144)
        mask = ((lane >= hd * GAT1_OUT) & (lane < (hd + 1) * GAT1_OUT)).astype(f32)
        term = jnp.dot(p, h1 * mask, preferred_element_type=f32)               # (144,128)
        out1 = term if out1 is None else out1 + term
    h1_act = jnp.maximum(out1 + b1_ref[...], 0.0)                              # bias + F.relu

    # ---- GAT2 (single head, concat=True) --------------------------------------
    h2 = jnp.dot(h1_act, w2_ref[...], preferred_element_type=f32)              # (144,128)
    a_dst2 = jnp.dot(h2, adst2_ref[...], preferred_element_type=f32)           # (144,1)
    a_src2 = jnp.dot(h2, asrc2_ref[...], preferred_element_type=f32)           # (144,1)
    p2 = masked_softmax(a_dst2, jnp.transpose(a_src2))                         # (144,144)
    out2 = jnp.dot(p2, h2, preferred_element_type=f32) + b2_ref[...]           # (144,128)

    # ---- readout (node 0 per subgraph) + classifier + pair softmax + loss -----
    v_qd = jnp.dot(scls_ref[...], out2, preferred_element_type=f32)            # (16,128)
    score = (jnp.dot(qd_ref[...], wq_ref[...], preferred_element_type=f32)
             + jnp.dot(v_qd, wv_ref[...], preferred_element_type=f32)
             + bc_ref[...])                                                    # (16,1) logits
    pair = jnp.dot(psel_ref[...], score, preferred_element_type=f32)           # (16,1)
    s_pos = pair[0:BATCH, :]                                                   # scores.view(-1,2)[:,0]
    s_neg = pair[BATCH:2 * BATCH, :]                                           # scores.view(-1,2)[:,1]
    # softmax(dim=1) over each pos/neg pair
    m = jnp.maximum(s_pos, s_neg)
    ep = jnp.exp(s_pos - m)
    en = jnp.exp(s_neg - m)
    inv = 1.0 / (ep + en)
    p_pos = ep * inv
    p_neg = en * inv
    probs_ref[...] = jnp.concatenate([p_pos, p_neg], axis=1)                   # (8,2)
    # PairwiseHingeLoss(margin=0, reduction='mean') with target = [1, 0] per row
    l_sum = (jnp.sum(1.0 - p_pos, keepdims=True)
             + jnp.sum(jnp.maximum(p_neg, 0.0), keepdims=True))                # (1,1)
    loss_ref[...] = l_sum * (1.0 / (2 * BATCH))


# ------------------------------ constant matrices --------------------------------
def build_constants():
    """Adjacency of create_subgraph_data() (block-diagonal over all graphs) as an
    additive mask, plus 0/1 placement/selection matrices replacing PyG Batch
    bookkeeping (construct_batch / repeat_interleave / node-0 readout / pairing)."""
    adj9 = np.zeros((NUM_NODES, NUM_NODES), np.float32)
    edges = [(0, 1), (0, GROUP + 1)]
    for i in range(1, GROUP):
        edges.append((1, i + 1))
        edges.append((GROUP + 1, GROUP + 1 + i))
    edges = edges + [(b, a) for (a, b) in edges]             # reversed edges
    for (src, dst) in edges:
        adj9[dst, src] = 1.0
    adj9 = adj9 + np.eye(NUM_NODES, dtype=np.float32)        # GATConv add_self_loops=True
    adj = np.kron(np.eye(NUM_GRAPHS, dtype=np.float32), adj9)          # (144,144)
    amask = np.where(adj > 0, 0.0, NEG_INF).astype(np.float32)

    g = np.zeros((TOTAL_NODES, IN_ROWS), np.float32)         # combined placement
    s_cls = np.zeros((NUM_GRAPHS, TOTAL_NODES), np.float32)  # node-0 readout selector
    for gi in range(NUM_GRAPHS):
        base = gi * NUM_NODES
        b = gi // 2                                           # repeat_interleave(2, dim=0)
        g[base, gi] = 1.0                                     # node 0 <- qd row gi
        s_cls[gi, base] = 1.0
        for k in range(GROUP):
            g[base + 1 + k, NUM_GRAPHS + b * GROUP + k] = 1.0                           # V_s
            g[base + 1 + GROUP + k, NUM_GRAPHS + BATCH * GROUP + b * GROUP + k] = 1.0   # V_t

    p_sel = np.zeros((NUM_GRAPHS, NUM_GRAPHS), np.float32)    # pos rows 0..7, neg rows 8..15
    for b in range(BATCH):
        p_sel[b, 2 * b] = 1.0
        p_sel[BATCH + b, 2 * b + 1] = 1.0

    const_np = dict(g=g, amask=amask, s_cls=s_cls, p_sel=p_sel)
    return {k: jnp.asarray(v) for k, v in const_np.items()}


# --------------------------------- parameters -------------------------------------
def init_params(key):
    ks = jax.random.split(key, 8)
    p = {}
    p["gat1_w"] = 0.05 * jax.random.normal(ks[0], (HIDDEN, GAT1_DIM), jnp.float32)
    p["gat1_asrc"] = 0.05 * jax.random.normal(ks[1], (GAT1_HEADS, GAT1_OUT), jnp.float32)
    p["gat1_adst"] = 0.05 * jax.random.normal(ks[2], (GAT1_HEADS, GAT1_OUT), jnp.float32)
    p["gat1_b"] = jnp.zeros((1, GAT1_DIM), jnp.float32)
    p["gat2_w"] = 0.05 * jax.random.normal(ks[3], (GAT1_DIM, GAT2_HEADS * GAT2_OUT), jnp.float32)
    p["gat2_asrc"] = 0.05 * jax.random.normal(ks[4], (GAT2_HEADS, GAT2_OUT), jnp.float32)
    p["gat2_adst"] = 0.05 * jax.random.normal(ks[5], (GAT2_HEADS, GAT2_OUT), jnp.float32)
    p["gat2_b"] = jnp.zeros((1, GAT2_HEADS * GAT2_OUT), jnp.float32)
    p["cls_w"] = 0.05 * jax.random.normal(ks[6], (1, 2 * HIDDEN), jnp.float32)  # Linear(2*hidden, 1)
    p["cls_b"] = jnp.zeros((1, 1), jnp.float32)
    return p


def prepare_kernel_params(p):
    """Reshape parameters once into kernel-friendly (block-diagonal / split) form."""
    def blockdiag(att, heads, out_ch):
        m = jnp.zeros((heads * out_ch, heads), jnp.float32)
        for hd in range(heads):
            m = m.at[hd * out_ch:(hd + 1) * out_ch, hd].set(att[hd])
        return m
    return {
        "w1": p["gat1_w"],
        "asrc1": blockdiag(p["gat1_asrc"], GAT1_HEADS, GAT1_OUT),   # (128, 4)
        "adst1": blockdiag(p["gat1_adst"], GAT1_HEADS, GAT1_OUT),   # (128, 4)
        "b1": p["gat1_b"],
        "w2": p["gat2_w"],
        "asrc2": blockdiag(p["gat2_asrc"], GAT2_HEADS, GAT2_OUT),   # (128, 1)
        "adst2": blockdiag(p["gat2_adst"], GAT2_HEADS, GAT2_OUT),   # (128, 1)
        "b2": p["gat2_b"],
        "cls_wq": jnp.transpose(p["cls_w"][:, :HIDDEN]),            # (128, 1)
        "cls_wv": jnp.transpose(p["cls_w"][:, HIDDEN:]),            # (128, 1)
        "cls_b": p["cls_b"],                                        # (1, 1)
    }


# --------------------------------- forward pass ------------------------------------
@jax.jit
def my_model_forward(kparams, consts, qd_emb, ed_s_emb, ed_t_emb):
    """Training-mode forward of MyModel (post-BERT), fully fused in ONE pallas_call.

    qd_emb:   (2*BATCH, HIDDEN)      query-doc [CLS] embeddings (pos/neg interleaved)
    ed_s_emb: (BATCH*GROUP, HIDDEN)  source entity-desc [CLS] embeddings
    ed_t_emb: (BATCH*GROUP, HIDDEN)  target entity-desc [CLS] embeddings
    """
    probs, loss = pl.pallas_call(
        _fused_kernel,
        out_shape=(jax.ShapeDtypeStruct((BATCH, 2), jnp.float32),
                   jax.ShapeDtypeStruct((1, 1), jnp.float32)),
    )(qd_emb, ed_s_emb, ed_t_emb,
      consts["g"], consts["amask"], consts["s_cls"], consts["p_sel"],
      kparams["w1"], kparams["asrc1"], kparams["adst1"], kparams["b1"],
      kparams["w2"], kparams["asrc2"], kparams["adst2"], kparams["b2"],
      kparams["cls_wq"], kparams["cls_wv"], kparams["cls_b"])
    # TODO(synk): eval-mode branch (raw (batch,1) scores, loss=None) not exercised;
    # the module is exercised in training mode here.
    return OutputTuple(loss=loss[0, 0], scores=probs)


# ------------------------------------ main -------------------------------------------
if __name__ == "__main__":
    key = jax.random.PRNGKey(0)
    kp, k1, k2, k3 = jax.random.split(key, 4)
    params = init_params(kp)
    kparams = prepare_kernel_params(params)
    consts = build_constants()

    qd_emb = jax.random.normal(k1, (NUM_GRAPHS, HIDDEN), jnp.float32)
    ed_s_emb = jax.random.normal(k2, (BATCH * GROUP, HIDDEN), jnp.float32)
    ed_t_emb = jax.random.normal(k3, (BATCH * GROUP, HIDDEN), jnp.float32)

    out = my_model_forward(kparams, consts, qd_emb, ed_s_emb, ed_t_emb)
    jax.block_until_ready((out.loss, out.scores))
    assert out.scores.shape == (BATCH, 2)
    assert out.loss.shape == ()
    assert bool(jnp.isfinite(out.loss))
    print("KERNEL_OK")
</pallas_src>

<mosaic_0001>
module attributes {stable_mosaic.version = 11 : i64} {
  func.func @_fused_kernel(%arg0: memref<16x128xf32, #tpu.memory_space<vmem>>, %arg1: memref<32x128xf32, #tpu.memory_space<vmem>>, %arg2: memref<32x128xf32, #tpu.memory_space<vmem>>, %arg3: memref<144x80xf32, #tpu.memory_space<vmem>>, %arg4: memref<144x144xf32, #tpu.memory_space<vmem>>, %arg5: memref<16x144xf32, #tpu.memory_space<vmem>>, %arg6: memref<16x16xf32, #tpu.memory_space<vmem>>, %arg7: memref<128x128xf32, #tpu.memory_space<vmem>>, %arg8: memref<128x4xf32, #tpu.memory_space<vmem>>, %arg9: memref<128x4xf32, #tpu.memory_space<vmem>>, %arg10: memref<1x128xf32, #tpu.memory_space<vmem>>, %arg11: memref<128x128xf32, #tpu.memory_space<vmem>>, %arg12: memref<128x1xf32, #tpu.memory_space<vmem>>, %arg13: memref<128x1xf32, #tpu.memory_space<vmem>>, %arg14: memref<1x128xf32, #tpu.memory_space<vmem>>, %arg15: memref<128x1xf32, #tpu.memory_space<vmem>>, %arg16: memref<128x1xf32, #tpu.memory_space<vmem>>, %arg17: memref<1x1xf32, #tpu.memory_space<vmem>>, %arg18: memref<8x2xf32, #tpu.memory_space<vmem>>, %arg19: memref<1x1xf32, #tpu.memory_space<vmem>>) attributes {dimension_semantics = [], scalar_prefetch = 0 : i64, scratch_operands = 0 : i64, tpu.core_type = #tpu.core_type<tc>} {
    %c0 = arith.constant 0 : index
    %c0_0 = arith.constant 0 : index
    %0 = vector.load %arg4[%c0, %c0_0] : memref<144x144xf32, #tpu.memory_space<vmem>>, vector<144x144xf32>
    %c0_1 = arith.constant 0 : index
    %c0_2 = arith.constant 0 : index
    %1 = vector.load %arg0[%c0_1, %c0_2] : memref<16x128xf32, #tpu.memory_space<vmem>>, vector<16x128xf32>
    %c0_3 = arith.constant 0 : index
    %c0_4 = arith.constant 0 : index
    %2 = vector.load %arg1[%c0_3, %c0_4] : memref<32x128xf32, #tpu.memory_space<vmem>>, vector<32x128xf32>
    %c0_5 = arith.constant 0 : index
    %c0_6 = arith.constant 0 : index
    %3 = vector.load %arg2[%c0_5, %c0_6] : memref<32x128xf32, #tpu.memory_space<vmem>>, vector<32x128xf32>
    %4 = tpu.concatenate %1, %2, %3 in 0 : vector<16x128xf32>, vector<32x128xf32>, vector<32x128xf32> -> vector<80x128xf32>
    %c0_7 = arith.constant 0 : index
    %c0_8 = arith.constant 0 : index
    %5 = vector.load %arg7[%c0_7, %c0_8] : memref<128x128xf32, #tpu.memory_space<vmem>>, vector<128x128xf32>
    %cst = arith.constant dense<0.000000e+00> : vector<80x128xf32>
    %6 = tpu.matmul %4, %5, %cst {dimension_numbers = #tpu.dot_dimension_numbers<[1], [0], [0], [1], [0, 0, 1, 1], [], []>} : vector<80x128xf32>, vector<128x128xf32>, vector<80x128xf32> -> vector<80x128xf32>
    %c0_9 = arith.constant 0 : index
    %c0_10 = arith.constant 0 : index
    %7 = vector.load %arg3[%c0_9, %c0_10] : memref<144x80xf32, #tpu.memory_space<vmem>>, vector<144x80xf32>
    %cst_11 = arith.constant dense<0.000000e+00> : vector<144x128xf32>
    %8 = tpu.matmul %7, %6, %cst_11 {dimension_numbers = #tpu.dot_dimension_numbers<[1], [0], [0], [1], [0, 0, 1, 1], [], []>} : vector<144x80xf32>, vector<80x128xf32>, vector<144x128xf32> -> vector<144x128xf32>
    %c0_12 = arith.constant 0 : index
    %c0_13 = arith.constant 0 : index
    %9 = vector.load %arg9[%c0_12, %c0_13] : memref<128x4xf32, #tpu.memory_space<vmem>>, vector<128x4xf32>
    %cst_14 = arith.constant dense<0.000000e+00> : vector<144x4xf32>
    %10 = tpu.matmul %8, %9, %cst_14 {dimension_numbers = #tpu.dot_dimension_numbers<[1], [0], [0], [1], [0, 0, 1, 1], [], []>} : vector<144x128xf32>, vector<128x4xf32>, vector<144x4xf32> -> vector<144x4xf32>
    %c0_15 = arith.constant 0 : index
    %c0_16 = arith.constant 0 : index
    %11 = vector.load %arg8[%c0_15, %c0_16] : memref<128x4xf32, #tpu.memory_space<vmem>>, vector<128x4xf32>
    %cst_17 = arith.constant dense<0.000000e+00> : vector<144x4xf32>
    %12 = tpu.matmul %8, %11, %cst_17 {dimension_numbers = #tpu.dot_dimension_numbers<[1], [0], [0], [1], [0, 0, 1, 1], [], []>} : vector<144x128xf32>, vector<128x4xf32>, vector<144x4xf32> -> vector<144x4xf32>
    %13 = tpu.iota {dimensions = array<i32: 1>} : vector<1x128xi32>
    %14 = vector.extract_strided_slice %10 {offsets = [0, 0], sizes = [144, 1], strides = [1, 1]} : vector<144x4xf32> to vector<144x1xf32>
    %15 = vector.extract_strided_slice %12 {offsets = [0, 0], sizes = [144, 1], strides = [1, 1]} : vector<144x4xf32> to vector<144x1xf32>
    %16 = tpu.transpose %15, [1, 0] : vector<144x1xf32> -> vector<1x144xf32>
    %17 = vector.broadcast %14 : vector<144x1xf32> to vector<144x144xf32>
    %18 = vector.broadcast %16 : vector<1x144xf32> to vector<144x144xf32>
    %19 = arith.addf %17, %18 : vector<144x144xf32>
    %cst_18 = arith.constant 2.000000e-01 : f32
    %20 = vector.broadcast %cst_18 : f32 to vector<144x144xf32>
    %21 = arith.mulf %20, %19 : vector<144x144xf32>
    %22 = arith.maximumf %19, %21 : vector<144x144xf32>
    %23 = arith.addf %22, %0 : vector<144x144xf32>
    %cst_19 = arith.constant dense<0xFF800000> : vector<144xf32>
    %24 = vector.multi_reduction <maximumf>, %23, %cst_19 [1] : vector<144x144xf32> to vector<144xf32>
    %25 = vector.shape_cast %24 : vector<144xf32> to vector<144x1xf32>
    %26 = vector.broadcast %25 : vector<144x1xf32> to vector<144x144xf32>
    %27 = arith.subf %23, %26 : vector<144x144xf32>
    %28 = math.exp %27 : vector<144x144xf32>
    %cst_20 = arith.constant dense<0.000000e+00> : vector<144xf32>
    %29 = vector.multi_reduction <add>, %28, %cst_20 [1] : vector<144x144xf32> to vector<144xf32>
    %30 = vector.shape_cast %29 : vector<144xf32> to vector<144x1xf32>
    %31 = tpu.reciprocal %30 {approx = true} : vector<144x1xf32> -> vector<144x1xf32>
    %32 = vector.broadcast %31 : vector<144x1xf32> to vector<144x144xf32>
    %33 = arith.mulf %28, %32 : vector<144x144xf32>
    %c0_i32 = arith.constant 0 : i32
    %34 = vector.broadcast %c0_i32 : i32 to vector<1x128xi32>
    %35 = arith.cmpi sge, %13, %34 : vector<1x128xi32>
    %c32_i32 = arith.constant 32 : i32
    %36 = vector.broadcast %c32_i32 : i32 to vector<1x128xi32>
    %37 = arith.cmpi slt, %13, %36 : vector<1x128xi32>
    %38 = arith.andi %35, %37 : vector<1x128xi1>
    %39 = arith.extui %38 : vector<1x128xi1> to vector<1x128xi32>
    %40 = arith.sitofp %39 : vector<1x128xi32> to vector<1x128xf32>
    %41 = vector.broadcast %40 : vector<1x128xf32> to vector<144x128xf32>
    %42 = arith.mulf %8, %41 : vector<144x128xf32>
    %cst_21 = arith.constant dense<0.000000e+00> : vector<144x128xf32>
    %43 = tpu.matmul %33, %42, %cst_21 {dimension_numbers = #tpu.dot_dimension_numbers<[1], [0], [0], [1], [0, 0, 1, 1], [], []>} : vector<144x144xf32>, vector<144x128xf32>, vector<144x128xf32> -> vector<144x128xf32>
    %44 = vector.extract_strided_slice %10 {offsets = [0, 1], sizes = [144, 1], strides = [1, 1]} : vector<144x4xf32> to vector<144x1xf32>
    %45 = vector.extract_strided_slice %12 {offsets = [0, 1], sizes = [144, 1], strides = [1, 1]} : vector<144x4xf32> to vector<144x1xf32>
    %46 = tpu.transpose %45, [1, 0] : vector<144x1xf32> -> vector<1x144xf32>
    %47 = vector.broadcast %44 : vector<144x1xf32> to vector<144x144xf32>
    %48 = vector.broadcast %46 : vector<1x144xf32> to vector<144x144xf32>
    %49 = arith.addf %47, %48 : vector<144x144xf32>
    %cst_22 = arith.constant 2.000000e-01 : f32
    %50 = vector.broadcast %cst_22 : f32 to vector<144x144xf32>
    %51 = arith.mulf %50, %49 : vector<144x144xf32>
    %52 = arith.maximumf %49, %51 : vector<144x144xf32>
    %53 = arith.addf %52, %0 : vector<144x144xf32>
    %cst_23 = arith.constant dense<0xFF800000> : vector<144xf32>
    %54 = vector.multi_reduction <maximumf>, %53, %cst_23 [1] : vector<144x144xf32> to vector<144xf32>
    %55 = vector.shape_cast %54 : vector<144xf32> to vector<144x1xf32>
    %56 = vector.broadcast %55 : vector<144x1xf32> to vector<144x144xf32>
    %57 = arith.subf %53, %56 : vector<144x144xf32>
    %58 = math.exp %57 : vector<144x144xf32>
    %cst_24 = arith.constant dense<0.000000e+00> : vector<144xf32>
    %59 = vector.multi_reduction <add>, %58, %cst_24 [1] : vector<144x144xf32> to vector<144xf32>
    %60 = vector.shape_cast %59 : vector<144xf32> to vector<144x1xf32>
    %61 = tpu.reciprocal %60 {approx = true} : vector<144x1xf32> -> vector<144x1xf32>
    %62 = vector.broadcast %61 : vector<144x1xf32> to vector<144x144xf32>
    %63 = arith.mulf %58, %62 : vector<144x144xf32>
    %c32_i32_25 = arith.constant 32 : i32
    %64 = vector.broadcast %c32_i32_25 : i32 to vector<1x128xi32>
    %65 = arith.cmpi sge, %13, %64 : vector<1x128xi32>
    %c64_i32 = arith.constant 64 : i32
    %66 = vector.broadcast %c64_i32 : i32 to vector<1x128xi32>
    %67 = arith.cmpi slt, %13, %66 : vector<1x128xi32>
    %68 = arith.andi %65, %67 : vector<1x128xi1>
    %69 = arith.extui %68 : vector<1x128xi1> to vector<1x128xi32>
    %70 = arith.sitofp %69 : vector<1x128xi32> to vector<1x128xf32>
    %71 = vector.broadcast %70 : vector<1x128xf32> to vector<144x128xf32>
    %72 = arith.mulf %8, %71 : vector<144x128xf32>
    %cst_26 = arith.constant dense<0.000000e+00> : vector<144x128xf32>
    %73 = tpu.matmul %63, %72, %cst_26 {dimension_numbers = #tpu.dot_dimension_numbers<[1], [0], [0], [1], [0, 0, 1, 1], [], []>} : vector<144x144xf32>, vector<144x128xf32>, vector<144x128xf32> -> vector<144x128xf32>
    %74 = arith.addf %43, %73 : vector<144x128xf32>
    %75 = vector.extract_strided_slice %10 {offsets = [0, 2], sizes = [144, 1], strides = [1, 1]} : vector<144x4xf32> to vector<144x1xf32>
    %76 = vector.extract_strided_slice %12 {offsets = [0, 2], sizes = [144, 1], strides = [1, 1]} : vector<144x4xf32> to vector<144x1xf32>
    %77 = tpu.transpose %76, [1, 0] : vector<144x1xf32> -> vector<1x144xf32>
    %78 = vector.broadcast %75 : vector<144x1xf32> to vector<144x144xf32>
    %79 = vector.broadcast %77 : vector<1x144xf32> to vector<144x144xf32>
    %80 = arith.addf %78, %79 : vector<144x144xf32>
    %cst_27 = arith.constant 2.000000e-01 : f32
    %81 = vector.broadcast %cst_27 : f32 to vector<144x144xf32>
    %82 = arith.mulf %81, %80 : vector<144x144xf32>
    %83 = arith.maximumf %80, %82 : vector<144x144xf32>
    %84 = arith.addf %83, %0 : vector<144x144xf32>
    %cst_28 = arith.constant dense<0xFF800000> : vector<144xf32>
    %85 = vector.multi_reduction <maximumf>, %84, %cst_28 [1] : vector<144x144xf32> to vector<144xf32>
    %86 = vector.shape_cast %85 : vector<144xf32> to vector<144x1xf32>
    %87 = vector.broadcast %86 : vector<144x1xf32> to vector<144x144xf32>
    %88 = arith.subf %84, %87 : vector<144x144xf32>
    %89 = math.exp %88 : vector<144x144xf32>
    %cst_29 = arith.constant dense<0.000000e+00> : vector<144xf32>
    %90 = vector.multi_reduction <add>, %89, %cst_29 [1] : vector<144x144xf32> to vector<144xf32>
    %91 = vector.shape_cast %90 : vector<144xf32> to vector<144x1xf32>
    %92 = tpu.reciprocal %91 {approx = true} : vector<144x1xf32> -> vector<144x1xf32>
    %93 = vector.broadcast %92 : vector<144x1xf32> to vector<144x144xf32>
    %94 = arith.mulf %89, %93 : vector<144x144xf32>
    %c64_i32_30 = arith.constant 64 : i32
    %95 = vector.broadcast %c64_i32_30 : i32 to vector<1x128xi32>
    %96 = arith.cmpi sge, %13, %95 : vector<1x128xi32>
    %c96_i32 = arith.constant 96 : i32
    %97 = vector.broadcast %c96_i32 : i32 to vector<1x128xi32>
    %98 = arith.cmpi slt, %13, %97 : vector<1x128xi32>
    %99 = arith.andi %96, %98 : vector<1x128xi1>
    %100 = arith.extui %99 : vector<1x128xi1> to vector<1x128xi32>
    %101 = arith.sitofp %100 : vector<1x128xi32> to vector<1x128xf32>
    %102 = vector.broadcast %101 : vector<1x128xf32> to vector<144x128xf32>
    %103 = arith.mulf %8, %102 : vector<144x128xf32>
    %cst_31 = arith.constant dense<0.000000e+00> : vector<144x128xf32>
    %104 = tpu.matmul %94, %103, %cst_31 {dimension_numbers = #tpu.dot_dimension_numbers<[1], [0], [0], [1], [0, 0, 1, 1], [], []>} : vector<144x144xf32>, vector<144x128xf32>, vector<144x128xf32> -> vector<144x128xf32>
    %105 = arith.addf %74, %104 : vector<144x128xf32>
    %106 = vector.extract_strided_slice %10 {offsets = [0, 3], sizes = [144, 1], strides = [1, 1]} : vector<144x4xf32> to vector<144x1xf32>
    %107 = vector.extract_strided_slice %12 {offsets = [0, 3], sizes = [144, 1], strides = [1, 1]} : vector<144x4xf32> to vector<144x1xf32>
    %108 = tpu.transpose %107, [1, 0] : vector<144x1xf32> -> vector<1x144xf32>
    %109 = vector.broadcast %106 : vector<144x1xf32> to vector<144x144xf32>
    %110 = vector.broadcast %108 : vector<1x144xf32> to vector<144x144xf32>
    %111 = arith.addf %109, %110 : vector<144x144xf32>
    %cst_32 = arith.constant 2.000000e-01 : f32
    %112 = vector.broadcast %cst_32 : f32 to vector<144x144xf32>
    %113 = arith.mulf %112, %111 : vector<144x144xf32>
    %114 = arith.maximumf %111, %113 : vector<144x144xf32>
    %115 = arith.addf %114, %0 : vector<144x144xf32>
    %cst_33 = arith.constant dense<0xFF800000> : vector<144xf32>
    %116 = vector.multi_reduction <maximumf>, %115, %cst_33 [1] : vector<144x144xf32> to vector<144xf32>
    %117 = vector.shape_cast %116 : vector<144xf32> to vector<144x1xf32>
    %118 = vector.broadcast %117 : vector<144x1xf32> to vector<144x144xf32>
    %119 = arith.subf %115, %118 : vector<144x144xf32>
    %120 = math.exp %119 : vector<144x144xf32>
    %cst_34 = arith.constant dense<0.000000e+00> : vector<144xf32>
    %121 = vector.multi_reduction <add>, %120, %cst_34 [1] : vector<144x144xf32> to vector<144xf32>
    %122 = vector.shape_cast %121 : vector<144xf32> to vector<144x1xf32>
    %123 = tpu.reciprocal %122 {approx = true} : vector<144x1xf32> -> vector<144x1xf32>
    %124 = vector.broadcast %123 : vector<144x1xf32> to vector<144x144xf32>
    %125 = arith.mulf %120, %124 : vector<144x144xf32>
    %c96_i32_35 = arith.constant 96 : i32
    %126 = vector.broadcast %c96_i32_35 : i32 to vector<1x128xi32>
    %127 = arith.cmpi sge, %13, %126 : vector<1x128xi32>
    %c128_i32 = arith.constant 128 : i32
    %128 = vector.broadcast %c128_i32 : i32 to vector<1x128xi32>
    %129 = arith.cmpi slt, %13, %128 : vector<1x128xi32>
    %130 = arith.andi %127, %129 : vector<1x128xi1>
    %131 = arith.extui %130 : vector<1x128xi1> to vector<1x128xi32>
    %132 = arith.sitofp %131 : vector<1x128xi32> to vector<1x128xf32>
    %133 = vector.broadcast %132 : vector<1x128xf32> to vector<144x128xf32>
    %134 = arith.mulf %8, %133 : vector<144x128xf32>
    %cst_36 = arith.constant dense<0.000000e+00> : vector<144x128xf32>
    %135 = tpu.matmul %125, %134, %cst_36 {dimension_numbers = #tpu.dot_dimension_numbers<[1], [0], [0], [1], [0, 0, 1, 1], [], []>} : vector<144x144xf32>, vector<144x128xf32>, vector<144x128xf32> -> vector<144x128xf32>
    %136 = arith.addf %105, %135 : vector<144x128xf32>
    %c0_37 = arith.constant 0 : index
    %c0_38 = arith.constant 0 : index
    %137 = vector.load %arg10[%c0_37, %c0_38] : memref<1x128xf32, #tpu.memory_space<vmem>>, vector<1x128xf32>
    %138 = vector.broadcast %137 : vector<1x128xf32> to vector<144x128xf32>
    %139 = arith.addf %136, %138 : vector<144x128xf32>
    %cst_39 = arith.constant 0.000000e+00 : f32
    %140 = vector.broadcast %cst_39 : f32 to vector<144x128xf32>
    %141 = arith.maximumf %139, %140 : vector<144x128xf32>
    %c0_40 = arith.constant 0 : index
    %c0_41 = arith.constant 0 : index
    %142 = vector.load %arg11[%c0_40, %c0_41] : memref<128x128xf32, #tpu.memory_space<vmem>>, vector<128x128xf32>
    %cst_42 = arith.constant dense<0.000000e+00> : vector<144x128xf32>
    %143 = tpu.matmul %141, %142, %cst_42 {dimension_numbers = #tpu.dot_dimension_numbers<[1], [0], [0], [1], [0, 0, 1, 1], [], []>} : vector<144x128xf32>, vector<128x128xf32>, vector<144x128xf32> -> vector<144x128xf32>
    %c0_43 = arith.constant 0 : index
    %c0_44 = arith.constant 0 : index
    %144 = vector.load %arg13[%c0_43, %c0_44] : memref<128x1xf32, #tpu.memory_space<vmem>>, vector<128x1xf32>
    %cst_45 = arith.constant dense<0.000000e+00> : vector<144x1xf32>
    %145 = tpu.matmul %143, %144, %cst_45 {dimension_numbers = #tpu.dot_dimension_numbers<[1], [0], [0], [1], [0, 0, 1, 1], [], []>} : vector<144x128xf32>, vector<128x1xf32>, vector<144x1xf32> -> vector<144x1xf32>
    %c0_46 = arith.constant 0 : index
    %c0_47 = arith.constant 0 : index
    %146 = vector.load %arg12[%c0_46, %c0_47] : memref<128x1xf32, #tpu.memory_space<vmem>>, vector<128x1xf32>
    %cst_48 = arith.constant dense<0.000000e+00> : vector<144x1xf32>
    %147 = tpu.matmul %143, %146, %cst_48 {dimension_numbers = #tpu.dot_dimension_numbers<[1], [0], [0], [1], [0, 0, 1, 1], [], []>} : vector<144x128xf32>, vector<128x1xf32>, vector<144x1xf32> -> vector<144x1xf32>
    %148 = tpu.transpose %147, [1, 0] : vector<144x1xf32> -> vector<1x144xf32>
    %149 = vector.broadcast %145 : vector<144x1xf32> to vector<144x144xf32>
    %150 = vector.broadcast %148 : vector<1x144xf32> to vector<144x144xf32>
    %151 = arith.addf %149, %150 : vector<144x144xf32>
    %cst_49 = arith.constant 2.000000e-01 : f32
    %152 = vector.broadcast %cst_49 : f32 to vector<144x144xf32>
    %153 = arith.mulf %152, %151 : vector<144x144xf32>
    %154 = arith.maximumf %151, %153 : vector<144x144xf32>
    %155 = arith.addf %154, %0 : vector<144x144xf32>
    %cst_50 = arith.constant dense<0xFF800000> : vector<144xf32>
    %156 = vector.multi_reduction <maximumf>, %155, %cst_50 [1] : vector<144x144xf32> to vector<144xf32>
    %157 = vector.shape_cast %156 : vector<144xf32> to vector<144x1xf32>
    %158 = vector.broadcast %157 : vector<144x1xf32> to vector<144x144xf32>
    %159 = arith.subf %155, %158 : vector<144x144xf32>
    %160 = math.exp %159 : vector<144x144xf32>
    %cst_51 = arith.constant dense<0.000000e+00> : vector<144xf32>
    %161 = vector.multi_reduction <add>, %160, %cst_51 [1] : vector<144x144xf32> to vector<144xf32>
    %162 = vector.shape_cast %161 : vector<144xf32> to vector<144x1xf32>
    %163 = tpu.reciprocal %162 {approx = true} : vector<144x1xf32> -> vector<144x1xf32>
    %164 = vector.broadcast %163 : vector<144x1xf32> to vector<144x144xf32>
    %165 = arith.mulf %160, %164 : vector<144x144xf32>
    %cst_52 = arith.constant dense<0.000000e+00> : vector<144x128xf32>
    %166 = tpu.matmul %165, %143, %cst_52 {dimension_numbers = #tpu.dot_dimension_numbers<[1], [0], [0], [1], [0, 0, 1, 1], [], []>} : vector<144x144xf32>, vector<144x128xf32>, vector<144x128xf32> -> vector<144x128xf32>
    %c0_53 = arith.constant 0 : index
    %c0_54 = arith.constant 0 : index
    %167 = vector.load %arg14[%c0_53, %c0_54] : memref<1x128xf32, #tpu.memory_space<vmem>>, vector<1x128xf32>
    %168 = vector.broadcast %167 : vector<1x128xf32> to vector<144x128xf32>
    %169 = arith.addf %166, %168 : vector<144x128xf32>
    %c0_55 = arith.constant 0 : index
    %c0_56 = arith.constant 0 : index
    %170 = vector.load %arg5[%c0_55, %c0_56] : memref<16x144xf32, #tpu.memory_space<vmem>>, vector<16x144xf32>
    %cst_57 = arith.constant dense<0.000000e+00> : vector<16x128xf32>
    %171 = tpu.matmul %170, %169, %cst_57 {dimension_numbers = #tpu.dot_dimension_numbers<[1], [0], [0], [1], [0, 0, 1, 1], [], []>} : vector<16x144xf32>, vector<144x128xf32>, vector<16x128xf32> -> vector<16x128xf32>
    %c0_58 = arith.constant 0 : index
    %c0_59 = arith.constant 0 : index
    %172 = vector.load %arg0[%c0_58, %c0_59] : memref<16x128xf32, #tpu.memory_space<vmem>>, vector<16x128xf32>
    %c0_60 = arith.constant 0 : index
    %c0_61 = arith.constant 0 : index
    %173 = vector.load %arg15[%c0_60, %c0_61] : memref<128x1xf32, #tpu.memory_space<vmem>>, vector<128x1xf32>
    %cst_62 = arith.constant dense<0.000000e+00> : vector<16x1xf32>
    %174 = tpu.matmul %172, %173, %cst_62 {dimension_numbers = #tpu.dot_dimension_numbers<[1], [0], [0], [1], [0, 0, 1, 1], [], []>} : vector<16x128xf32>, vector<128x1xf32>, vector<16x1xf32> -> vector<16x1xf32>
    %c0_63 = arith.constant 0 : index
    %c0_64 = arith.constant 0 : index
    %175 = vector.load %arg16[%c0_63, %c0_64] : memref<128x1xf32, #tpu.memory_space<vmem>>, vector<128x1xf32>
    %cst_65 = arith.constant dense<0.000000e+00> : vector<16x1xf32>
    %176 = tpu.matmul %171, %175, %cst_65 {dimension_numbers = #tpu.dot_dimension_numbers<[1], [0], [0], [1], [0, 0, 1, 1], [], []>} : vector<16x128xf32>, vector<128x1xf32>, vector<16x1xf32> -> vector<16x1xf32>
    %177 = arith.addf %174, %176 : vector<16x1xf32>
    %c0_66 = arith.constant 0 : index
    %c0_67 = arith.constant 0 : index
    %178 = vector.load %arg17[%c0_66, %c0_67] : memref<1x1xf32, #tpu.memory_space<vmem>>, vector<1x1xf32>
    %179 = vector.broadcast %178 : vector<1x1xf32> to vector<16x1xf32>
    %180 = arith.addf %177, %179 : vector<16x1xf32>
    %c0_68 = arith.constant 0 : index
    %c0_69 = arith.constant 0 : index
    %181 = vector.load %arg6[%c0_68, %c0_69] : memref<16x16xf32, #tpu.memory_space<vmem>>, vector<16x16xf32>
    %cst_70 = arith.constant dense<0.000000e+00> : vector<16x1xf32>
    %182 = tpu.matmul %181, %180, %cst_70 {dimension_numbers = #tpu.dot_dimension_numbers<[1], [0], [0], [1], [0, 0, 1, 1], [], []>} : vector<16x16xf32>, vector<16x1xf32>, vector<16x1xf32> -> vector<16x1xf32>
    %183 = vector.extract_strided_slice %182 {offsets = [0, 0], sizes = [8, 1], strides = [1, 1]} : vector<16x1xf32> to vector<8x1xf32>
    %184 = vector.extract_strided_slice %182 {offsets = [8, 0], sizes = [8, 1], strides = [1, 1]} : vector<16x1xf32> to vector<8x1xf32>
    %185 = arith.maximumf %183, %184 : vector<8x1xf32>
    %186 = arith.subf %183, %185 : vector<8x1xf32>
    %187 = math.exp %186 : vector<8x1xf32>
    %188 = arith.subf %184, %185 : vector<8x1xf32>
    %189 = math.exp %188 : vector<8x1xf32>
    %190 = arith.addf %187, %189 : vector<8x1xf32>
    %cst_71 = arith.constant 1.000000e+00 : f32
    %191 = vector.broadcast %cst_71 : f32 to vector<8x1xf32>
    %192 = arith.divf %191, %190 : vector<8x1xf32>
    %193 = arith.mulf %187, %192 : vector<8x1xf32>
    %194 = arith.mulf %189, %192 : vector<8x1xf32>
    %195 = tpu.concatenate %193, %194 in 1 : vector<8x1xf32>, vector<8x1xf32> -> vector<8x2xf32>
    %c0_72 = arith.constant 0 : index
    %c0_73 = arith.constant 0 : index
    %196 = vector.load %arg18[%c0_72, %c0_73] : memref<8x2xf32, #tpu.memory_space<vmem>>, vector<8x2xf32>
    tpu.vector_store %arg18[%c0_72, %c0_73], %195 {strides = array<i32>} : memref<8x2xf32, #tpu.memory_space<vmem>>, vector<8x2xf32>,
    %cst_74 = arith.constant 1.000000e+00 : f32
    %197 = vector.broadcast %cst_74 : f32 to vector<8x1xf32>
    %198 = arith.subf %197, %193 : vector<8x1xf32>
    %199 = vector.shape_cast %198 : vector<8x1xf32> to vector<1x8x1xf32>
    %cst_75 = arith.constant dense<0.000000e+00> : vector<1xf32>
    %200 = vector.multi_reduction <add>, %199, %cst_75 [1, 2] : vector<1x8x1xf32> to vector<1xf32>
    %201 = vector.shape_cast %200 : vector<1xf32> to vector<1x1x1xf32>
    %202 = vector.extract %201[0, 0, 0] : f32 from vector<1x1x1xf32>
    %203 = vector.broadcast %202 : f32 to vector<1x1xf32>
    %cst_76 = arith.constant 0.000000e+00 : f32
    %204 = vector.broadcast %cst_76 : f32 to vector<8x1xf32>
    %205 = arith.maximumf %194, %204 : vector<8x1xf32>
    %206 = vector.shape_cast %205 : vector<8x1xf32> to vector<1x8x1xf32>
    %cst_77 = arith.constant dense<0.000000e+00> : vector<1xf32>
    %207 = vector.multi_reduction <add>, %206, %cst_77 [1, 2] : vector<1x8x1xf32> to vector<1xf32>
    %208 = vector.shape_cast %207 : vector<1xf32> to vector<1x1x1xf32>
    %209 = vector.extract %208[0, 0, 0] : f32 from vector<1x1x1xf32>
    %210 = vector.broadcast %209 : f32 to vector<1x1xf32>
    %211 = arith.addf %203, %210 : vector<1x1xf32>
    %cst_78 = arith.constant 6.250000e-02 : f32
    %212 = vector.broadcast %cst_78 : f32 to vector<1x1xf32>
    %213 = arith.mulf %211, %212 : vector<1x1xf32>
    %c0_79 = arith.constant 0 : index
    %c0_80 = arith.constant 0 : index
    %214 = vector.load %arg19[%c0_79, %c0_80] : memref<1x1xf32, #tpu.memory_space<vmem>>, vector<1x1xf32>
    tpu.vector_store %arg19[%c0_79, %c0_80], %213 {strides = array<i32>} : memref<1x1xf32, #tpu.memory_space<vmem>>, vector<1x1xf32>,
    return
  }
}

</mosaic_0001>

<bundles_post_ra>
// kernel: my_model_forward.1
= control target key start
LH: loop header
LB: loop body
LE: loop exit
PB: predicated region body
PF: predicated region fallthrough
CT: control target
= control target key end

     0   :  { %s12405_s0 = inlined_call_operand.vmem [shape: f32[16,128], index: 0, kind: input, shape index: {}]   ;;  %s12406_s1 = inlined_call_operand.vmem [shape: f32[32,128], index: 1, kind: input, shape index: {}]   ;;  %s12407_s2 = inlined_call_operand.vmem [shape: f32[32,128], index: 2, kind: input, shape index: {}]   ;;  %s12408_s3 = inlined_call_operand.vmem [shape: f32[144,80], index: 3, kind: input, shape index: {}]   ;;  %s12409_s4 = inlined_call_operand.vmem [shape: f32[144,144], index: 4, kind: input, shape index: {}]   ;;  %s12410_s5 = inlined_call_operand.vmem [shape: f32[16,144], index: 5, kind: input, shape index: {}]   ;;  %s12411_s6 = inlined_call_operand.hbm [shape: f32[16,16], index: 6, kind: input, shape index: {}]   ;;  %s12412_s7 = inlined_call_operand.vmem [shape: f32[128,128], index: 7, kind: input, shape index: {}]   ;;  %s12413_s8 = inlined_call_operand.vmem [shape: f32[128,4], index: 8, kind: input, shape index: {}]   ;;  %s12414_s9 = inlined_call_operand.vmem [shape: f32[128,4], index: 9, kind: input, shape index: {}]   ;;  %s12415_s10 = inlined_call_operand.vmem [shape: f32[1,128], index: 10, kind: input, shape index: {}]   ;;  %s12416_s11 = inlined_call_operand.vmem [shape: f32[128,128], index: 11, kind: input, shape index: {}]   ;;  %s12417_s12 = inlined_call_operand.vmem [shape: f32[128,1], index: 12, kind: input, shape index: {}]   ;;  %s12418_s13 = inlined_call_operand.vmem [shape: f32[128,1], index: 13, kind: input, shape index: {}]   ;;  %s12419_s14 = inlined_call_operand.hbm [shape: f32[1,128], index: 14, kind: input, shape index: {}]   ;;  %s12420_s15 = inlined_call_operand.vmem [shape: f32[128,1], index: 15, kind: input, shape index: {}]   ;;  %s12421_s16 = inlined_call_operand.vmem [shape: f32[128,1], index: 16, kind: input, shape index: {}]   ;;  %s12422_s17 = inlined_call_operand.<no memory space> [shape: f32[1,1], index: 17, kind: input, shape index: {}]   ;;  %s12423_s18 = inlined_call_operand.vmem [shape: f32[8,2], index: 18, kind: output, shape index: {0}]   ;;  %s12424_s19 = inlined_call_operand.hbm [shape: f32[1,1], index: 19, kind: output, shape index: {1}]  }
   0x1   :  { %12740 = sst [smem:[#allocation151_spill]] %s12405_s0  ;;  %v25_v0 = vstv %s12422_s17 }
   0x2   :  { %12741 = sst [smem:[#allocation152_spill]] %s12406_s1  ;;  %26 = vst [vmem:[#allocation2] sm:$0x1] %v25_v0 }
   0x3   :  { %12742 = sst [smem:[#allocation153_spill]] %s12407_s2 }
   0x4   :  { %12743 = sst [smem:[#allocation154_spill]] %s12408_s3 }
   0x5   :  { %27 = vsyncpa [#allocation4], 0 }
   0x6   :  { %28 = vsyncpa [#allocation7], 0 }
   0x7   :  { %29 = vsyncpa [#allocation5], 0  ;;  %s7778_s20 = smov [#allocation3]  }
   0x8   :  { %s47_s21 = sshll.u32 %s7778_s20, 4  ;;  %s48_s21 = int_to_ptr.vmem [resolvable:$true] %s47_s21 }
   0x9   :  { %s7720_s1 = scalar_lea.vmem %s48_s21, 256  ;;  %p7725_p1 = scmp.lt.s32.totalorder %s48_s21, %s48_s21 }
   0xa   :  { %p7721_p0 = scmp.ne.s32.totalorder %s48_s21, %s7720_s1  ;;  %p7726_p2 = scmp.lt.s32.totalorder %s7720_s1, %s7720_s1 }
   0xc   :  { %p7727_p3 = por %p7726_p2, %p7725_p1 }
   0xe   :  { %p7728_p4 = pnand %p7727_p3, %p7721_p0 }
  0x10   :  { %7731 = shalt.err (!%p7728_p4)
}
  0x11   :  { %s7779_s22 = smov 128   ;;  %s7780_s2 = smov 8  }
  0x12   :  { %53 = dma.hbm_to_vmem [thread:$0]  %s12411_s6, 256, %s48_s21, [#allocation4], %s7779_s22, %s7779_s22, %s7780_s2  }
  0x13   :  { %s7781_s17 = smov [#allocation6]  }
  0x14   :  { %s74_s25 = sshll.u32 %s7781_s17, 4  ;;  %s75_s25 = int_to_ptr.vmem [resolvable:$true] %s74_s25 }
  0x15   :  { %s7740_s3 = scalar_lea.vmem %s75_s25, 16  ;;  %s7744_s26 = scalar_lea.vmem %s75_s25, 32 }
  0x16   :  { %p7741_p5 = scmp.ne.s32.totalorder %s75_s25, %s7740_s3  ;;  %p7745_p6 = scmp.lt.s32.totalorder %s75_s25, %s75_s25 }
  0x17   :  { %p7746_p7 = scmp.lt.s32.totalorder %s7744_s26, %s7740_s3 }
  0x19   :  { %p7747_p8 = por %p7746_p7, %p7745_p6 }
  0x1b   :  { %p7748_p9 = pnand %p7747_p8, %p7741_p5 }
  0x1d   :  { %7751 = shalt.err (!%p7748_p9)
}
  0x1e   :  { %77 = dma.hbm_to_vmem [thread:$0]  %s12419_s14, 16, %s75_s25, [#allocation7]  }
  0x1f   :  { %7772 = dma.done.wait [#allocation4], 256  }
  0x20   :  { %7773 = vsyncadd [#allocation4], 4294967040 }
  0x21   :  { %7774 = dma.done.wait [#allocation7], 16  }
  0x22   :  { %7775 = vsyncadd [#allocation7], 4294967280  ;;  %v151_v1 = vld [vmem:[%s12412_s7 + $0x78] sm:$0xff]  ;;  %v150_v2 = vld [vmem:[%s12412_s7 + $0x70] sm:$0xff]  ;;  %s12744_s23 = sld [smem:[#allocation151_spill]]  ;;  %vm285_vm0 = vcmask 654336  }
  0x23   :  { %6572 = vmatprep.subr.mxu0 %v151_v1  ;;  %v149_v3 = vld [vmem:[%s12412_s7 + $0x68] sm:$0xff]  ;;  %v148_v4 = vld [vmem:[%s12412_s7 + $0x60] sm:$0xff]  ;;  %v147_v6 = vld [vmem:[%s12412_s7 + $0x58] sm:$0xff]  ;;  %s12745_s20 = sld [smem:[#allocation152_spill]]  ;;  %s7789_s28 = smov 125   ;;  %vm1145_vm9 = vcmask 130048  }
  0x24   :  { %6573 = vmatpush3.msra.mxu0 %v151_v1  ;;  %v146_v7 = vld [vmem:[%s12412_s7 + $0x50] sm:$0xff]  ;;  %v145_v8 = vld [vmem:[%s12412_s7 + $0x48] sm:$0xff]  ;;  %v144_v9 = vld [vmem:[%s12412_s7 + $0x40] sm:$0xff]  ;;  %s12746_s25 = sld [smem:[#allocation153_spill]]  ;;  %vm6137_vm10 = vcmask 7168   ;;  %vm6139_vm11 = vcmask 15360  }
  0x25   :  { %6574 = vmatprep.subr.mxu0 %v150_v2  ;;  %v143_v10 = vld [vmem:[%s12412_s7 + $0x38] sm:$0xff]  ;;  %v142_v11 = vld [vmem:[%s12412_s7 + $0x30] sm:$0xff]  ;;  %v141_v12 = vld [vmem:[%s12412_s7 + $0x28] sm:$0xff]  ;;  %vm6167_vm12 = vcmask 0  }
  0x26   :  { %6575 = vmatpush3.msra.mxu0 %v150_v2  ;;  %v140_v13 = vld [vmem:[%s12412_s7 + $0x20] sm:$0xff]  ;;  %v139_v14 = vld [vmem:[%s12412_s7 + $0x18] sm:$0xff]  ;;  %v138_v15 = vld [vmem:[%s12412_s7 + $0x10] sm:$0xff] }
  0x27   :  { %6576 = vmatprep.subr.mxu0 %v149_v3  ;;  %v137_v16 = vld [vmem:[%s12412_s7 + $0x8] sm:$0xff]  ;;  %v136_v17 = vld [vmem:[%s12412_s7] sm:$0xff]  ;;  %v681_v28 = vld [vmem:[%s12413_s8 + $0x78] sm:$0xff] }
  0x28   :  { %v126_v5 = vld [vmem:[%s12744_s23] sm:$0xff]  ;;  %6577 = vmatpush3.msra.mxu0 %v149_v3  ;;  %v127_v18 = vld [vmem:[%s12744_s23 + $0x8] sm:$0xff]  ;;  %v680_v29 = vld [vmem:[%s12413_s8 + $0x70] sm:$0xff] }
  0x29   :  { %6604 = vmatprep.mubr.f32.mxu0 %v126_v5  ;;  %6578 = vmatprep.subr.mxu0 %v148_v4  ;;  %v128_v19 = vld [vmem:[%s12745_s20] sm:$0xff]  ;;  %v129_v20 = vld [vmem:[%s12745_s20 + $0x8] sm:$0xff]  ;;  %v130_v21 = vld [vmem:[%s12745_s20 + $0x10] sm:$0xff] }
  0x2a   :  { %6579 = vmatpush3.msra.mxu0 %v148_v4  ;;  %v131_v22 = vld [vmem:[%s12745_s20 + $0x18] sm:$0xff]  ;;  %v132_v23 = vld [vmem:[%s12746_s25] sm:$0xff]  ;;  %v133_v24 = vld [vmem:[%s12746_s25 + $0x8] sm:$0xff]  ;;  %s12747_s20 = sld [smem:[#allocation154_spill]] }
  0x2b   :  { %6580 = vmatprep.subr.mxu0 %v147_v6  ;;  %v134_v25 = vld [vmem:[%s12746_s25 + $0x10] sm:$0xff]  ;;  %v135_v26 = vld [vmem:[%s12746_s25 + $0x18] sm:$0xff]  ;;  %v679_v30 = vld [vmem:[%s12413_s8 + $0x68] sm:$0xff] }
  0x2c   :  { %6581 = vmatpush3.msra.mxu0 %v147_v6  ;;  %v678_v31 = vld [vmem:[%s12413_s8 + $0x60] sm:$0xff]  ;;  %v677_v32 = vld [vmem:[%s12413_s8 + $0x58] sm:$0xff]  ;;  %v676_v33 = vld [vmem:[%s12413_s8 + $0x50] sm:$0xff] }
  0x2d   :  { %6582 = vmatprep.subr.mxu0 %v146_v7  ;;  %v675_v34 = vld [vmem:[%s12413_s8 + $0x48] sm:$0xff]  ;;  %v674_v35 = vld [vmem:[%s12413_s8 + $0x40] sm:$0xff]  ;;  %v673_v36 = vld [vmem:[%s12413_s8 + $0x38] sm:$0xff] }
  0x2e   :  { %6583 = vmatpush3.msra.mxu0 %v146_v7  ;;  %v672_v37 = vld [vmem:[%s12413_s8 + $0x30] sm:$0xff]  ;;  %v671_v38 = vld [vmem:[%s12413_s8 + $0x28] sm:$0xff]  ;;  %v670_v39 = vld [vmem:[%s12413_s8 + $0x20] sm:$0xff] }
  0x2f   :  { %6584 = vmatprep.subr.mxu0 %v145_v8  ;;  %v669_v40 = vld [vmem:[%s12413_s8 + $0x18] sm:$0xff]  ;;  %v668_v41 = vld [vmem:[%s12413_s8 + $0x10] sm:$0xff]  ;;  %v508_v57 = vld [vmem:[%s12414_s9 + $0x68] sm:$0xff] }
  0x30   :  { %6585 = vmatpush3.msra.mxu0 %v145_v8  ;;  %v267_v27 = vld [vmem:[%s12747_s20] sm:$0xff]  ;;  %v268_v52 = vld [vmem:[%s12747_s20 + $0x8] sm:$0xff]  ;;  %v510_v53 = vld [vmem:[%s12414_s9 + $0x78] sm:$0xff] }
  0x31   :  { %6586 = vmatprep.subr.mxu0 %v144_v9  ;;  %6639 = vmatprep.mubr.msk.f32.mxu1 %vm285_vm0, %v267_v27  ;;  %v269_v54 = vld [vmem:[%s12747_s20 + $0x10] sm:$0xff]  ;;  %v270_v56 = vld [vmem:[%s12747_s20 + $0x18] sm:$0xff]  ;;  %v271_v58 = vld [vmem:[%s12747_s20 + $0x20] sm:$0xff] }
  0x32   :  { %6587 = vmatpush3.msra.mxu0 %v144_v9  ;;  %v509_v55 = vld [vmem:[%s12414_s9 + $0x70] sm:$0xff]  ;;  %v507_v59 = vld [vmem:[%s12414_s9 + $0x60] sm:$0xff]  ;;  %v272_v60 = vld [vmem:[%s12747_s20 + $0x28] sm:$0xff] }
  0x33   :  { %6588 = vmatprep.subr.mxu0 %v143_v10  ;;  %v506_v61 = vld [vmem:[%s12414_s9 + $0x58] sm:$0xff]  ;;  %v273_v62 = vld [vmem:[%s12747_s20 + $0x30] sm:$0xff]  ;;  %v504_v1 = vld [vmem:[%s12414_s9 + $0x48] sm:$0xff] }
  0x34   :  { %6589 = vmatpush3.msra.mxu0 %v143_v10  ;;  %v505_v63 = vld [vmem:[%s12414_s9 + $0x50] sm:$0xff]  ;;  %v274_v0 = vld [vmem:[%s12747_s20 + $0x38] sm:$0xff]  ;;  %v275_v2 = vld [vmem:[%s12747_s20 + $0x40] sm:$0xff] }
  0x35   :  { %6590 = vmatprep.subr.mxu0 %v142_v11  ;;  %v503_v3 = vld [vmem:[%s12414_s9 + $0x40] sm:$0xff]  ;;  %v276_v4 = vld [vmem:[%s12747_s20 + $0x48] sm:$0xff]  ;;  %v502_v5 = vld [vmem:[%s12414_s9 + $0x38] sm:$0xff] }
  0x36   :  { %6591 = vmatpush3.msra.mxu0 %v142_v11  ;;  %v277_v6 = vld [vmem:[%s12747_s20 + $0x50] sm:$0xff]  ;;  %v278_v8 = vld [vmem:[%s12747_s20 + $0x58] sm:$0xff]  ;;  %v500_v9 = vld [vmem:[%s12414_s9 + $0x28] sm:$0xff] }
  0x37   :  { %6592 = vmatprep.subr.mxu0 %v141_v12  ;;  %v501_v7 = vld [vmem:[%s12414_s9 + $0x30] sm:$0xff]  ;;  %v279_v10 = vld [vmem:[%s12747_s20 + $0x60] sm:$0xff] }
  0x38   :  { %6593 = vmatpush3.msra.mxu0 %v141_v12  ;;  %v499_v11 = vld [vmem:[%s12414_s9 + $0x20] sm:$0xff]  ;;  %v280_v12 = vld [vmem:[%s12747_s20 + $0x68] sm:$0xff] }
  0x39   :  { %6594 = vmatprep.subr.mxu0 %v140_v13 }
  0x3a   :  { %6595 = vmatpush3.msra.mxu0 %v140_v13  ;;  %v498_v13 = vld [vmem:[%s12414_s9 + $0x18] sm:$0xff] }
  0x3b   :  { %6596 = vmatprep.subr.mxu0 %v139_v14 }
  0x3c   :  { %6597 = vmatpush3.msra.mxu0 %v139_v14  ;;  %v281_v14 = vld [vmem:[%s12747_s20 + $0x70] sm:$0xff] }
  0x3d   :  { %6598 = vmatprep.subr.mxu0 %v138_v15 }
  0x3e   :  { %6599 = vmatpush3.msra.mxu0 %v138_v15  ;;  %v497_v15 = vld [vmem:[%s12414_s9 + $0x10] sm:$0xff] }
  0x3f   :  { %6600 = vmatprep.subr.mxu0 %v137_v16 }
  0x40   :  { %6601 = vmatpush3.msra.mxu0 %v137_v16  ;;  %v282_v16 = vld [vmem:[%s12747_s20 + $0x78] sm:$0xff] }
  0x41   :  { %6602 = vmatprep.subr.mxu0 %v136_v17 }
  0x42   :  { %6603 = vmatpush3.msra.mxu0 %v136_v17  ;;  %v283_v17 = vld [vmem:[%s12747_s20 + $0x80] sm:$0xff] }
  0x43   :  { %6605 = vmatmul.mubr.f32.vlgmr.msra.gmra.mxu0 %v127_v18  ;;  %6725 = vmatprep.subr.mxu0 %v681_v28  ;;  %v284_v18 = vld [vmem:[%s12747_s20 + $0x88] sm:$0xff] }
  0x44   :  { %6607 = vmatprep.mubr.f32.mxu0 %v128_v19  ;;  %6726 = vmatpush3.msra.mxu0 %v681_v28  ;;  %v496_v19 = vld [vmem:[%s12414_s9 + $0x8] sm:$0xff] }
  0x45   :  { %6727 = vmatprep.subr.mxu0 %v680_v29 }
  0x46   :  { %6728 = vmatpush3.msra.mxu0 %v680_v29 }
  0x47   :  { %6608 = vmatmul.mubr.f32.gmra.mxu0 %v129_v20  ;;  %6729 = vmatprep.subr.mxu0 %v679_v30  ;;  %v667_v20 = vld [vmem:[%s12413_s8 + $0x8] sm:$0xff] }
  0x48   :  { %6610 = vmatprep.mubr.f32.mxu0 %v130_v21  ;;  %6730 = vmatpush3.msra.mxu0 %v679_v30  ;;  %v495_v21 = vld [vmem:[%s12414_s9] sm:$0xff]  ;;  %s7787_s9 = smov 126  }
  0x49   :  { %6731 = vmatprep.subr.mxu0 %v678_v31 }
  0x4a   :  { %6732 = vmatpush3.msra.mxu0 %v678_v31 }
  0x4b   :  { %6611 = vmatmul.mubr.f32.gmra.mxu0 %v131_v22  ;;  %6733 = vmatprep.subr.mxu0 %v677_v32  ;;  %v666_v22 = vld [vmem:[%s12413_s8] sm:$0xff]  ;;  %s7785_s8 = smov 127  }
  0x4c   :  { %6613 = vmatprep.mubr.f32.mxu0 %v132_v23  ;;  %6734 = vmatpush3.msra.mxu0 %v677_v32  ;;  %v12429_v23 = vmov 0.0  }
  0x4d   :  { %6735 = vmatprep.subr.mxu0 %v676_v33 }
  0x4e   :  { %6736 = vmatpush3.msra.mxu0 %v676_v33 }
  0x4f   :  { %6614 = vmatmul.mubr.f32.gmra.mxu0 %v133_v24  ;;  %6737 = vmatprep.subr.mxu0 %v675_v34  ;;  %v12440_v24 = vmov 1  }
  0x50   :  { %6616 = vmatprep.mubr.f32.mxu0 %v134_v25  ;;  %6738 = vmatpush3.msra.mxu0 %v675_v34  ;;  %v12433_v25 = vlaneseq }
  0x51   :  { %6739 = vmatprep.subr.mxu0 %v674_v35  ;;  %7056 = vset.pattern.permute.xlu1 %v12440_v24 }
  0x52   :  { %6740 = vmatpush3.msra.mxu0 %v674_v35 }
  0x53   :  { %6617 = vmatmul.mubr.f32.gmra.mxu0 %v135_v26  ;;  %6741 = vmatprep.subr.mxu0 %v673_v36  ;;  %v8151_v26 = vand.u32 127, %v12433_v25 }
  0x54   :  { %6742 = vmatpush3.msra.mxu0 %v673_v36 }
  0x55   :  { %6743 = vmatprep.subr.mxu0 %v672_v37  ;;  %vm3230_vm1 = vcmp.ge.s32.totalorder %v8151_v26, 64  ;;  %vm3231_vm2 = vcmp.lt.s32.totalorder %v8151_v26, 96  ;;  %vm4128_vm4 = vcmp.ge.s32.totalorder %v8151_v26, 96  ;;  %vm2141_vm5 = vcmp.ge.s32.totalorder %v8151_v26, 32 }
  0x56   :  { %6744 = vmatpush3.msra.mxu0 %v672_v37  ;;  %vm3232_vm3 = vmand %vm3230_vm1, %vm3231_vm2  ;;  %v8160_v28 = vsel %vm4128_vm4, 1.0, %v12429_v23  ;;  %vm2142_vm6 = vcmp.lt.s32.totalorder %v8151_v26, 64  ;;  %vm1453_vm8 = vcmp.lt.s32.totalorder %v8151_v26, 32 }
  0x57   :  { %6745 = vmatprep.subr.mxu0 %v671_v38  ;;  %v8157_v27 = vsel %vm3232_vm3, 1.0, %v12429_v23  ;;  %12749 = vst [vmem:[#allocation13_spill] sm:$0xff] %v8160_v28  ;;  %vm2143_vm7 = vmand %vm2141_vm5, %vm2142_vm6 }
  0x58   :  { %6746 = vmatpush3.msra.mxu0 %v671_v38  ;;  %12748 = vst [vmem:[#allocation12_spill] sm:$0xff] %v8157_v27 }
  0x59   :  { %6747 = vmatprep.subr.mxu0 %v670_v39 }
  0x5a   :  { %6748 = vmatpush3.msra.mxu0 %v670_v39 }
  0x5b   :  { %6749 = vmatprep.subr.mxu0 %v669_v40 }
  0x5c   :  { %6750 = vmatpush3.msra.mxu0 %v669_v40 }
  0x5d   :  { %6751 = vmatprep.subr.mxu0 %v668_v41 }
  0x5e   :  { %6752 = vmatpush3.msra.mxu0 %v668_v41 }
  0x5f   :  { %6753 = vmatprep.subr.mxu0 %v667_v20 }
  0x60   :  { %6754 = vmatpush3.msra.mxu0 %v667_v20 }
  0x61   :  { %6755 = vmatprep.subr.mxu0 %v666_v22 }
  0x62   :  { %6756 = vmatpush3.msra.mxu0 %v666_v22 }
  0x63   :  { %2427 = vmatprep.subr.mxu0 %v12429_v23 }
 0x103   :  { %v6606_v42 = vpop.f32.mrf.mxu0 }
 0x105   :  { %v218_v43 = vpop.f32.mrf.mxu0 }
 0x107   :  { %v6609_v44 = vpop.f32.mrf.mxu0 }
 0x109   :  { %v228_v45 = vpop.f32.mrf.mxu0 }
 0x10b   :  { %v6612_v46 = vpop.f32.mrf.mxu0 }
 0x10d   :  { %v238_v47 = vpop.f32.mrf.mxu0 }
 0x10f   :  { %v6615_v48 = vpop.f32.mrf.mxu0 }
 0x111   :  { %v248_v49 = vpop.f32.mrf.mxu0 }
 0x113   :  { %v6618_v50 = vpop.f32.mrf.mxu0 }
 0x114   :  { %6619 = vmatprep.subr.mxu1 %v6618_v50 }
 0x115   :  { %v258_v51 = vpop.f32.mrf.mxu0  ;;  %6620 = vmatpush3.msra.mxu1 %v6618_v50 }
 0x116   :  { %6621 = vmatprep.subr.mxu1 %v258_v51 }
 0x117   :  { %6622 = vmatpush3.msra.mxu1 %v258_v51 }
 0x118   :  { %6623 = vmatprep.subr.mxu1 %v6615_v48 }
 0x119   :  { %6624 = vmatpush3.msra.mxu1 %v6615_v48 }
 0x11a   :  { %6625 = vmatprep.subr.mxu1 %v248_v49 }
 0x11b   :  { %6626 = vmatpush3.msra.mxu1 %v248_v49 }
 0x11c   :  { %6627 = vmatprep.subr.mxu1 %v6612_v46 }
 0x11d   :  { %6628 = vmatpush3.msra.mxu1 %v6612_v46 }
 0x11e   :  { %6629 = vmatprep.subr.mxu1 %v238_v47 }
 0x11f   :  { %6630 = vmatpush3.msra.mxu1 %v238_v47 }
 0x120   :  { %6631 = vmatprep.subr.mxu1 %v6609_v44 }
 0x121   :  { %6632 = vmatpush3.msra.mxu1 %v6609_v44 }
 0x122   :  { %6633 = vmatprep.subr.mxu1 %v228_v45 }
 0x123   :  { %6634 = vmatpush3.msra.mxu1 %v228_v45 }
 0x124   :  { %6635 = vmatprep.subr.mxu1 %v6606_v42 }
 0x125   :  { %6636 = vmatpush3.msra.mxu1 %v6606_v42 }
 0x126   :  { %6637 = vmatprep.subr.mxu1 %v218_v43 }
 0x127   :  { %6638 = vmatpush3.msra.mxu1 %v218_v43 }
 0x128   :  { %6640 = vmatmul.mubr.msk.f32.vlgmr.msra.gmra.mxu1 %vm285_vm0, %v268_v52  ;;  %6666 = vmatprep.subr.mxu1 %v510_v53 }
 0x129   :  { %6642 = vmatprep.mubr.msk.f32.mxu1 %vm285_vm0, %v269_v54  ;;  %6667 = vmatpush3.msra.mxu1 %v510_v53  ;;  %v8256_v54 = vsel %vm2143_vm7, 1.0, %v12429_v23 }
 0x12a   :  { %6668 = vmatprep.subr.mxu1 %v509_v55 }
 0x12b   :  { %6669 = vmatpush3.msra.mxu1 %v509_v55  ;;  %v8259_v55 = vsel %vm1453_vm8, 1.0, %v12429_v23 }
 0x12c   :  { %6643 = vmatmul.mubr.msk.f32.gmra.mxu1 %vm285_vm0, %v270_v56  ;;  %6670 = vmatprep.subr.mxu1 %v508_v57 }
 0x12d   :  { %6645 = vmatprep.mubr.msk.f32.mxu1 %vm285_vm0, %v271_v58  ;;  %6671 = vmatpush3.msra.mxu1 %v508_v57 }
 0x12e   :  { %6672 = vmatprep.subr.mxu1 %v507_v59 }
 0x12f   :  { %6673 = vmatpush3.msra.mxu1 %v507_v59 }
 0x130   :  { %6646 = vmatmul.mubr.msk.f32.gmra.mxu1 %vm285_vm0, %v272_v60  ;;  %6674 = vmatprep.subr.mxu1 %v506_v61 }
 0x131   :  { %6648 = vmatprep.mubr.msk.f32.mxu1 %vm285_vm0, %v273_v62  ;;  %6675 = vmatpush3.msra.mxu1 %v506_v61 }
 0x132   :  { %6676 = vmatprep.subr.mxu1 %v505_v63 }
 0x133   :  { %6677 = vmatpush3.msra.mxu1 %v505_v63 }
 0x134   :  { %6649 = vmatmul.mubr.msk.f32.gmra.mxu1 %vm285_vm0, %v274_v0  ;;  %6678 = vmatprep.subr.mxu1 %v504_v1 }
 0x135   :  { %6651 = vmatprep.mubr.msk.f32.mxu1 %vm285_vm0, %v275_v2  ;;  %6679 = vmatpush3.msra.mxu1 %v504_v1 }
 0x136   :  { %6680 = vmatprep.subr.mxu1 %v503_v3 }
 0x137   :  { %6681 = vmatpush3.msra.mxu1 %v503_v3 }
 0x138   :  { %6652 = vmatmul.mubr.msk.f32.gmra.mxu1 %vm285_vm0, %v276_v4  ;;  %6682 = vmatprep.subr.mxu1 %v502_v5 }
 0x139   :  { %6654 = vmatprep.mubr.msk.f32.mxu1 %vm285_vm0, %v277_v6  ;;  %6683 = vmatpush3.msra.mxu1 %v502_v5 }
 0x13a   :  { %6684 = vmatprep.subr.mxu1 %v501_v7 }
 0x13b   :  { %6685 = vmatpush3.msra.mxu1 %v501_v7 }
 0x13c   :  { %6655 = vmatmul.mubr.msk.f32.gmra.mxu1 %vm285_vm0, %v278_v8  ;;  %6686 = vmatprep.subr.mxu1 %v500_v9 }
 0x13d   :  { %6657 = vmatprep.mubr.msk.f32.mxu1 %vm285_vm0, %v279_v10  ;;  %6687 = vmatpush3.msra.mxu1 %v500_v9 }
 0x13e   :  { %6688 = vmatprep.subr.mxu1 %v499_v11 }
 0x13f   :  { %6689 = vmatpush3.msra.mxu1 %v499_v11 }
 0x140   :  { %6658 = vmatmul.mubr.msk.f32.gmra.mxu1 %vm285_vm0, %v280_v12  ;;  %6690 = vmatprep.subr.mxu1 %v498_v13 }
 0x141   :  { %6660 = vmatprep.mubr.msk.f32.mxu1 %vm285_vm0, %v281_v14  ;;  %6691 = vmatpush3.msra.mxu1 %v498_v13 }
 0x142   :  { %6692 = vmatprep.subr.mxu1 %v497_v15 }
 0x143   :  { %6693 = vmatpush3.msra.mxu1 %v497_v15 }
 0x144   :  { %6661 = vmatmul.mubr.msk.f32.gmra.mxu1 %vm285_vm0, %v282_v16  ;;  %6694 = vmatprep.subr.mxu1 %v496_v19 }
 0x145   :  { %6663 = vmatprep.mubr.msk.f32.mxu1 %vm285_vm0, %v283_v17  ;;  %6695 = vmatpush3.msra.mxu1 %v496_v19 }
 0x146   :  { %6696 = vmatprep.subr.mxu1 %v495_v21 }
 0x147   :  { %6697 = vmatpush3.msra.mxu1 %v495_v21 }
 0x148   :  { %6664 = vmatmul.mubr.msk.f32.gmra.mxu1 %vm285_vm0, %v284_v18  ;;  %2218 = vmatprep.subr.mxu1 %v12429_v23 }
 0x1e8   :  { %v8162_v29 = vpop.f32.mrf.mxu1 }
 0x1e9   :  { %v8166_v30 = vmul.f32 %v8162_v29, %v8157_v27  ;;  %v8170_v31 = vmul.f32 %v8162_v29, %v8160_v28 }
 0x1ea   :  { %v8172_v32 = vpop.f32.mrf.mxu1 }
 0x1eb   :  { %12750 = vst [vmem:[#allocation14_spill] sm:$0xff] %v8166_v30  ;;  %12751 = vst [vmem:[#allocation15_spill] sm:$0xff] %v8170_v31  ;;  %6698 = vmatprep.mubr.f32.mxu1 %v8172_v32  ;;  %6757 = vmatprep.mubr.f32.mxu0 %v8172_v32 }
 0x1ec   :  { %12752 = vst [vmem:[#allocation16_spill] sm:$0xff] %v8172_v32  ;;  %v8176_v33 = vpop.f32.mrf.mxu1  ;;  %6699 = vmatmul.mubr.f32.vlgmr.msra.gmra.mxu1 %v8162_v29  ;;  %6758 = vmatmul.mubr.f32.vlgmr.msra.gmra.mxu0 %v8162_v29 }
 0x1ed   :  { %v8182_v34 = vmul.f32 %v8176_v33, %v8157_v27  ;;  %v8186_v35 = vmul.f32 %v8176_v33, %v8160_v28  ;;  %v2149_v21 = vmul.f32 %v8176_v33, %v8256_v54  ;;  %v1460_v22 = vmul.f32 %v8176_v33, %v8259_v55 }
 0x1ee   :  { %v8188_v36 = vpop.f32.mrf.mxu1 }
 0x1ef   :  { %12753 = vst [vmem:[#allocation17_spill] sm:$0xff] %v8182_v34  ;;  %12754 = vst [vmem:[#allocation18_spill] sm:$0xff] %v8186_v35  ;;  %6701 = vmatprep.mubr.f32.mxu1 %v8188_v36  ;;  %6760 = vmatprep.mubr.f32.mxu0 %v8188_v36  ;;  %v12794_v35 = vmov 0  }
 0x1f0   :  { %12755 = vst [vmem:[#allocation19_spill] sm:$0xff] %v8188_v36  ;;  %v8192_v37 = vpop.f32.mrf.mxu1  ;;  %6702 = vmatmul.mubr.f32.gmra.mxu1 %v8176_v33  ;;  %6761 = vmatmul.mubr.f32.gmra.mxu0 %v8176_v33  ;;  %v1459_v33 = vmul.f32 %v8259_v55, %v8188_v36 }
 0x1f1   :  { %v8198_v38 = vmul.f32 %v8192_v37, %v8157_v27  ;;  %v8202_v39 = vmul.f32 %v8192_v37, %v8160_v28  ;;  %v2151_v17 = vmul.f32 %v8192_v37, %v8256_v54  ;;  %v1462_v18 = vmul.f32 %v8192_v37, %v8259_v55 }
 0x1f2   :  { %v8204_v40 = vpop.f32.mrf.mxu1 }
 0x1f3   :  { %12756 = vst [vmem:[#allocation20_spill] sm:$0xff] %v8198_v38  ;;  %12757 = vst [vmem:[#allocation21_spill] sm:$0xff] %v8202_v39  ;;  %6704 = vmatprep.mubr.f32.mxu1 %v8204_v40  ;;  %6763 = vmatprep.mubr.f32.mxu0 %v8204_v40  ;;  %v2150_v19 = vmul.f32 %v8256_v54, %v8204_v40  ;;  %v1461_v20 = vmul.f32 %v8259_v55, %v8204_v40 }
 0x1f4   :  { %12758 = vst [vmem:[#allocation22_spill] sm:$0xff] %v8204_v40  ;;  %v8208_v41 = vpop.f32.mrf.mxu1  ;;  %6705 = vmatmul.mubr.f32.gmra.mxu1 %v8192_v37  ;;  %6764 = vmatmul.mubr.f32.gmra.mxu0 %v8192_v37 }
 0x1f5   :  { %v8214_v42 = vmul.f32 %v8208_v41, %v8157_v27  ;;  %v8218_v43 = vmul.f32 %v8208_v41, %v8160_v28  ;;  %v2153_v13 = vmul.f32 %v8208_v41, %v8256_v54  ;;  %v1464_v14 = vmul.f32 %v8208_v41, %v8259_v55 }
 0x1f6   :  { %v8220_v44 = vpop.f32.mrf.mxu1 }
 0x1f7   :  { %12759 = vst [vmem:[#allocation23_spill] sm:$0xff] %v8214_v42  ;;  %12760 = vst [vmem:[#allocation24_spill] sm:$0xff] %v8218_v43  ;;  %6707 = vmatprep.mubr.f32.mxu1 %v8220_v44  ;;  %6766 = vmatprep.mubr.f32.mxu0 %v8220_v44  ;;  %v2152_v15 = vmul.f32 %v8256_v54, %v8220_v44  ;;  %v1463_v16 = vmul.f32 %v8259_v55, %v8220_v44 }
 0x1f8   :  { %12761 = vst [vmem:[#allocation25_spill] sm:$0xff] %v8220_v44  ;;  %v8224_v45 = vpop.f32.mrf.mxu1  ;;  %6708 = vmatmul.mubr.f32.gmra.mxu1 %v8208_v41  ;;  %6767 = vmatmul.mubr.f32.gmra.mxu0 %v8208_v41  ;;  %v2148_v41 = vmul.f32 %v8256_v54, %v8188_v36  ;;  %v12796_v36 = vmov 1  }
 0x1f9   :  { %v8230_v46 = vmul.f32 %v8224_v45, %v8157_v27  ;;  %v8234_v47 = vmul.f32 %v8224_v45, %v8160_v28  ;;  %v2155_v7 = vmul.f32 %v8224_v45, %v8256_v54  ;;  %v1466_v8 = vmul.f32 %v8224_v45, %v8259_v55 }
 0x1fa   :  { %v8236_v48 = vpop.f32.mrf.mxu1 }
 0x1fb   :  { %12762 = vst [vmem:[#allocation26_spill] sm:$0xff] %v8230_v46  ;;  %12763 = vst [vmem:[#allocation27_spill] sm:$0xff] %v8234_v47  ;;  %6710 = vmatprep.mubr.f32.mxu1 %v8236_v48  ;;  %6769 = vmatprep.mubr.f32.mxu0 %v8236_v48  ;;  %v2154_v9 = vmul.f32 %v8256_v54, %v8236_v48  ;;  %v1465_v10 = vmul.f32 %v8259_v55, %v8236_v48 }
 0x1fc   :  { %12764 = vst [vmem:[#allocation28_spill] sm:$0xff] %v8236_v48  ;;  %v6656_v49 = vpop.f32.mrf.mxu1  ;;  %6711 = vmatmul.mubr.f32.gmra.mxu1 %v8224_v45  ;;  %6770 = vmatmul.mubr.f32.gmra.mxu0 %v8224_v45  ;;  %v2147_v45 = vmul.f32 %v8162_v29, %v8256_v54 }
 0x1fd   :  { %v8262_v56 = vmul.f32 %v6656_v49, %v8157_v27  ;;  %v8265_v57 = vmul.f32 %v6656_v49, %v8160_v28  ;;  %v2157_v3 = vmul.f32 %v6656_v49, %v8256_v54  ;;  %v1468_v4 = vmul.f32 %v6656_v49, %v8259_v55 }
 0x1fe   :  { %v8242_v50 = vpop.f32.mrf.mxu1 }
 0x1ff   :  { %12765 = vst [vmem:[#allocation29_spill] sm:$0xff] %v8242_v50  ;;  %6713 = vmatprep.mubr.f32.mxu1 %v8242_v50  ;;  %6772 = vmatprep.mubr.f32.mxu0 %v8242_v50  ;;  %12767 = vst [vmem:[#allocation31_spill] sm:$0xff] %v8262_v56  ;;  %v2156_v5 = vmul.f32 %v8256_v54, %v8242_v50  ;;  %v1467_v6 = vmul.f32 %v8259_v55, %v8242_v50 }
 0x200   :  { %v6659_v51 = vpop.f32.mrf.mxu1  ;;  %6714 = vmatmul.mubr.f32.gmra.mxu1 %v6656_v49  ;;  %6773 = vmatmul.mubr.f32.gmra.mxu0 %v6656_v49  ;;  %12768 = vst [vmem:[#allocation32_spill] sm:$0xff] %v8265_v57  ;;  %v1458_v49 = vmul.f32 %v8162_v29, %v8259_v55 }
 0x201   :  { %v2159_v61 = vmul.f32 %v6659_v51, %v8256_v54  ;;  %v1470_v0 = vmul.f32 %v6659_v51, %v8259_v55  ;;  %v8308_v11 = vmul.f32 %v6659_v51, %v8157_v27  ;;  %v8311_v12 = vmul.f32 %v6659_v51, %v8160_v28 }
 0x202   :  { %v8249_v52 = vpop.f32.mrf.mxu1 }
 0x203   :  { %12766 = vst [vmem:[#allocation30_spill] sm:$0xff] %v8249_v52  ;;  %6716 = vmatprep.mubr.f32.mxu1 %v8249_v52  ;;  %6775 = vmatprep.mubr.f32.mxu0 %v8249_v52  ;;  %v2158_v1 = vmul.f32 %v8256_v54, %v8249_v52  ;;  %v1469_v2 = vmul.f32 %v8259_v55, %v8249_v52  ;;  %12770 = vst [vmem:[#allocation34_spill] sm:$0xff] %v8308_v11 }
 0x204   :  { %v8253_v53 = vpop.f32.mrf.mxu1  ;;  %6717 = vmatmul.mubr.f32.gmra.mxu1 %v6659_v51  ;;  %6776 = vmatmul.mubr.f32.gmra.mxu0 %v6659_v51  ;;  %12771 = vst [vmem:[#allocation35_spill] sm:$0xff] %v8311_v12 }
 0x205   :  { %v2161_v58 = vmul.f32 %v8253_v53, %v8256_v54  ;;  %v1472_v59 = vmul.f32 %v8253_v53, %v8259_v55  ;;  %v8347_v26 = vmul.f32 %v8253_v53, %v8157_v27  ;;  %v8351_v37 = vmul.f32 %v8253_v53, %v8160_v28 }
 0x206   :  { %v8271_v60 = vpop.f32.mrf.mxu1 }
 0x207   :  { %12769 = vst [vmem:[#allocation33_spill] sm:$0xff] %v8271_v60  ;;  %2219 = vmatpush1.msra.mxu1 %v2161_v58  ;;  %2428 = vmatpush1.msra.mxu0 %v1472_v59  ;;  %v2160_v62 = vmul.f32 %v8256_v54, %v8271_v60  ;;  %v1471_v63 = vmul.f32 %v8259_v55, %v8271_v60  ;;  %12772 = vst [vmem:[#allocation36_spill] sm:$0xff] %v8347_v26 }
 0x208   :  { %2220 = vmatprep.subr.mxu1 %v12429_v23  ;;  %2429 = vmatprep.subr.mxu0 %v12429_v23  ;;  %12773 = vst [vmem:[#allocation37_spill] sm:$0xff] %v8351_v37  ;;  %v6665_v51 = vpop.f32.mrf.mxu1  ;;  %v2146_v58 = vmul.f32 %v8256_v54, %v8172_v32  ;;  %v1457_v59 = vmul.f32 %v8259_v55, %v8172_v32 }
 0x209   :  { %2221 = vmatpush1.msra.mxu1 %v2160_v62  ;;  %2430 = vmatpush1.msra.mxu0 %v1471_v63  ;;  %v1474_v62 = vmul.f32 %v6665_v51, %v8259_v55 }
 0x20a   :  { %2222 = vmatprep.subr.mxu1 %v12429_v23  ;;  %2431 = vmatprep.subr.mxu0 %v12429_v23  ;;  %v8373_v29 = vpop.f32.mrf.mxu1 }
 0x20b   :  { %2223 = vmatpush1.msra.mxu1 %v2159_v61  ;;  %2432 = vmatpush1.msra.mxu0 %v1470_v0  ;;  %12774 = vst [vmem:[#allocation38_spill] sm:$0xff] %v8373_v29  ;;  %v2163_v61 = vmul.f32 %v6665_v51, %v8256_v54  ;;  %v2162_v63 = vmul.f32 %v8256_v54, %v8373_v29 }
 0x20c   :  { %2224 = vmatprep.subr.mxu1 %v12429_v23  ;;  %2433 = vmatprep.subr.mxu0 %v12429_v23  ;;  %v1473_v0 = vmul.f32 %v8259_v55, %v8373_v29 }
 0x20d   :  { %2225 = vmatpush1.msra.mxu1 %v2158_v1  ;;  %2434 = vmatpush1.msra.mxu0 %v1469_v2  ;;  %v8390_v1 = vmul.f32 %v6665_v51, %v8157_v27  ;;  %v8393_v2 = vmul.f32 %v6665_v51, %v8160_v28 }
 0x20e   :  { %2226 = vmatprep.subr.mxu1 %v12429_v23  ;;  %2435 = vmatprep.subr.mxu0 %v12429_v23 }
 0x20f   :  { %2227 = vmatpush1.msra.mxu1 %v2157_v3  ;;  %2436 = vmatpush1.msra.mxu0 %v1468_v4  ;;  %12775 = vst [vmem:[#allocation39_spill] sm:$0xff] %v8390_v1  ;;  %12776 = vst [vmem:[#allocation40_spill] sm:$0xff] %v8393_v2  ;;  %v12436_v3 = vmov 3  }
 0x210   :  { %2228 = vmatprep.subr.mxu1 %v12429_v23  ;;  %2437 = vmatprep.subr.mxu0 %v12429_v23 }
 0x211   :  { %2229 = vmatpush1.msra.mxu1 %v2156_v5  ;;  %2438 = vmatpush1.msra.mxu0 %v1467_v6  ;;  %v12431_v5 = vmov 2  }
 0x212   :  { %2230 = vmatprep.subr.mxu1 %v12429_v23  ;;  %2439 = vmatprep.subr.mxu0 %v12429_v23 }
 0x213   :  { %2231 = vmatpush1.msra.mxu1 %v2155_v7  ;;  %2440 = vmatpush1.msra.mxu0 %v1466_v8 }
 0x214   :  { %2232 = vmatprep.subr.mxu1 %v12429_v23  ;;  %2441 = vmatprep.subr.mxu0 %v12429_v23 }
 0x215   :  { %2233 = vmatpush1.msra.mxu1 %v2154_v9  ;;  %2442 = vmatpush1.msra.mxu0 %v1465_v10 }
 0x216   :  { %2234 = vmatprep.subr.mxu1 %v12429_v23  ;;  %2443 = vmatprep.subr.mxu0 %v12429_v23 }
 0x217   :  { %2235 = vmatpush1.msra.mxu1 %v2153_v13  ;;  %2444 = vmatpush1.msra.mxu0 %v1464_v14 }
 0x218   :  { %2236 = vmatprep.subr.mxu1 %v12429_v23  ;;  %2445 = vmatprep.subr.mxu0 %v12429_v23 }
 0x219   :  { %2237 = vmatpush1.msra.mxu1 %v2152_v15  ;;  %2446 = vmatpush1.msra.mxu0 %v1463_v16 }
 0x21a   :  { %2238 = vmatprep.subr.mxu1 %v12429_v23  ;;  %2447 = vmatprep.subr.mxu0 %v12429_v23 }
 0x21b   :  { %2239 = vmatpush1.msra.mxu1 %v2151_v17  ;;  %2448 = vmatpush1.msra.mxu0 %v1462_v18 }
 0x21c   :  { %2240 = vmatprep.subr.mxu1 %v12429_v23  ;;  %2449 = vmatprep.subr.mxu0 %v12429_v23 }
 0x21d   :  { %2241 = vmatpush1.msra.mxu1 %v2150_v19  ;;  %2450 = vmatpush1.msra.mxu0 %v1461_v20 }
 0x21e   :  { %2242 = vmatprep.subr.mxu1 %v12429_v23  ;;  %2451 = vmatprep.subr.mxu0 %v12429_v23 }
 0x21f   :  { %2243 = vmatpush1.msra.mxu1 %v2149_v21  ;;  %2452 = vmatpush1.msra.mxu0 %v1460_v22 }
 0x220   :  { %2244 = vmatprep.subr.mxu1 %v12429_v23  ;;  %2453 = vmatprep.subr.mxu0 %v12429_v23 }
 0x221   :  { %2245 = vmatpush1.msra.mxu1 %v2148_v41  ;;  %2454 = vmatpush1.msra.mxu0 %v1459_v33 }
 0x222   :  { %2246 = vmatprep.subr.mxu1 %v12429_v23  ;;  %2455 = vmatprep.subr.mxu0 %v12429_v23 }
 0x223   :  { %2247 = vmatpush1.msra.mxu1 %v2147_v45  ;;  %2456 = vmatpush1.msra.mxu0 %v1458_v49 }
 0x224   :  { %2248 = vmatprep.subr.mxu1 %v12429_v23  ;;  %2457 = vmatprep.subr.mxu0 %v12429_v23 }
 0x225   :  { %2249 = vmatpush1.msra.mxu1 %v2146_v58  ;;  %2458 = vmatpush1.msra.mxu0 %v1457_v59 }
 0x226   :  { %6719 = vmatprep.mubr.f32.mxu1 %v8271_v60  ;;  %6778 = vmatprep.mubr.f32.mxu0 %v8271_v60 }
 0x227   :  { %6720 = vmatmul.mubr.f32.gmra.mxu1 %v8253_v53  ;;  %6779 = vmatmul.mubr.f32.gmra.mxu0 %v8253_v53  ;;  %v12434_v53 = vmov 0  }
 0x228   :  { %6722 = vmatprep.mubr.f32.mxu1 %v8373_v29  ;;  %6781 = vmatprep.mubr.f32.mxu0 %v8373_v29 }
 0x229   :  { %2278 = vmatprep.subr.mxu1 %v12429_v23  ;;  %2487 = vmatprep.subr.mxu0 %v12429_v23 }
 0x22a   :  { %2279 = vmatpush2.msra.mxu1 %v2163_v61  ;;  %2488 = vmatpush2.msra.mxu0 %v1474_v62 }
 0x22b   :  { %6723 = vmatmul.mubr.f32.gmra.mxu1 %v6665_v51  ;;  %6782 = vmatmul.mubr.f32.gmra.mxu0 %v6665_v51 }
 0x22c   :  { %2280 = vmatprep.subr.mxu1 %v12429_v23  ;;  %2489 = vmatprep.subr.mxu0 %v12429_v23 }
 0x22d   :  { %2281 = vmatpush2.msra.mxu1 %v2162_v63  ;;  %2490 = vmatpush2.msra.mxu0 %v1473_v0 }
 0x22e   :  { %3307 = vmatprep.subr.mxu1 %v12429_v23  ;;  %4205 = vmatprep.subr.mxu0 %v12429_v23 }
 0x22f   :  { %7057 = vset.pattern.permute.xlu0 %v12434_v53 }
 0x2ac   :  { %v6700_v54 = vpop.f32.mrf.mxu1  ;;  %v8400_v55 = vpop.f32.mrf.mxu0 }
 0x2ad   :  { %1495 = vrot.lane.b32.xlu0 %v8400_v55, %s7785_s8  ;;  %1616 = vperm.xlu1 %7056, %v6700_v54  }
 0x2ae   :  { %v8407_v4 = vpop.f32.mrf.mxu1  ;;  %v8414_v6 = vpop.f32.mrf.mxu0 }
 0x2af   :  { %12777 = vst [vmem:[#allocation41_spill] sm:$0xff] %v8407_v4 }
 0x2b0   :  { %v8426_v7 = vpop.f32.mrf.mxu0  ;;  %v8430_v8 = vpop.f32.mrf.mxu1 }
 0x2b1   :  { %910 = vperm.xlu0 %7057, %v6700_v54   ;;  %7059 = vset.pattern.permute.xlu1 %v12436_v3  ;;  %12778 = vst [vmem:[#allocation42_spill] sm:$0xff] %v8430_v8 }
 0x2b2   :  { %3603 = vperm.xlu1 %7059, %v6700_v54   ;;  %v8437_v9 = vpop.f32.mrf.mxu0  ;;  %v587_v10 = vpop.f32.mrf.mxu1 }
 0x2b4   :  { %v8449_v13 = vpop.f32.mrf.mxu1  ;;  %v8456_v14 = vpop.f32.mrf.mxu0 }
 0x2b5   :  { %2584 = vrot.lane.b32.xlu0 %v8400_v55, %s7787_s9  ;;  %12779 = vst [vmem:[#allocation43_spill] sm:$0xff] %v8449_v13 }
 0x2b6   :  { %7061 = vset.pattern.permute.xlu1 %v12434_v53  ;;  %7058 = vset.pattern.permute.xlu0 %v12431_v5  ;;  %v8464_v15 = vpop.f32.mrf.mxu0  ;;  %v8470_v16 = vpop.f32.mrf.mxu1 }
 0x2b7   :  { %905 = vperm.xlu1 %7061, %v8407_v4   ;;  %12780 = vst [vmem:[#allocation44_spill] sm:$0xff] %v8470_v16 }
 0x2b8   :  { %v8474_v17 = vpop.f32.mrf.mxu0  ;;  %v6709_v18 = vpop.f32.mrf.mxu1 }
 0x2b9   :  { %3482 = vrot.lane.b32.xlu0 %v8400_v55, %s7789_s28 }
 0x2ba   :  { %v8488_v19 = vpop.f32.mrf.mxu0  ;;  %v8493_v20 = vpop.f32.mrf.mxu1 }
 0x2bb   :  { %2582 = vrot.lane.b32.xlu1 %v8414_v6, %s7787_s9  ;;  %12781 = vst [vmem:[#allocation45_spill] sm:$0xff] %v8493_v20 }
 0x2bc   :  { %7062 = vset.pattern.permute.xlu1 %v12436_v3  ;;  %v8497_v21 = vpop.f32.mrf.mxu0  ;;  %v8499_v22 = vpop.f32.mrf.mxu1 }
 0x2bd   :  { %2705 = vperm.xlu0 %7058, %v6700_v54   ;;  %12782 = vst [vmem:[#allocation46_spill] sm:$0xff] %v8499_v22 }
 0x2be   :  { %v8504_v41 = vpop.f32.mrf.mxu0  ;;  %v8513_v33 = vpop.f32.mrf.mxu1 }
 0x2bf   :  { %3480 = vrot.lane.b32.xlu1 %v8414_v6, %s7789_s28  ;;  %12783 = vst [vmem:[#allocation47_spill] sm:$0xff] %v8513_v33 }
 0x2c0   :  { %v8515_v45 = vpop.f32.mrf.mxu1  ;;  %v8517_v49 = vpop.f32.mrf.mxu0 }
 0x2c1   :  { %1493 = vrot.lane.b32.xlu0 %v8414_v6, %s7785_s8  ;;  %12784 = vst [vmem:[#allocation48_spill] sm:$0xff] %v8515_v45 }
 0x2c2   :  { %7060 = vset.pattern.permute.xlu0 %v12440_v24  ;;  %v8521_v51 = vpop.f32.mrf.mxu0  ;;  %v8529_v58 = vpop.f32.mrf.mxu1 }
 0x2c3   :  { %3599 = vperm.xlu1 %7062, %v8407_v4   ;;  %12785 = vst [vmem:[#allocation49_spill] sm:$0xff] %v8529_v58 }
 0x2c4   :  { %v8536_v59 = vpop.f32.mrf.mxu0  ;;  %v8538_v61 = vpop.f32.mrf.mxu1 }
 0x2c5   :  { %1612 = vperm.xlu0 %7060, %v8407_v4   ;;  %12786 = vst [vmem:[#allocation50_spill] sm:$0xff] %v8538_v61 }
 0x2c6   :  { %v8544_v62 = vpop.f32.mrf.mxu0  ;;  %v8549_v63 = vpop.f32.mrf.mxu1 }
 0x2c7   :  { %1499 = vrot.lane.b32.xlu1 %v8426_v7, %s7785_s8  ;;  %12787 = vst [vmem:[#allocation51_spill] sm:$0xff] %v8549_v63 }
 0x2c8   :  { %7063 = vset.pattern.permute.xlu1 %v12434_v53 }
 0x2c9   :  { %1624 = vperm.xlu0 %7060, %v8430_v8  }
 0x2cb   :  { %920 = vperm.xlu1 %7063, %v8430_v8  }
 0x2cd   :  { %2588 = vrot.lane.b32.xlu0 %v8426_v7, %s7787_s9 }
 0x2ce   :  { %7064 = vset.pattern.permute.xlu0 %v12431_v5 }
 0x2cf   :  { %1497 = vrot.lane.b32.xlu1 %v8437_v9, %s7785_s8 }
 0x2d0   :  { %7065 = vset.pattern.permute.xlu1 %v12440_v24 }
 0x2d1   :  { %3486 = vrot.lane.b32.xlu0 %v8426_v7, %s7789_s28 }
 0x2d3   :  { %1620 = vperm.xlu1 %7065, %v587_v10  }
 0x2d5   :  { %2713 = vperm.xlu0 %7064, %v8430_v8  }
 0x2d7   :  { %7066 = vset.pattern.permute.xlu1 %v12434_v53 }
 0x2d8   :  { %915 = vperm.xlu1 %7066, %v587_v10  }
 0x2d9   :  { %2709 = vperm.xlu0 %7064, %v587_v10  }
 0x2dc   :  { %2586 = vrot.lane.b32.xlu1 %v8437_v9, %s7787_s9 }
 0x2dd   :  { %7068 = vset.pattern.permute.xlu0 %v12440_v24  ;;  %7067 = vset.pattern.permute.xlu1 %v12436_v3 }
 0x2de   :  { %1632 = vperm.xlu0 %7068, %v8449_v13  }
 0x2e0   :  { %3484 = vrot.lane.b32.xlu1 %v8437_v9, %s7789_s28 }
 0x2e2   :  { %2592 = vrot.lane.b32.xlu0 %v8456_v14, %s7787_s9 }
 0x2e4   :  { %3607 = vperm.xlu1 %7067, %v587_v10  }
 0x2e6   :  { %3490 = vrot.lane.b32.xlu0 %v8456_v14, %s7789_s28 }
 0x2e7   :  { %v8557_v10 = vpop.f32.mrf.mxu0 }
 0x2e8   :  { %1503 = vrot.lane.b32.xlu1 %v8456_v14, %s7785_s8 }
 0x2e9   :  { %7069 = vset.pattern.permute.xlu1 %v12434_v53  ;;  %v8567_v25 = vpop.f32.mrf.mxu0 }
 0x2ea   :  { %1501 = vrot.lane.b32.xlu0 %v8464_v15, %s7785_s8 }
 0x2eb   :  { %v8586_v29 = vpop.f32.mrf.mxu0 }
 0x2ec   :  { %930 = vperm.xlu1 %7069, %v8449_v13  }
 0x2ed   :  { %v8614_v38 = vpop.f32.mrf.mxu0 }
 0x2ee   :  { %1628 = vperm.xlu0 %7068, %v8470_v16  }
 0x2f0   :  { %925 = vperm.xlu1 %7069, %v8470_v16  }
 0x2f2   :  { %2596 = vrot.lane.b32.xlu0 %v8474_v17, %s7787_s9 }
 0x2f3   :  { %7072 = vset.pattern.permute.xlu0 %v12431_v5 }
 0x2f4   :  { %2590 = vrot.lane.b32.xlu1 %v8464_v15, %s7787_s9 }
 0x2f5   :  { %7070 = vset.pattern.permute.xlu1 %v12440_v24 }
 0x2f6   :  { %3494 = vrot.lane.b32.xlu0 %v8474_v17, %s7789_s28 }
 0x2f8   :  { %3488 = vrot.lane.b32.xlu1 %v8464_v15, %s7789_s28 }
 0x2fa   :  { %2729 = vperm.xlu0 %7072, %v6709_v18  }
 0x2fc   :  { %1507 = vrot.lane.b32.xlu1 %v8474_v17, %s7785_s8 }
 0x2fe   :  { %1505 = vrot.lane.b32.xlu0 %v8488_v19, %s7785_s8 }
 0x2ff   :  { %7074 = vset.pattern.permute.xlu0 %v12440_v24 }
 0x300   :  { %1640 = vperm.xlu1 %7070, %v6709_v18  }
 0x302   :  { %1636 = vperm.xlu0 %7074, %v8493_v20  }
 0x304   :  { %7071 = vset.pattern.permute.xlu1 %v12434_v53 }
 0x305   :  { %940 = vperm.xlu1 %7071, %v6709_v18  }
 0x306   :  { %7077 = vset.pattern.permute.xlu0 %v12434_v53 }
 0x307   :  { %950 = vperm.xlu0 %7077, %v8499_v22  }
 0x309   :  { %7073 = vset.pattern.permute.xlu1 %v12436_v3 }
 0x30a   :  { %3627 = vperm.xlu1 %7073, %v6709_v18   ;;  %v8559_v18 = vpop.f32.mrf.mxu1 }
 0x30b   :  { %1509 = vrot.lane.b32.xlu0 %v8504_v41, %s7785_s8  ;;  %12789 = vst [vmem:[#allocation53_spill] sm:$0xff] %v8559_v18 }
 0x30c   :  { %v8578_v2 = vpop.f32.mrf.mxu1 }
 0x30d   :  { %12792 = vst [vmem:[#allocation56_spill] sm:$0xff] %v8578_v2 }
 0x30e   :  { %2594 = vrot.lane.b32.xlu1 %v8488_v19, %s7787_s9  ;;  %v8605_v39 = vpop.f32.mrf.mxu1 }
 0x30f   :  { %2598 = vrot.lane.b32.xlu0 %v8504_v41, %s7787_s9  ;;  %7075 = vset.pattern.permute.xlu1 %v12434_v53  ;;  %12798 = vst [vmem:[#allocation60_spill] sm:$0xff] %v8605_v39 }
 0x310   :  { %v8624_v44 = vpop.f32.mrf.mxu1 }
 0x311   :  { %12801 = vst [vmem:[#allocation63_spill] sm:$0xff] %v8624_v44 }
 0x312   :  { %935 = vperm.xlu1 %7075, %v8493_v20  }
 0x313   :  { %960 = vperm.xlu0 %7077, %v8515_v45  }
 0x316   :  { %3492 = vrot.lane.b32.xlu1 %v8488_v19, %s7789_s28 }
 0x317   :  { %1513 = vrot.lane.b32.xlu0 %v8521_v51, %s7785_s8  ;;  %7076 = vset.pattern.permute.xlu1 %v12440_v24 }
 0x318   :  { %7083 = vset.pattern.permute.xlu0 %v12431_v5 }
 0x31a   :  { %1511 = vrot.lane.b32.xlu1 %v8497_v21, %s7785_s8 }
 0x31b   :  { %2741 = vperm.xlu0 %7083, %v8529_v58  }
 0x31e   :  { %2600 = vrot.lane.b32.xlu1 %v8497_v21, %s7787_s9 }
 0x31f   :  { %7085 = vset.pattern.permute.xlu0 %v12434_v53  ;;  %v8551_v0 = vpop.permute.xlu0 %1495 }
 0x320   :  { %970 = vperm.xlu0 %7085, %v8538_v61  }
 0x322   :  { %3498 = vrot.lane.b32.xlu1 %v8497_v21, %s7789_s28 }
 0x324   :  { %1517 = vrot.lane.b32.xlu0 %v8544_v62, %s7785_s8 }
 0x326   :  { %1648 = vperm.xlu1 %7076, %v8499_v22  }
 0x328   :  { %v8553_v54 = vpop.permute.xlu1 %1616  ;;  %965 = vperm.xlu0 %7085, %v8549_v63  }
 0x329   :  { %12788 = vst [vmem:[#allocation52_spill] sm:$0xff] %v8553_v54 }
 0x32a   :  { %7078 = vset.pattern.permute.xlu1 %v12436_v3 }
 0x32b   :  { %3635 = vperm.xlu1 %7078, %v8499_v22  }
 0x32c   :  { %v8562_v23 = vpop.permute.xlu0 %910  ;;  %980 = vperm.xlu0 %7085, %v8559_v18  }
 0x32d   :  { %v8565_v5 = vpop.permute.xlu1 %3603 }
 0x32e   :  { %12790 = vst [vmem:[#allocation54_spill] sm:$0xff] %v8565_v5 }
 0x32f   :  { %3496 = vrot.lane.b32.xlu1 %v8504_v41, %s7789_s28 }
 0x330   :  { %v8571_v53 = vpop.permute.xlu0 %2584  ;;  %3508 = vrot.lane.b32.xlu0 %v8567_v25, %s7789_s28  ;;  %7079 = vset.pattern.permute.xlu1 %v12440_v24 }
 0x331   :  { %12791 = vst [vmem:[#allocation55_spill] sm:$0xff] %v8571_v53 }
 0x332   :  { %v8576_v3 = vpop.permute.xlu1 %905 }
 0x333   :  { %1644 = vperm.xlu1 %7079, %v8513_v33  }
 0x334   :  { %v8581_v1 = vpop.permute.xlu0 %3482  ;;  %975 = vperm.xlu0 %7085, %v8578_v2  }
 0x336   :  { %v8584_v31 = vpop.permute.xlu1 %2582 }
 0x337   :  { %12793 = vst [vmem:[#allocation57_spill] sm:$0xff] %v8584_v31  ;;  %7080 = vset.pattern.permute.xlu1 %v12794_v35 }
 0x338   :  { %v8589_v30 = vpop.permute.xlu0 %2705  ;;  %945 = vperm.xlu1 %7080, %v8513_v33   ;;  %1527 = vrot.lane.b32.xlu0 %v8586_v29, %s7785_s8 }
 0x339   :  { %12795 = vst [vmem:[#allocation58_spill] sm:$0xff] %v8589_v30 }
 0x33a   :  { %v8594_v24 = vpop.permute.xlu1 %3480 }
 0x33c   :  { %v8596_v32 = vpop.permute.xlu0 %1493  ;;  %1515 = vrot.lane.b32.xlu1 %v8517_v49, %s7785_s8  ;;  %3514 = vrot.lane.b32.xlu0 %v8586_v29, %s7789_s28 }
 0x33d   :  { %7081 = vset.pattern.permute.xlu1 %v12796_v36 }
 0x33e   :  { %v8603_v34 = vpop.permute.xlu1 %3599 }
 0x33f   :  { %12797 = vst [vmem:[#allocation59_spill] sm:$0xff] %v8603_v34 }
 0x340   :  { %v8607_v40 = vpop.permute.xlu0 %1612  ;;  %2604 = vrot.lane.b32.xlu1 %v8517_v49, %s7787_s9  ;;  %990 = vperm.xlu0 %7085, %v8605_v39  }
 0x341   :  { %12799 = vst [vmem:[#allocation61_spill] sm:$0xff] %v8607_v40 }
 0x342   :  { %v8612_v43 = vpop.permute.xlu1 %1499 }
 0x344   :  { %v8616_v42 = vpop.permute.xlu0 %1624  ;;  %3502 = vrot.lane.b32.xlu1 %v8517_v49, %s7789_s28  ;;  %1525 = vrot.lane.b32.xlu0 %v8614_v38, %s7785_s8 }
 0x345   :  { %12800 = vst [vmem:[#allocation62_spill] sm:$0xff] %v8616_v42 }
 0x346   :  { %v8622_v47 = vpop.permute.xlu1 %920 }
 0x348   :  { %v8626_v48 = vpop.permute.xlu0 %2588  ;;  %1656 = vperm.xlu1 %7081, %v8515_v45   ;;  %985 = vperm.xlu0 %7085, %v8624_v44  }
 0x349   :  { %12802 = vst [vmem:[#allocation64_spill] sm:$0xff] %v8626_v48 }
 0x34a   :  { %v8630_v57 = vpop.permute.xlu1 %1497 }
 0x34c   :  { %v8632_v46 = vpop.permute.xlu0 %3486  ;;  %2602 = vrot.lane.b32.xlu1 %v8521_v51, %s7787_s9 }
 0x34e   :  { %v8636_v50 = vpop.permute.xlu1 %1620 }
 0x34f   :  { %12803 = vst [vmem:[#allocation65_spill] sm:$0xff] %v8636_v50 }
 0x350   :  { %v8638_v56 = vpop.permute.xlu0 %2713  ;;  %3500 = vrot.lane.b32.xlu1 %v8521_v51, %s7789_s28 }
 0x351   :  { %12804 = vst [vmem:[#allocation66_spill] sm:$0xff] %v8638_v56 }
 0x353   :  { %v8642_v12 = vpop.permute.xlu1 %915 }
 0x354   :  { %v8644_v52 = vpop.permute.xlu0 %2709  ;;  %1652 = vperm.xlu1 %7081, %v8529_v58  }
 0x355   :  { %12805 = vst [vmem:[#allocation67_spill] sm:$0xff] %v8644_v52 }
 0x357   :  { %v8647_v11 = vpop.permute.xlu1 %2586 }
 0x358   :  { %12806 = vst [vmem:[#allocation68_spill] sm:$0xff] %v8647_v11  ;;  %7082 = vset.pattern.permute.xlu1 %v12794_v35  ;;  %v8862_v11 = vld [vmem:[%s12409_s4 + $0x38] sm:$0xff] }
 0x359   :  { %v8650_v28 = vpop.permute.xlu0 %1632  ;;  %955 = vperm.xlu1 %7082, %v8529_v58   ;;  %12847 = vst [vmem:[#allocation108_spill] sm:$0xff] %v8862_v11 }
 0x35a   :  { %12807 = vst [vmem:[#allocation69_spill] sm:$0xff] %v8650_v28 }
 0x35b   :  { %v8653_v37 = vpop.permute.xlu1 %3484 }
 0x35d   :  { %v8655_v27 = vpop.permute.xlu0 %2592  ;;  %1519 = vrot.lane.b32.xlu1 %v8536_v59, %s7785_s8 }
 0x35e   :  { %12808 = vst [vmem:[#allocation70_spill] sm:$0xff] %v8655_v27  ;;  %7084 = vset.pattern.permute.xlu1 %v12796_v36 }
 0x35f   :  { %v8660_v60 = vpop.permute.xlu1 %3607 }
 0x360   :  { %12809 = vst [vmem:[#allocation71_spill] sm:$0xff] %v8660_v60 }
 0x361   :  { %v8662_v26 = vpop.permute.xlu0 %3490  ;;  %2608 = vrot.lane.b32.xlu1 %v8536_v59, %s7787_s9 }
 0x363   :  { %v8666_v56 = vpop.permute.xlu1 %1503 }
 0x365   :  { %v8668_v52 = vpop.permute.xlu0 %1501  ;;  %3506 = vrot.lane.b32.xlu1 %v8536_v59, %s7789_s28 }
 0x366   :  { %871 = vxpose.xlu0.b32.start [1/2] (short) (narrow) %v8614_v38, 8 }
 0x367   :  { %v8673_v5 = vpop.permute.xlu1 %930 }
 0x369   :  { %v8675_v30 = vpop.permute.xlu0 %1628  ;;  %1664 = vperm.xlu1 %7084, %v8538_v61  }
 0x36a   :  { %12810 = vst [vmem:[#allocation72_spill] sm:$0xff] %v8675_v30  ;;  %872 = vxpose.xlu0.b32.end [2/2] (short) (narrow) %v8586_v29, 8 }
 0x36b   :  { %v8679_v36 = vpop.permute.xlu1 %925 }
 0x36d   :  { %v8681_v34 = vpop.permute.xlu0 %2596  ;;  %2606 = vrot.lane.b32.xlu1 %v8544_v62, %s7787_s9 }
 0x36e   :  { %12811 = vst [vmem:[#allocation73_spill] sm:$0xff] %v8681_v34  ;;  %839 = vxpose.xlu0.b32.start [1/16] (narrow) %v8414_v6, 8 }
 0x36f   :  { %v8686_v60 = vpop.permute.xlu1 %2590 }
 0x370   :  { %12812 = vst [vmem:[#allocation74_spill] sm:$0xff] %v8686_v60 }
 0x371   :  { %v8688_v35 = vpop.permute.xlu0 %3494  ;;  %3504 = vrot.lane.b32.xlu1 %v8544_v62, %s7789_s28 }
 0x372   :  { %840 = vxpose.xlu0.b32.cont [2/16] (narrow) %v8400_v55, 8 }
 0x373   :  { %v8693_v61 = vpop.permute.xlu1 %3488 }
 0x375   :  { %v8695_v8 = vpop.permute.xlu0 %2729  ;;  %1660 = vperm.xlu1 %7084, %v8549_v63  }
 0x376   :  { %12813 = vst [vmem:[#allocation75_spill] sm:$0xff] %v8695_v8  ;;  %841 = vxpose.xlu0.b32.cont [3/16] (narrow) %v8437_v9, 8 }
 0x377   :  { %v8699_v22 = vpop.permute.xlu1 %1507 }
 0x378   :  { %12814 = vst [vmem:[#allocation76_spill] sm:$0xff] %v8699_v22 }
 0x379   :  { %v8701_v6 = vpop.permute.xlu0 %1505  ;;  %1523 = vrot.lane.b32.xlu1 %v8557_v10, %s7785_s8 }
 0x37a   :  { %12815 = vst [vmem:[#allocation77_spill] sm:$0xff] %v8701_v6  ;;  %842 = vxpose.xlu0.b32.cont [4/16] (narrow) %v8426_v7, 8 }
 0x37b   :  { %v8706_v33 = vpop.permute.xlu1 %1640 }
 0x37c   :  { %12816 = vst [vmem:[#allocation78_spill] sm:$0xff] %v8706_v33 }
 0x37d   :  { %v8708_v55 = vpop.permute.xlu0 %1636  ;;  %2612 = vrot.lane.b32.xlu1 %v8557_v10, %s7787_s9 }
 0x37e   :  { %12817 = vst [vmem:[#allocation79_spill] sm:$0xff] %v8708_v55  ;;  %843 = vxpose.xlu0.b32.cont [5/16] (narrow) %v8464_v15, 8 }
 0x380   :  { %v8713_v8 = vpop.permute.xlu1 %940 }
 0x381   :  { %3510 = vrot.lane.b32.xlu1 %v8557_v10, %s7789_s28 }
 0x382   :  { %v8717_v9 = vpop.permute.xlu0 %950  ;;  %844 = vxpose.xlu0.b32.cont [6/16] (narrow) %v8456_v14, 8 }
 0x385   :  { %v8720_v20 = vpop.permute.xlu1 %3627  ;;  %1672 = vperm.xlu1 %7084, %v8559_v18  }
 0x386   :  { %12818 = vst [vmem:[#allocation80_spill] sm:$0xff] %v8720_v20  ;;  %v8723_v7 = vpop.permute.xlu0 %1509  ;;  %845 = vxpose.xlu0.b32.cont [7/16] (narrow) %v8488_v19, 8 }
 0x387   :  { %12819 = vst [vmem:[#allocation81_spill] sm:$0xff] %v8723_v7 }
 0x389   :  { %v8726_v13 = vpop.permute.xlu1 %2594  ;;  %1521 = vrot.lane.b32.xlu1 %v8567_v25, %s7785_s8 }
 0x38a   :  { %12820 = vst [vmem:[#allocation82_spill] sm:$0xff] %v8726_v13  ;;  %v8730_v15 = vpop.permute.xlu0 %2598  ;;  %846 = vxpose.xlu0.b32.cont [8/16] (narrow) %v8474_v17, 8 }
 0x38b   :  { %12821 = vst [vmem:[#allocation83_spill] sm:$0xff] %v8730_v15 }
 0x38d   :  { %v8733_v16 = vpop.permute.xlu1 %935  ;;  %2610 = vrot.lane.b32.xlu1 %v8567_v25, %s7787_s9 }
 0x38e   :  { %847 = vxpose.xlu0.b32.cont [9/16] (narrow) %v8504_v41, 8  ;;  %v8738_v14 = vpop.permute.xlu0 %960 }
 0x38f   :  { %12822 = vst [vmem:[#allocation84_spill] sm:$0xff] %v8738_v14 }
 0x391   :  { %v8740_v20 = vpop.permute.xlu1 %3492  ;;  %1668 = vperm.xlu1 %7084, %v8578_v2  }
 0x392   :  { %848 = vxpose.xlu0.b32.cont [10/16] (narrow) %v8497_v21, 8  ;;  %v8748_v17 = vpop.permute.xlu0 %1513 }
 0x393   :  { %12824 = vst [vmem:[#allocation86_spill] sm:$0xff] %v8748_v17 }
 0x395   :  { %v8744_v19 = vpop.permute.xlu1 %1511  ;;  %2616 = vrot.lane.b32.xlu1 %v8586_v29, %s7787_s9 }
 0x396   :  { %12823 = vst [vmem:[#allocation85_spill] sm:$0xff] %v8744_v19  ;;  %849 = vxpose.xlu0.b32.cont [11/16] (narrow) %v8521_v51, 8  ;;  %v8755_v41 = vpop.permute.xlu0 %2741 }
 0x397   :  { %12826 = vst [vmem:[#allocation88_spill] sm:$0xff] %v8755_v41 }
 0x399   :  { %v8751_v18 = vpop.permute.xlu1 %2600  ;;  %1680 = vperm.xlu1 %7084, %v8605_v39  }
 0x39a   :  { %12825 = vst [vmem:[#allocation87_spill] sm:$0xff] %v8751_v18  ;;  %850 = vxpose.xlu0.b32.cont [12/16] (narrow) %v8517_v49, 8 }
 0x39b   :  { %v8766_v21 = vpop.permute.xlu0 %970 }
 0x39c   :  { %12828 = vst [vmem:[#allocation90_spill] sm:$0xff] %v8766_v21 }
 0x39d   :  { %v8757_v2 = vpop.permute.xlu1 %3498  ;;  %2614 = vrot.lane.b32.xlu1 %v8614_v38, %s7787_s9 }
 0x39e   :  { %851 = vxpose.xlu0.b32.cont [13/16] (narrow) %v8544_v62, 8 }
 0x39f   :  { %v8773_v51 = vpop.permute.xlu0 %1517 }
 0x3a0   :  { %12830 = vst [vmem:[#allocation92_spill] sm:$0xff] %v8773_v51 }
 0x3a1   :  { %v8762_v29 = vpop.permute.xlu1 %1648  ;;  %3512 = vrot.lane.b32.xlu1 %v8614_v38, %s7789_s28 }
 0x3a2   :  { %12827 = vst [vmem:[#allocation89_spill] sm:$0xff] %v8762_v29  ;;  %852 = vxpose.xlu0.b32.cont [14/16] (narrow) %v8536_v59, 8 }
 0x3a3   :  { %v8778_v62 = vpop.permute.xlu0 %965 }
 0x3a4   :  { %12831 = vst [vmem:[#allocation93_spill] sm:$0xff] %v8778_v62 }
 0x3a5   :  { %1676 = vperm.xlu1 %7084, %v8624_v44  }
 0x3a6   :  { %v8770_v49 = vpop.permute.xlu1 %3635  ;;  %853 = vxpose.xlu0.b32.cont [15/16] (narrow) %v8567_v25, 8 }
 0x3a7   :  { %12829 = vst [vmem:[#allocation91_spill] sm:$0xff] %v8770_v49  ;;  %v8784_v4 = vpop.permute.xlu0 %980 }
 0x3a8   :  { %12833 = vst [vmem:[#allocation95_spill] sm:$0xff] %v8784_v4 }
 0x3aa   :  { %v8775_v41 = vpop.permute.xlu1 %3496  ;;  %854 = vxpose.xlu0.b32.end [16/16] (narrow) %v8557_v10, 8 }
 0x3ab   :  { %v8788_v44 = vpop.permute.xlu0 %3508 }
 0x3ae   :  { %v8780_v39 = vpop.permute.xlu1 %1644 }
 0x3af   :  { %12832 = vst [vmem:[#allocation94_spill] sm:$0xff] %v8780_v39  ;;  %v8794_v21 = vpop.permute.xlu0 %975 }
 0x3b0   :  { %12836 = vst [vmem:[#allocation98_spill] sm:$0xff] %v8794_v21  ;;  %v12842_v21 = vlaneseq }
 0x3b3   :  { %v8782_v38 = vpop.permute.xlu1 %945  ;;  %v8798_v10 = vpop.permute.xlu0 %1527 }
 0x3b7   :  { %v8786_v59 = vpop.permute.xlu1 %1515  ;;  %v8804_v14 = vpop.permute.xlu0 %3514 }
 0x3b8   :  { %12834 = vst [vmem:[#allocation96_spill] sm:$0xff] %v8786_v59 }
 0x3bb   :  { %v8790_v49 = vpop.permute.xlu1 %2604  ;;  %v8808_v45 = vpop.permute.xlu0 %990 }
 0x3bc   :  { %12835 = vst [vmem:[#allocation97_spill] sm:$0xff] %v8790_v49  ;;  %12840 = vst [vmem:[#allocation102_spill] sm:$0xff] %v8808_v45 }
 0x3bf   :  { %v8792_v25 = vpop.permute.xlu1 %3502  ;;  %v8812_v55 = vpop.permute.xlu0 %1525 }
 0x3c3   :  { %v8796_v63 = vpop.permute.xlu1 %1656  ;;  %v8819_v42 = vpop.permute.xlu0 %985 }
 0x3c4   :  { %12837 = vst [vmem:[#allocation99_spill] sm:$0xff] %v8796_v63  ;;  %v994_v63 = vshrl.u32 %v12842_v21, 7  ;;  %12844 = vst [vmem:[#allocation105_spill] sm:$0xff] %v8819_v42 }
 0x3c6   :  { %v8821_v54 = vsub.s32 0, %v994_v63 }
 0x3c7   :  { %v8800_v62 = vpop.permute.xlu1 %2602 }
 0x3c8   :  { %12838 = vst [vmem:[#allocation100_spill] sm:$0xff] %v8800_v62  ;;  %12845 = vst [vmem:[#allocation106_spill] sm:$0xff] %v8821_v54 }
 0x3cb   :  { %v8802_v58 = vpop.permute.xlu1 %3500 }
 0x3cf   :  { %v8806_v4 = vpop.permute.xlu1 %1652 }
 0x3d0   :  { %12839 = vst [vmem:[#allocation101_spill] sm:$0xff] %v8806_v4 }
 0x3d4   :  { %v8810_v39 = vpop.permute.xlu1 %955 }
 0x3d8   :  { %v8814_v28 = vpop.permute.xlu1 %1519 }
 0x3d9   :  { %12841 = vst [vmem:[#allocation103_spill] sm:$0xff] %v8814_v28 }
 0x3dc   :  { %v8817_v30 = vpop.permute.xlu1 %2608 }
 0x3dd   :  { %12843 = vst [vmem:[#allocation104_spill] sm:$0xff] %v8817_v30 }
 0x3e0   :  { %v8823_v29 = vpop.permute.xlu1 %3506 }
 0x3e2   :  { %v887_v33 = vpop.trf.xlu0 }
 0x3e3   :  { %v8826_v4 = vrot.slane %v887_v33, %v8821_v54 }
 0x3e4   :  { %v8844_v40 = vpop.permute.xlu1 %1664 }
 0x3e5   :  { %v1008_v45 = vadd.f32 %v8826_v4, %v8622_v47  ;;  %v1002_v50 = vadd.f32 %v8826_v4, %v8576_v3  ;;  %v1006_v21 = vadd.f32 %v8826_v4, %v8642_v12  ;;  %v1004_v42 = vadd.f32 %v8826_v4, %v8562_v23  ;;  %12846 = vst [vmem:[#allocation107_spill] sm:$0xff] %v8844_v40 }
 0x3e6   :  { %v8838_v63 = vadd.f32 %v8826_v4, %v8673_v5  ;;  %v8842_v33 = vadd.f32 %v8826_v4, %v8713_v8  ;;  %v8848_v18 = vadd.f32 %v8826_v4, %v8679_v36  ;;  %v8854_v60 = vadd.f32 %v8826_v4, %v8717_v9 }
 0x3e7   :  { %v1044_v30 = vmul.f32 0.2, %v1008_v45  ;;  %v1038_v49 = vmul.f32 0.2, %v1002_v50  ;;  %v1042_v62 = vmul.f32 0.2, %v1006_v21  ;;  %v8869_v51 = vadd.f32 %v8826_v4, %v8733_v16 }
 0x3e8   :  { %v1040_v15 = vmul.f32 0.2, %v1004_v42  ;;  %v1048_v34 = vmul.f32 0.2, %v8838_v63  ;;  %v1052_v27 = vmul.f32 0.2, %v8842_v33  ;;  %v8871_v59 = vpop.permute.xlu1 %2606 }
 0x3e9   :  { %v1080_v40 = vmax.f32 %v1008_v45, %v1044_v30  ;;  %v1074_v53 = vmax.f32 %v1002_v50, %v1038_v49  ;;  %v1078_v31 = vmax.f32 %v1006_v21, %v1042_v62  ;;  %v8865_v28 = vmul.f32 0.2, %v8848_v18  ;;  %12848 = vst [vmem:[#allocation109_spill] sm:$0xff] %v8871_v59 }
 0x3ea   :  { %v855_v13 = vpop.trf.xlu0  ;;  %v1076_v45 = vmax.f32 %v1004_v42, %v1040_v15  ;;  %v1084_v49 = vmax.f32 %v8838_v63, %v1048_v34  ;;  %v8897_v34 = vld [vmem:[%s12409_s4 + $0x28] sm:$0xff]  ;;  %v8902_v42 = vld [vmem:[%s12409_s4 + $0x18] sm:$0xff] }
 0x3eb   :  { %v8857_v48 = vrot.slane %v855_v13, %v8821_v54  ;;  %v8878_v13 = vld [vmem:[%s12409_s4 + $0x8] sm:$0xff]  ;;  %v1088_v54 = vmax.f32 %v8842_v33, %v1052_v27  ;;  %v8892_v17 = vadd.f32 %v1080_v40, %v8862_v11  ;;  %12851 = vst [vmem:[#allocation112_spill] sm:$0xff] %v8902_v42  ;;  %v8909_v27 = vld [vmem:[%s12409_s4 + $0x30] sm:$0xff]  ;;  %v8914_v40 = vld [vmem:[%s12409_s4] sm:$0xff] }
 0x3ec   :  { %12849 = vst [vmem:[#allocation110_spill] sm:$0xff] %v8878_v13  ;;  %12852 = vst [vmem:[#allocation113_spill] sm:$0xff] %v8909_v27  ;;  %v8924_v11 = vld [vmem:[%s12409_s4 + $0x20] sm:$0xff] }
 0x3ed   :  { %v1007_v30 = vadd.f32 %v8857_v48, %v8622_v47  ;;  %v1001_v50 = vadd.f32 %v8857_v48, %v8576_v3  ;;  %v1005_v62 = vadd.f32 %v8857_v48, %v8642_v12  ;;  %v1003_v21 = vadd.f32 %v8857_v48, %v8562_v23  ;;  %12850 = vst [vmem:[#allocation111_spill] sm:$0xff] %v8892_v17 }
 0x3ee   :  { %v8889_v47 = vmul.f32 0.2, %v8854_v60  ;;  %v1011_v23 = vadd.f32 %v8857_v48, %v8673_v5  ;;  %v8917_v12 = vadd.f32 %v1074_v53, %v8878_v13  ;;  %v1015_v63 = vadd.f32 %v8857_v48, %v8713_v8  ;;  %v8934_v13 = vld [vmem:[%s12409_s4 + $0x10] sm:$0xff] }
 0x3ef   :  { %v1043_v59 = vmul.f32 0.2, %v1007_v30  ;;  %v1037_v19 = vmul.f32 0.2, %v1001_v50  ;;  %v1041_v3 = vmul.f32 0.2, %v1005_v62  ;;  %v1009_v22 = vadd.f32 %v8857_v48, %v8679_v36 }
 0x3f0   :  { %12853 = vst [vmem:[#allocation114_spill] sm:$0xff] %v8917_v12  ;;  %v1039_v15 = vmul.f32 0.2, %v1003_v21  ;;  %v1047_v7 = vmul.f32 0.2, %v1011_v23  ;;  %v8929_v53 = vadd.f32 %v1078_v31, %v8897_v34  ;;  %v8945_v36 = vadd.f32 %v1076_v45, %v8902_v42  ;;  %v8950_v31 = vld [vmem:[%s12409_s4 + $0x58] sm:$0xff] }
 0x3f1   :  { %v1079_v33 = vmax.f32 %v1007_v30, %v1043_v59  ;;  %v1073_v5 = vmax.f32 %v1001_v50, %v1037_v19  ;;  %v1077_v6 = vmax.f32 %v1005_v62, %v1041_v3  ;;  %v1051_v19 = vmul.f32 0.2, %v1015_v63  ;;  %v8936_v59 = vpop.permute.xlu1 %3504 }
 0x3f2   :  { %12854 = vst [vmem:[#allocation115_spill] sm:$0xff] %v8929_v53  ;;  %v1075_v8 = vmax.f32 %v1003_v21, %v1039_v15  ;;  %12856 = vst [vmem:[#allocation117_spill] sm:$0xff] %v8945_v36  ;;  %v1083_v62 = vmax.f32 %v1011_v23, %v1047_v7  ;;  %v8955_v21 = vld [vmem:[%s12409_s4 + $0x78] sm:$0xff]  ;;  %v1158_v3 = vsel %vm1145_vm9, %v8892_v17, -inf  ;;  %v1146_v15 = vsel %vm1145_vm9, %v8917_v12, -inf }
 0x3f3   :  { %v8939_v30 = vadd.f32 %v1079_v33, %v8909_v27  ;;  %v8942_v50 = vadd.f32 %v1073_v5, %v8914_v40  ;;  %v8962_v45 = vadd.f32 %v1077_v6, %v8924_v11  ;;  %v8967_v33 = vld [vmem:[%s12409_s4 + $0x50] sm:$0xff]  ;;  %v1045_v7 = vmul.f32 0.2, %v1009_v22 }
 0x3f4   :  { %v8972_v27 = vadd.f32 %v1075_v8, %v8934_v13  ;;  %v1087_v17 = vmax.f32 %v1015_v63, %v1051_v19  ;;  %v8975_v42 = vadd.f32 %v1084_v49, %v8950_v31  ;;  %v8980_v6 = vld [vmem:[%s12409_s4 + $0x70] sm:$0xff]  ;;  %v8983_v12 = vadd.f32 %v1088_v54, %v8955_v21 }
 0x3f5   :  { %12855 = vst [vmem:[#allocation116_spill] sm:$0xff] %v8942_v50  ;;  %12857 = vst [vmem:[#allocation118_spill] sm:$0xff] %v8962_v45  ;;  %v1159_v23 = vmax.f32 %v8939_v30, %v1158_v3  ;;  %v1147_v5 = vmax.f32 %v8942_v50, %v1146_v15  ;;  %v1019_v3 = vadd.f32 %v8857_v48, %v8717_v9  ;;  %v1154_v8 = vsel %vm1145_vm9, %v8929_v53, -inf }
 0x3f6   :  { %12858 = vst [vmem:[#allocation119_spill] sm:$0xff] %v8972_v27  ;;  %v1150_v49 = vsel %vm1145_vm9, %v8945_v36, -inf  ;;  %v8992_v63 = vadd.f32 %v1083_v62, %v8967_v33  ;;  %v1082_v19 = vmax.f32 %v8848_v18, %v8865_v28  ;;  %v1092_v54 = vmax.f32 %v8854_v60, %v8889_v47  ;;  %v9011_v28 = vld [vmem:[%s12409_s4 + $0x48] sm:$0xff]  ;;  %v9021_v18 = vld [vmem:[%s12409_s4 + $0x40] sm:$0xff] }
 0x3f7   :  { %1160 = vmax.xlane.f32.xlu0 %v1159_v23  ;;  %1148 = vmax.xlane.f32.xlu1 %v1147_v5  ;;  %v1055_v15 = vmul.f32 0.2, %v1019_v3  ;;  %v1013_v9 = vadd.f32 %v8857_v48, %v8733_v16  ;;  %v1050_v23 = vmul.f32 0.2, %v8869_v51  ;;  %v9001_v5 = vpop.permute.xlu1 %1660  ;;  %v1155_v53 = vmax.f32 %v8962_v45, %v1154_v8  ;;  %v9016_v16 = vld [vmem:[%s12409_s4 + $0x98] sm:$0xff] }
 0x3f8   :  { %v1151_v36 = vmax.f32 %v8972_v27, %v1150_v49  ;;  %v9006_v62 = vadd.f32 %v1087_v17, %v8980_v6  ;;  %v1081_v60 = vmax.f32 %v1009_v22, %v1045_v7  ;;  %v9026_v17 = vld [vmem:[%s12409_s4 + $0x90] sm:$0xff]  ;;  %v1166_v22 = vsel %vm1145_vm9, %v8975_v42, -inf }
 0x3f9   :  { %v1091_v47 = vmax.f32 %v1019_v3, %v1055_v15  ;;  %v1049_v8 = vmul.f32 0.2, %v1013_v9  ;;  %v1174_v7 = vsel %vm1145_vm9, %v8983_v12, -inf  ;;  %v1167_v49 = vmax.f32 %v8992_v63, %v1166_v22  ;;  %v9050_v15 = vld [vmem:[%s12409_s4 + $0x68] sm:$0xff] }
 0x3fa   :  { %12859 = vst [vmem:[#allocation120_spill] sm:$0xff] %v9006_v62  ;;  %v9034_v27 = vadd.f32 %v1082_v19, %v9011_v28  ;;  %v9037_v45 = vadd.f32 %v1092_v54, %v9016_v16  ;;  %v1086_v50 = vmax.f32 %v8869_v51, %v1050_v23  ;;  %v1175_v3 = vmax.f32 %v9006_v62, %v1174_v7  ;;  %v9055_v54 = vld [vmem:[%s12409_s4 + $0x60] sm:$0xff] }
 0x3fb   :  { %1156 = vmax.xlane.f32.xlu0 %v1155_v53  ;;  %1152 = vmax.xlane.f32.xlu1 %v1151_v36  ;;  %v9042_v53 = vadd.f32 %v1081_v60, %v9021_v18  ;;  %v9045_v36 = vadd.f32 %v1091_v47, %v9026_v17  ;;  %v1085_v19 = vmax.f32 %v1013_v9, %v1049_v8  ;;  %v9057_v51 = vpop.permute.xlu1 %1523 }
 0x3fc   :  { %12860 = vst [vmem:[#allocation121_spill] sm:$0xff] %v9037_v45  ;;  %v1162_v23 = vsel %vm1145_vm9, %v9034_v27, -inf  ;;  %v1182_v60 = vsel %vm1145_vm9, %v9037_v45, -inf  ;;  %v9064_v47 = vadd.f32 %v1086_v50, %v9050_v15 }
 0x3fd   :  { %12861 = vst [vmem:[#allocation122_spill] sm:$0xff] %v9045_v36  ;;  %v1163_v9 = vmax.f32 %v9042_v53, %v1162_v23  ;;  %v1183_v8 = vmax.f32 %v9045_v36, %v1182_v60  ;;  %v9069_v22 = vadd.f32 %v1085_v19, %v9055_v54 }
 0x3fe   :  { %12862 = vst [vmem:[#allocation123_spill] sm:$0xff] %v9064_v47  ;;  %v1170_v7 = vsel %vm1145_vm9, %v9064_v47, -inf }
 0x3ff   :  { %1168 = vmax.xlane.f32.xlu0 %v1167_v49  ;;  %1176 = vmax.xlane.f32.xlu1 %v1175_v3  ;;  %12863 = vst [vmem:[#allocation124_spill] sm:$0xff] %v9069_v22  ;;  %v9073_v49 = vpop.permute.xlu1 %2612  ;;  %v1171_v3 = vmax.f32 %v9069_v22, %v1170_v7 }
 0x403   :  { %1164 = vmax.xlane.f32.xlu0 %v1163_v9  ;;  %1184 = vmax.xlane.f32.xlu1 %v1183_v8  ;;  %v3511_v45 = vpop.permute.xlu1 %3510 }
 0x407   :  { %1172 = vmax.xlane.f32.xlu0 %v1171_v3  ;;  %v9076_v50 = vpop.permute.xlu1 %1672  ;;  %v1018_v3 = vadd.f32 %v8826_v4, %v8782_v38 }
 0x40b   :  { %v9078_v62 = vpop.permute.xlu1 %1521 }
 0x40f   :  { %v9080_v23 = vpop.permute.xlu1 %2610 }
 0x413   :  { %v9082_v60 = vpop.permute.xlu1 %1668 }
 0x417   :  { %v2617_v19 = vpop.permute.xlu1 %2616 }
 0x41b   :  { %v9084_v9 = vpop.permute.xlu1 %1680 }
 0x41f   :  { %v2615_v8 = vpop.permute.xlu1 %2614 }
 0x423   :  { %v3513_v7 = vpop.permute.xlu1 %3512 }
 0x434   :  { %1579 = vxpose.xlu0.b32.start [1/2] (short) (narrow) %v8812_v55, 8  ;;  %v1017_v55 = vadd.f32 %v8857_v48, %v8782_v38 }
 0x436   :  { %2668 = vxpose.xlu1.b32.start [1/2] (short) (narrow) %v2615_v8, 8  ;;  %v1053_v8 = vmul.f32 0.2, %v1017_v55 }
 0x438   :  { %1580 = vxpose.xlu0.b32.end [2/2] (short) (narrow) %v8798_v10, 8  ;;  %v1054_v10 = vmul.f32 0.2, %v1018_v3  ;;  %v1089_v38 = vmax.f32 %v1017_v55, %v1053_v8 }
 0x43a   :  { %2669 = vxpose.xlu1.b32.end [2/2] (short) (narrow) %v2617_v19, 8  ;;  %v1022_v19 = vadd.f32 %v8826_v4, %v8810_v39 }
 0x43c   :  { %3566 = vxpose.xlu0.b32.start [1/2] (short) (narrow) %v3513_v7, 8 }
 0x440   :  { %3567 = vxpose.xlu0.b32.end [2/2] (short) (narrow) %v8804_v14, 8  ;;  %v9105_v14 = vld [vmem:[%s12409_s4 + $0x88] sm:$0xff] }
 0x444   :  { %3534 = vxpose.xlu0.b32.start [1/16] (narrow) %v8594_v24, 8  ;;  %v1021_v24 = vadd.f32 %v8857_v48, %v8810_v39 }
 0x446   :  { %v1057_v7 = vmul.f32 0.2, %v1021_v24 }
 0x448   :  { %3535 = vxpose.xlu0.b32.cont [2/16] (narrow) %v8581_v1, 8  ;;  %v1090_v1 = vmax.f32 %v1018_v3, %v1054_v10  ;;  %v9122_v10 = vld [vmem:[%s12409_s4 + $0xa8] sm:$0xff]  ;;  %v1093_v55 = vmax.f32 %v1021_v24, %v1057_v7 }
 0x449   :  { %v12882_v7 = vld [vmem:[#allocation70_spill] sm:$0xff] }
 0x44a   :  { %v9114_v39 = vadd.f32 %v1090_v1, %v9105_v14 }
 0x44c   :  { %3536 = vxpose.xlu0.b32.cont [3/16] (narrow) %v8653_v37, 8  ;;  %v1058_v37 = vmul.f32 0.2, %v1022_v19  ;;  %12864 = vst [vmem:[#allocation125_spill] sm:$0xff] %v9114_v39  ;;  %v1178_v8 = vsel %vm1145_vm9, %v9114_v39, -inf }
 0x450   :  { %3537 = vxpose.xlu0.b32.cont [4/16] (narrow) %v8632_v46, 8  ;;  %v9111_v46 = vld [vmem:[%s12409_s4 + $0x80] sm:$0xff] }
 0x451   :  { %v9117_v3 = vadd.f32 %v1089_v38, %v9111_v46  ;;  %v9174_v38 = vpop.permute.xlu1 %1676 }
 0x453   :  { %12865 = vst [vmem:[#allocation126_spill] sm:$0xff] %v9117_v3  ;;  %v1179_v1 = vmax.f32 %v9117_v3, %v1178_v8 }
 0x454   :  { %3538 = vxpose.xlu0.b32.cont [5/16] (narrow) %v8693_v61, 8  ;;  %v1094_v61 = vmax.f32 %v1022_v19, %v1058_v37 }
 0x456   :  { %v9133_v19 = vadd.f32 %v1094_v61, %v9122_v10 }
 0x458   :  { %3539 = vxpose.xlu0.b32.cont [6/16] (narrow) %v8662_v26, 8  ;;  %v9128_v26 = vld [vmem:[%s12409_s4 + $0xa0] sm:$0xff]  ;;  %12866 = vst [vmem:[#allocation127_spill] sm:$0xff] %v9133_v19 }
 0x459   :  { %v9137_v37 = vadd.f32 %v1093_v55, %v9128_v26  ;;  %v12884_v55 = vld [vmem:[#allocation73_spill] sm:$0xff] }
 0x45b   :  { %12867 = vst [vmem:[#allocation128_spill] sm:$0xff] %v9137_v37 }
 0x45c   :  { %3540 = vxpose.xlu0.b32.cont [7/16] (narrow) %v8740_v20, 8  ;;  %v1186_v20 = vsel %vm1145_vm9, %v9133_v19, -inf }
 0x45d   :  { %v1187_v24 = vmax.f32 %v9137_v37, %v1186_v20  ;;  %v12885_v20 = vld [vmem:[#allocation83_spill] sm:$0xff] }
 0x460   :  { %3541 = vxpose.xlu0.b32.cont [8/16] (narrow) %v8688_v35, 8  ;;  %v12868_v35 = vmov 2  }
 0x461   :  { %1180 = vmax.xlane.f32.xlu1 %v1179_v1 }
 0x464   :  { %3542 = vxpose.xlu0.b32.cont [9/16] (narrow) %v8775_v41, 8  ;;  %v12872_v41 = vld [vmem:[#allocation85_spill] sm:$0xff] }
 0x465   :  { %1188 = vmax.xlane.f32.xlu1 %v1187_v24 }
 0x468   :  { %3543 = vxpose.xlu0.b32.cont [10/16] (narrow) %v8757_v2, 8  ;;  %v12869_v2 = vld [vmem:[#allocation77_spill] sm:$0xff] }
 0x46c   :  { %3544 = vxpose.xlu0.b32.cont [11/16] (narrow) %v8802_v58, 8  ;;  %v12870_v58 = vld [vmem:[#allocation76_spill] sm:$0xff] }
 0x470   :  { %3545 = vxpose.xlu0.b32.cont [12/16] (narrow) %v8792_v25, 8  ;;  %v12880_v25 = vld [vmem:[#allocation64_spill] sm:$0xff] }
 0x474   :  { %3546 = vxpose.xlu0.b32.cont [13/16] (narrow) %v8936_v59, 8  ;;  %v12881_v59 = vld [vmem:[#allocation74_spill] sm:$0xff] }
 0x478   :  { %3547 = vxpose.xlu0.b32.cont [14/16] (narrow) %v8823_v29, 8  ;;  %v12879_v29 = vld [vmem:[#allocation68_spill] sm:$0xff] }
 0x47c   :  { %3548 = vxpose.xlu0.b32.cont [15/16] (narrow) %v8788_v44, 8  ;;  %v12871_v44 = vld [vmem:[#allocation81_spill] sm:$0xff] }
 0x480   :  { %3549 = vxpose.xlu0.b32.end [16/16] (narrow) %v3511_v45, 8  ;;  %v9172_v45 = vpop.xlane.xlu0 %1160  ;;  %v9177_v61 = vpop.xlane.xlu1 %1148 }
 0x484   :  { %v9183_v8 = vpop.xlane.xlu1 %1152 }
 0x488   :  { %v9188_v24 = vpop.xlane.xlu1 %1176 }
 0x498   :  { %1547 = vxpose.xlu1.b32.start [1/16] (narrow) %v8596_v32, 8  ;;  %v12873_v32 = vld [vmem:[#allocation86_spill] sm:$0xff] }
 0x49c   :  { %1548 = vxpose.xlu1.b32.cont [2/16] (narrow) %v8551_v0, 8  ;;  %v12874_v0 = vld [vmem:[#allocation96_spill] sm:$0xff] }
 0x4a0   :  { %1549 = vxpose.xlu1.b32.cont [3/16] (narrow) %v8630_v57, 8  ;;  %v12875_v57 = vld [vmem:[#allocation92_spill] sm:$0xff] }
 0x4a4   :  { %1550 = vxpose.xlu1.b32.cont [4/16] (narrow) %v8612_v43, 8  ;;  %v12876_v43 = vld [vmem:[#allocation103_spill] sm:$0xff] }
 0x4a8   :  { %1551 = vxpose.xlu1.b32.cont [5/16] (narrow) %v8668_v52, 8  ;;  %v12877_v52 = vld [vmem:[#allocation57_spill] sm:$0xff] }
 0x4a9   :  { %7087 = vset.pattern.permute.xlu0 %v12868_v35 }
 0x4ac   :  { %1552 = vxpose.xlu1.b32.cont [6/16] (narrow) %v8666_v56, 8  ;;  %v12878_v56 = vld [vmem:[#allocation55_spill] sm:$0xff] }
 0x4b0   :  { %1553 = vxpose.xlu1.b32.cont [7/16] (narrow) %v12869_v2, 8  ;;  %v12886_v2 = vld [vmem:[#allocation87_spill] sm:$0xff] }
 0x4b4   :  { %1554 = vxpose.xlu1.b32.cont [8/16] (narrow) %v12870_v58, 8 }
 0x4b8   :  { %1555 = vxpose.xlu1.b32.cont [9/16] (narrow) %v12871_v44, 8  ;;  %v12887_v44 = vld [vmem:[#allocation100_spill] sm:$0xff] }
 0x4bc   :  { %1556 = vxpose.xlu1.b32.cont [10/16] (narrow) %v12872_v41, 8  ;;  %v9194_v41 = vpop.xlane.xlu1 %1184 }
 0x4c0   :  { %1557 = vxpose.xlu1.b32.cont [11/16] (narrow) %v12873_v32, 8 }
 0x4c4   :  { %1558 = vxpose.xlu1.b32.cont [12/16] (narrow) %v12874_v0, 8  ;;  %v12889_v0 = vld [vmem:[#allocation97_spill] sm:$0xff] }
 0x4c8   :  { %1559 = vxpose.xlu1.b32.cont [13/16] (narrow) %v12875_v57, 8  ;;  %v9199_v57 = vpop.trf.xlu1 }
 0x4c9   :  { %12890 = vst [vmem:[#allocation76_spill] sm:$0xff] %v9199_v57 }
 0x4cc   :  { %1560 = vxpose.xlu1.b32.cont [14/16] (narrow) %v12876_v43, 8 }
 0x4d0   :  { %1561 = vxpose.xlu1.b32.cont [15/16] (narrow) %v9078_v62, 8  ;;  %v12883_v62 = vld [vmem:[#allocation82_spill] sm:$0xff] }
 0x4d4   :  { %1562 = vxpose.xlu1.b32.end [16/16] (narrow) %v9057_v51, 8  ;;  %v9180_v51 = vpop.xlane.xlu0 %1156 }
 0x4d8   :  { %2636 = vxpose.xlu1.b32.start [1/16] (narrow) %v12877_v52, 8  ;;  %v9185_v1 = vpop.xlane.xlu0 %1168  ;;  %v12891_v52 = vld [vmem:[#allocation109_spill] sm:$0xff] }
 0x4dc   :  { %2637 = vxpose.xlu1.b32.cont [2/16] (narrow) %v12878_v56, 8  ;;  %v9191_v58 = vpop.xlane.xlu0 %1164  ;;  %v12892_v56 = vld [vmem:[#allocation106_spill] sm:$0xff] }
 0x4e0   :  { %2638 = vxpose.xlu1.b32.cont [3/16] (narrow) %v12879_v29, 8  ;;  %v9196_v32 = vpop.xlane.xlu0 %1172 }
 0x4e1   :  { %12888 = vst [vmem:[#allocation77_spill] sm:$0xff] %v9196_v32 }
 0x4e4   :  { %2639 = vxpose.xlu1.b32.cont [4/16] (narrow) %v12880_v25, 8  ;;  %v1595_v43 = vpop.trf.xlu0 }
 0x4e5   :  { %v9203_v29 = vrot.slane %v1595_v43, %v12892_v56 }
 0x4e8   :  { %2640 = vxpose.xlu1.b32.cont [5/16] (narrow) %v12881_v59, 8  ;;  %v12894_v59 = vld [vmem:[#allocation104_spill] sm:$0xff] }
 0x4ea   :  { %v9205_v25 = vpop.xlane.xlu1 %1180 }
 0x4eb   :  { %12893 = vst [vmem:[#allocation81_spill] sm:$0xff] %v9205_v25  ;;  %v12899_v25 = vld [vmem:[#allocation110_spill] sm:$0xff] }
 0x4ec   :  { %2641 = vxpose.xlu1.b32.cont [6/16] (narrow) %v12882_v7, 8  ;;  %v12895_v7 = vld [vmem:[#allocation61_spill] sm:$0xff] }
 0x4f0   :  { %2642 = vxpose.xlu1.b32.cont [7/16] (narrow) %v12883_v62, 8  ;;  %v1692_v62 = vadd.f32 %v9203_v29, %v12895_v7 }
 0x4f4   :  { %2643 = vxpose.xlu1.b32.cont [8/16] (narrow) %v12884_v55, 8  ;;  %v9210_v55 = vpop.xlane.xlu1 %1188 }
 0x4f5   :  { %12896 = vst [vmem:[#allocation85_spill] sm:$0xff] %v9210_v55 }
 0x4f8   :  { %2644 = vxpose.xlu1.b32.cont [9/16] (narrow) %v12885_v20, 8  ;;  %v1728_v20 = vmul.f32 0.2, %v1692_v62 }
 0x4fc   :  { %2645 = vxpose.xlu1.b32.cont [10/16] (narrow) %v12886_v2, 8  ;;  %v12897_v2 = vld [vmem:[#allocation65_spill] sm:$0xff] }
 0x500   :  { %2646 = vxpose.xlu1.b32.cont [11/16] (narrow) %v12887_v44, 8  ;;  %v1696_v44 = vadd.f32 %v9203_v29, %v12897_v2 }
 0x502   :  { %v1732_v37 = vmul.f32 0.2, %v1696_v44 }
 0x504   :  { %2647 = vxpose.xlu1.b32.cont [12/16] (narrow) %v12889_v0, 8 }
 0x508   :  { %2648 = vxpose.xlu1.b32.cont [13/16] (narrow) %v12891_v52, 8  ;;  %v1764_v52 = vmax.f32 %v1692_v62, %v1728_v20  ;;  %v12900_v20 = vld [vmem:[#allocation89_spill] sm:$0xff] }
 0x509   :  { %v1710_v22 = vadd.f32 %v9203_v29, %v12900_v20 }
 0x50a   :  { %v9228_v57 = vadd.f32 %v1764_v52, %v12899_v25 }
 0x50c   :  { %2649 = vxpose.xlu1.b32.cont [14/16] (narrow) %v12894_v59, 8  ;;  %v12898_v59 = vld [vmem:[#allocation78_spill] sm:$0xff] }
 0x50d   :  { %v1706_v19 = vadd.f32 %v9203_v29, %v12898_v59 }
 0x50f   :  { %v1742_v62 = vmul.f32 0.2, %v1706_v19 }
 0x510   :  { %2650 = vxpose.xlu1.b32.cont [15/16] (narrow) %v9080_v23, 8 }
 0x514   :  { %2651 = vxpose.xlu1.b32.end [16/16] (narrow) %v9073_v49, 8  ;;  %v1563_v0 = vpop.trf.xlu1 }
 0x515   :  { %v9217_v43 = vrot.slane %v1563_v0, %v12892_v56  ;;  %v1768_v0 = vmax.f32 %v1696_v44, %v1732_v37  ;;  %v1778_v37 = vmax.f32 %v1706_v19, %v1742_v62  ;;  %v1746_v44 = vmul.f32 0.2, %v1710_v22 }
 0x517   :  { %v1691_v55 = vadd.f32 %v9217_v43, %v12895_v7  ;;  %v1695_v23 = vadd.f32 %v9217_v43, %v12897_v2  ;;  %v1705_v39 = vadd.f32 %v9217_v43, %v12898_v59  ;;  %v1709_v7 = vadd.f32 %v9217_v43, %v12900_v20 }
 0x518   :  { %v1835_v59 = vsel %vm1145_vm9, %v9228_v57, -inf  ;;  %v9240_v25 = vadd.f32 %v1768_v0, %v8897_v34 }
 0x519   :  { %v1727_v3 = vmul.f32 0.2, %v1691_v55  ;;  %v1731_v49 = vmul.f32 0.2, %v1695_v23  ;;  %v1741_v32 = vmul.f32 0.2, %v1705_v39 }
 0x51a   :  { %12901 = vst [vmem:[#allocation86_spill] sm:$0xff] %v9240_v25 }
 0x51b   :  { %v1763_v36 = vmax.f32 %v1691_v55, %v1727_v3  ;;  %v1767_v47 = vmax.f32 %v1695_v23, %v1731_v49  ;;  %v1777_v55 = vmax.f32 %v1705_v39, %v1741_v32  ;;  %v1745_v23 = vmul.f32 0.2, %v1709_v7 }
 0x51c   :  { %v1782_v49 = vmax.f32 %v1710_v22, %v1746_v44 }
 0x51d   :  { %v9235_v2 = vadd.f32 %v1763_v36, %v8914_v40  ;;  %v9244_v3 = vadd.f32 %v1767_v47, %v8924_v11  ;;  %v1843_v40 = vsel %vm1145_vm9, %v9240_v25, -inf  ;;  %v9249_v36 = vadd.f32 %v1778_v37, %v8955_v21  ;;  %v12906_v21 = vld [vmem:[#allocation52_spill] sm:$0xff] }
 0x51e   :  { %v9253_v19 = vadd.f32 %v1777_v55, %v8980_v6  ;;  %v1781_v0 = vmax.f32 %v1709_v7, %v1745_v23  ;;  %v9258_v47 = vadd.f32 %v1782_v49, %v9016_v16  ;;  %v1694_v22 = vadd.f32 %v9203_v29, %v12906_v21  ;;  %v12907_v7 = vld [vmem:[#allocation62_spill] sm:$0xff]  ;;  %v12908_v55 = vld [vmem:[#allocation72_spill] sm:$0xff] }
 0x51f   :  { %v1836_v52 = vmax.f32 %v9235_v2, %v1835_v59  ;;  %12902 = vst [vmem:[#allocation96_spill] sm:$0xff] %v9249_v36  ;;  %v1844_v34 = vmax.f32 %v9244_v3, %v1843_v40  ;;  %v1863_v11 = vsel %vm1145_vm9, %v9249_v36, -inf  ;;  %v1693_v6 = vadd.f32 %v9217_v43, %v12906_v21 }
 0x520   :  { %12903 = vst [vmem:[#allocation92_spill] sm:$0xff] %v9253_v19  ;;  %12904 = vst [vmem:[#allocation103_spill] sm:$0xff] %v9258_v47  ;;  %v1864_v39 = vmax.f32 %v9253_v19, %v1863_v11  ;;  %v9262_v32 = vadd.f32 %v1781_v0, %v9026_v17  ;;  %v1871_v62 = vsel %vm1145_vm9, %v9258_v47, -inf  ;;  %v1698_v16 = vadd.f32 %v9203_v29, %v12907_v7 }
 0x521   :  { %1837 = vmax.xlane.f32.xlu0 %v1836_v52  ;;  %v1730_v59 = vmul.f32 0.2, %v1694_v22  ;;  %v1729_v37 = vmul.f32 0.2, %v1693_v6  ;;  %v1697_v17 = vadd.f32 %v9217_v43, %v12907_v7  ;;  %v1700_v23 = vadd.f32 %v9203_v29, %v12908_v55 }
 0x522   :  { %12905 = vst [vmem:[#allocation57_spill] sm:$0xff] %v9262_v32  ;;  %v1872_v20 = vmax.f32 %v9262_v32, %v1871_v62  ;;  %v1734_v44 = vmul.f32 0.2, %v1698_v16  ;;  %v12909_v0 = vmov 3   ;;  %v12911_v62 = vld [vmem:[#allocation112_spill] sm:$0xff] }
 0x523   :  { %v1766_v52 = vmax.f32 %v1694_v22, %v1730_v59  ;;  %v1765_v40 = vmax.f32 %v1693_v6, %v1729_v37  ;;  %v1733_v49 = vmul.f32 0.2, %v1697_v17  ;;  %v1736_v7 = vmul.f32 0.2, %v1700_v23  ;;  %v12912_v32 = vld [vmem:[#allocation108_spill] sm:$0xff] }
 0x524   :  { %v1770_v11 = vmax.f32 %v1698_v16, %v1734_v44 }
 0x525   :  { %1845 = vmax.xlane.f32.xlu0 %v1844_v34  ;;  %v1699_v34 = vadd.f32 %v9217_v43, %v12908_v55  ;;  %v9288_v59 = vadd.f32 %v1765_v40, %v8934_v13  ;;  %v1769_v6 = vmax.f32 %v1697_v17, %v1733_v49  ;;  %v1772_v44 = vmax.f32 %v1700_v23, %v1736_v7  ;;  %v12917_v7 = vld [vmem:[#allocation94_spill] sm:$0xff] }
 0x526   :  { %v9291_v55 = vadd.f32 %v1770_v11, %v12912_v32 }
 0x527   :  { %v1735_v37 = vmul.f32 0.2, %v1699_v34  ;;  %v9306_v23 = vadd.f32 %v1772_v44, %v9011_v28  ;;  %v12920_v28 = vld [vmem:[#allocation101_spill] sm:$0xff] }
 0x528   :  { %v1847_v32 = vsel %vm1145_vm9, %v9291_v55, -inf }
 0x529   :  { %1865 = vmax.xlane.f32.xlu0 %v1864_v39  ;;  %v12910_v39 = vld [vmem:[#allocation69_spill] sm:$0xff]  ;;  %v1771_v13 = vmax.f32 %v1699_v34, %v1735_v37  ;;  %12916 = vst [vmem:[#allocation68_spill] sm:$0xff] %v9306_v23 }
 0x52a   :  { %v1702_v21 = vadd.f32 %v9203_v29, %v12910_v39  ;;  %v1701_v22 = vadd.f32 %v9217_v43, %v12910_v39  ;;  %v12914_v39 = vld [vmem:[#allocation113_spill] sm:$0xff] }
 0x52b   :  { %v9299_v25 = vadd.f32 %v1769_v6, %v12914_v39  ;;  %v9312_v34 = vadd.f32 %v1771_v13, %v9021_v18 }
 0x52c   :  { %v1738_v47 = vmul.f32 0.2, %v1702_v21  ;;  %v1737_v19 = vmul.f32 0.2, %v1701_v22 }
 0x52d   :  { %1873 = vmax.xlane.f32.xlu0 %v1872_v20  ;;  %v9283_v20 = vadd.f32 %v1766_v52, %v12911_v62  ;;  %v12913_v52 = vld [vmem:[#allocation79_spill] sm:$0xff]  ;;  %12915 = vst [vmem:[#allocation55_spill] sm:$0xff] %v9299_v25  ;;  %v1848_v6 = vmax.f32 %v9299_v25, %v1847_v32  ;;  %12918 = vst [vmem:[#allocation64_spill] sm:$0xff] %v9312_v34  ;;  %v1711_v32 = vadd.f32 %v9217_v43, %v12920_v28 }
 0x52e   :  { %v1704_v62 = vadd.f32 %v9203_v29, %v12913_v52  ;;  %v1703_v17 = vadd.f32 %v9217_v43, %v12913_v52  ;;  %v1774_v40 = vmax.f32 %v1702_v21, %v1738_v47  ;;  %v1773_v49 = vmax.f32 %v1701_v22, %v1737_v19 }
 0x52f   :  { %v1839_v16 = vsel %vm1145_vm9, %v9283_v20, -inf  ;;  %v1712_v19 = vadd.f32 %v9203_v29, %v12920_v28  ;;  %v1851_v21 = vsel %vm1145_vm9, %v9306_v23, -inf }
 0x530   :  { %v1840_v36 = vmax.f32 %v9288_v59, %v1839_v16  ;;  %v1740_v11 = vmul.f32 0.2, %v1704_v62  ;;  %v1708_v16 = vadd.f32 %v9203_v29, %v12917_v7  ;;  %v1739_v37 = vmul.f32 0.2, %v1703_v17 }
 0x531   :  { %v9317_v47 = vadd.f32 %v1774_v40, %v8950_v31  ;;  %v9324_v22 = vadd.f32 %v1773_v49, %v8967_v33  ;;  %v1852_v52 = vmax.f32 %v9312_v34, %v1851_v21  ;;  %v12922_v31 = vld [vmem:[#allocation48_spill] sm:$0xff]  ;;  %v1748_v49 = vmul.f32 0.2, %v1712_v19 }
 0x532   :  { %7086 = vset.pattern.permute.xlu1 %v12909_v0  ;;  %v1776_v44 = vmax.f32 %v1704_v62, %v1740_v11  ;;  %v1744_v18 = vmul.f32 0.2, %v1708_v16  ;;  %v1775_v39 = vmax.f32 %v1703_v17, %v1739_v37 }
 0x533   :  { %12919 = vst [vmem:[#allocation74_spill] sm:$0xff] %v9317_v47  ;;  %12921 = vst [vmem:[#allocation70_spill] sm:$0xff] %v9324_v22  ;;  %v1855_v40 = vsel %vm1145_vm9, %v9317_v47, -inf  ;;  %v1784_v21 = vmax.f32 %v1712_v19, %v1748_v49 }
 0x534   :  { %v1780_v33 = vmax.f32 %v1708_v16, %v1744_v18  ;;  %v1856_v62 = vmax.f32 %v9324_v22, %v1855_v40  ;;  %v9337_v11 = vadd.f32 %v1775_v39, %v9055_v54  ;;  %v12946_v22 = vld [vmem:[#allocation98_spill] sm:$0xff] }
 0x535   :  { %v1029_v47 = vadd.f32 %v8857_v48, %v12946_v22 }
 0x536   :  { %12924 = vst [vmem:[#allocation73_spill] sm:$0xff] %v9337_v11  ;;  %v9342_v28 = vadd.f32 %v1780_v33, %v9105_v14  ;;  %v12929_v14 = vld [vmem:[#allocation84_spill] sm:$0xff] }
 0x537   :  { %v1024_v19 = vadd.f32 %v8826_v4, %v12929_v14  ;;  %v1023_v39 = vadd.f32 %v8857_v48, %v12929_v14  ;;  %v1065_v23 = vmul.f32 0.2, %v1029_v47 }
 0x538   :  { %12925 = vst [vmem:[#allocation83_spill] sm:$0xff] %v9342_v28  ;;  %v1867_v54 = vsel %vm1145_vm9, %v9342_v28, -inf }
 0x539   :  { %v1059_v33 = vmul.f32 0.2, %v1023_v39 }
 0x53b   :  { %1841 = vmax.xlane.f32.xlu1 %v1840_v36  ;;  %v1707_v36 = vadd.f32 %v9217_v43, %v12917_v7  ;;  %v9333_v7 = vadd.f32 %v1776_v44, %v9050_v15 }
 0x53d   :  { %v1743_v13 = vmul.f32 0.2, %v1707_v36  ;;  %12923 = vst [vmem:[#allocation82_spill] sm:$0xff] %v9333_v7  ;;  %v1859_v37 = vsel %vm1145_vm9, %v9333_v7, -inf }
 0x53e   :  { %v1860_v15 = vmax.f32 %v9337_v11, %v1859_v37 }
 0x53f   :  { %1849 = vmax.xlane.f32.xlu1 %v1848_v6  ;;  %v1779_v17 = vmax.f32 %v1707_v36, %v1743_v13  ;;  %v1747_v6 = vmul.f32 0.2, %v1711_v32  ;;  %v9351_v36 = vadd.f32 %v1784_v21, %v9122_v10  ;;  %v1060_v10 = vmul.f32 0.2, %v1024_v19  ;;  %v112_v21 = vld [vmem:[%s12409_s4 + $0xb0] sm:$0xff] }
 0x541   :  { %v9346_v16 = vadd.f32 %v1779_v17, %v9111_v46  ;;  %v1783_v44 = vmax.f32 %v1711_v32, %v1747_v6  ;;  %12927 = vst [vmem:[#allocation100_spill] sm:$0xff] %v9351_v36  ;;  %v1875_v46 = vsel %vm1145_vm9, %v9351_v36, -inf  ;;  %v12930_v32 = vld [vmem:[#allocation99_spill] sm:$0xff]  ;;  %v1096_v49 = vmax.f32 %v1024_v19, %v1060_v10  ;;  %v113_v17 = vld [vmem:[%s12409_s4 + $0xb8] sm:$0xff] }
 0x542   :  { %v1714_v40 = vadd.f32 %v9203_v29, %v12930_v32  ;;  %v1095_v6 = vmax.f32 %v1023_v39, %v1059_v33  ;;  %v12935_v10 = vld [vmem:[#allocation49_spill] sm:$0xff]  ;;  %v1715_v33 = vadd.f32 %v9217_v43, %v9001_v5 }
 0x543   :  { %1853 = vmax.xlane.f32.xlu1 %v1852_v52  ;;  %2745 = vperm.xlu0 %7087, %v12922_v31   ;;  %12926 = vst [vmem:[#allocation87_spill] sm:$0xff] %v9346_v16  ;;  %v1868_v18 = vmax.f32 %v9346_v16, %v1867_v54  ;;  %v9355_v52 = vadd.f32 %v1783_v44, %v9128_v26 }
 0x544   :  { %v1713_v26 = vadd.f32 %v9217_v43, %v12930_v32  ;;  %v9376_v54 = vadd.f32 %v1095_v6, %v112_v21  ;;  %v1751_v6 = vmul.f32 0.2, %v1715_v33 }
 0x545   :  { %12928 = vst [vmem:[#allocation97_spill] sm:$0xff] %v9355_v52  ;;  %v1876_v13 = vmax.f32 %v9355_v52, %v1875_v46 }
 0x546   :  { %v1749_v37 = vmul.f32 0.2, %v1713_v26  ;;  %12932 = vst [vmem:[#allocation104_spill] sm:$0xff] %v9376_v54 }
 0x547   :  { %1857 = vmax.xlane.f32.xlu1 %v1856_v62  ;;  %v1750_v62 = vmul.f32 0.2, %v1714_v40 }
 0x549   :  { %v1786_v44 = vmax.f32 %v1714_v40, %v1750_v62  ;;  %v1716_v40 = vadd.f32 %v9203_v29, %v9001_v5  ;;  %v12937_v62 = vld [vmem:[#allocation107_spill] sm:$0xff]  ;;  %v1719_v5 = vadd.f32 %v9217_v43, %v9082_v60 }
 0x54b   :  { %1861 = vmax.xlane.f32.xlu1 %v1860_v15  ;;  %v9374_v15 = vadd.f32 %v1096_v49, %v113_v17  ;;  %v9380_v19 = vadd.f32 %v1786_v44, %v113_v17  ;;  %v1752_v49 = vmul.f32 0.2, %v1716_v40  ;;  %v1718_v17 = vadd.f32 %v9203_v29, %v12937_v62 }
 0x54c   :  { %v1787_v44 = vmax.f32 %v1715_v33, %v1751_v6 }
 0x54d   :  { %12931 = vst [vmem:[#allocation109_spill] sm:$0xff] %v9374_v15  ;;  %v1190_v14 = vsel %vm1145_vm9, %v9374_v15, -inf  ;;  %12933 = vst [vmem:[#allocation61_spill] sm:$0xff] %v9380_v19  ;;  %v1879_v39 = vsel %vm1145_vm9, %v9380_v19, -inf  ;;  %v12943_v15 = vld [vmem:[#allocation90_spill] sm:$0xff] }
 0x54e   :  { %v1191_v46 = vmax.f32 %v9376_v54, %v1190_v14  ;;  %v115_v14 = vld [vmem:[%s12409_s4 + $0xc8] sm:$0xff]  ;;  %v12940_v54 = vld [vmem:[#allocation93_spill] sm:$0xff]  ;;  %v1028_v52 = vadd.f32 %v8826_v4, %v12943_v15 }
 0x54f   :  { %1869 = vmax.xlane.f32.xlu1 %v1868_v18  ;;  %v1785_v18 = vmax.f32 %v1713_v26, %v1749_v37  ;;  %v12936_v26 = vld [vmem:[#allocation51_spill] sm:$0xff]  ;;  %v1717_v37 = vadd.f32 %v9217_v43, %v12937_v62  ;;  %v117_v62 = vld [vmem:[%s12409_s4 + $0xd8] sm:$0xff]  ;;  %v1025_v19 = vadd.f32 %v8857_v48, %v12940_v54 }
 0x550   :  { %v1064_v7 = vmul.f32 0.2, %v1028_v52 }
 0x551   :  { %v1061_v36 = vmul.f32 0.2, %v1025_v19 }
 0x553   :  { %1877 = vmax.xlane.f32.xlu1 %v1876_v13  ;;  %v9383_v13 = vadd.f32 %v1785_v18, %v112_v21  ;;  %v1754_v21 = vmul.f32 0.2, %v1718_v17  ;;  %v1753_v18 = vmul.f32 0.2, %v1717_v37 }
 0x555   :  { %12934 = vst [vmem:[#allocation65_spill] sm:$0xff] %v9383_v13  ;;  %v1880_v32 = vmax.f32 %v9383_v13, %v1879_v39  ;;  %v1722_v39 = vadd.f32 %v9203_v29, %v9076_v50 }
 0x557   :  { %v1758_v13 = vmul.f32 0.2, %v1722_v39 }
 0x562   :  { %1192 = vmax.xlane.f32.xlu0 %v1191_v46 }
 0x564   :  { %3639 = vperm.xlu1 %7086, %v12935_v10   ;;  %v114_v10 = vld [vmem:[%s12409_s4 + $0xc0] sm:$0xff] }
 0x565   :  { %v9417_v33 = vadd.f32 %v1787_v44, %v114_v10 }
 0x566   :  { %1881 = vmax.xlane.f32.xlu0 %v1880_v32  ;;  %v1790_v32 = vmax.f32 %v1718_v17, %v1754_v21 }
 0x567   :  { %12939 = vst [vmem:[#allocation110_spill] sm:$0xff] %v9417_v33 }
 0x568   :  { %3643 = vperm.xlu1 %7086, %v12922_v31   ;;  %v1720_v31 = vadd.f32 %v9203_v29, %v9082_v60  ;;  %v1789_v60 = vmax.f32 %v1717_v37, %v1753_v18  ;;  %v9431_v37 = vadd.f32 %v1790_v32, %v117_v62  ;;  %v119_v32 = vld [vmem:[%s12409_s4 + $0xe8] sm:$0xff] }
 0x56a   :  { %v1756_v46 = vmul.f32 0.2, %v1720_v31  ;;  %12941 = vst [vmem:[#allocation89_spill] sm:$0xff] %v9431_v37 }
 0x56c   :  { %7088 = vset.pattern.permute.xlu1 %v12868_v35  ;;  %v1788_v35 = vmax.f32 %v1716_v40, %v1752_v49  ;;  %v1721_v40 = vadd.f32 %v9217_v43, %v9076_v50  ;;  %v1755_v49 = vmul.f32 0.2, %v1719_v5  ;;  %v1792_v6 = vmax.f32 %v1720_v31, %v1756_v46  ;;  %v116_v50 = vld [vmem:[%s12409_s4 + $0xd0] sm:$0xff] }
 0x56d   :  { %v1724_v31 = vadd.f32 %v9203_v29, %v9174_v38  ;;  %v9436_v18 = vadd.f32 %v1789_v60, %v116_v50  ;;  %v1887_v60 = vsel %vm1145_vm9, %v9431_v37, -inf  ;;  %v121_v37 = vld [vmem:[%s12409_s4 + $0xf8] sm:$0xff] }
 0x56e   :  { %v1757_v21 = vmul.f32 0.2, %v1721_v40  ;;  %v1791_v46 = vmax.f32 %v1719_v5, %v1755_v49  ;;  %v9452_v5 = vadd.f32 %v1792_v6, %v119_v32  ;;  %v1794_v49 = vmax.f32 %v1722_v39, %v1758_v13 }
 0x56f   :  { %12942 = vst [vmem:[#allocation52_spill] sm:$0xff] %v9436_v18  ;;  %v1030_v13 = vadd.f32 %v8826_v4, %v12946_v22 }
 0x570   :  { %12944 = vst [vmem:[#allocation62_spill] sm:$0xff] %v9452_v5  ;;  %v1891_v39 = vsel %vm1145_vm9, %v9452_v5, -inf  ;;  %v123_v5 = vld [vmem:[%s12409_s4 + $0x108] sm:$0xff] }
 0x571   :  { %v1066_v25 = vmul.f32 0.2, %v1030_v13 }
 0x57c   :  { %2749 = vperm.xlu0 %7087, %v12936_v26  }
 0x580   :  { %7089 = vset.pattern.permute.xlu0 %v12909_v0  ;;  %v9413_v0 = vadd.f32 %v1788_v35, %v115_v14  ;;  %v1026_v35 = vadd.f32 %v8826_v4, %v12940_v54  ;;  %v1723_v54 = vadd.f32 %v9217_v43, %v9174_v38  ;;  %v118_v38 = vld [vmem:[%s12409_s4 + $0xe0] sm:$0xff] }
 0x582   :  { %12938 = vst [vmem:[#allocation78_spill] sm:$0xff] %v9413_v0  ;;  %v1883_v17 = vsel %vm1145_vm9, %v9413_v0, -inf  ;;  %v1027_v0 = vadd.f32 %v8857_v48, %v12943_v15  ;;  %v1062_v16 = vmul.f32 0.2, %v1026_v35  ;;  %v1888_v15 = vmax.f32 %v9436_v18, %v1887_v60 }
 0x583   :  { %v1884_v44 = vmax.f32 %v9417_v33, %v1883_v17  ;;  %v1760_v17 = vmul.f32 0.2, %v1724_v31  ;;  %v1793_v33 = vmax.f32 %v1721_v40, %v1757_v21  ;;  %v1759_v28 = vmul.f32 0.2, %v1723_v54  ;;  %v120_v40 = vld [vmem:[%s12409_s4 + $0xf0] sm:$0xff] }
 0x584   :  { %v1063_v11 = vmul.f32 0.2, %v1027_v0  ;;  %v1098_v6 = vmax.f32 %v1026_v35, %v1062_v16  ;;  %v9469_v21 = vadd.f32 %v1794_v49, %v121_v37  ;;  %v1100_v35 = vmax.f32 %v1028_v52, %v1064_v7  ;;  %v12950_v49 = vld [vmem:[#allocation95_spill] sm:$0xff]  ;;  %v122_v7 = vld [vmem:[%s12409_s4 + $0x100] sm:$0xff] }
 0x585   :  { %v1796_v60 = vmax.f32 %v1724_v31, %v1760_v17  ;;  %v9472_v18 = vadd.f32 %v1793_v33, %v120_v40  ;;  %v1795_v34 = vmax.f32 %v1723_v54, %v1759_v28  ;;  %v1031_v28 = vadd.f32 %v8857_v48, %v12950_v49 }
 0x586   :  { %12947 = vst [vmem:[#allocation69_spill] sm:$0xff] %v9469_v21  ;;  %v1099_v16 = vmax.f32 %v1027_v0, %v1063_v11  ;;  %v9474_v22 = vadd.f32 %v1098_v6, %v115_v14  ;;  %v9497_v31 = vadd.f32 %v1100_v35, %v117_v62  ;;  %v1101_v54 = vmax.f32 %v1029_v47, %v1065_v23 }
 0x587   :  { %12948 = vst [vmem:[#allocation112_spill] sm:$0xff] %v9472_v18  ;;  %v9488_v11 = vadd.f32 %v1796_v60, %v123_v5  ;;  %v9493_v14 = vadd.f32 %v1795_v34, %v122_v7  ;;  %v1102_v17 = vmax.f32 %v1030_v13, %v1066_v25 }
 0x588   :  { %12949 = vst [vmem:[#allocation108_spill] sm:$0xff] %v9474_v22  ;;  %v9495_v0 = vadd.f32 %v1099_v16, %v116_v50  ;;  %12955 = vst [vmem:[#allocation48_spill] sm:$0xff] %v9497_v31  ;;  %v1198_v25 = vsel %vm1145_vm9, %v9497_v31, -inf  ;;  %v9514_v35 = vadd.f32 %v1101_v54, %v118_v38 }
 0x589   :  { %12952 = vst [vmem:[#allocation113_spill] sm:$0xff] %v9488_v11  ;;  %12953 = vst [vmem:[#allocation94_spill] sm:$0xff] %v9493_v14  ;;  %v1899_v34 = vsel %vm1145_vm9, %v9488_v11, -inf  ;;  %v9511_v47 = vadd.f32 %v1102_v17, %v119_v32 }
 0x58a   :  { %12954 = vst [vmem:[#allocation101_spill] sm:$0xff] %v9495_v0  ;;  %v1900_v23 = vmax.f32 %v9493_v14, %v1899_v34  ;;  %v1199_v16 = vmax.f32 %v9495_v0, %v1198_v25  ;;  %12958 = vst [vmem:[#allocation99_spill] sm:$0xff] %v9514_v35  ;;  %v12971_v25 = vld [vmem:[#allocation56_spill] sm:$0xff] }
 0x58b   :  { %12957 = vst [vmem:[#allocation84_spill] sm:$0xff] %v9511_v47 }
 0x58c   :  { %1885 = vmax.xlane.f32.xlu1 %v1884_v44  ;;  %v9455_v44 = vadd.f32 %v1791_v46, %v118_v38  ;;  %v1097_v46 = vmax.f32 %v1025_v19, %v1061_v36  ;;  %v1032_v36 = vadd.f32 %v8826_v4, %v12950_v49  ;;  %v1895_v19 = vsel %vm1145_vm9, %v9469_v21, -inf }
 0x58d   :  { %v1896_v52 = vmax.f32 %v9472_v18, %v1895_v19  ;;  %v13030_v18 = vld [vmem:[#allocation67_spill] sm:$0xff] }
 0x58e   :  { %12945 = vst [vmem:[#allocation72_spill] sm:$0xff] %v9455_v44  ;;  %v9483_v33 = vadd.f32 %v1097_v46, %v114_v10  ;;  %v1194_v10 = vsel %vm1145_vm9, %v9474_v22, -inf  ;;  %v1068_v6 = vmul.f32 0.2, %v1032_v36 }
 0x590   :  { %1889 = vmax.xlane.f32.xlu1 %v1888_v15  ;;  %v1892_v15 = vmax.f32 %v9455_v44, %v1891_v39  ;;  %12951 = vst [vmem:[#allocation79_spill] sm:$0xff] %v9483_v33  ;;  %v12956_v39 = vld [vmem:[#allocation105_spill] sm:$0xff]  ;;  %v1195_v60 = vmax.f32 %v9483_v33, %v1194_v10  ;;  %v1104_v50 = vmax.f32 %v1032_v36, %v1068_v6  ;;  %v12964_v6 = vld [vmem:[#allocation44_spill] sm:$0xff] }
 0x591   :  { %v1034_v46 = vadd.f32 %v8826_v4, %v12956_v39  ;;  %v1033_v62 = vadd.f32 %v8857_v48, %v12956_v39 }
 0x592   :  { %v9518_v10 = vadd.f32 %v1104_v50, %v121_v37  ;;  %v12972_v50 = vld [vmem:[#allocation53_spill] sm:$0xff] }
 0x593   :  { %v1070_v13 = vmul.f32 0.2, %v1034_v46  ;;  %v1069_v19 = vmul.f32 0.2, %v1033_v62 }
 0x594   :  { %1893 = vmax.xlane.f32.xlu1 %v1892_v15  ;;  %v1067_v15 = vmul.f32 0.2, %v1031_v28  ;;  %12959 = vst [vmem:[#allocation49_spill] sm:$0xff] %v9518_v10  ;;  %v1206_v36 = vsel %vm1145_vm9, %v9518_v10, -inf }
 0x595   :  { %v1106_v39 = vmax.f32 %v1034_v46, %v1070_v13  ;;  %v1105_v32 = vmax.f32 %v1033_v62, %v1069_v19  ;;  %v12965_v46 = vld [vmem:[#allocation43_spill] sm:$0xff]  ;;  %v12968_v62 = vld [vmem:[#allocation46_spill] sm:$0xff]  ;;  %v9552_v19 = vpop.trf.xlu1 }
 0x596   :  { %v1103_v49 = vmax.f32 %v1031_v28, %v1067_v15  ;;  %v12966_v15 = vld [vmem:[#allocation45_spill] sm:$0xff]  ;;  %v12973_v13 = vld [vmem:[#allocation63_spill] sm:$0xff] }
 0x597   :  { %v9525_v38 = vadd.f32 %v1106_v39, %v123_v5  ;;  %v9528_v54 = vadd.f32 %v1105_v32, %v122_v7  ;;  %v12967_v5 = vld [vmem:[#allocation47_spill] sm:$0xff]  ;;  %v12969_v7 = vld [vmem:[#allocation42_spill] sm:$0xff]  ;;  %v1726_v39 = vadd.f32 %v9203_v29, %v9084_v9  ;;  %v125_v29 = vld [vmem:[%s12409_s4 + $0x118] sm:$0xff] }
 0x598   :  { %1897 = vmax.xlane.f32.xlu1 %v1896_v52  ;;  %v1202_v52 = vsel %vm1145_vm9, %v9511_v47, -inf  ;;  %v9521_v34 = vadd.f32 %v1103_v49, %v120_v40  ;;  %v12963_v40 = vld [vmem:[#allocation41_spill] sm:$0xff]  ;;  %v12975_v49 = vmov 0  }
 0x599   :  { %12961 = vst [vmem:[#allocation107_spill] sm:$0xff] %v9525_v38  ;;  %12962 = vst [vmem:[#allocation93_spill] sm:$0xff] %v9528_v54  ;;  %v1210_v37 = vsel %vm1145_vm9, %v9525_v38, -inf  ;;  %v1762_v32 = vmul.f32 0.2, %v1726_v39 }
 0x59a   :  { %12960 = vst [vmem:[#allocation51_spill] sm:$0xff] %v9521_v34  ;;  %v1207_v28 = vmax.f32 %v9521_v34, %v1206_v36  ;;  %v1211_v17 = vmax.f32 %v9528_v54, %v1210_v37  ;;  %v1229_v34 = vsub.f32 %v8975_v42, %v9185_v1 }
 0x59b   :  { %1196 = vmax.xlane.f32.xlu0 %v1195_v60  ;;  %v1203_v60 = vmax.f32 %v9514_v35, %v1202_v52  ;;  %v1798_v37 = vmax.f32 %v1726_v39, %v1762_v32  ;;  %v12979_v39 = vld [vmem:[#allocation71_spill] sm:$0xff] }
 0x59c   :  { %1901 = vmax.xlane.f32.xlu1 %v1900_v23  ;;  %v12970_v23 = vld [vmem:[#allocation50_spill] sm:$0xff]  ;;  %v1276_v42 = vmul.f32 1.442695, %v1229_v34 }
 0x59f   :  { %1200 = vmax.xlane.f32.xlu0 %v1199_v16  ;;  %v12974_v16 = vld [vmem:[#allocation60_spill] sm:$0xff] }
 0x5a3   :  { %1204 = vmax.xlane.f32.xlu0 %v1203_v60 }
 0x5a7   :  { %1208 = vmax.xlane.f32.xlu0 %v1207_v28 }
 0x5ab   :  { %1212 = vmax.xlane.f32.xlu0 %v1211_v17  ;;  %v3582_v17 = vpop.trf.xlu0 }
 0x5ad   :  { %2701 = vperm.xlu1 %7088, %v12963_v40  }
 0x5b1   :  { %2717 = vperm.xlu1 %7088, %v12964_v6  }
 0x5b5   :  { %2721 = vperm.xlu1 %7088, %v12965_v46  }
 0x5b9   :  { %2725 = vperm.xlu1 %7088, %v12966_v15  }
 0x5bd   :  { %2733 = vperm.xlu1 %7088, %v12967_v5  }
 0x5c1   :  { %2737 = vperm.xlu1 %7088, %v12968_v62   ;;  %3611 = vperm.xlu0 %7089, %v12969_v7   ;;  %v12978_v62 = vld [vmem:[#allocation102_spill] sm:$0xff] }
 0x5c2   :  { %v1036_v7 = vadd.f32 %v8826_v4, %v12978_v62 }
 0x5c4   :  { %v9555_v52 = vpop.xlane.xlu1 %1841 }
 0x5c5   :  { %2753 = vperm.xlu1 %7088, %v12970_v23   ;;  %3615 = vperm.xlu0 %7089, %v12964_v6   ;;  %v124_v6 = vld [vmem:[%s12409_s4 + $0x110] sm:$0xff] }
 0x5c8   :  { %v9561_v60 = vpop.xlane.xlu1 %1849 }
 0x5c9   :  { %2757 = vperm.xlu1 %7088, %v12971_v25   ;;  %3619 = vperm.xlu0 %7089, %v12965_v46  }
 0x5cc   :  { %v9566_v28 = vpop.xlane.xlu1 %1853 }
 0x5cd   :  { %2761 = vperm.xlu1 %7088, %v12972_v50   ;;  %3623 = vperm.xlu0 %7089, %v12966_v15  }
 0x5d0   :  { %v9577_v46 = vpop.xlane.xlu1 %1857 }
 0x5d1   :  { %2765 = vperm.xlu1 %7088, %v12973_v13   ;;  %3631 = vperm.xlu0 %7089, %v12967_v5   ;;  %v9582_v5 = vrot.slane %v3582_v17, %v12892_v56 }
 0x5d5   :  { %2769 = vperm.xlu1 %7088, %v12974_v16   ;;  %3647 = vperm.xlu0 %7089, %v12936_v26   ;;  %v1725_v26 = vadd.f32 %v9217_v43, %v9084_v9  ;;  %v9575_v9 = vadd.f32 %v1798_v37, %v125_v29  ;;  %v3550_v43 = vpop.trf.xlu0 }
 0x5d7   :  { %v1761_v36 = vmul.f32 0.2, %v1725_v26  ;;  %12976 = vst [vmem:[#allocation90_spill] sm:$0xff] %v9575_v9 }
 0x5d9   :  { %3651 = vperm.xlu0 %7089, %v12970_v23   ;;  %7091 = vset.pattern.permute.xlu1 %v12975_v49  ;;  %v1797_v40 = vmax.f32 %v1725_v26, %v1761_v36  ;;  %v9587_v23 = vrot.slane %v3550_v43, %v12892_v56  ;;  %v3683_v26 = vadd.f32 %v9582_v5, %v12979_v39  ;;  %v9600_v36 = vpop.xlane.xlu0 %1837 }
 0x5db   :  { %v9579_v15 = vadd.f32 %v1797_v40, %v124_v6  ;;  %v3682_v4 = vadd.f32 %v9587_v23, %v12979_v39  ;;  %v3719_v17 = vmul.f32 0.2, %v3683_v26 }
 0x5dd   :  { %3655 = vperm.xlu0 %7089, %v12971_v25   ;;  %12977 = vst [vmem:[#allocation98_spill] sm:$0xff] %v9579_v15  ;;  %v1903_v25 = vsel %vm1145_vm9, %v9575_v9, -inf  ;;  %v3718_v43 = vmul.f32 0.2, %v3682_v4 }
 0x5df   :  { %v3754_v9 = vmax.f32 %v3682_v4, %v3718_v43  ;;  %v12986_v43 = vld [vmem:[#allocation116_spill] sm:$0xff] }
 0x5e1   :  { %3659 = vperm.xlu0 %7089, %v12972_v50   ;;  %v1035_v50 = vadd.f32 %v8857_v48, %v12978_v62 }
 0x5e3   :  { %v1071_v32 = vmul.f32 0.2, %v1035_v50 }
 0x5e5   :  { %3663 = vperm.xlu0 %7089, %v12973_v13   ;;  %v1904_v13 = vmax.f32 %v9579_v15, %v1903_v25  ;;  %v1107_v40 = vmax.f32 %v1035_v50, %v1071_v32  ;;  %v3755_v25 = vmax.f32 %v3683_v26, %v3719_v17  ;;  %v1224_v32 = vsub.f32 %v8939_v30, %v9172_v45  ;;  %v12988_v30 = vld [vmem:[#allocation118_spill] sm:$0xff] }
 0x5e7   :  { %v9608_v15 = vadd.f32 %v1107_v40, %v124_v6  ;;  %v9626_v6 = vld [vmem:[%s12409_s4 + $0x20] sm:$0xff] }
 0x5e9   :  { %3667 = vperm.xlu0 %7089, %v12974_v16   ;;  %v9594_v16 = vpop.xlane.xlu1 %1861  ;;  %12981 = vst [vmem:[#allocation105_spill] sm:$0xff] %v9608_v15 }
 0x5ed   :  { %7090 = vset.pattern.permute.xlu0 %v12975_v49  ;;  %v1072_v49 = vmul.f32 0.2, %v1036_v7  ;;  %v9602_v48 = vpop.xlane.xlu1 %1869 }
 0x5ef   :  { %v1108_v37 = vmax.f32 %v1036_v7, %v1072_v49  ;;  %v9617_v7 = vld [vmem:[%s12409_s4 + $0x28] sm:$0xff]  ;;  %v9629_v49 = vadd.f32 %v9626_v6, %v3754_v9 }
 0x5f0   :  { %v9620_v50 = vadd.f32 %v9617_v7, %v3755_v25  ;;  %v1218_v25 = vsub.f32 %v12986_v43, %v9177_v61  ;;  %v12987_v9 = vld [vmem:[#allocation114_spill] sm:$0xff] }
 0x5f1   :  { %v9604_v62 = vadd.f32 %v1108_v37, %v125_v29  ;;  %v9610_v54 = vpop.xlane.xlu1 %1877  ;;  %12984 = vst [vmem:[#allocation43_spill] sm:$0xff] %v9629_v49  ;;  %v12985_v37 = vld [vmem:[#allocation111_spill] sm:$0xff] }
 0x5f2   :  { %12982 = vst [vmem:[#allocation41_spill] sm:$0xff] %v9610_v54  ;;  %12983 = vst [vmem:[#allocation44_spill] sm:$0xff] %v9620_v50  ;;  %v3830_v4 = vsel %vm1145_vm9, %v9620_v50, -inf  ;;  %v1225_v17 = vsub.f32 %v12985_v37, %v9172_v45  ;;  %v12989_v50 = vld [vmem:[#allocation115_spill] sm:$0xff]  ;;  %v12990_v37 = vld [vmem:[#allocation117_spill] sm:$0xff] }
 0x5f3   :  { %12980 = vst [vmem:[#allocation95_spill] sm:$0xff] %v9604_v62  ;;  %v1214_v39 = vsel %vm1145_vm9, %v9604_v62, -inf  ;;  %v3831_v40 = vmax.f32 %v9629_v49, %v3830_v4  ;;  %v1222_v62 = vsub.f32 %v12988_v30, %v9180_v51  ;;  %v1223_v38 = vsub.f32 %v12989_v50, %v9180_v51  ;;  %v13041_v54 = vld [vmem:[#allocation75_spill] sm:$0xff] }
 0x5f4   :  { %v1215_v29 = vmax.f32 %v9608_v15, %v1214_v39  ;;  %v1219_v15 = vsub.f32 %v12987_v9, %v9177_v61  ;;  %v1268_v14 = vmul.f32 1.442695, %v1225_v17  ;;  %v1254_v4 = vmul.f32 1.442695, %v1218_v25 }
 0x5f5   :  { %v9642_v39 = vpop.permute.xlu1 %3639  ;;  %v1221_v43 = vsub.f32 %v12990_v37, %v9183_v8  ;;  %v1262_v61 = vmul.f32 1.442695, %v1222_v62  ;;  %v1264_v17 = vmul.f32 1.442695, %v1223_v38  ;;  %v1228_v51 = vsub.f32 %v8992_v63, %v9185_v1  ;;  %v12994_v63 = vld [vmem:[#allocation120_spill] sm:$0xff]  ;;  %v12998_v37 = vld [vmem:[#allocation123_spill] sm:$0xff] }
 0x5f6   :  { %v1256_v49 = vmul.f32 1.442695, %v1219_v15  ;;  %v1233_v15 = vsub.f32 %v8983_v12, %v9188_v24  ;;  %v1227_v62 = vsub.f32 %v9034_v27, %v9191_v58  ;;  %v1232_v1 = vsub.f32 %v12994_v63, %v9188_v24  ;;  %v12996_v27 = vld [vmem:[#allocation121_spill] sm:$0xff] }
 0x5f7   :  { %v1260_v25 = vmul.f32 1.442695, %v1221_v43  ;;  %v1226_v12 = vsub.f32 %v9042_v53, %v9191_v58 }
 0x5f8   :  { %v1284_v30 = vmul.f32 1.442695, %v1233_v15  ;;  %v1272_v34 = vmul.f32 1.442695, %v1227_v62  ;;  %v1282_v24 = vmul.f32 1.442695, %v1232_v1 }
 0x5f9   :  { %1905 = vmax.xlane.f32.xlu1 %v1904_v13  ;;  %v9606_v13 = vpop.xlane.xlu0 %1845  ;;  %v9658_v9 = vpop.permute.xlu1 %3643 }
 0x5fa   :  { %12992 = vst [vmem:[#allocation45_spill] sm:$0xff] %v9658_v9 }
 0x5fd   :  { %v9631_v26 = vpop.xlane.xlu0 %1865 }
 0x601   :  { %v9650_v45 = vpop.xlane.xlu0 %1873 }
 0x605   :  { %v9662_v50 = vpop.permute.xlu0 %2745 }
 0x608   :  { %1216 = vmax.xlane.f32.xlu0 %v1215_v29  ;;  %v1266_v29 = vmul.f32 1.442695, %v1224_v32  ;;  %v12991_v32 = vld [vmem:[#allocation119_spill] sm:$0xff] }
 0x609   :  { %v9672_v38 = vpop.xlane.xlu0 %1192 }
 0x60a   :  { %7092 = vpow2.f32 %v1266_v29  ;;  %12995 = vst [vmem:[#allocation46_spill] sm:$0xff] %v9672_v38 }
 0x60b   :  { %7094 = vpow2.f32 %v1268_v14  ;;  %v1274_v14 = vmul.f32 1.442695, %v1228_v51  ;;  %v13002_v51 = vld [vmem:[#allocation124_spill] sm:$0xff] }
 0x60c   :  { %3832 = vmax.xlane.f32.xlu0 %v3831_v40  ;;  %v1220_v40 = vsub.f32 %v12991_v32, %v9183_v8  ;;  %7096 = vpow2.f32 %v1254_v4  ;;  %v12997_v4 = vld [vmem:[#allocation77_spill] sm:$0xff]  ;;  %v1270_v32 = vmul.f32 1.442695, %v1226_v12  ;;  %v13009_v12 = vld [vmem:[#allocation76_spill] sm:$0xff] }
 0x60d   :  { %7098 = vpow2.f32 %v1256_v49  ;;  %v1237_v49 = vsub.f32 %v12996_v27, %v9194_v41  ;;  %v1231_v43 = vsub.f32 %v12998_v37, %v12997_v4  ;;  %v9684_v58 = vpop.xlane.xlu0 %1881 }
 0x60e   :  { %7100 = vpow2.f32 %v1262_v61  ;;  %v1258_v8 = vmul.f32 1.442695, %v1220_v40  ;;  %v13000_v40 = vld [vmem:[#allocation122_spill] sm:$0xff]  ;;  %13001 = vst [vmem:[#allocation50_spill] sm:$0xff] %v9684_v58 }
 0x60f   :  { %7102 = vpow2.f32 %v1264_v17  ;;  %v1236_v17 = vsub.f32 %v13000_v40, %v9194_v41  ;;  %v1292_v53 = vmul.f32 1.442695, %v1237_v49  ;;  %v1280_v15 = vmul.f32 1.442695, %v1231_v43  ;;  %v13017_v40 = vld [vmem:[#allocation59_spill] sm:$0xff] }
 0x610   :  { %7104 = vpow2.f32 %v1260_v25  ;;  %v1230_v25 = vsub.f32 %v13002_v51, %v12997_v4  ;;  %v9738_v10 = vadd.f32 %v9587_v23, %v13017_v40 }
 0x611   :  { %7106 = vpow2.f32 %v1276_v42  ;;  %v1290_v63 = vmul.f32 1.442695, %v1236_v17  ;;  %v9696_v41 = vpop.permute.xlu0 %2749  ;;  %v9720_v17 = vadd.f32 %v9582_v5, %v13017_v40 }
 0x612   :  { %7108 = vpow2.f32 %v1258_v8  ;;  %13007 = vst [vmem:[#allocation102_spill] sm:$0xff] %v9696_v41  ;;  %v3714_v21 = vmul.f32 0.2, %v9738_v10 }
 0x613   :  { %7110 = vpow2.f32 %v1274_v14  ;;  %v3715_v0 = vmul.f32 0.2, %v9720_v17 }
 0x614   :  { %7112 = vpow2.f32 %v1284_v30  ;;  %v1278_v30 = vmul.f32 1.442695, %v1230_v25 }
 0x615   :  { %v9668_v29 = vpop.xlane.xlu1 %1885  ;;  %7114 = vpow2.f32 %v1272_v34  ;;  %v9702_v34 = vrot.slane %v13009_v12, %v12892_v56 }
 0x616   :  { %12993 = vst [vmem:[#allocation47_spill] sm:$0xff] %v9668_v29  ;;  %7116 = vpow2.f32 %v1282_v24  ;;  %v3750_v29 = vmax.f32 %v9738_v10, %v3714_v21 }
 0x617   :  { %v9690_v62 = vpop.eup %7092  ;;  %7118 = vpow2.f32 %v1270_v32 }
 0x618   :  { %13004 = vst [vmem:[#allocation53_spill] sm:$0xff] %v9690_v62  ;;  %v9692_v8 = vpop.eup %7094  ;;  %7120 = vpow2.f32 %v1292_v53  ;;  %v13018_v53 = vld [vmem:[#allocation58_spill] sm:$0xff] }
 0x619   :  { %v9680_v61 = vpop.xlane.xlu1 %1889  ;;  %13005 = vst [vmem:[#allocation63_spill] sm:$0xff] %v9692_v8  ;;  %v9694_v14 = vpop.eup %7096  ;;  %7122 = vpow2.f32 %v1280_v15  ;;  %v9724_v51 = vadd.f32 %v9702_v34, %v13018_v53  ;;  %v1338_v25 = vsel %vm1145_vm9, %v9692_v8, 0.0  ;;  %v9746_v8 = vrot.slane %v9552_v19, %v12892_v56 }
 0x61a   :  { %12999 = vst [vmem:[#allocation42_spill] sm:$0xff] %v9680_v61  ;;  %13006 = vst [vmem:[#allocation60_spill] sm:$0xff] %v9694_v14  ;;  %v9698_v1 = vpop.eup %7098  ;;  %7124 = vpow2.f32 %v1290_v63 }
 0x61b   :  { %13008 = vst [vmem:[#allocation71_spill] sm:$0xff] %v9698_v1  ;;  %v9706_v49 = vpop.eup %7100  ;;  %7126 = vpow2.f32 %v1278_v30  ;;  %v1326_v63 = vsel %vm1145_vm9, %v9698_v1, 0.0  ;;  %v9751_v1 = vadd.f32 %v9690_v62, %v1338_v25  ;;  %v13024_v62 = vld [vmem:[#allocation54_spill] sm:$0xff] }
 0x61c   :  { %13011 = vst [vmem:[#allocation116_spill] sm:$0xff] %v9706_v49  ;;  %v9708_v4 = vpop.eup %7102  ;;  %v9760_v31 = vadd.f32 %v9694_v14, %v1326_v63  ;;  %v9777_v63 = vadd.f32 %v9587_v23, %v13024_v62 }
 0x61d   :  { %v9688_v42 = vpop.xlane.xlu1 %1893  ;;  %13012 = vst [vmem:[#allocation114_spill] sm:$0xff] %v9708_v4  ;;  %v9710_v37 = vpop.eup %7104  ;;  %v1334_v30 = vsel %vm1145_vm9, %v9708_v4, 0.0 }
 0x61e   :  { %13003 = vst [vmem:[#allocation56_spill] sm:$0xff] %v9688_v42  ;;  %13013 = vst [vmem:[#allocation118_spill] sm:$0xff] %v9710_v37  ;;  %v9714_v24 = vpop.eup %7106  ;;  %v1330_v35 = vsel %vm1145_vm9, %v9710_v37, 0.0  ;;  %v2819_v37 = vmul.f32 0.2, %v9724_v51  ;;  %v9763_v19 = vadd.f32 %v9706_v49, %v1334_v30 }
 0x61f   :  { %13015 = vst [vmem:[#allocation117_spill] sm:$0xff] %v9714_v24  ;;  %v9728_v15 = vpop.eup %7108  ;;  %v1346_v4 = vsel %vm1145_vm9, %v9714_v24, 0.0  ;;  %v3681_v24 = vadd.f32 %v9582_v5, %v13024_v62 }
 0x620   :  { %13019 = vst [vmem:[#allocation120_spill] sm:$0xff] %v9728_v15  ;;  %v9734_v12 = vpop.eup %7110 }
 0x621   :  { %v9704_v27 = vpop.xlane.xlu1 %1897  ;;  %13020 = vst [vmem:[#allocation121_spill] sm:$0xff] %v9734_v12  ;;  %v9742_v11 = vpop.eup %7112  ;;  %v9780_v30 = vadd.f32 %v9734_v12, %v1346_v4  ;;  %v3751_v4 = vmax.f32 %v9720_v17, %v3715_v0  ;;  %v2855_v12 = vmax.f32 %v9724_v51, %v2819_v37  ;;  %v3716_v0 = vmul.f32 0.2, %v9777_v63  ;;  %v7640_v51 = vld [vmem:[%s12409_s4] sm:$0xff] }
 0x622   :  { %13010 = vst [vmem:[#allocation111_spill] sm:$0xff] %v9704_v27  ;;  %13021 = vst [vmem:[#allocation77_spill] sm:$0xff] %v9742_v11  ;;  %v9755_v47 = vpop.eup %7114  ;;  %v13031_v27 = vld [vmem:[#allocation66_spill] sm:$0xff] }
 0x623   :  { %13023 = vst [vmem:[#allocation122_spill] sm:$0xff] %v9755_v47  ;;  %v9772_v33 = vpop.eup %7116  ;;  %13026 = vst [vmem:[#allocation76_spill] sm:$0xff] %v9780_v30  ;;  %v2787_v44 = vadd.f32 %v9702_v34, %v13031_v27  ;;  %v2786_v10 = vadd.f32 %v9746_v8, %v13031_v27  ;;  %v7642_v27 = vld [vmem:[%s12409_s4 + $0x18] sm:$0xff] }
 0x624   :  { %v9712_v43 = vpop.xlane.xlu0 %1196  ;;  %13025 = vst [vmem:[#allocation124_spill] sm:$0xff] %v9772_v33  ;;  %v9784_v49 = vpop.eup %7118 }
 0x625   :  { %13014 = vst [vmem:[#allocation115_spill] sm:$0xff] %v9712_v43  ;;  %v9716_v32 = vpop.xlane.xlu1 %1901  ;;  %13027 = vst [vmem:[#allocation59_spill] sm:$0xff] %v9784_v49  ;;  %v1342_v43 = vsel %vm1145_vm9, %v9755_v47, 0.0  ;;  %v9792_v62 = vpop.eup %7120  ;;  %v2784_v47 = vadd.f32 %v9746_v8, %v13030_v18  ;;  %v2822_v41 = vmul.f32 0.2, %v2786_v10 }
 0x626   :  { %13016 = vst [vmem:[#allocation119_spill] sm:$0xff] %v9716_v32  ;;  %13029 = vst [vmem:[#allocation54_spill] sm:$0xff] %v9792_v62  ;;  %v9800_v42 = vpop.eup %7122  ;;  %v9807_v37 = vadd.f32 %v9784_v49, %v1342_v43 }
 0x627   :  { %13032 = vst [vmem:[#allocation67_spill] sm:$0xff] %v9800_v42  ;;  %v2820_v58 = vmul.f32 0.2, %v2784_v47 }
 0x628   :  { %v9748_v32 = vpop.xlane.xlu0 %1200  ;;  %13033 = vst [vmem:[#allocation66_spill] sm:$0xff] %v9807_v37  ;;  %v9845_v37 = vadd.f32 %v7640_v51, %v3750_v29 }
 0x629   :  { %13022 = vst [vmem:[#allocation123_spill] sm:$0xff] %v9748_v32  ;;  %v2702_v40 = vpop.permute.xlu1 %2701  ;;  %v9770_v32 = vadd.f32 %v9728_v15, %v1330_v35  ;;  %v2782_v15 = vadd.f32 %v9746_v8, %v13018_v53  ;;  %v3717_v53 = vmul.f32 0.2, %v3681_v24 }
 0x62a   :  { %v2780_v56 = vadd.f32 %v9746_v8, %v2702_v40  ;;  %v2781_v25 = vadd.f32 %v9702_v34, %v2702_v40  ;;  %v1354_v40 = vsel %vm1145_vm9, %v9742_v11, 0.0  ;;  %v2785_v11 = vadd.f32 %v9702_v34, %v13030_v18  ;;  %v7641_v18 = vld [vmem:[%s12409_s4 + $0x8] sm:$0xff]  ;;  %13040 = vst [vmem:[#allocation135_spill] sm:$0xff] %v9845_v37 }
 0x62b   :  { %v9810_v17 = vadd.f32 %v9772_v33, %v1354_v40  ;;  %v2818_v21 = vmul.f32 0.2, %v2782_v15  ;;  %v1350_v40 = vsel %vm1145_vm9, %v9800_v42, 0.0  ;;  %v3753_v30 = vmax.f32 %v3681_v24, %v3717_v53 }
 0x62c   :  { %v2816_v14 = vmul.f32 0.2, %v2780_v56  ;;  %v2817_v22 = vmul.f32 0.2, %v2781_v25  ;;  %v9786_v35 = vpop.xlane.xlu0 %1204  ;;  %v2821_v43 = vmul.f32 0.2, %v2785_v11  ;;  %v1908_v42 = vsub.f32 %v9228_v57, %v9600_v36 }
 0x62d   :  { %13028 = vst [vmem:[#allocation58_spill] sm:$0xff] %v9786_v35  ;;  %13034 = vst [vmem:[#allocation129_spill] sm:$0xff] %v9810_v17  ;;  %v9839_v17 = vadd.f32 %v7642_v27, %v2855_v12  ;;  %v2718_v38 = vpop.permute.xlu1 %2717  ;;  %v9851_v12 = vadd.f32 %v9702_v34, %v13041_v54 }
 0x62e   :  { %v2852_v35 = vmax.f32 %v2780_v56, %v2816_v14  ;;  %v2853_v61 = vmax.f32 %v2781_v25, %v2817_v22  ;;  %v9824_v14 = vpop.eup %7124  ;;  %v2823_v25 = vmul.f32 0.2, %v2787_v44  ;;  %v2857_v24 = vmax.f32 %v2785_v11, %v2821_v43 }
 0x62f   :  { %13035 = vst [vmem:[#allocation130_spill] sm:$0xff] %v9824_v14  ;;  %v9830_v33 = vpop.eup %7126  ;;  %13039 = vst [vmem:[#allocation134_spill] sm:$0xff] %v9839_v17  ;;  %v1907_v11 = vsub.f32 %v9235_v2, %v9600_v36  ;;  %v9874_v43 = vadd.f32 %v9702_v34, %v2718_v38 }
 0x630   :  { %v9815_v56 = vadd.f32 %v7640_v51, %v2852_v35  ;;  %v9820_v22 = vadd.f32 %v7641_v18, %v2853_v61  ;;  %v1362_v35 = vsel %vm1145_vm9, %v9792_v62, 0.0  ;;  %13036 = vst [vmem:[#allocation131_spill] sm:$0xff] %v9830_v33  ;;  %v9832_v49 = vpop.xlane.xlu0 %1208  ;;  %v9834_v61 = vadd.f32 %v7641_v18, %v3751_v4  ;;  %v7643_v51 = vld [vmem:[%s12409_s4 + $0x10] sm:$0xff] }
 0x631   :  { %13037 = vst [vmem:[#allocation132_spill] sm:$0xff] %v9832_v49  ;;  %v3752_v4 = vmax.f32 %v9777_v63, %v3716_v0  ;;  %v2854_v49 = vmax.f32 %v2782_v15, %v2818_v21  ;;  %v2859_v53 = vmax.f32 %v2787_v44, %v2823_v25  ;;  %v9854_v57 = vadd.f32 %v9830_v33, %v1350_v40  ;;  %v2722_v2 = vpop.permute.xlu1 %2721 }
 0x632   :  { %13038 = vst [vmem:[#allocation133_spill] sm:$0xff] %v9834_v61  ;;  %v2924_v62 = vsel %vm1145_vm9, %v9820_v22, -inf  ;;  %v9857_v9 = vadd.f32 %v9824_v14, %v1362_v35  ;;  %v3822_v29 = vsel %vm1145_vm9, %v9834_v61, -inf  ;;  %v2928_v15 = vsel %vm1145_vm9, %v9839_v17, -inf  ;;  %v13047_v35 = vld [vmem:[#allocation80_spill] sm:$0xff] }
 0x633   :  { %v2925_v18 = vmax.f32 %v9815_v56, %v2924_v62  ;;  %v9863_v63 = vadd.f32 %v7642_v27, %v3753_v30  ;;  %v2856_v62 = vmax.f32 %v2784_v47, %v2820_v58  ;;  %v1945_v44 = vmul.f32 1.442695, %v1908_v42  ;;  %v7644_v42 = vld [vmem:[%s12409_s4 + $0x38] sm:$0xff] }
 0x634   :  { %v3823_v0 = vmax.f32 %v9845_v37, %v3822_v29  ;;  %v9871_v21 = vadd.f32 %v7643_v51, %v3752_v4  ;;  %v9876_v25 = vpop.xlane.xlu0 %1212  ;;  %v9878_v30 = vadd.f32 %v7643_v51, %v2854_v49  ;;  %v2858_v47 = vmax.f32 %v2786_v10, %v2822_v41  ;;  %v13049_v4 = vld [vmem:[#allocation91_spill] sm:$0xff] }
 0x635   :  { %2926 = vmax.xlane.f32.xlu1 %v2925_v18  ;;  %13042 = vst [vmem:[#allocation75_spill] sm:$0xff] %v9863_v63  ;;  %v9881_v58 = vmul.f32 0.2, %v9851_v12  ;;  %v9884_v36 = vadd.f32 %v9617_v7, %v2857_v24  ;;  %v9889_v40 = vadd.f32 %v7644_v42, %v2859_v53  ;;  %v9893_v27 = vadd.f32 %v9587_v23, %v13047_v35 }
 0x636   :  { %13043 = vst [vmem:[#allocation136_spill] sm:$0xff] %v9871_v21  ;;  %13044 = vst [vmem:[#allocation137_spill] sm:$0xff] %v9878_v30  ;;  %v9897_v41 = vadd.f32 %v9582_v5, %v13047_v35  ;;  %v9900_v49 = vadd.f32 %v9746_v8, %v2718_v38  ;;  %v3826_v7 = vsel %vm1145_vm9, %v9863_v63, -inf  ;;  %v9905_v10 = vadd.f32 %v9626_v6, %v2856_v62  ;;  %v7645_v62 = vld [vmem:[%s12409_s4 + $0x30] sm:$0xff] }
 0x637   :  { %13045 = vst [vmem:[#allocation138_spill] sm:$0xff] %v9884_v36  ;;  %13046 = vst [vmem:[#allocation139_spill] sm:$0xff] %v9889_v40  ;;  %v9909_v18 = vadd.f32 %v9587_v23, %v13049_v4  ;;  %v1943_v24 = vmul.f32 1.442695, %v1907_v11  ;;  %7128 = vpow2.f32 %v1945_v44  ;;  %v1910_v53 = vsub.f32 %v9283_v20, %v9555_v52 }
 0x638   :  { %13048 = vst [vmem:[#allocation80_spill] sm:$0xff] %v9905_v10  ;;  %v3827_v29 = vmax.f32 %v9871_v21, %v3826_v7  ;;  %v2825_v38 = vmul.f32 0.2, %v9874_v43  ;;  %v2929_v6 = vmax.f32 %v9878_v30, %v2928_v15  ;;  %v9922_v35 = vadd.f32 %v7645_v62, %v2858_v47 }
 0x639   :  { %3824 = vmax.xlane.f32.xlu1 %v3823_v0  ;;  %v9916_v0 = vadd.f32 %v9702_v34, %v2722_v2  ;;  %v2932_v44 = vsel %vm1145_vm9, %v9884_v36, -inf  ;;  %v9930_v7 = vsel %vm1145_vm9, %v9889_v40, -inf  ;;  %v1909_v15 = vsub.f32 %v9288_v59, %v9555_v52 }
 0x63a   :  { %v2824_v14 = vmul.f32 0.2, %v9900_v49  ;;  %v9936_v33 = vadd.f32 %v9746_v8, %v2722_v2  ;;  %v2933_v47 = vmax.f32 %v9905_v10, %v2932_v44  ;;  %7130 = vpow2.f32 %v1943_v24  ;;  %v2726_v2 = vpop.permute.xlu1 %2725 }
 0x63b   :  { %v1911_v36 = vsub.f32 %v9244_v3, %v9606_v13  ;;  %v2861_v40 = vmax.f32 %v9874_v43, %v2825_v38  ;;  %v2827_v17 = vmul.f32 0.2, %v9916_v0  ;;  %v2937_v52 = vmax.f32 %v9922_v35, %v9930_v7 }
 0x63c   :  { %v3612_v51 = vpop.permute.xlu0 %3611  ;;  %v1947_v61 = vmul.f32 1.442695, %v1909_v15  ;;  %v2860_v3 = vmax.f32 %v9900_v49, %v2824_v14  ;;  %v2826_v43 = vmul.f32 0.2, %v9936_v33 }
 0x63d   :  { %v3684_v11 = vadd.f32 %v9587_v23, %v3612_v51  ;;  %v3685_v20 = vadd.f32 %v9582_v5, %v3612_v51  ;;  %2930 = vmax.xlane.f32.xlu1 %v2929_v6  ;;  %v1949_v51 = vmul.f32 1.442695, %v1910_v53  ;;  %v13050_v53 = vld [vmem:[#allocation86_spill] sm:$0xff] }
 0x63e   :  { %v1912_v10 = vsub.f32 %v13050_v53, %v9606_v13  ;;  %v7646_v13 = vld [vmem:[%s12409_s4 + $0x48] sm:$0xff] }
 0x63f   :  { %v3720_v63 = vmul.f32 0.2, %v3684_v11  ;;  %v3721_v21 = vmul.f32 0.2, %v3685_v20  ;;  %7132 = vpow2.f32 %v1949_v51  ;;  %v9962_v14 = vadd.f32 %v7646_v13, %v2861_v40 }
 0x640   :  { %v3616_v59 = vpop.permute.xlu0 %3615  ;;  %v1953_v51 = vmul.f32 1.442695, %v1912_v10  ;;  %7134 = vpow2.f32 %v1947_v61  ;;  %v9973_v40 = vadd.f32 %v9746_v8, %v2726_v2 }
 0x641   :  { %v3756_v30 = vmax.f32 %v3684_v11, %v3720_v63  ;;  %v3757_v6 = vmax.f32 %v3685_v20, %v3721_v21  ;;  %v3686_v44 = vadd.f32 %v9587_v23, %v3616_v59  ;;  %v3687_v24 = vadd.f32 %v9582_v5, %v3616_v59  ;;  %3828 = vmax.xlane.f32.xlu1 %v3827_v29 }
 0x642   :  { %v2863_v63 = vmax.f32 %v9916_v0, %v2827_v17  ;;  %v9955_v21 = vadd.f32 %v9702_v34, %v2726_v2  ;;  %v2862_v17 = vmax.f32 %v9936_v33, %v2826_v43  ;;  %7136 = vpow2.f32 %v1953_v51 }
 0x643   :  { %v3722_v38 = vmul.f32 0.2, %v3686_v44  ;;  %v3723_v37 = vmul.f32 0.2, %v3687_v24  ;;  %v9951_v7 = vadd.f32 %v7644_v42, %v3757_v6  ;;  %v9957_v20 = vadd.f32 %v7645_v62, %v3756_v30  ;;  %v7647_v30 = vld [vmem:[%s12409_s4 + $0x40] sm:$0xff] }
 0x644   :  { %v3620_v11 = vpop.permute.xlu0 %3619  ;;  %v9970_v0 = vadd.f32 %v7647_v30, %v2860_v3  ;;  %v9979_v10 = vpop.eup %7128  ;;  %v2829_v2 = vmul.f32 0.2, %v9955_v21  ;;  %v7648_v3 = vld [vmem:[%s12409_s4 + $0x58] sm:$0xff] }
 0x645   :  { %v3758_v49 = vmax.f32 %v3686_v44, %v3722_v38  ;;  %v3759_v29 = vmax.f32 %v3687_v24, %v3723_v37  ;;  %v3688_v15 = vadd.f32 %v9587_v23, %v3620_v11  ;;  %v3689_v42 = vadd.f32 %v9582_v5, %v3620_v11  ;;  %2934 = vmax.xlane.f32.xlu1 %v2933_v47 }
 0x646   :  { %v3834_v37 = vsel %vm1145_vm9, %v9951_v7, -inf  ;;  %13051 = vst [vmem:[#allocation91_spill] sm:$0xff] %v9979_v10  ;;  %v2940_v44 = vsel %vm1145_vm9, %v9962_v14, -inf  ;;  %v9993_v43 = vadd.f32 %v7648_v3, %v2863_v63  ;;  %v1951_v38 = vmul.f32 1.442695, %v1911_v36 }
 0x647   :  { %v3725_v62 = vmul.f32 0.2, %v3689_v42  ;;  %v9977_v59 = vadd.f32 %v7647_v30, %v3758_v49  ;;  %v3724_v61 = vmul.f32 0.2, %v3688_v15  ;;  %v3835_v33 = vmax.f32 %v9957_v20, %v3834_v37  ;;  %v10007_v63 = vpop.eup %7130 }
 0x648   :  { %v3624_v47 = vpop.permute.xlu0 %3623  ;;  %v9982_v6 = vadd.f32 %v7646_v13, %v3759_v29  ;;  %13052 = vst [vmem:[#allocation86_spill] sm:$0xff] %v9993_v43  ;;  %v9999_v13 = vadd.f32 %v9582_v5, %v13049_v4  ;;  %v1914_v49 = vsub.f32 %v9291_v55, %v9561_v60  ;;  %v2828_v29 = vmul.f32 0.2, %v9973_v40  ;;  %13053 = vst [vmem:[#allocation140_spill] sm:$0xff] %v10007_v63  ;;  %v7649_v4 = vld [vmem:[%s12409_s4 + $0x50] sm:$0xff] }
 0x649   :  { %v3761_v24 = vmax.f32 %v3689_v42, %v3725_v62  ;;  %v9988_v53 = vadd.f32 %v9582_v5, %v3624_v47  ;;  %3836 = vmax.xlane.f32.xlu0 %v3835_v33  ;;  %2938 = vmax.xlane.f32.xlu1 %v2937_v52  ;;  %v2015_v36 = vsel %vm1145_vm9, %v9979_v10, 0.0  ;;  %v3760_v52 = vmax.f32 %v3688_v15, %v3724_v61  ;;  %v7652_v10 = vld [vmem:[%s12409_s4 + $0x60] sm:$0xff] }
 0x64a   :  { %v3838_v11 = vsel %vm1145_vm9, %v9982_v6, -inf  ;;  %v10010_v51 = vadd.f32 %v9587_v23, %v3624_v47  ;;  %v2941_v30 = vmax.f32 %v9970_v0, %v2940_v44  ;;  %v10016_v55 = vadd.f32 %v7649_v4, %v2862_v17  ;;  %v13055_v47 = vld [vmem:[#allocation55_spill] sm:$0xff] }
 0x64b   :  { %v3839_v42 = vmax.f32 %v9977_v59, %v3838_v11  ;;  %v2865_v62 = vmax.f32 %v9955_v21, %v2829_v2  ;;  %v3727_v37 = vmul.f32 0.2, %v9988_v53  ;;  %v2944_v33 = vsel %vm1145_vm9, %v9993_v43, -inf }
 0x64c   :  { %v10022_v11 = vadd.f32 %v7648_v3, %v3761_v24  ;;  %v10026_v15 = vadd.f32 %v9746_v8, %v13041_v54  ;;  %v2867_v61 = vmax.f32 %v9851_v12, %v9881_v58  ;;  %v3728_v17 = vmul.f32 0.2, %v9893_v27  ;;  %v10035_v3 = vpop.eup %7132 }
 0x64d   :  { %3840 = vmax.xlane.f32.xlu0 %v3839_v42  ;;  %2942 = vmax.xlane.f32.xlu1 %v2941_v30  ;;  %v3729_v21 = vmul.f32 0.2, %v9897_v41  ;;  %7138 = vpow2.f32 %v1951_v38  ;;  %v1913_v44 = vsub.f32 %v13055_v47, %v9561_v60  ;;  %v1957_v2 = vmul.f32 1.442695, %v1914_v49  ;;  %13056 = vst [vmem:[#allocation55_spill] sm:$0xff] %v10035_v3  ;;  %v7650_v60 = vld [vmem:[%s12409_s4 + $0x68] sm:$0xff] }
 0x64e   :  { %13054 = vst [vmem:[#allocation141_spill] sm:$0xff] %v10022_v11  ;;  %v2016_v24 = vadd.f32 %v10007_v63, %v2015_v36  ;;  %v2864_v42 = vmax.f32 %v9973_v40, %v2828_v29  ;;  %v3726_v54 = vmul.f32 0.2, %v10010_v51  ;;  %v2945_v30 = vmax.f32 %v10016_v55, %v2944_v33  ;;  %v2734_v40 = vpop.permute.xlu1 %2733  ;;  %v7651_v29 = vld [vmem:[%s12409_s4 + $0x78] sm:$0xff]  ;;  %v10064_v33 = vpop.eup %7134 }
 0x64f   :  { %v10040_v12 = vadd.f32 %v7649_v4, %v3760_v52  ;;  %v3763_v58 = vmax.f32 %v9988_v53, %v3727_v37  ;;  %v3842_v38 = vsel %vm1145_vm9, %v10022_v11, -inf  ;;  %v10048_v49 = vadd.f32 %v7650_v60, %v2865_v62  ;;  %v13060_v37 = vld [vmem:[#allocation88_spill] sm:$0xff] }
 0x650   :  { %v3732_v36 = vmul.f32 0.2, %v9909_v18  ;;  %v10054_v52 = vadd.f32 %v7651_v29, %v2867_v61  ;;  %v3764_v53 = vmax.f32 %v9893_v27, %v3728_v17  ;;  %v10058_v4 = vmul.f32 0.2, %v9999_v13  ;;  %13061 = vst [vmem:[#allocation88_spill] sm:$0xff] %v10064_v33 }
 0x651   :  { %13057 = vst [vmem:[#allocation142_spill] sm:$0xff] %v10040_v12  ;;  %13058 = vst [vmem:[#allocation143_spill] sm:$0xff] %v10048_v49  ;;  %2946 = vmax.xlane.f32.xlu0 %v2945_v30  ;;  %2017 = vadd.xlane.f32.xlu1 %v2016_v24  ;;  %v10062_v62 = vadd.f32 %v9702_v34, %v13060_v37  ;;  %v1955_v47 = vmul.f32 1.442695, %v1913_v44  ;;  %v13062_v24 = vld [vmem:[#allocation68_spill] sm:$0xff]  ;;  %v3765_v61 = vmax.f32 %v9897_v41, %v3729_v21 }
 0x652   :  { %13059 = vst [vmem:[#allocation144_spill] sm:$0xff] %v10054_v52  ;;  %v1916_v30 = vsub.f32 %v13062_v24, %v9566_v28  ;;  %v2830_v63 = vmul.f32 0.2, %v10026_v15  ;;  %7140 = vpow2.f32 %v1957_v2  ;;  %v3762_v27 = vmax.f32 %v10010_v51, %v3726_v54  ;;  %v3632_v51 = vpop.permute.xlu0 %3631  ;;  %v7653_v2 = vld [vmem:[%s12409_s4 + $0x70] sm:$0xff] }
 0x653   :  { %v3843_v17 = vmax.f32 %v10040_v12, %v3842_v38  ;;  %v10075_v11 = vadd.f32 %v7652_v10, %v2864_v42  ;;  %v10078_v44 = vadd.f32 %v9702_v34, %v2734_v40  ;;  %v2948_v24 = vsel %vm1145_vm9, %v10048_v49, -inf }
 0x654   :  { %v2019_v41 = vsel %vm1145_vm9, %v10035_v3, 0.0  ;;  %v10084_v21 = vadd.f32 %v7650_v60, %v3763_v58  ;;  %v10090_v42 = vadd.f32 %v7653_v2, %v3764_v53  ;;  %v3768_v54 = vmax.f32 %v9909_v18, %v3732_v36  ;;  %v10098_v58 = vpop.eup %7136  ;;  %v13066_v60 = vld [vmem:[#allocation64_spill] sm:$0xff] }
 0x655   :  { %13063 = vst [vmem:[#allocation68_spill] sm:$0xff] %v10075_v11  ;;  %3844 = vmax.xlane.f32.xlu0 %v3843_v17  ;;  %1328 = vadd.xlane.f32.xlu1 %v9760_v31  ;;  %v3769_v38 = vmax.f32 %v9999_v13, %v10058_v4  ;;  %v10096_v49 = vmul.f32 0.2, %v10062_v62  ;;  %13065 = vst [vmem:[#allocation146_spill] sm:$0xff] %v10098_v58  ;;  %7142 = vpow2.f32 %v1955_v47  ;;  %v1961_v4 = vmul.f32 1.442695, %v1916_v30 }
 0x656   :  { %13064 = vst [vmem:[#allocation145_spill] sm:$0xff] %v10084_v21  ;;  %v1915_v31 = vsub.f32 %v13066_v60, %v9566_v28  ;;  %v2866_v17 = vmax.f32 %v10026_v15, %v2830_v63  ;;  %v10103_v3 = vadd.f32 %v7651_v29, %v3765_v61  ;;  %v10106_v53 = vadd.f32 %v9746_v8, %v2734_v40  ;;  %v13069_v63 = vld [vmem:[#allocation81_spill] sm:$0xff]  ;;  %v13070_v15 = vld [vmem:[#allocation126_spill] sm:$0xff]  ;;  %v10127_v30 = vld [vmem:[%s12409_s4 + $0x90] sm:$0xff] }
 0x657   :  { %v2949_v18 = vmax.f32 %v10075_v11, %v2948_v24  ;;  %v2020_v13 = vadd.f32 %v10064_v33, %v2019_v41  ;;  %v10110_v36 = vadd.f32 %v7652_v10, %v3762_v27  ;;  %v2833_v12 = vmul.f32 0.2, %v10078_v44  ;;  %v13071_v40 = vld [vmem:[#allocation125_spill] sm:$0xff]  ;;  %v2738_v24 = vpop.permute.xlu1 %2737  ;;  %v13075_v11 = vld [vmem:[#allocation127_spill] sm:$0xff] }
 0x658   :  { %13067 = vst [vmem:[#allocation64_spill] sm:$0xff] %v10103_v3  ;;  %v10114_v47 = vadd.f32 %v9582_v5, %v3632_v51  ;;  %v3846_v28 = vsel %vm1145_vm9, %v10084_v21, -inf  ;;  %v1234_v29 = vsub.f32 %v13070_v15, %v13069_v63  ;;  %v1235_v61 = vsub.f32 %v13071_v40, %v13069_v63  ;;  %v13073_v15 = vld [vmem:[#allocation74_spill] sm:$0xff]  ;;  %v13074_v21 = vld [vmem:[#allocation85_spill] sm:$0xff] }
 0x659   :  { %13068 = vst [vmem:[#allocation147_spill] sm:$0xff] %v10110_v36  ;;  %2950 = vmax.xlane.f32.xlu0 %v2949_v18  ;;  %2021 = vadd.xlane.f32.xlu1 %v2020_v13  ;;  %v2952_v10 = vsel %vm1145_vm9, %v10054_v52, -inf  ;;  %v10130_v27 = vadd.f32 %v10127_v30, %v3768_v54  ;;  %v1959_v41 = vmul.f32 1.442695, %v1915_v31  ;;  %v10132_v60 = vadd.f32 %v7653_v2, %v2866_v17 }
 0x65a   :  { %v2023_v63 = vsel %vm1145_vm9, %v10098_v58, 0.0  ;;  %v10138_v13 = vpop.eup %7138  ;;  %v1918_v40 = vsub.f32 %v13073_v15, %v9577_v46  ;;  %v2832_v33 = vmul.f32 0.2, %v10106_v53  ;;  %v3694_v52 = vadd.f32 %v9587_v23, %v3632_v51  ;;  %v7655_v51 = vld [vmem:[%s12409_s4 + $0x98] sm:$0xff] }
 0x65b   :  { %13072 = vst [vmem:[#allocation81_spill] sm:$0xff] %v10138_v13  ;;  %v3847_v54 = vmax.f32 %v10110_v36, %v3846_v28  ;;  %7144 = vpow2.f32 %v1961_v4  ;;  %v2869_v2 = vmax.f32 %v10078_v44, %v2833_v12  ;;  %v2799_v31 = vadd.f32 %v9702_v34, %v2738_v24  ;;  %v13077_v12 = vld [vmem:[#allocation70_spill] sm:$0xff] }
 0x65c   :  { %v3731_v17 = vmul.f32 0.2, %v10114_v47  ;;  %v1286_v58 = vmul.f32 1.442695, %v1234_v29  ;;  %v1288_v18 = vmul.f32 1.442695, %v1235_v61  ;;  %v1239_v43 = vsub.f32 %v13075_v11, %v13074_v21 }
 0x65d   :  { %3848 = vmax.xlane.f32.xlu0 %v3847_v54  ;;  %1332 = vadd.xlane.f32.xlu1 %v9770_v32  ;;  %v10154_v28 = vadd.f32 %v7655_v51, %v3769_v38  ;;  %7146 = vpow2.f32 %v1959_v41  ;;  %v1917_v44 = vsub.f32 %v13077_v12, %v9577_v46  ;;  %v2953_v4 = vmax.f32 %v10132_v60, %v2952_v10  ;;  %v7656_v46 = vld [vmem:[%s12409_s4 + $0x88] sm:$0xff] }
 0x65e   :  { %v2024_v29 = vadd.f32 %v10138_v13, %v2023_v63  ;;  %v1965_v61 = vmul.f32 1.442695, %v1918_v40  ;;  %v2868_v11 = vmax.f32 %v10106_v53, %v2832_v33  ;;  %v2798_v15 = vadd.f32 %v9746_v8, %v2738_v24  ;;  %v13079_v33 = vld [vmem:[#allocation128_spill] sm:$0xff]  ;;  %v13081_v12 = vld [vmem:[#allocation82_spill] sm:$0xff] }
 0x65f   :  { %13076 = vst [vmem:[#allocation126_spill] sm:$0xff] %v10154_v28  ;;  %v3730_v32 = vmul.f32 0.2, %v3694_v52  ;;  %v10162_v54 = vpop.eup %7140  ;;  %v2835_v36 = vmul.f32 0.2, %v2799_v31  ;;  %v3767_v38 = vmax.f32 %v10114_v47, %v3731_v17  ;;  %v3850_v41 = vsel %vm1145_vm9, %v10103_v3, -inf }
 0x660   :  { %13078 = vst [vmem:[#allocation125_spill] sm:$0xff] %v10162_v54  ;;  %v10170_v10 = vadd.f32 %v7656_v46, %v2869_v2  ;;  %7148 = vpow2.f32 %v1286_v58  ;;  %v1238_v53 = vsub.f32 %v13079_v33, %v13074_v21  ;;  %v1296_v24 = vmul.f32 1.442695, %v1239_v43  ;;  %v13080_v47 = vld [vmem:[#allocation96_spill] sm:$0xff]  ;;  %v7657_v43 = vld [vmem:[%s12409_s4 + $0x80] sm:$0xff] }
 0x661   :  { %2954 = vmax.xlane.f32.xlu0 %v2953_v4  ;;  %2025 = vadd.xlane.f32.xlu1 %v2024_v29  ;;  %v3851_v63 = vmax.f32 %v10090_v42, %v3850_v41  ;;  %7150 = vpow2.f32 %v1288_v18  ;;  %v1922_v40 = vsub.f32 %v13080_v47, %v9631_v26  ;;  %v1963_v17 = vmul.f32 1.442695, %v1917_v44 }
 0x662   :  { %v1920_v13 = vsub.f32 %v13081_v12, %v9594_v16  ;;  %v10179_v3 = vpop.eup %7142  ;;  %7152 = vpow2.f32 %v1965_v61  ;;  %v2834_v58 = vmul.f32 0.2, %v2798_v15  ;;  %v3766_v2 = vmax.f32 %v3694_v52, %v3730_v32  ;;  %v13083_v61 = vld [vmem:[#allocation92_spill] sm:$0xff]  ;;  %v13088_v12 = vld [vmem:[#allocation57_spill] sm:$0xff] }
 0x663   :  { %13082 = vst [vmem:[#allocation74_spill] sm:$0xff] %v10179_v3  ;;  %v10184_v21 = vadd.f32 %v7657_v43, %v2868_v11  ;;  %v2871_v4 = vmax.f32 %v2799_v31, %v2835_v36  ;;  %v2956_v18 = vsel %vm1145_vm9, %v10170_v10, -inf  ;;  %v2027_v44 = vsel %vm1145_vm9, %v10162_v54, 0.0  ;;  %v13084_v31 = vld [vmem:[#allocation103_spill] sm:$0xff]  ;;  %v13119_v54 = vld [vmem:[#allocation61_spill] sm:$0xff] }
 0x664   :  { %v10190_v29 = vadd.f32 %v7656_v46, %v3767_v38  ;;  %v1294_v41 = vmul.f32 1.442695, %v1238_v53  ;;  %7154 = vpow2.f32 %v1296_v24  ;;  %v1921_v52 = vsub.f32 %v13083_v61, %v9631_v26  ;;  %v13085_v38 = vld [vmem:[#allocation73_spill] sm:$0xff] }
 0x665   :  { %3852 = vmax.xlane.f32.xlu0 %v3851_v63  ;;  %1336 = vadd.xlane.f32.xlu1 %v9763_v19  ;;  %v10197_v11 = vadd.f32 %v9746_v8, %v13060_v37  ;;  %v1973_v36 = vmul.f32 1.442695, %v1922_v40  ;;  %v1926_v32 = vsub.f32 %v13084_v31, %v9650_v45  ;;  %7156 = vpow2.f32 %v1963_v17 }
 0x666   :  { %v1919_v46 = vsub.f32 %v13085_v38, %v9594_v16  ;;  %v2870_v33 = vmax.f32 %v2798_v15, %v2834_v58  ;;  %v2957_v53 = vmax.f32 %v10184_v21, %v2956_v18  ;;  %v2028_v26 = vadd.f32 %v10179_v3, %v2027_v44  ;;  %v13087_v15 = vld [vmem:[#allocation83_spill] sm:$0xff] }
 0x667   :  { %v10205_v24 = vadd.f32 %v7657_v43, %v3766_v2  ;;  %v1969_v19 = vmul.f32 1.442695, %v1920_v13  ;;  %v10209_v37 = vadd.f32 %v9582_v5, %v9642_v39  ;;  %v3854_v63 = vsel %vm1145_vm9, %v10190_v29, -inf }
 0x668   :  { %v10213_v47 = vadd.f32 %v7655_v51, %v2871_v4  ;;  %v10215_v40 = vpop.eup %7144  ;;  %7158 = vpow2.f32 %v1294_v41  ;;  %v1971_v16 = vmul.f32 1.442695, %v1921_v52  ;;  %v1924_v17 = vsub.f32 %v13087_v15, %v9602_v48 }
 0x669   :  { %13086 = vst [vmem:[#allocation85_spill] sm:$0xff] %v10215_v40  ;;  %2958 = vmax.xlane.f32.xlu0 %v2957_v53  ;;  %2029 = vadd.xlane.f32.xlu1 %v2028_v26  ;;  %v2836_v13 = vmul.f32 0.2, %v10197_v11  ;;  %7160 = vpow2.f32 %v1973_v36  ;;  %v1925_v58 = vsub.f32 %v13088_v12, %v9650_v45  ;;  %v10224_v2 = vadd.f32 %v9702_v34, %v9662_v50  ;;  %v13095_v26 = vld [vmem:[#allocation45_spill] sm:$0xff] }
 0x66a   :  { %v1967_v51 = vmul.f32 1.442695, %v1919_v46  ;;  %v10226_v43 = vpop.eup %7146  ;;  %v1981_v4 = vmul.f32 1.442695, %v1926_v32  ;;  %v10230_v18 = vadd.f32 %v9587_v23, %v9642_v39  ;;  %v3855_v44 = vmax.f32 %v10205_v24, %v3854_v63  ;;  %v13090_v39 = vld [vmem:[#allocation87_spill] sm:$0xff]  ;;  %v13097_v12 = vld [vmem:[#allocation41_spill] sm:$0xff] }
 0x66b   :  { %13089 = vst [vmem:[#allocation127_spill] sm:$0xff] %v10226_v43  ;;  %v10234_v41 = vadd.f32 %v10127_v30, %v2870_v33  ;;  %7162 = vpow2.f32 %v1969_v19  ;;  %v3735_v45 = vmul.f32 0.2, %v10209_v37  ;;  %v2960_v61 = vsel %vm1145_vm9, %v10213_v47, -inf  ;;  %v7658_v33 = vld [vmem:[%s12409_s4 + $0xa8] sm:$0xff] }
 0x66c   :  { %v2031_v52 = vsel %vm1145_vm9, %v10215_v40, 0.0  ;;  %7164 = vpow2.f32 %v1971_v16  ;;  %v10243_v36 = vadd.f32 %v9746_v8, %v9662_v50  ;;  %v1923_v31 = vsub.f32 %v13090_v39, %v9602_v48 }
 0x66d   :  { %v1977_v32 = vmul.f32 1.442695, %v1924_v17  ;;  %3856 = vmax.xlane.f32.xlu0 %v3855_v44  ;;  %1340 = vadd.xlane.f32.xlu1 %v9751_v1  ;;  %v10248_v30 = vpop.eup %7148  ;;  %v2839_v38 = vmul.f32 0.2, %v10224_v2  ;;  %7166 = vpow2.f32 %v1967_v51  ;;  %v2872_v46 = vmax.f32 %v10197_v11, %v2836_v13  ;;  %v13098_v51 = vld [vmem:[#allocation100_spill] sm:$0xff] }
 0x66e   :  { %13091 = vst [vmem:[#allocation70_spill] sm:$0xff] %v10248_v30  ;;  %v13092_v50 = vmax.f32 %v10062_v62, %v10096_v49  ;;  %v10260_v48 = vpop.eup %7150  ;;  %v3734_v1 = vmul.f32 0.2, %v10230_v18  ;;  %v10265_v19 = vadd.f32 %v9582_v5, %v13095_v26  ;;  %v2961_v63 = vmax.f32 %v10234_v41, %v2960_v61 }
 0x66f   :  { %13094 = vst [vmem:[#allocation96_spill] sm:$0xff] %v10260_v48  ;;  %v2032_v11 = vadd.f32 %v10226_v43, %v2031_v52  ;;  %v10269_v16 = vpop.eup %7152  ;;  %v1979_v15 = vmul.f32 1.442695, %v1925_v58  ;;  %7168 = vpow2.f32 %v1981_v4  ;;  %v3771_v49 = vmax.f32 %v10209_v37, %v3735_v45  ;;  %v13100_v4 = vld [vmem:[#allocation102_spill] sm:$0xff] }
 0x670   :  { %v10258_v53 = vadd.f32 %v7658_v33, %v13092_v50  ;;  %13096 = vst [vmem:[#allocation82_spill] sm:$0xff] %v10269_v16  ;;  %v3858_v62 = vsel %vm1145_vm9, %v10154_v28, -inf  ;;  %v2838_v17 = vmul.f32 0.2, %v10243_v36  ;;  %v1975_v13 = vmul.f32 1.442695, %v1923_v31 }
 0x671   :  { %7170 = vpow2.f32 %v1977_v32  ;;  %v1928_v44 = vsub.f32 %v13098_v51, %v13097_v12  ;;  %2962 = vmax.xlane.f32.xlu0 %v2961_v63  ;;  %2033 = vadd.xlane.f32.xlu1 %v2032_v11  ;;  %v10277_v61 = vpop.eup %7154  ;;  %v10281_v58 = vadd.f32 %v9587_v23, %v13095_v26  ;;  %v10285_v37 = vadd.f32 %v9702_v34, %v13100_v4  ;;  %v7659_v52 = vld [vmem:[%s12409_s4 + $0xa0] sm:$0xff] }
 0x672   :  { %13093 = vst [vmem:[#allocation128_spill] sm:$0xff] %v10258_v53  ;;  %13099 = vst [vmem:[#allocation92_spill] sm:$0xff] %v10277_v61  ;;  %v3859_v45 = vmax.f32 %v10130_v27, %v3858_v62  ;;  %v10291_v39 = vadd.f32 %v7659_v52, %v2872_v46  ;;  %v10293_v31 = vpop.eup %7156  ;;  %v2875_v32 = vmax.f32 %v10224_v2, %v2839_v38  ;;  %v3737_v26 = vmul.f32 0.2, %v10265_v19  ;;  %v13104_v2 = vld [vmem:[#allocation97_spill] sm:$0xff]  ;;  %v13105_v43 = vld [vmem:[#allocation66_spill] sm:$0xff] }
 0x673   :  { %13102 = vst [vmem:[#allocation73_spill] sm:$0xff] %v10293_v31  ;;  %v3770_v50 = vmax.f32 %v10230_v18, %v3734_v1  ;;  %v2964_v63 = vsel %vm1145_vm9, %v10258_v53, -inf  ;;  %7172 = vpow2.f32 %v1979_v15  ;;  %v2035_v11 = vsel %vm1145_vm9, %v10269_v16, 0.0  ;;  %v3648_v1 = vpop.permute.xlu0 %3647 }
 0x674   :  { %13101 = vst [vmem:[#allocation103_spill] sm:$0xff] %v10291_v39  ;;  %v10302_v62 = vadd.f32 %v7658_v33, %v3771_v49  ;;  %v1358_v46 = vsel %vm1145_vm9, %v10260_v48, 0.0  ;;  %v2874_v51 = vmax.f32 %v10243_v36, %v2838_v17  ;;  %7174 = vpow2.f32 %v1975_v13  ;;  %v2754_v48 = vpop.permute.xlu1 %2753 }
 0x675   :  { %v1927_v18 = vsub.f32 %v13104_v2, %v13097_v12  ;;  %v1985_v38 = vmul.f32 1.442695, %v1928_v44  ;;  %3860 = vmax.xlane.f32.xlu0 %v3859_v45  ;;  %1344 = vadd.xlane.f32.xlu1 %v13105_v43  ;;  %v10310_v15 = vpop.eup %7158  ;;  %v3736_v16 = vmul.f32 0.2, %v10281_v58  ;;  %v10315_v33 = vadd.f32 %v9746_v8, %v13100_v4  ;;  %v7660_v43 = vld [vmem:[%s12409_s4 + $0xb8] sm:$0xff] }
 0x676   :  { %13103 = vst [vmem:[#allocation83_spill] sm:$0xff] %v10302_v62  ;;  %13106 = vst [vmem:[#allocation57_spill] sm:$0xff] %v10310_v15  ;;  %v2841_v49 = vmul.f32 0.2, %v10285_v37  ;;  %v2965_v36 = vmax.f32 %v10291_v39, %v2964_v63  ;;  %v10319_v17 = vpop.eup %7160  ;;  %v3773_v13 = vmax.f32 %v10265_v19, %v3737_v26  ;;  %v2036_v12 = vadd.f32 %v10293_v31, %v2035_v11  ;;  %v13111_v26 = vld [vmem:[#allocation46_spill] sm:$0xff]  ;;  %v13112_v11 = vld [vmem:[#allocation109_spill] sm:$0xff] }
 0x677   :  { %13107 = vst [vmem:[#allocation87_spill] sm:$0xff] %v10319_v17  ;;  %v10323_v44 = vadd.f32 %v7659_v52, %v3770_v50  ;;  %v10328_v45 = vadd.f32 %v7660_v43, %v2875_v32  ;;  %v10331_v4 = vadd.f32 %v9582_v5, %v3648_v1  ;;  %v3862_v63 = vsel %vm1145_vm9, %v10302_v62, -inf  ;;  %v7661_v31 = vld [vmem:[%s12409_s4 + $0xb0] sm:$0xff] }
 0x678   :  { %v10336_v2 = vadd.f32 %v10248_v30, %v1358_v46  ;;  %v1366_v19 = vsel %vm1145_vm9, %v10277_v61, 0.0  ;;  %v10340_v52 = vpop.eup %7162  ;;  %v1983_v50 = vmul.f32 1.442695, %v1927_v18  ;;  %7176 = vpow2.f32 %v1985_v38 }
 0x679   :  { %13108 = vst [vmem:[#allocation45_spill] sm:$0xff] %v10323_v44  ;;  %13109 = vst [vmem:[#allocation41_spill] sm:$0xff] %v10328_v45  ;;  %v1241_v32 = vsub.f32 %v13112_v11, %v13111_v26  ;;  %2966 = vmax.xlane.f32.xlu0 %v2965_v36  ;;  %2037 = vadd.xlane.f32.xlu1 %v2036_v12  ;;  %v10347_v40 = vadd.f32 %v7661_v31, %v2874_v51  ;;  %v10349_v46 = vpop.eup %7164  ;;  %v2840_v30 = vmul.f32 0.2, %v10315_v33 }
 0x67a   :  { %13110 = vst [vmem:[#allocation100_spill] sm:$0xff] %v10340_v52  ;;  %13114 = vst [vmem:[#allocation97_spill] sm:$0xff] %v10349_v46  ;;  %v3772_v61 = vmax.f32 %v10281_v58, %v3736_v16  ;;  %v2877_v18 = vmax.f32 %v10285_v37, %v2841_v49  ;;  %v2043_v38 = vsel %vm1145_vm9, %v10319_v17, 0.0  ;;  %v10356_v11 = vpop.eup %7166  ;;  %v10359_v36 = vadd.f32 %v9587_v23, %v3648_v1  ;;  %v13118_v17 = vld [vmem:[#allocation50_spill] sm:$0xff] }
 0x67b   :  { %13113 = vst [vmem:[#allocation102_spill] sm:$0xff] %v10347_v40  ;;  %13115 = vst [vmem:[#allocation66_spill] sm:$0xff] %v10356_v11  ;;  %v3863_v12 = vmax.f32 %v10323_v44, %v3862_v63  ;;  %v2968_v51 = vsel %vm1145_vm9, %v10328_v45, -inf  ;;  %v10364_v3 = vadd.f32 %v7660_v43, %v3773_v13  ;;  %v10367_v16 = vadd.f32 %v9702_v34, %v2754_v48  ;;  %v3652_v13 = vpop.permute.xlu0 %3651  ;;  %v13120_v43 = vld [vmem:[#allocation76_spill] sm:$0xff] }
 0x67c   :  { %v3739_v58 = vmul.f32 0.2, %v10331_v4  ;;  %v2039_v37 = vsel %vm1145_vm9, %v10340_v52, 0.0  ;;  %v10373_v49 = vadd.f32 %v10310_v15, %v1366_v19  ;;  %v10375_v1 = vpop.eup %7168  ;;  %7178 = vpow2.f32 %v1983_v50  ;;  %v7662_v50 = vld [vmem:[%s12409_s4 + $0xc8] sm:$0xff] }
 0x67d   :  { %13116 = vst [vmem:[#allocation46_spill] sm:$0xff] %v10364_v3  ;;  %13117 = vst [vmem:[#allocation109_spill] sm:$0xff] %v10375_v1  ;;  %v1300_v63 = vmul.f32 1.442695, %v1241_v32  ;;  %v1930_v45 = vsub.f32 %v13119_v54, %v13118_v17  ;;  %3864 = vmax.xlane.f32.xlu0 %v3863_v12  ;;  %1348 = vadd.xlane.f32.xlu1 %v13120_v43  ;;  %v2044_v62 = vadd.f32 %v10349_v46, %v2043_v38  ;;  %v13125_v43 = vld [vmem:[#allocation104_spill] sm:$0xff] }
 0x67e   :  { %v10381_v44 = vpop.eup %7170  ;;  %v2876_v52 = vmax.f32 %v10315_v33, %v2840_v30  ;;  %v2969_v19 = vmax.f32 %v10347_v40, %v2968_v51  ;;  %v10385_v15 = vadd.f32 %v7661_v31, %v3772_v61  ;;  %v10390_v32 = vadd.f32 %v7662_v50, %v2877_v18  ;;  %v2758_v61 = vpop.permute.xlu1 %2757 }
 0x67f   :  { %13121 = vst [vmem:[#allocation50_spill] sm:$0xff] %v10381_v44  ;;  %v10393_v54 = vadd.f32 %v9746_v8, %v2754_v48  ;;  %v3738_v12 = vmul.f32 0.2, %v10359_v36  ;;  %v2040_v38 = vadd.f32 %v10356_v11, %v2039_v37  ;;  %v3866_v30 = vsel %vm1145_vm9, %v10364_v3, -inf  ;;  %v3656_v39 = vpop.permute.xlu0 %3655 }
 0x680   :  { %13122 = vst [vmem:[#allocation61_spill] sm:$0xff] %v10385_v15  ;;  %13123 = vst [vmem:[#allocation76_spill] sm:$0xff] %v10390_v32  ;;  %v2843_v33 = vmul.f32 0.2, %v10367_v16  ;;  %v3775_v31 = vmax.f32 %v10331_v4, %v3739_v58  ;;  %v10402_v51 = vadd.f32 %v9582_v5, %v3652_v13  ;;  %v2051_v18 = vsel %vm1145_vm9, %v10375_v1, 0.0  ;;  %v10406_v48 = vpop.eup %7172  ;;  %v13127_v4 = vld [vmem:[#allocation65_spill] sm:$0xff] }
 0x681   :  { %13124 = vst [vmem:[#allocation148_spill] sm:$0xff] %v10406_v48  ;;  %v1240_v46 = vsub.f32 %v13125_v43, %v13111_v26  ;;  %7180 = vpow2.f32 %v1300_v63  ;;  %v1989_v37 = vmul.f32 1.442695, %v1930_v45  ;;  %2970 = vmax.xlane.f32.xlu0 %v2969_v19  ;;  %2041 = vadd.xlane.f32.xlu1 %v2040_v38  ;;  %v2047_v11 = vsel %vm1145_vm9, %v10381_v44, 0.0  ;;  %v10412_v3 = vpop.eup %7174  ;;  %v7663_v1 = vld [vmem:[%s12409_s4 + $0xc0] sm:$0xff]  ;;  %v13130_v44 = vld [vmem:[#allocation47_spill] sm:$0xff] }
 0x682   :  { %13126 = vst [vmem:[#allocation104_spill] sm:$0xff] %v10412_v3  ;;  %v1929_v58 = vsub.f32 %v13127_v4, %v13118_v17  ;;  %v3867_v40 = vmax.f32 %v10385_v15, %v3866_v30  ;;  %v10420_v53 = vadd.f32 %v7663_v1, %v2876_v52  ;;  %v2972_v45 = vsel %vm1145_vm9, %v10390_v32, -inf  ;;  %v13131_v32 = vld [vmem:[#allocation110_spill] sm:$0xff] }
 0x683   :  { %v2842_v26 = vmul.f32 0.2, %v10393_v54  ;;  %v10426_v63 = vadd.f32 %v9702_v34, %v2758_v61  ;;  %v3774_v19 = vmax.f32 %v10359_v36, %v3738_v12  ;;  %v10430_v17 = vadd.f32 %v9587_v23, %v3652_v13 }
 0x684   :  { %13128 = vst [vmem:[#allocation65_spill] sm:$0xff] %v10420_v53  ;;  %v2879_v38 = vmax.f32 %v10367_v16, %v2843_v33  ;;  %v3741_v30 = vmul.f32 0.2, %v10402_v51  ;;  %v10434_v43 = vadd.f32 %v7662_v50, %v3775_v31  ;;  %v10437_v52 = vadd.f32 %v10406_v48, %v2051_v18  ;;  %v13133_v50 = vld [vmem:[#allocation78_spill] sm:$0xff] }
 0x685   :  { %v1298_v4 = vmul.f32 1.442695, %v1240_v46  ;;  %7182 = vpow2.f32 %v1989_v37  ;;  %v1931_v15 = vsub.f32 %v13131_v32, %v13130_v44  ;;  %3868 = vmax.xlane.f32.xlu0 %v3867_v40  ;;  %1352 = vadd.xlane.f32.xlu1 %v9854_v57  ;;  %v2048_v36 = vadd.f32 %v10412_v3, %v2047_v11  ;;  %v10443_v13 = vpop.eup %7176  ;;  %v2762_v40 = vpop.permute.xlu1 %2761  ;;  %v13142_v3 = vld [vmem:[#allocation129_spill] sm:$0xff] }
 0x686   :  { %13129 = vst [vmem:[#allocation149_spill] sm:$0xff] %v10434_v43  ;;  %13132 = vst [vmem:[#allocation47_spill] sm:$0xff] %v10443_v13  ;;  %v1987_v16 = vmul.f32 1.442695, %v1929_v58  ;;  %v1932_v12 = vsub.f32 %v13133_v50, %v13130_v44  ;;  %v10448_v33 = vadd.f32 %v9746_v8, %v2758_v61  ;;  %v2973_v46 = vmax.f32 %v10420_v53, %v2972_v45  ;;  %v7664_v61 = vld [vmem:[%s12409_s4 + $0xd8] sm:$0xff]  ;;  %v13136_v45 = vld [vmem:[#allocation42_spill] sm:$0xff] }
 0x687   :  { %v2878_v31 = vmax.f32 %v10393_v54, %v2842_v26  ;;  %v2845_v32 = vmul.f32 0.2, %v10426_v63  ;;  %v3740_v57 = vmul.f32 0.2, %v10430_v17  ;;  %v10454_v18 = vadd.f32 %v7663_v1, %v3774_v19  ;;  %v13137_v26 = vld [vmem:[#allocation52_spill] sm:$0xff] }
 0x688   :  { %v3777_v11 = vmax.f32 %v10402_v51, %v3741_v30  ;;  %v10458_v37 = vadd.f32 %v9582_v5, %v3656_v39  ;;  %v3870_v44 = vsel %vm1145_vm9, %v10434_v43, -inf  ;;  %v10465_v54 = vadd.f32 %v7664_v61, %v2879_v38  ;;  %v13145_v43 = vld [vmem:[#allocation72_spill] sm:$0xff] }
 0x689   :  { %13134 = vst [vmem:[#allocation110_spill] sm:$0xff] %v10454_v18  ;;  %7184 = vpow2.f32 %v1298_v4  ;;  %v1991_v58 = vmul.f32 1.442695, %v1931_v15  ;;  %v1933_v1 = vsub.f32 %v13137_v26, %v13136_v45  ;;  %2974 = vmax.xlane.f32.xlu0 %v2973_v46  ;;  %2045 = vadd.xlane.f32.xlu1 %v2044_v62  ;;  %v2055_v51 = vsel %vm1145_vm9, %v10443_v13, 0.0  ;;  %v10471_v19 = vpop.eup %7178  ;;  %v7665_v62 = vld [vmem:[%s12409_s4 + $0xd0] sm:$0xff] }
 0x68a   :  { %13135 = vst [vmem:[#allocation78_spill] sm:$0xff] %v10465_v54  ;;  %13138 = vst [vmem:[#allocation42_spill] sm:$0xff] %v10471_v19  ;;  %7186 = vpow2.f32 %v1987_v16  ;;  %v1993_v30 = vmul.f32 1.442695, %v1932_v12  ;;  %v2844_v50 = vmul.f32 0.2, %v10448_v33  ;;  %v10475_v48 = vadd.f32 %v9702_v34, %v2762_v40 }
 0x68b   :  { %v3776_v38 = vmax.f32 %v10430_v17, %v3740_v57  ;;  %v10479_v15 = vadd.f32 %v9587_v23, %v3656_v39  ;;  %v3871_v4 = vmax.f32 %v10454_v18, %v3870_v44  ;;  %v10485_v46 = vadd.f32 %v7665_v62, %v2878_v31  ;;  %v13141_v39 = vld [vmem:[#allocation89_spill] sm:$0xff]  ;;  %v3660_v44 = vpop.permute.xlu0 %3659 }
 0x68c   :  { %v2881_v16 = vmax.f32 %v10426_v63, %v2845_v32  ;;  %v3743_v12 = vmul.f32 0.2, %v10458_v37  ;;  %v2976_v26 = vsel %vm1145_vm9, %v10465_v54, -inf  ;;  %v10491_v13 = vadd.f32 %v7664_v61, %v3777_v11  ;;  %v13144_v32 = vld [vmem:[#allocation56_spill] sm:$0xff] }
 0x68d   :  { %13139 = vst [vmem:[#allocation52_spill] sm:$0xff] %v10485_v46  ;;  %7188 = vpow2.f32 %v1991_v58  ;;  %v1934_v17 = vsub.f32 %v13141_v39, %v13136_v45  ;;  %v1995_v57 = vmul.f32 1.442695, %v1933_v1  ;;  %3872 = vmax.xlane.f32.xlu0 %v3871_v4  ;;  %1356 = vadd.xlane.f32.xlu1 %v13142_v3  ;;  %v10497_v31 = vadd.f32 %v10471_v19, %v2055_v51  ;;  %v2766_v45 = vpop.permute.xlu1 %2765  ;;  %v13150_v39 = vld [vmem:[#allocation111_spill] sm:$0xff]  ;;  %v13151_v19 = vld [vmem:[#allocation112_spill] sm:$0xff] }
 0x68e   :  { %13140 = vst [vmem:[#allocation150_spill] sm:$0xff] %v10491_v13  ;;  %v10499_v63 = vpop.eup %7180  ;;  %7190 = vpow2.f32 %v1993_v30  ;;  %v1935_v54 = vsub.f32 %v13145_v43, %v13144_v32  ;;  %v2880_v11 = vmax.f32 %v10448_v33, %v2844_v50  ;;  %v10505_v61 = vadd.f32 %v9746_v8, %v2762_v40  ;;  %v7666_v33 = vld [vmem:[%s12409_s4 + $0xe8] sm:$0xff] }
 0x68f   :  { %13143 = vst [vmem:[#allocation89_spill] sm:$0xff] %v10499_v63  ;;  %v2847_v58 = vmul.f32 0.2, %v10475_v48  ;;  %v3742_v1 = vmul.f32 0.2, %v10479_v15  ;;  %v2977_v3 = vmax.f32 %v10485_v46, %v2976_v26  ;;  %v10510_v51 = vadd.f32 %v7665_v62, %v3776_v38  ;;  %v13148_v26 = vld [vmem:[#allocation62_spill] sm:$0xff] }
 0x690   :  { %v3779_v4 = vmax.f32 %v10458_v37, %v3743_v12  ;;  %v10514_v30 = vadd.f32 %v9582_v5, %v3660_v44  ;;  %v3874_v43 = vsel %vm1145_vm9, %v10491_v13, -inf  ;;  %v10521_v40 = vadd.f32 %v7666_v33, %v2881_v16 }
 0x691   :  { %13146 = vst [vmem:[#allocation129_spill] sm:$0xff] %v10510_v51  ;;  %7192 = vpow2.f32 %v1995_v57  ;;  %v1997_v50 = vmul.f32 1.442695, %v1934_v17  ;;  %v1936_v38 = vsub.f32 %v13148_v26, %v13144_v32  ;;  %2978 = vmax.xlane.f32.xlu0 %v2977_v3  ;;  %2049 = vadd.xlane.f32.xlu1 %v2048_v36  ;;  %v10527_v37 = vsel %vm1145_vm9, %v10499_v63, 0.0  ;;  %v7667_v3 = vld [vmem:[%s12409_s4 + $0xe0] sm:$0xff] }
 0x692   :  { %13147 = vst [vmem:[#allocation56_spill] sm:$0xff] %v10521_v40  ;;  %v10529_v62 = vpop.eup %7182  ;;  %v1999_v12 = vmul.f32 1.442695, %v1935_v54  ;;  %v1937_v13 = vsub.f32 %v13151_v19, %v13150_v39  ;;  %v2846_v16 = vmul.f32 0.2, %v10505_v61  ;;  %v10535_v57 = vadd.f32 %v9702_v34, %v2766_v45 }
 0x693   :  { %13149 = vst [vmem:[#allocation72_spill] sm:$0xff] %v10529_v62  ;;  %v3778_v17 = vmax.f32 %v10479_v15, %v3742_v1  ;;  %v10539_v32 = vadd.f32 %v9587_v23, %v3660_v44  ;;  %v3875_v36 = vmax.f32 %v10510_v51, %v3874_v43  ;;  %v10545_v54 = vadd.f32 %v7667_v3, %v2880_v11  ;;  %v13154_v44 = vld [vmem:[#allocation115_spill] sm:$0xff]  ;;  %v13155_v1 = vld [vmem:[#allocation108_spill] sm:$0xff]  ;;  %v3664_v51 = vpop.permute.xlu0 %3663 }
 0x694   :  { %v2883_v19 = vmax.f32 %v10475_v48, %v2847_v58  ;;  %v3745_v26 = vmul.f32 0.2, %v10514_v30  ;;  %v2980_v63 = vsel %vm1145_vm9, %v10521_v40, -inf  ;;  %v10551_v46 = vadd.f32 %v7666_v33, %v3779_v4 }
 0x695   :  { %13152 = vst [vmem:[#allocation62_spill] sm:$0xff] %v10545_v54  ;;  %7194 = vpow2.f32 %v1997_v50  ;;  %v2001_v15 = vmul.f32 1.442695, %v1936_v38  ;;  %v1243_v43 = vsub.f32 %v13155_v1, %v13154_v44  ;;  %3876 = vmax.xlane.f32.xlu0 %v3875_v36  ;;  %1360 = vadd.xlane.f32.xlu1 %v10336_v2  ;;  %v10558_v11 = vsel %vm1145_vm9, %v10529_v62, 0.0  ;;  %v2770_v36 = vpop.permute.xlu1 %2769 }
 0x696   :  { %13153 = vst [vmem:[#allocation111_spill] sm:$0xff] %v10551_v46  ;;  %v10560_v48 = vpop.eup %7184  ;;  %7196 = vpow2.f32 %v1999_v12  ;;  %v2003_v58 = vmul.f32 1.442695, %v1937_v13  ;;  %v2882_v4 = vmax.f32 %v10505_v61, %v2846_v16  ;;  %v10564_v33 = vadd.f32 %v9746_v8, %v2766_v45  ;;  %v7668_v45 = vld [vmem:[%s12409_s4 + $0xf8] sm:$0xff] }
 0x697   :  { %v10566_v50 = vpop.eup %7186  ;;  %v2849_v38 = vmul.f32 0.2, %v10535_v57  ;;  %v3744_v2 = vmul.f32 0.2, %v10539_v32  ;;  %v2981_v1 = vmax.f32 %v10545_v54, %v2980_v63  ;;  %v10571_v62 = vadd.f32 %v7667_v3, %v3778_v17  ;;  %v13158_v16 = vld [vmem:[#allocation69_spill] sm:$0xff]  ;;  %v13159_v17 = vld [vmem:[#allocation79_spill] sm:$0xff] }
 0x698   :  { %v3781_v40 = vmax.f32 %v10514_v30, %v3745_v26  ;;  %v10575_v13 = vadd.f32 %v9582_v5, %v3664_v51  ;;  %v3878_v61 = vsel %vm1145_vm9, %v10551_v46, -inf  ;;  %v10582_v12 = vadd.f32 %v7668_v45, %v2883_v19  ;;  %v13160_v46 = vld [vmem:[#allocation123_spill] sm:$0xff]  ;;  %v13161_v54 = vld [vmem:[#allocation48_spill] sm:$0xff] }
 0x699   :  { %13156 = vst [vmem:[#allocation112_spill] sm:$0xff] %v10571_v62  ;;  %7198 = vpow2.f32 %v2001_v15  ;;  %v1938_v63 = vsub.f32 %v13158_v16, %v13150_v39  ;;  %v1242_v3 = vsub.f32 %v13159_v17, %v13154_v44  ;;  %v1304_v30 = vmul.f32 1.442695, %v1243_v43  ;;  %2982 = vmax.xlane.f32.xlu0 %v2981_v1  ;;  %2053 = vadd.xlane.f32.xlu1 %v10437_v52  ;;  %v7669_v43 = vld [vmem:[%s12409_s4 + $0xf0] sm:$0xff]  ;;  %v3668_v17 = vpop.permute.xlu0 %3667 }
 0x69a   :  { %13157 = vst [vmem:[#allocation115_spill] sm:$0xff] %v10582_v12  ;;  %v10589_v26 = vpop.eup %7188  ;;  %7200 = vpow2.f32 %v2003_v58  ;;  %v1245_v18 = vsub.f32 %v13161_v54, %v13160_v46  ;;  %v2848_v19 = vmul.f32 0.2, %v10564_v33  ;;  %v10595_v15 = vadd.f32 %v9702_v34, %v2770_v36 }
 0x69b   :  { %v10597_v53 = vpop.eup %7190  ;;  %v3780_v39 = vmax.f32 %v10539_v32, %v3744_v2  ;;  %v10601_v44 = vadd.f32 %v9587_v23, %v3664_v51  ;;  %v3879_v52 = vmax.f32 %v10571_v62, %v3878_v61  ;;  %v10607_v58 = vadd.f32 %v7669_v43, %v2882_v4  ;;  %v13163_v2 = vld [vmem:[#allocation101_spill] sm:$0xff]  ;;  %v13165_v62 = vld [vmem:[#allocation84_spill] sm:$0xff] }
 0x69c   :  { %13162 = vst [vmem:[#allocation108_spill] sm:$0xff] %v10597_v53  ;;  %v2885_v54 = vmax.f32 %v10535_v57, %v2849_v38  ;;  %v3747_v34 = vmul.f32 0.2, %v10575_v13  ;;  %v2984_v1 = vsel %vm1145_vm9, %v10582_v12, -inf  ;;  %v10613_v16 = vadd.f32 %v7668_v45, %v3781_v40  ;;  %v13164_v38 = vld [vmem:[#allocation58_spill] sm:$0xff] }
 0x69d   :  { %v2005_v32 = vmul.f32 1.442695, %v1938_v63  ;;  %v1302_v51 = vmul.f32 1.442695, %v1242_v3  ;;  %7202 = vpow2.f32 %v1304_v30  ;;  %v1244_v61 = vsub.f32 %v13163_v2, %v13160_v46  ;;  %3880 = vmax.xlane.f32.xlu0 %v3879_v52  ;;  %1364 = vadd.xlane.f32.xlu1 %v9857_v9  ;;  %v13167_v30 = vld [vmem:[#allocation113_spill] sm:$0xff]  ;;  %v13168_v52 = vld [vmem:[#allocation99_spill] sm:$0xff] }
 0x69e   :  { %v10618_v4 = vpop.eup %7192  ;;  %v1308_v57 = vmul.f32 1.442695, %v1245_v18  ;;  %v1247_v28 = vsub.f32 %v13165_v62, %v13164_v38  ;;  %v2884_v12 = vmax.f32 %v10564_v33, %v2848_v19  ;;  %v10624_v40 = vadd.f32 %v9746_v8, %v2770_v36  ;;  %v7670_v8 = vld [vmem:[%s12409_s4 + $0x108] sm:$0xff] }
 0x69f   :  { %v2851_v45 = vmul.f32 0.2, %v10595_v15  ;;  %v3746_v63 = vmul.f32 0.2, %v10601_v44  ;;  %v2985_v46 = vmax.f32 %v10607_v58, %v2984_v1  ;;  %v10629_v3 = vadd.f32 %v7669_v43, %v3780_v39  ;;  %v13166_v36 = vld [vmem:[#allocation119_spill] sm:$0xff]  ;;  %v13170_v1 = vld [vmem:[#allocation49_spill] sm:$0xff] }
 0x6a0   :  { %v3783_v9 = vmax.f32 %v10575_v13, %v3747_v34  ;;  %v10633_v18 = vadd.f32 %v9582_v5, %v3668_v17  ;;  %v3882_v62 = vsel %vm1145_vm9, %v10613_v16, -inf  ;;  %v10640_v33 = vadd.f32 %v7670_v8, %v2885_v54  ;;  %v13169_v34 = vld [vmem:[#allocation132_spill] sm:$0xff] }
 0x6a1   :  { %7204 = vpow2.f32 %v1302_v51  ;;  %v1940_v19 = vsub.f32 %v13167_v30, %v13166_v36  ;;  %v1306_v39 = vmul.f32 1.442695, %v1244_v61  ;;  %v1246_v13 = vsub.f32 %v13168_v52, %v13164_v38  ;;  %2986 = vmax.xlane.f32.xlu0 %v2985_v46  ;;  %2057 = vadd.xlane.f32.xlu1 %v10497_v31  ;;  %v7671_v31 = vld [vmem:[%s12409_s4 + $0x100] sm:$0xff] }
 0x6a2   :  { %v10647_v5 = vpop.eup %7194  ;;  %7206 = vpow2.f32 %v1308_v57  ;;  %v1312_v43 = vmul.f32 1.442695, %v1247_v28  ;;  %v1249_v2 = vsub.f32 %v13170_v1, %v13169_v34  ;;  %v2850_v54 = vmul.f32 0.2, %v10624_v40 }
 0x6a3   :  { %v10652_v51 = vpop.eup %7196  ;;  %v3782_v30 = vmax.f32 %v10601_v44, %v3746_v63  ;;  %v10656_v61 = vadd.f32 %v9587_v23, %v3668_v17  ;;  %v3883_v38 = vmax.f32 %v10629_v3, %v3882_v62  ;;  %v10662_v57 = vadd.f32 %v7671_v31, %v2884_v12  ;;  %v13171_v44 = vld [vmem:[#allocation51_spill] sm:$0xff] }
 0x6a4   :  { %v2887_v28 = vmax.f32 %v10595_v15, %v2851_v45  ;;  %v3749_v46 = vmul.f32 0.2, %v10633_v18  ;;  %v2988_v52 = vsel %vm1145_vm9, %v10640_v33, -inf  ;;  %v10668_v1 = vadd.f32 %v7670_v8, %v3783_v9  ;;  %v13172_v62 = vld [vmem:[#allocation107_spill] sm:$0xff] }
 0x6a5   :  { %7208 = vpow2.f32 %v2005_v32  ;;  %v1310_v23 = vmul.f32 1.442695, %v1246_v13  ;;  %v1248_v17 = vsub.f32 %v13171_v44, %v13169_v34  ;;  %3884 = vmax.xlane.f32.xlu0 %v3883_v38  ;;  %1368 = vadd.xlane.f32.xlu1 %v10373_v49  ;;  %v2060_v12 = vadd.f32 %v10566_v50, %v10558_v11  ;;  %v1906_v38 = vpop.xlane.xlu1 %1905 }
 0x6a6   :  { %v10675_v63 = vpop.eup %7198  ;;  %v2009_v15 = vmul.f32 1.442695, %v1940_v19  ;;  %7210 = vpow2.f32 %v1306_v39  ;;  %v1316_v45 = vmul.f32 1.442695, %v1249_v2  ;;  %v1251_v9 = vsub.f32 %v13172_v62, %v9876_v25  ;;  %v7672_v39 = vld [vmem:[%s12409_s4 + $0x118] sm:$0xff] }
 0x6a7   :  { %v10679_v8 = vpop.eup %7200  ;;  %v2886_v32 = vmax.f32 %v10624_v40, %v2850_v54  ;;  %v3748_v13 = vmul.f32 0.2, %v10656_v61  ;;  %v2989_v34 = vmax.f32 %v10662_v57, %v2988_v52  ;;  %v10684_v49 = vadd.f32 %v7671_v31, %v3782_v30  ;;  %v13174_v40 = vld [vmem:[#allocation94_spill] sm:$0xff]  ;;  %v1217_v30 = vpop.xlane.xlu0 %1216  ;;  %v13175_v31 = vld [vmem:[#allocation93_spill] sm:$0xff] }
 0x6a8   :  { %13173 = vst [vmem:[#allocation69_spill] sm:$0xff] %v10679_v8  ;;  %7212 = vpow2.f32 %v1312_v43  ;;  %v3785_v11 = vmax.f32 %v10633_v18, %v3749_v46  ;;  %v3886_v19 = vsel %vm1145_vm9, %v10668_v1, -inf  ;;  %v10692_v2 = vadd.f32 %v7672_v39, %v2887_v28 }
 0x6a9   :  { %v1939_v54 = vsub.f32 %v13174_v40, %v13166_v36  ;;  %7214 = vpow2.f32 %v1310_v23  ;;  %v1314_v52 = vmul.f32 1.442695, %v1248_v17  ;;  %2990 = vmax.xlane.f32.xlu0 %v2989_v34  ;;  %2061 = vadd.xlane.f32.xlu1 %v2060_v12  ;;  %v1371_v18 = vadd.f32 %v10560_v48, %v10527_v37  ;;  %v13176_v23 = vld [vmem:[#allocation90_spill] sm:$0xff]  ;;  %v7673_v37 = vld [vmem:[%s12409_s4 + $0x110] sm:$0xff] }
 0x6aa   :  { %v10698_v43 = vpop.eup %7202  ;;  %7216 = vpow2.f32 %v1316_v45  ;;  %v1250_v46 = vsub.f32 %v13175_v31, %v9876_v25  ;;  %v1320_v44 = vmul.f32 1.442695, %v1251_v9  ;;  %v2063_v28 = vsel %vm1145_vm9, %v10597_v53, 0.0  ;;  %v13177_v45 = vld [vmem:[#allocation95_spill] sm:$0xff] }
 0x6ab   :  { %v3784_v36 = vmax.f32 %v10656_v61, %v3748_v13  ;;  %v1942_v17 = vsub.f32 %v13176_v23, %v1906_v38  ;;  %v3887_v62 = vmax.f32 %v10684_v49, %v3886_v19  ;;  %v10710_v12 = vadd.f32 %v7673_v37, %v2886_v32  ;;  %v13178_v19 = vld [vmem:[#allocation98_spill] sm:$0xff] }
 0x6ac   :  { %7218 = vpow2.f32 %v2009_v15  ;;  %v1253_v34 = vsub.f32 %v13177_v45, %v1217_v30  ;;  %v2992_v25 = vsel %vm1145_vm9, %v10692_v2, -inf  ;;  %v10715_v9 = vadd.f32 %v7672_v39, %v3785_v11  ;;  %v13179_v45 = vld [vmem:[#allocation105_spill] sm:$0xff] }
 0x6ad   :  { %v2007_v40 = vmul.f32 1.442695, %v1939_v54  ;;  %7220 = vpow2.f32 %v1314_v52  ;;  %3888 = vmax.xlane.f32.xlu0 %v3887_v62  ;;  %1372 = vadd.xlane.f32.xlu1 %v1371_v18  ;;  %v1318_v13 = vmul.f32 1.442695, %v1250_v46  ;;  %v1941_v31 = vsub.f32 %v13178_v19, %v1906_v38 }
 0x6ae   :  { %v10717_v61 = vpop.eup %7204  ;;  %7222 = vpow2.f32 %v1320_v44  ;;  %v2064_v32 = vadd.f32 %v10589_v26, %v2063_v28  ;;  %v2013_v23 = vmul.f32 1.442695, %v1942_v17  ;;  %v1252_v53 = vsub.f32 %v13179_v45, %v1217_v30 }
 0x6af   :  { %v10721_v15 = vpop.eup %7206  ;;  %v2993_v11 = vmax.f32 %v10710_v12, %v2992_v25  ;;  %v10725_v39 = vadd.f32 %v7673_v37, %v3784_v36  ;;  %v1324_v54 = vmul.f32 1.442695, %v1253_v34  ;;  %v3890_v52 = vsel %vm1145_vm9, %v10715_v9, -inf }
 0x6b0   :  { %v1374_v18 = vsel %vm1145_vm9, %v10698_v43, 0.0  ;;  %7224 = vpow2.f32 %v2007_v40  ;;  %v2011_v46 = vmul.f32 1.442695, %v1941_v31  ;;  %v1322_v30 = vmul.f32 1.442695, %v1252_v53 }
 0x6b1   :  { %2994 = vmax.xlane.f32.xlu0 %v2993_v11  ;;  %2065 = vadd.xlane.f32.xlu1 %v2064_v32  ;;  %7226 = vpow2.f32 %v1318_v13  ;;  %v3891_v28 = vmax.f32 %v10725_v39, %v3890_v52  ;;  %v1375_v36 = vadd.f32 %v10717_v61, %v1374_v18  ;;  %v1378_v17 = vsel %vm1145_vm9, %v10721_v15, 0.0 }
 0x6b2   :  { %v10731_v38 = vpop.eup %7208  ;;  %7228 = vpow2.f32 %v2013_v23  ;;  %v2067_v62 = vsel %vm1145_vm9, %v10647_v5, 0.0  ;;  %v2071_v19 = vsel %vm1145_vm9, %v10675_v63, 0.0 }
 0x6b3   :  { %13180 = vst [vmem:[#allocation79_spill] sm:$0xff] %v10731_v38  ;;  %v10733_v44 = vpop.eup %7210  ;;  %7230 = vpow2.f32 %v1324_v54  ;;  %v2068_v40 = vadd.f32 %v10618_v4, %v2067_v62  ;;  %v2072_v11 = vadd.f32 %v10652_v51, %v2071_v19  ;;  %v2075_v52 = vsel %vm1145_vm9, %v10731_v38, 0.0 }
 0x6b4   :  { %7232 = vpow2.f32 %v2011_v46  ;;  %v1379_v53 = vadd.f32 %v10733_v44, %v1378_v17 }
 0x6b5   :  { %v10741_v37 = vpop.eup %7212  ;;  %3892 = vmax.xlane.f32.xlu0 %v3891_v28  ;;  %1376 = vadd.xlane.f32.xlu1 %v1375_v36  ;;  %7234 = vpow2.f32 %v1322_v30  ;;  %v2076_v28 = vadd.f32 %v10679_v8, %v2075_v52 }
 0x6b6   :  { %v10743_v34 = vpop.eup %7214  ;;  %v1382_v13 = vsel %vm1145_vm9, %v10741_v37, 0.0 }
 0x6b7   :  { %v10745_v25 = vpop.eup %7216  ;;  %v1383_v45 = vadd.f32 %v10743_v34, %v1382_v13 }
 0x6b8   :  { %13181 = vst [vmem:[#allocation123_spill] sm:$0xff] %v10745_v25  ;;  %v1386_v54 = vsel %vm1145_vm9, %v10745_v25, 0.0 }
 0x6b9   :  { %v10753_v31 = vpop.eup %7218  ;;  %1380 = vadd.xlane.f32.xlu0 %v1379_v53  ;;  %2069 = vadd.xlane.f32.xlu1 %v2068_v40 }
 0x6ba   :  { %13182 = vst [vmem:[#allocation48_spill] sm:$0xff] %v10753_v31  ;;  %v10755_v32 = vpop.eup %7220  ;;  %v2079_v40 = vsel %vm1145_vm9, %v10753_v31, 0.0  ;;  %v13191_v31 = vld [vmem:[#allocation133_spill] sm:$0xff] }
 0x6bb   :  { %13183 = vst [vmem:[#allocation101_spill] sm:$0xff] %v10755_v32  ;;  %v10757_v23 = vpop.eup %7222  ;;  %v1387_v30 = vadd.f32 %v10755_v32, %v1386_v54 }
 0x6bc   :  { %13184 = vst [vmem:[#allocation58_spill] sm:$0xff] %v10757_v23  ;;  %v1390_v53 = vsel %vm1145_vm9, %v10757_v23, 0.0  ;;  %v13190_v23 = vld [vmem:[#allocation135_spill] sm:$0xff] }
 0x6bd   :  { %1384 = vadd.xlane.f32.xlu0 %v1383_v45  ;;  %2073 = vadd.xlane.f32.xlu1 %v2072_v11  ;;  %v10765_v18 = vpop.eup %7224 }
 0x6be   :  { %13185 = vst [vmem:[#allocation84_spill] sm:$0xff] %v10765_v18  ;;  %v2927_v46 = vpop.xlane.xlu1 %2926  ;;  %v10769_v36 = vpop.eup %7226 }
 0x6bf   :  { %13186 = vst [vmem:[#allocation119_spill] sm:$0xff] %v10769_v36  ;;  %v2996_v17 = vsub.f32 %v9815_v56, %v2927_v46  ;;  %v2997_v62 = vsub.f32 %v9820_v22, %v2927_v46  ;;  %v10777_v13 = vpop.eup %7228  ;;  %v1391_v52 = vadd.f32 %v10769_v36, %v1390_v53  ;;  %v2080_v56 = vadd.f32 %v10765_v18, %v2079_v40  ;;  %v3833_v46 = vpop.xlane.xlu0 %3832  ;;  %v13192_v53 = vld [vmem:[#allocation44_spill] sm:$0xff]  ;;  %v13194_v36 = vld [vmem:[#allocation134_spill] sm:$0xff] }
 0x6c0   :  { %13187 = vst [vmem:[#allocation113_spill] sm:$0xff] %v10777_v13  ;;  %v10779_v19 = vpop.eup %7230  ;;  %v2083_v38 = vsel %vm1145_vm9, %v10777_v13, 0.0  ;;  %v3899_v40 = vsub.f32 %v13192_v53, %v3833_v46  ;;  %v13196_v53 = vld [vmem:[#allocation136_spill] sm:$0xff] }
 0x6c1   :  { %13188 = vst [vmem:[#allocation99_spill] sm:$0xff] %v10779_v19  ;;  %v3032_v45 = vmul.f32 1.442695, %v2996_v17  ;;  %v3034_v11 = vmul.f32 1.442695, %v2997_v62  ;;  %1388 = vadd.xlane.f32.xlu0 %v1387_v30  ;;  %2077 = vadd.xlane.f32.xlu1 %v2076_v28  ;;  %v10783_v22 = vpop.eup %7232  ;;  %v1394_v30 = vsel %vm1145_vm9, %v10779_v19, 0.0 }
 0x6c2   :  { %v3825_v54 = vpop.xlane.xlu1 %3824  ;;  %13189 = vst [vmem:[#allocation132_spill] sm:$0xff] %v10783_v22  ;;  %v10789_v17 = vpop.eup %7234 }
 0x6c3   :  { %7236 = vpow2.f32 %v3032_v45  ;;  %v3894_v32 = vsub.f32 %v13190_v23, %v3825_v54  ;;  %v3895_v8 = vsub.f32 %v13191_v31, %v3825_v54  ;;  %v2084_v23 = vadd.f32 %v10783_v22, %v2083_v38  ;;  %v13193_v31 = vld [vmem:[#allocation137_spill] sm:$0xff]  ;;  %v13197_v38 = vld [vmem:[#allocation75_spill] sm:$0xff] }
 0x6c4   :  { %7238 = vpow2.f32 %v3034_v11  ;;  %v1395_v18 = vadd.f32 %v10789_v17, %v1394_v30 }
 0x6c5   :  { %v3930_v28 = vmul.f32 1.442695, %v3894_v32  ;;  %v3932_v62 = vmul.f32 1.442695, %v3895_v8  ;;  %1392 = vadd.xlane.f32.xlu0 %v1391_v52  ;;  %2081 = vadd.xlane.f32.xlu1 %v2080_v56  ;;  %v13195_v8 = vld [vmem:[#allocation43_spill] sm:$0xff] }
 0x6c6   :  { %v2931_v45 = vpop.xlane.xlu1 %2930  ;;  %v3898_v32 = vsub.f32 %v13195_v8, %v3833_v46  ;;  %v3940_v52 = vmul.f32 1.442695, %v3899_v40 }
 0x6c7   :  { %7240 = vpow2.f32 %v3930_v28  ;;  %v2998_v54 = vsub.f32 %v13193_v31, %v2931_v45  ;;  %v2999_v13 = vsub.f32 %v13194_v36, %v2931_v45 }
 0x6c8   :  { %7242 = vpow2.f32 %v3932_v62  ;;  %v3938_v36 = vmul.f32 1.442695, %v3898_v32  ;;  %v13198_v62 = vld [vmem:[#allocation80_spill] sm:$0xff] }
 0x6c9   :  { %v3036_v11 = vmul.f32 1.442695, %v2998_v54  ;;  %v3038_v25 = vmul.f32 1.442695, %v2999_v13  ;;  %1396 = vadd.xlane.f32.xlu0 %v1395_v18  ;;  %2085 = vadd.xlane.f32.xlu1 %v2084_v23  ;;  %v13199_v18 = vld [vmem:[#allocation138_spill] sm:$0xff] }
 0x6ca   :  { %v3829_v56 = vpop.xlane.xlu1 %3828 }
 0x6cb   :  { %7244 = vpow2.f32 %v3036_v11  ;;  %v3896_v19 = vsub.f32 %v13196_v53, %v3829_v56  ;;  %v3897_v28 = vsub.f32 %v13197_v38, %v3829_v56 }
 0x6cc   :  { %7246 = vpow2.f32 %v3038_v25 }
 0x6cd   :  { %v3934_v31 = vmul.f32 1.442695, %v3896_v19  ;;  %v3936_v22 = vmul.f32 1.442695, %v3897_v28  ;;  %7248 = vpow2.f32 %v3940_v52 }
 0x6ce   :  { %v2935_v30 = vpop.xlane.xlu1 %2934 }
 0x6cf   :  { %7250 = vpow2.f32 %v3934_v31  ;;  %v3000_v13 = vsub.f32 %v13198_v62, %v2935_v30  ;;  %v3001_v45 = vsub.f32 %v13199_v18, %v2935_v30 }
 0x6d0   :  { %v10803_v23 = vpop.eup %7236  ;;  %7252 = vpow2.f32 %v3936_v22  ;;  %v13200_v22 = vld [vmem:[#allocation139_spill] sm:$0xff] }
 0x6d1   :  { %v10805_v46 = vpop.eup %7238  ;;  %v3040_v40 = vmul.f32 1.442695, %v3000_v13  ;;  %v3042_v54 = vmul.f32 1.442695, %v3001_v45  ;;  %7254 = vpow2.f32 %v3938_v36 }
 0x6d2   :  { %v3837_v11 = vpop.xlane.xlu0 %3836  ;;  %v2939_v25 = vpop.xlane.xlu1 %2938  ;;  %v3104_v19 = vsel %vm1145_vm9, %v10805_v46, 0.0 }
 0x6d3   :  { %7256 = vpow2.f32 %v3040_v40  ;;  %v3900_v8 = vsub.f32 %v9957_v20, %v3837_v11  ;;  %v3901_v32 = vsub.f32 %v9951_v7, %v3837_v11  ;;  %v3002_v52 = vsub.f32 %v9922_v35, %v2939_v25 }
 0x6d4   :  { %v10812_v56 = vpop.eup %7240  ;;  %7258 = vpow2.f32 %v3042_v54  ;;  %v3003_v53 = vsub.f32 %v13200_v22, %v2939_v25  ;;  %v3105_v38 = vadd.f32 %v10803_v23, %v3104_v19 }
 0x6d5   :  { %v10816_v28 = vpop.eup %7242  ;;  %v3942_v31 = vmul.f32 1.442695, %v3900_v8  ;;  %v3944_v36 = vmul.f32 1.442695, %v3901_v32  ;;  %v3044_v30 = vmul.f32 1.442695, %v3002_v52 }
 0x6d6   :  { %v3046_v62 = vmul.f32 1.442695, %v3003_v53  ;;  %3106 = vadd.xlane.f32.xlu1 %v3105_v38  ;;  %v3841_v13 = vpop.xlane.xlu0 %3840  ;;  %v2943_v20 = vpop.xlane.xlu1 %2942  ;;  %v4002_v7 = vsel %vm1145_vm9, %v10816_v28, 0.0  ;;  %v13202_v53 = vld [vmem:[#allocation86_spill] sm:$0xff] }
 0x6d7   :  { %7260 = vpow2.f32 %v3942_v31  ;;  %v3902_v35 = vsub.f32 %v9977_v59, %v3841_v13  ;;  %v3903_v18 = vsub.f32 %v9982_v6, %v3841_v13  ;;  %v3004_v45 = vsub.f32 %v9970_v0, %v2943_v20 }
 0x6d8   :  { %v10823_v40 = vpop.eup %7244  ;;  %7262 = vpow2.f32 %v3944_v36  ;;  %v3005_v54 = vsub.f32 %v9962_v14, %v2943_v20  ;;  %v4003_v11 = vadd.f32 %v10812_v56, %v4002_v7 }
 0x6d9   :  { %v10827_v25 = vpop.eup %7246  ;;  %7264 = vpow2.f32 %v3044_v30  ;;  %v3946_v19 = vmul.f32 1.442695, %v3902_v35  ;;  %v3948_v8 = vmul.f32 1.442695, %v3903_v18  ;;  %v3048_v32 = vmul.f32 1.442695, %v3004_v45 }
 0x6da   :  { %7266 = vpow2.f32 %v3046_v62  ;;  %v3050_v52 = vmul.f32 1.442695, %v3005_v54  ;;  %4004 = vadd.xlane.f32.xlu0 %v4003_v11  ;;  %v2947_v59 = vpop.xlane.xlu0 %2946  ;;  %v2018_v6 = vpop.xlane.xlu1 %2017  ;;  %v3108_v0 = vsel %vm1145_vm9, %v10827_v25, 0.0  ;;  %v13206_v45 = vld [vmem:[#allocation142_spill] sm:$0xff]  ;;  %v13207_v11 = vld [vmem:[#allocation141_spill] sm:$0xff] }
 0x6db   :  { %v10831_v22 = vpop.eup %7248  ;;  %7268 = vpow2.f32 %v3946_v19  ;;  %v3006_v14 = vsub.f32 %v10016_v55, %v2947_v59  ;;  %v3007_v38 = vsub.f32 %v13202_v53, %v2947_v59  ;;  %v3109_v31 = vadd.f32 %v10823_v40, %v3108_v0 }
 0x6dc   :  { %13201 = vst [vmem:[#allocation49_spill] sm:$0xff] %v10831_v22  ;;  %v10836_v36 = vpop.eup %7250  ;;  %7270 = vpow2.f32 %v3948_v8  ;;  %v4010_v55 = vsel %vm1145_vm9, %v10831_v22, 0.0 }
 0x6dd   :  { %13203 = vst [vmem:[#allocation51_spill] sm:$0xff] %v10836_v36  ;;  %v10838_v30 = vpop.eup %7252  ;;  %7272 = vpow2.f32 %v3048_v32  ;;  %v3052_v62 = vmul.f32 1.442695, %v3006_v14  ;;  %v3054_v13 = vmul.f32 1.442695, %v3007_v38  ;;  %3110 = vadd.xlane.f32.xlu1 %v3109_v31 }
 0x6de   :  { %13204 = vst [vmem:[#allocation107_spill] sm:$0xff] %v10838_v30  ;;  %7274 = vpow2.f32 %v3050_v52  ;;  %v3845_v20 = vpop.xlane.xlu0 %3844  ;;  %v1329_v7 = vpop.xlane.xlu1 %1328  ;;  %v4006_v35 = vsel %vm1145_vm9, %v10838_v30, 0.0 }
 0x6df   :  { %v10844_v18 = vpop.eup %7254  ;;  %7276 = vpow2.f32 %v3052_v62  ;;  %v3904_v54 = vsub.f32 %v13206_v45, %v3845_v20  ;;  %v3905_v19 = vsub.f32 %v13207_v11, %v3845_v20  ;;  %v4007_v8 = vadd.f32 %v10836_v36, %v4006_v35  ;;  %v13210_v62 = vld [vmem:[#allocation68_spill] sm:$0xff]  ;;  %v13211_v35 = vld [vmem:[#allocation143_spill] sm:$0xff] }
 0x6e0   :  { %13205 = vst [vmem:[#allocation94_spill] sm:$0xff] %v10844_v18  ;;  %v10849_v32 = vpop.eup %7256  ;;  %7278 = vpow2.f32 %v3054_v13  ;;  %v4011_v38 = vadd.f32 %v10844_v18, %v4010_v55 }
 0x6e1   :  { %13208 = vst [vmem:[#allocation93_spill] sm:$0xff] %v10849_v32  ;;  %v10851_v52 = vpop.eup %7258  ;;  %7280 = vrcp.f32 %v2018_v6  ;;  %v3950_v59 = vmul.f32 1.442695, %v3904_v54  ;;  %v3952_v0 = vmul.f32 1.442695, %v3905_v19  ;;  %4008 = vadd.xlane.f32.xlu0 %v4007_v8 }
 0x6e2   :  { %13209 = vst [vmem:[#allocation90_spill] sm:$0xff] %v10851_v52  ;;  %7282 = vrcp.f32 %v1329_v7  ;;  %v2951_v14 = vpop.xlane.xlu0 %2950  ;;  %v2022_v53 = vpop.xlane.xlu1 %2021  ;;  %v3112_v31 = vsel %vm1145_vm9, %v10851_v52, 0.0 }
 0x6e3   :  { %7284 = vpow2.f32 %v3950_v59  ;;  %v3008_v20 = vsub.f32 %v13210_v62, %v2951_v14  ;;  %v3009_v45 = vsub.f32 %v13211_v35, %v2951_v14  ;;  %v3113_v13 = vadd.f32 %v10849_v32, %v3112_v31  ;;  %v13216_v31 = vld [vmem:[#allocation147_spill] sm:$0xff]  ;;  %v13217_v35 = vld [vmem:[#allocation145_spill] sm:$0xff] }
 0x6e4   :  { %v10859_v11 = vpop.eup %7260  ;;  %7286 = vpow2.f32 %v3952_v0 }
 0x6e5   :  { %13212 = vst [vmem:[#allocation95_spill] sm:$0xff] %v10859_v11  ;;  %v10861_v6 = vpop.eup %7262  ;;  %v3058_v7 = vmul.f32 1.442695, %v3009_v45  ;;  %7288 = vrcp.f32 %v2022_v53  ;;  %4012 = vadd.xlane.f32.xlu0 %v4011_v38  ;;  %3114 = vadd.xlane.f32.xlu1 %v3113_v13  ;;  %v3056_v54 = vmul.f32 1.442695, %v3008_v20 }
 0x6e6   :  { %13213 = vst [vmem:[#allocation98_spill] sm:$0xff] %v10861_v6  ;;  %v10863_v55 = vpop.eup %7264  ;;  %v3849_v19 = vpop.xlane.xlu0 %3848  ;;  %v4014_v59 = vsel %vm1145_vm9, %v10861_v6, 0.0 }
 0x6e7   :  { %13214 = vst [vmem:[#allocation105_spill] sm:$0xff] %v10863_v55  ;;  %v1333_v8 = vpop.xlane.xlu1 %1332  ;;  %v10867_v14 = vpop.eup %7266  ;;  %v3906_v62 = vsub.f32 %v13216_v31, %v3849_v19  ;;  %v3907_v0 = vsub.f32 %v13217_v35, %v3849_v19  ;;  %v4015_v32 = vadd.f32 %v10859_v11, %v4014_v59  ;;  %7290 = vpow2.f32 %v3058_v7 }
 0x6e8   :  { %13215 = vst [vmem:[#allocation135_spill] sm:$0xff] %v10867_v14  ;;  %v10872_v45 = vpop.eup %7268  ;;  %v3116_v53 = vsel %vm1145_vm9, %v10867_v14, 0.0  ;;  %7292 = vpow2.f32 %v3056_v54  ;;  %v13222_v14 = vld [vmem:[#allocation144_spill] sm:$0xff] }
 0x6e9   :  { %13218 = vst [vmem:[#allocation133_spill] sm:$0xff] %v10872_v45  ;;  %v10876_v38 = vpop.eup %7270  ;;  %v3956_v20 = vmul.f32 1.442695, %v3907_v0  ;;  %4016 = vadd.xlane.f32.xlu0 %v4015_v32  ;;  %v3117_v13 = vadd.f32 %v10863_v55, %v3116_v53  ;;  %v3954_v31 = vmul.f32 1.442695, %v3906_v62  ;;  %7294 = vrcp.f32 %v1333_v8 }
 0x6ea   :  { %13219 = vst [vmem:[#allocation44_spill] sm:$0xff] %v10876_v38  ;;  %v10879_v6 = vpop.eup %7272  ;;  %v2955_v52 = vpop.xlane.xlu0 %2954  ;;  %v4018_v59 = vsel %vm1145_vm9, %v10876_v38, 0.0 }
 0x6eb   :  { %13220 = vst [vmem:[#allocation137_spill] sm:$0xff] %v10879_v6  ;;  %v2026_v19 = vpop.xlane.xlu1 %2025  ;;  %v10883_v35 = vpop.eup %7274  ;;  %3118 = vadd.xlane.f32.xlu1 %v3117_v13  ;;  %v3010_v7 = vsub.f32 %v10132_v60, %v2955_v52  ;;  %v3011_v0 = vsub.f32 %v13222_v14, %v2955_v52  ;;  %v4019_v32 = vadd.f32 %v10872_v45, %v4018_v59  ;;  %7296 = vpow2.f32 %v3956_v20  ;;  %v13225_v59 = vld [vmem:[#allocation91_spill] sm:$0xff]  ;;  %v13228_v20 = vld [vmem:[#allocation64_spill] sm:$0xff] }
 0x6ec   :  { %13221 = vst [vmem:[#allocation134_spill] sm:$0xff] %v10883_v35  ;;  %v10888_v53 = vpop.eup %7276  ;;  %v3120_v54 = vsel %vm1145_vm9, %v10883_v35, 0.0  ;;  %7298 = vpow2.f32 %v3954_v31  ;;  %v13226_v35 = vld [vmem:[#allocation140_spill] sm:$0xff] }
 0x6ed   :  { %13223 = vst [vmem:[#allocation43_spill] sm:$0xff] %v10888_v53  ;;  %v10892_v62 = vpop.eup %7278  ;;  %4020 = vadd.xlane.f32.xlu0 %v4019_v32  ;;  %v3121_v38 = vadd.f32 %v10879_v6, %v3120_v54  ;;  %v3062_v8 = vmul.f32 1.442695, %v3011_v0  ;;  %v3060_v14 = vmul.f32 1.442695, %v3010_v7  ;;  %7300 = vrcp.f32 %v2026_v19  ;;  %v13229_v54 = vld [vmem:[#allocation71_spill] sm:$0xff] }
 0x6ee   :  { %13224 = vst [vmem:[#allocation136_spill] sm:$0xff] %v10892_v62  ;;  %v7281_v55 = vpop.eup %7280  ;;  %v3853_v13 = vpop.xlane.xlu0 %3852  ;;  %v3124_v60 = vsel %vm1145_vm9, %v10892_v62, 0.0  ;;  %v13231_v31 = vld [vmem:[#allocation60_spill] sm:$0xff] }
 0x6ef   :  { %v1337_v11 = vpop.xlane.xlu1 %1336  ;;  %v7283_v52 = vpop.eup %7282  ;;  %v2106_v45 = vmul.f32 %v7281_v55, %v13225_v59  ;;  %3122 = vadd.xlane.f32.xlu1 %v3121_v38  ;;  %v2105_v18 = vmul.f32 %v7281_v55, %v13226_v35  ;;  %v3909_v32 = vsub.f32 %v13228_v20, %v3853_v13  ;;  %v3125_v6 = vadd.f32 %v10888_v53, %v3124_v60  ;;  %v13232_v60 = vld [vmem:[#allocation36_spill] sm:$0xff]  ;;  %v13233_v20 = vld [vmem:[#allocation33_spill] sm:$0xff] }
 0x6f0   :  { %v10899_v22 = vpop.eup %7284  ;;  %v1417_v0 = vmul.f32 %v7283_v52, %v13229_v54  ;;  %v1416_v7 = vmul.f32 %v7283_v52, %v13231_v31  ;;  %7302 = vpow2.f32 %v3062_v8  ;;  %v3908_v55 = vsub.f32 %v10090_v42, %v3853_v13  ;;  %v13234_v54 = vld [vmem:[#allocation12_spill] sm:$0xff]  ;;  %v13237_v8 = vld [vmem:[#allocation37_spill] sm:$0xff]  ;;  %v13239_v31 = vld [vmem:[#allocation55_spill] sm:$0xff] }
 0x6f1   :  { %13227 = vst [vmem:[#allocation75_spill] sm:$0xff] %v10899_v22  ;;  %v10904_v36 = vpop.eup %7286  ;;  %6209 = vmatprep.mubr.msk.f32.mxu1 %vm1145_vm9, %v2106_v45  ;;  %v3960_v38 = vmul.f32 1.442695, %v3909_v32  ;;  %v3249_v45 = vmul.f32 %v13234_v54, %v13233_v20  ;;  %7304 = vpow2.f32 %v3060_v14  ;;  %v13235_v52 = vmov 0.0   ;;  %v13238_v32 = vld [vmem:[#allocation13_spill] sm:$0xff] }
 0x6f2   :  { %13230 = vst [vmem:[#allocation80_spill] sm:$0xff] %v10904_v36  ;;  %v7289_v62 = vpop.eup %7288  ;;  %2283 = vmatmul.mubr.f32.vlgmr.msra.gmra.mxu1 %v2105_v18  ;;  %6227 = vmatprep.mubr.msk.f32.mxu0 %vm1145_vm9, %v1417_v0  ;;  %v2959_v19 = vpop.xlane.xlu0 %2958  ;;  %v4022_v59 = vsel %vm1145_vm9, %v10904_v36, 0.0  ;;  %7306 = vrcp.f32 %v1337_v11  ;;  %v4147_v0 = vmul.f32 %v13238_v32, %v13233_v20  ;;  %v13243_v20 = vld [vmem:[#allocation88_spill] sm:$0xff] }
 0x6f3   :  { %v2030_v35 = vpop.xlane.xlu1 %2029  ;;  %3308 = vmatpush1.msra.mxu1 %v13232_v60  ;;  %3126 = vadd.xlane.f32.xlu1 %v3125_v6  ;;  %v4023_v42 = vadd.f32 %v10899_v22, %v4022_v59  ;;  %v3013_v13 = vsub.f32 %v10170_v10, %v2959_v19  ;;  %v2108_v60 = vmul.f32 %v7289_v62, %v13239_v31  ;;  %v3958_v6 = vmul.f32 1.442695, %v3908_v55  ;;  %v13242_v10 = vld [vmem:[#allocation30_spill] sm:$0xff] }
 0x6f4   :  { %3309 = vmatprep.subr.mxu1 %v13235_v52  ;;  %2492 = vmatmul.mubr.f32.vlgmr.msra.gmra.mxu0 %v1416_v7  ;;  %v10917_v18 = vpop.eup %7290  ;;  %7308 = vpow2.f32 %v3960_v38  ;;  %v3012_v14 = vsub.f32 %v10184_v21, %v2959_v19  ;;  %v2107_v31 = vmul.f32 %v7289_v62, %v13243_v20 }
 0x6f5   :  { %13236 = vst [vmem:[#allocation138_spill] sm:$0xff] %v10917_v18  ;;  %3310 = vmatpush1.msra.mxu1 %v3249_v45  ;;  %4206 = vmatpush1.msra.mxu0 %v13237_v8  ;;  %v10927_v11 = vpop.eup %7292  ;;  %v13241_v45 = vld [vmem:[#allocation34_spill] sm:$0xff]  ;;  %v3247_v8 = vmul.f32 %v13234_v54, %v13242_v10  ;;  %v3128_v55 = vsel %vm1145_vm9, %v10917_v18, 0.0  ;;  %v3066_v21 = vmul.f32 1.442695, %v3013_v13  ;;  %7310 = vpow2.f32 %v3958_v6  ;;  %v13245_v13 = vld [vmem:[#allocation35_spill] sm:$0xff] }
 0x6f6   :  { %3311 = vmatprep.subr.mxu1 %v13235_v52  ;;  %4207 = vmatprep.subr.mxu0 %v13235_v52  ;;  %v3857_v7 = vpop.xlane.xlu0 %3856  ;;  %13240 = vst [vmem:[#allocation139_spill] sm:$0xff] %v10927_v11  ;;  %v7295_v38 = vpop.eup %7294  ;;  %v3064_v22 = vmul.f32 1.442695, %v3012_v14  ;;  %7312 = vrcp.f32 %v2030_v35 }
 0x6f7   :  { %v1341_v59 = vpop.xlane.xlu1 %1340  ;;  %3312 = vmatpush1.msra.mxu1 %v13241_v45  ;;  %4208 = vmatpush1.msra.mxu0 %v4147_v0  ;;  %v3910_v19 = vsub.f32 %v10205_v24, %v3857_v7  ;;  %v3911_v62 = vsub.f32 %v10190_v29, %v3857_v7  ;;  %v3129_v0 = vadd.f32 %v10927_v11, %v3128_v55  ;;  %v13249_v29 = vld [vmem:[#allocation29_spill] sm:$0xff]  ;;  %v13250_v55 = vld [vmem:[#allocation120_spill] sm:$0xff]  ;;  %7314 = vpow2.f32 %v3066_v21  ;;  %v13252_v21 = vld [vmem:[#allocation146_spill] sm:$0xff] }
 0x6f8   :  { %3313 = vmatprep.subr.mxu1 %v13235_v52  ;;  %4024 = vadd.xlane.f32.xlu0 %v4023_v42  ;;  %v10938_v45 = vpop.eup %7296  ;;  %v4145_v24 = vmul.f32 %v13238_v32, %v13242_v10  ;;  %v3245_v7 = vmul.f32 %v13234_v54, %v13249_v29  ;;  %v1418_v11 = vmul.f32 %v7295_v38, %v13250_v55  ;;  %7316 = vpow2.f32 %v3064_v22 }
 0x6f9   :  { %3314 = vmatpush1.msra.mxu1 %v3247_v8  ;;  %6210 = vmatprep.mubr.msk.f32.mxu1 %vm1145_vm9, %v2108_v60  ;;  %13244 = vst [vmem:[#allocation86_spill] sm:$0xff] %v10938_v45  ;;  %v13246_v60 = vld [vmem:[#allocation118_spill] sm:$0xff]  ;;  %v10948_v14 = vpop.eup %7298  ;;  %v13248_v8 = vld [vmem:[#allocation31_spill] sm:$0xff]  ;;  %7318 = vrcp.f32 %v1341_v59 }
 0x6fa   :  { %3315 = vmatprep.subr.mxu1 %v13235_v52  ;;  %4209 = vmatprep.subr.mxu0 %v13235_v52  ;;  %v2963_v20 = vpop.xlane.xlu0 %2962  ;;  %v1419_v6 = vmul.f32 %v7295_v38, %v13246_v60  ;;  %13247 = vst [vmem:[#allocation142_spill] sm:$0xff] %v10948_v14  ;;  %v4026_v60 = vsel %vm1145_vm9, %v10938_v45, 0.0  ;;  %v13255_v59 = vld [vmem:[#allocation26_spill] sm:$0xff] }
 0x6fb   :  { %v2034_v42 = vpop.xlane.xlu1 %2033  ;;  %2288 = vmatmul.mubr.f32.gmra.mxu1 %v2107_v31  ;;  %4210 = vmatpush1.msra.mxu0 %v13245_v13  ;;  %v3014_v35 = vsub.f32 %v10234_v41, %v2963_v20  ;;  %v7301_v31 = vpop.eup %7300  ;;  %v3962_v13 = vmul.f32 1.442695, %v3910_v19  ;;  %v3015_v10 = vsub.f32 %v10213_v47, %v2963_v20  ;;  %v4027_v22 = vadd.f32 %v10948_v14, %v4026_v60  ;;  %v13267_v14 = vld [vmem:[#allocation23_spill] sm:$0xff] }
 0x6fc   :  { %3316 = vmatpush1.msra.mxu1 %v13248_v8  ;;  %4211 = vmatprep.subr.mxu0 %v13235_v52  ;;  %v3964_v8 = vmul.f32 1.442695, %v3911_v62  ;;  %v2110_v19 = vmul.f32 %v7301_v31, %v13252_v21  ;;  %v13253_v62 = vld [vmem:[#allocation126_spill] sm:$0xff] }
 0x6fd   :  { %3317 = vmatprep.subr.mxu1 %v13235_v52  ;;  %4212 = vmatpush1.msra.mxu0 %v4145_v24  ;;  %v10960_v38 = vpop.eup %7302  ;;  %v3068_v47 = vmul.f32 1.442695, %v3014_v35  ;;  %7320 = vpow2.f32 %v3962_v13  ;;  %v13256_v24 = vld [vmem:[#allocation32_spill] sm:$0xff] }
 0x6fe   :  { %3318 = vmatpush1.msra.mxu1 %v3245_v7  ;;  %3130 = vadd.xlane.f32.xlu1 %v3129_v0  ;;  %v3861_v18 = vpop.xlane.xlu0 %3860  ;;  %13251 = vst [vmem:[#allocation141_spill] sm:$0xff] %v10960_v38  ;;  %v10969_v20 = vpop.eup %7304  ;;  %v13257_v7 = vld [vmem:[#allocation28_spill] sm:$0xff]  ;;  %7322 = vpow2.f32 %v3964_v8  ;;  %v3132_v13 = vsel %vm1145_vm9, %v10960_v38, 0.0 }
 0x6ff   :  { %v1345_v36 = vpop.xlane.xlu1 %1344  ;;  %6228 = vmatprep.mubr.msk.f32.mxu0 %vm1145_vm9, %v1419_v6  ;;  %3319 = vmatprep.subr.mxu1 %v13235_v52  ;;  %v3912_v41 = vsub.f32 %v10130_v27, %v3861_v18  ;;  %v3913_v0 = vsub.f32 %v13253_v62, %v3861_v18  ;;  %13254 = vst [vmem:[#allocation68_spill] sm:$0xff] %v10969_v20  ;;  %v3070_v6 = vmul.f32 1.442695, %v3015_v10  ;;  %v7307_v55 = vpop.eup %7306  ;;  %v13258_v18 = vld [vmem:[#allocation81_spill] sm:$0xff]  ;;  %7324 = vrcp.f32 %v2034_v42  ;;  %v13261_v8 = vld [vmem:[#allocation128_spill] sm:$0xff] }
 0x700   :  { %4213 = vmatprep.subr.mxu0 %v13235_v52  ;;  %2497 = vmatmul.mubr.f32.gmra.mxu0 %v1418_v11  ;;  %v3243_v27 = vmul.f32 %v13234_v54, %v13257_v7  ;;  %v4143_v11 = vmul.f32 %v13238_v32, %v13249_v29  ;;  %v2109_v35 = vmul.f32 %v7301_v31, %v13258_v18  ;;  %v13260_v29 = vld [vmem:[#allocation103_spill] sm:$0xff]  ;;  %7326 = vpow2.f32 %v3068_v47  ;;  %v13262_v18 = vld [vmem:[#allocation25_spill] sm:$0xff] }
 0x701   :  { %3320 = vmatpush1.msra.mxu1 %v13255_v59  ;;  %4214 = vmatpush1.msra.mxu0 %v13256_v24  ;;  %v10982_v10 = vpop.eup %7308  ;;  %v3966_v62 = vmul.f32 1.442695, %v3912_v41  ;;  %v3968_v31 = vmul.f32 1.442695, %v3913_v0  ;;  %v3241_v38 = vmul.f32 %v13234_v54, %v13262_v18  ;;  %7328 = vpow2.f32 %v3070_v6  ;;  %v13264_v47 = vld [vmem:[#allocation27_spill] sm:$0xff] }
 0x702   :  { %3321 = vmatprep.subr.mxu1 %v13235_v52  ;;  %4215 = vmatprep.subr.mxu0 %v13235_v52  ;;  %v2967_v60 = vpop.xlane.xlu0 %2966  ;;  %13259 = vst [vmem:[#allocation143_spill] sm:$0xff] %v10982_v10  ;;  %v4141_v42 = vmul.f32 %v13238_v32, %v13257_v7  ;;  %v3133_v41 = vadd.f32 %v10969_v20, %v3132_v13  ;;  %7330 = vrcp.f32 %v1345_v36  ;;  %v4030_v6 = vsel %vm1145_vm9, %v10982_v10, 0.0  ;;  %v13295_v10 = vld [vmem:[#allocation14_spill] sm:$0xff]  ;;  %v13298_v20 = vld [vmem:[#allocation149_spill] sm:$0xff] }
 0x703   :  { %v2038_v21 = vpop.xlane.xlu1 %2037  ;;  %3322 = vmatpush1.msra.mxu1 %v3243_v27  ;;  %4216 = vmatpush1.msra.mxu0 %v4143_v11  ;;  %v3016_v59 = vsub.f32 %v13260_v29, %v2967_v60  ;;  %v3017_v24 = vsub.f32 %v13261_v8, %v2967_v60  ;;  %v13263_v27 = vld [vmem:[#allocation114_spill] sm:$0xff]  ;;  %v10999_v8 = vpop.eup %7310  ;;  %7332 = vpow2.f32 %v3966_v62 }
 0x704   :  { %4028 = vadd.xlane.f32.xlu0 %v4027_v22  ;;  %6211 = vmatprep.mubr.msk.f32.mxu1 %vm1145_vm9, %v2110_v19  ;;  %v1421_v11 = vmul.f32 %v7307_v55, %v13263_v27  ;;  %v13265_v22 = vld [vmem:[#allocation116_spill] sm:$0xff]  ;;  %13266 = vst [vmem:[#allocation147_spill] sm:$0xff] %v10999_v8  ;;  %v13269_v27 = vld [vmem:[#allocation83_spill] sm:$0xff]  ;;  %7334 = vpow2.f32 %v3968_v31 }
 0x705   :  { %3323 = vmatprep.subr.mxu1 %v13235_v52  ;;  %4217 = vmatprep.subr.mxu0 %v13235_v52  ;;  %v1420_v19 = vmul.f32 %v7307_v55, %v13265_v22  ;;  %v3072_v0 = vmul.f32 1.442695, %v3016_v59  ;;  %v3074_v7 = vmul.f32 1.442695, %v3017_v24  ;;  %7336 = vrcp.f32 %v2038_v21 }
 0x706   :  { %2293 = vmatmul.mubr.f32.gmra.mxu1 %v2109_v35  ;;  %4218 = vmatpush1.msra.mxu0 %v13264_v47  ;;  %v3865_v60 = vpop.xlane.xlu0 %3864  ;;  %v13268_v35 = vld [vmem:[#allocation45_spill] sm:$0xff]  ;;  %v7313_v47 = vpop.eup %7312 }
 0x707   :  { %v1349_v29 = vpop.xlane.xlu1 %1348  ;;  %3324 = vmatpush1.msra.mxu1 %v13267_v14  ;;  %4219 = vmatprep.subr.mxu0 %v13235_v52  ;;  %v3914_v13 = vsub.f32 %v13268_v35, %v3865_v60  ;;  %v3915_v36 = vsub.f32 %v13269_v27, %v3865_v60  ;;  %v11006_v59 = vpop.eup %7314  ;;  %7338 = vpow2.f32 %v3072_v0  ;;  %v4031_v14 = vadd.f32 %v10999_v8, %v4030_v6  ;;  %v13274_v60 = vld [vmem:[#allocation41_spill] sm:$0xff]  ;;  %v13275_v27 = vld [vmem:[#allocation20_spill] sm:$0xff]  ;;  %v13277_v6 = vld [vmem:[#allocation22_spill] sm:$0xff] }
 0x708   :  { %3325 = vmatprep.subr.mxu1 %v13235_v52  ;;  %4220 = vmatpush1.msra.mxu0 %v4141_v42  ;;  %13270 = vst [vmem:[#allocation145_spill] sm:$0xff] %v11006_v59  ;;  %v11011_v31 = vpop.eup %7316  ;;  %7340 = vpow2.f32 %v3074_v7  ;;  %v13273_v42 = vld [vmem:[#allocation102_spill] sm:$0xff]  ;;  %v13276_v0 = vld [vmem:[#allocation24_spill] sm:$0xff]  ;;  %v3136_v7 = vsel %vm1145_vm9, %v11006_v59, 0.0 }
 0x709   :  { %3326 = vmatpush1.msra.mxu1 %v3241_v38  ;;  %3134 = vadd.xlane.f32.xlu1 %v3133_v41  ;;  %v3972_v55 = vmul.f32 1.442695, %v3915_v36  ;;  %v3970_v62 = vmul.f32 1.442695, %v3914_v13  ;;  %13271 = vst [vmem:[#allocation144_spill] sm:$0xff] %v11011_v31  ;;  %v13272_v38 = vld [vmem:[#allocation125_spill] sm:$0xff]  ;;  %v7319_v35 = vpop.eup %7318  ;;  %v3239_v13 = vmul.f32 %v13234_v54, %v13277_v6  ;;  %v4139_v36 = vmul.f32 %v13238_v32, %v13262_v18 }
 0x70a   :  { %6229 = vmatprep.mubr.msk.f32.mxu0 %vm1145_vm9, %v1421_v11  ;;  %3327 = vmatprep.subr.mxu1 %v13235_v52  ;;  %v2971_v24 = vpop.xlane.xlu0 %2970  ;;  %v2112_v21 = vmul.f32 %v7313_v47, %v13272_v38  ;;  %v13278_v8 = vld [vmem:[#allocation74_spill] sm:$0xff]  ;;  %7342 = vrcp.f32 %v1349_v29  ;;  %v13281_v29 = vld [vmem:[#allocation61_spill] sm:$0xff] }
 0x70b   :  { %v2042_v22 = vpop.xlane.xlu1 %2041  ;;  %4221 = vmatprep.subr.mxu0 %v13235_v52  ;;  %2502 = vmatmul.mubr.f32.gmra.mxu0 %v1420_v19  ;;  %v3018_v41 = vsub.f32 %v13273_v42, %v2971_v24  ;;  %v3019_v11 = vsub.f32 %v13274_v60, %v2971_v24  ;;  %v2111_v19 = vmul.f32 %v7313_v47, %v13278_v8  ;;  %7344 = vpow2.f32 %v3972_v55  ;;  %v11028_v42 = vpop.eup %7320  ;;  %v13282_v47 = vld [vmem:[#allocation46_spill] sm:$0xff] }
 0x70c   :  { %3328 = vmatpush1.msra.mxu1 %v13275_v27  ;;  %4222 = vmatpush1.msra.mxu0 %v13276_v0  ;;  %13279 = vst [vmem:[#allocation91_spill] sm:$0xff] %v11028_v42  ;;  %7346 = vpow2.f32 %v3970_v62  ;;  %v11030_v27 = vpop.eup %7322  ;;  %v4137_v62 = vmul.f32 %v13238_v32, %v13277_v6  ;;  %v13288_v6 = vld [vmem:[#allocation19_spill] sm:$0xff] }
 0x70d   :  { %3329 = vmatprep.subr.mxu1 %v13235_v52  ;;  %4223 = vmatprep.subr.mxu0 %v13235_v52  ;;  %v3076_v24 = vmul.f32 1.442695, %v3018_v41  ;;  %v3078_v38 = vmul.f32 1.442695, %v3019_v11  ;;  %13280 = vst [vmem:[#allocation140_spill] sm:$0xff] %v11030_v27  ;;  %7348 = vrcp.f32 %v2042_v22  ;;  %v7325_v0 = vpop.eup %7324  ;;  %v3137_v41 = vadd.f32 %v11011_v31, %v3136_v7  ;;  %v13285_v22 = vld [vmem:[#allocation63_spill] sm:$0xff] }
 0x70e   :  { %3330 = vmatpush1.msra.mxu1 %v3239_v13  ;;  %4224 = vmatpush1.msra.mxu0 %v4139_v36  ;;  %v3869_v60 = vpop.xlane.xlu0 %3868  ;;  %v11040_v11 = vpop.eup %7326  ;;  %v3237_v7 = vmul.f32 %v13234_v54, %v13288_v6 }
 0x70f   :  { %v1353_v18 = vpop.xlane.xlu1 %1352  ;;  %4032 = vadd.xlane.f32.xlu0 %v4031_v14  ;;  %6212 = vmatprep.mubr.msk.f32.mxu1 %vm1145_vm9, %v2112_v21  ;;  %v3916_v8 = vsub.f32 %v13281_v29, %v3869_v60  ;;  %v3917_v55 = vsub.f32 %v13282_v47, %v3869_v60  ;;  %7350 = vpow2.f32 %v3076_v24  ;;  %13283 = vst [vmem:[#allocation64_spill] sm:$0xff] %v11040_v11  ;;  %v13284_v14 = vld [vmem:[#allocation21_spill] sm:$0xff]  ;;  %v11044_v60 = vpop.eup %7328 }
 0x710   :  { %3331 = vmatprep.subr.mxu1 %v13235_v52  ;;  %4225 = vmatprep.subr.mxu0 %v13235_v52  ;;  %v1423_v21 = vmul.f32 %v7319_v35, %v13285_v22  ;;  %7352 = vpow2.f32 %v3078_v38  ;;  %13286 = vst [vmem:[#allocation71_spill] sm:$0xff] %v11044_v60  ;;  %v13287_v29 = vld [vmem:[#allocation17_spill] sm:$0xff]  ;;  %v4034_v38 = vsel %vm1145_vm9, %v11030_v27, 0.0  ;;  %v13291_v22 = vld [vmem:[#allocation76_spill] sm:$0xff] }
 0x711   :  { %2298 = vmatmul.mubr.f32.gmra.mxu1 %v2111_v19  ;;  %4226 = vmatpush1.msra.mxu0 %v13284_v14  ;;  %v3974_v13 = vmul.f32 1.442695, %v3916_v8  ;;  %v3976_v36 = vmul.f32 1.442695, %v3917_v55  ;;  %v13289_v24 = vld [vmem:[#allocation53_spill] sm:$0xff]  ;;  %7354 = vrcp.f32 %v1353_v18  ;;  %v11051_v14 = vpop.eup %7330  ;;  %v13293_v18 = vld [vmem:[#allocation16_spill] sm:$0xff] }
 0x712   :  { %3332 = vmatpush1.msra.mxu1 %v13287_v29  ;;  %4227 = vmatprep.subr.mxu0 %v13235_v52  ;;  %v1422_v47 = vmul.f32 %v7319_v35, %v13289_v24  ;;  %v2975_v19 = vpop.xlane.xlu0 %2974  ;;  %v13290_v8 = vld [vmem:[#allocation65_spill] sm:$0xff]  ;;  %v11058_v59 = vpop.eup %7332 }
 0x713   :  { %v2046_v31 = vpop.xlane.xlu1 %2045  ;;  %3333 = vmatprep.subr.mxu1 %v13235_v52  ;;  %4228 = vmatpush1.msra.mxu0 %v4137_v62  ;;  %7356 = vpow2.f32 %v3974_v13  ;;  %v3020_v55 = vsub.f32 %v13290_v8, %v2975_v19  ;;  %v3021_v29 = vsub.f32 %v13291_v22, %v2975_v19  ;;  %v11060_v35 = vpop.eup %7334  ;;  %v3235_v62 = vmul.f32 %v13234_v54, %v13293_v18 }
 0x714   :  { %3334 = vmatpush1.msra.mxu1 %v3237_v7  ;;  %3138 = vadd.xlane.f32.xlu1 %v3137_v41  ;;  %7358 = vpow2.f32 %v3976_v36  ;;  %13292 = vst [vmem:[#allocation60_spill] sm:$0xff] %v11060_v35  ;;  %v11066_v8 = vpop.eup %7336  ;;  %v4135_v41 = vmul.f32 %v13238_v32, %v13288_v6  ;;  %v4035_v36 = vadd.f32 %v11028_v42, %v4034_v38  ;;  %v13294_v7 = vld [vmem:[#allocation85_spill] sm:$0xff]  ;;  %v13300_v38 = vld [vmem:[#allocation127_spill] sm:$0xff] }
 0x715   :  { %6230 = vmatprep.mubr.msk.f32.mxu0 %vm1145_vm9, %v1423_v21  ;;  %3335 = vmatprep.subr.mxu1 %v13235_v52  ;;  %v3080_v24 = vmul.f32 1.442695, %v3020_v55  ;;  %v3082_v13 = vmul.f32 1.442695, %v3021_v29  ;;  %7360 = vrcp.f32 %v2046_v31  ;;  %v2114_v21 = vmul.f32 %v7325_v0, %v13294_v7  ;;  %v11073_v27 = vpop.eup %7338  ;;  %v13296_v55 = vld [vmem:[#allocation18_spill] sm:$0xff] }
 0x716   :  { %4229 = vmatprep.subr.mxu0 %v13235_v52  ;;  %2507 = vmatmul.mubr.f32.gmra.mxu0 %v1422_v47  ;;  %v3873_v19 = vpop.xlane.xlu0 %3872  ;;  %v3140_v31 = vsel %vm1145_vm9, %v11044_v60, 0.0  ;;  %v13297_v47 = vld [vmem:[#allocation110_spill] sm:$0xff]  ;;  %v11081_v45 = vpop.eup %7340  ;;  %v2113_v7 = vmul.f32 %v7325_v0, %v13300_v38  ;;  %v4133_v0 = vmul.f32 %v13238_v32, %v13293_v18  ;;  %v13307_v18 = vld [vmem:[#allocation15_spill] sm:$0xff] }
 0x717   :  { %v1357_v22 = vpop.xlane.xlu1 %1356  ;;  %3336 = vmatpush1.msra.mxu1 %v13295_v10  ;;  %4230 = vmatpush1.msra.mxu0 %v13296_v55  ;;  %7362 = vpow2.f32 %v3080_v24  ;;  %v3918_v29 = vsub.f32 %v13297_v47, %v3873_v19  ;;  %v3919_v6 = vsub.f32 %v13298_v20, %v3873_v19  ;;  %13299 = vst [vmem:[#allocation36_spill] sm:$0xff] %v11081_v45  ;;  %v11086_v10 = vpop.eup %7342  ;;  %v4038_v24 = vsel %vm1145_vm9, %v11060_v35, 0.0  ;;  %v13302_v19 = vld [vmem:[#allocation38_spill] sm:$0xff] }
 0x718   :  { %3337 = vmatprep.subr.mxu1 %v13235_v52  ;;  %4231 = vmatprep.subr.mxu0 %v13235_v52  ;;  %7364 = vpow2.f32 %v3082_v13  ;;  %v11090_v20 = vpop.eup %7344  ;;  %v3251_v60 = vmul.f32 %v13234_v54, %v13302_v19  ;;  %v13306_v54 = vld [vmem:[#allocation78_spill] sm:$0xff]  ;;  %v4039_v42 = vadd.f32 %v11058_v59, %v4038_v24  ;;  %v3144_v53 = vsel %vm1145_vm9, %v11081_v45, 0.0 }
 0x719   :  { %3338 = vmatpush1.msra.mxu1 %v3235_v62  ;;  %4232 = vmatpush1.msra.mxu0 %v4135_v41  ;;  %v3978_v55 = vmul.f32 1.442695, %v3918_v29  ;;  %v3980_v47 = vmul.f32 1.442695, %v3919_v6  ;;  %7366 = vrcp.f32 %v1357_v22  ;;  %13301 = vst [vmem:[#allocation33_spill] sm:$0xff] %v11090_v20  ;;  %v3141_v62 = vadd.f32 %v11040_v11, %v3140_v31  ;;  %v11098_v38 = vpop.eup %7346  ;;  %v13304_v22 = vld [vmem:[#allocation122_spill] sm:$0xff] }
 0x71a   :  { %4036 = vadd.xlane.f32.xlu0 %v4035_v36  ;;  %6213 = vmatprep.mubr.msk.f32.mxu1 %vm1145_vm9, %v2114_v21  ;;  %v2979_v13 = vpop.xlane.xlu0 %2978  ;;  %13303 = vst [vmem:[#allocation12_spill] sm:$0xff] %v11098_v38  ;;  %v1425_v36 = vmul.f32 %v11051_v14, %v13304_v22  ;;  %v13305_v21 = vld [vmem:[#allocation52_spill] sm:$0xff]  ;;  %v7349_v35 = vpop.eup %7348  ;;  %v13308_v31 = vld [vmem:[#allocation59_spill] sm:$0xff]  ;;  %v13311_v24 = vld [vmem:[#allocation82_spill] sm:$0xff] }
 0x71b   :  { %v2050_v41 = vpop.xlane.xlu1 %2049  ;;  %3367 = vmatprep.subr.mxu1 %v13235_v52  ;;  %4233 = vmatprep.subr.mxu0 %v13235_v52  ;;  %7368 = vpow2.f32 %v3978_v55  ;;  %v3022_v29 = vsub.f32 %v13305_v21, %v2979_v13  ;;  %v3023_v6 = vsub.f32 %v13306_v54, %v2979_v13  ;;  %v1424_v11 = vmul.f32 %v11051_v14, %v13308_v31  ;;  %v13309_v55 = vld [vmem:[#allocation39_spill] sm:$0xff] }
 0x71c   :  { %2303 = vmatmul.mubr.f32.gmra.mxu1 %v2113_v7  ;;  %4234 = vmatpush1.msra.mxu0 %v13307_v18  ;;  %7370 = vpow2.f32 %v3980_v47  ;;  %v11112_v30 = vpop.eup %7350  ;;  %v4042_v7 = vsel %vm1145_vm9, %v11090_v20, 0.0  ;;  %v4149_v14 = vmul.f32 %v13238_v32, %v13302_v19  ;;  %v2116_v47 = vmul.f32 %v11066_v8, %v13311_v24  ;;  %v13314_v20 = vld [vmem:[#allocation150_spill] sm:$0xff]  ;;  %v13315_v19 = vld [vmem:[#allocation117_spill] sm:$0xff] }
 0x71d   :  { %3368 = vmatpush2.msra.mxu1 %v13309_v55  ;;  %4235 = vmatprep.subr.mxu0 %v13235_v52  ;;  %v3084_v13 = vmul.f32 1.442695, %v3022_v29  ;;  %v3086_v22 = vmul.f32 1.442695, %v3023_v6  ;;  %7372 = vrcp.f32 %v2050_v41  ;;  %v11118_v21 = vpop.eup %7352  ;;  %v13312_v41 = vld [vmem:[#allocation73_spill] sm:$0xff]  ;;  %v3145_v32 = vadd.f32 %v11073_v27, %v3144_v53 }
 0x71e   :  { %13310 = vst [vmem:[#allocation37_spill] sm:$0xff] %v11118_v21  ;;  %3369 = vmatprep.subr.mxu1 %v13235_v52  ;;  %4236 = vmatpush1.msra.mxu0 %v4133_v0  ;;  %v3877_v54 = vpop.xlane.xlu0 %3876  ;;  %v7355_v31 = vpop.eup %7354  ;;  %v2115_v29 = vmul.f32 %v11066_v8, %v13312_v41  ;;  %v13313_v6 = vld [vmem:[#allocation129_spill] sm:$0xff]  ;;  %v13318_v41 = vld [vmem:[#allocation100_spill] sm:$0xff] }
 0x71f   :  { %v1361_v18 = vpop.xlane.xlu1 %1360  ;;  %3370 = vmatpush2.msra.mxu1 %v3251_v60  ;;  %3142 = vadd.xlane.f32.xlu1 %v3141_v62  ;;  %7374 = vpow2.f32 %v3084_v13  ;;  %v3920_v55 = vsub.f32 %v13313_v6, %v3877_v54  ;;  %v3921_v45 = vsub.f32 %v13314_v20, %v3877_v54  ;;  %v1427_v60 = vmul.f32 %v11086_v10, %v13315_v19  ;;  %v13316_v54 = vld [vmem:[#allocation40_spill] sm:$0xff]  ;;  %v13317_v53 = vld [vmem:[#allocation121_spill] sm:$0xff]  ;;  %v13319_v6 = vld [vmem:[#allocation66_spill] sm:$0xff] }
 0x720   :  { %v11129_v0 = vpop.eup %7356  ;;  %6231 = vmatprep.mubr.msk.f32.mxu0 %vm1145_vm9, %v1425_v36  ;;  %4265 = vmatprep.subr.mxu0 %v13235_v52  ;;  %7376 = vpow2.f32 %v3086_v22  ;;  %v4043_v62 = vadd.f32 %v11098_v38, %v4042_v7  ;;  %v3148_v36 = vsel %vm1145_vm9, %v11118_v21, 0.0  ;;  %v1426_v22 = vmul.f32 %v11086_v10, %v13317_v53  ;;  %v13322_v21 = vld [vmem:[#allocation56_spill] sm:$0xff]  ;;  %v13323_v53 = vld [vmem:[#allocation87_spill] sm:$0xff] }
 0x721   :  { %v11137_v8 = vpop.eup %7358  ;;  %2512 = vmatmul.mubr.f32.gmra.mxu0 %v1424_v11  ;;  %4040 = vadd.xlane.f32.xlu0 %v4039_v42  ;;  %v3982_v13 = vmul.f32 1.442695, %v3920_v55  ;;  %v3984_v20 = vmul.f32 1.442695, %v3921_v45  ;;  %7378 = vrcp.f32 %v1361_v18  ;;  %v2118_v7 = vmul.f32 %v7349_v35, %v13318_v41  ;;  %v13320_v18 = vld [vmem:[#allocation67_spill] sm:$0xff] }
 0x722   :  { %v7361_v24 = vpop.eup %7360  ;;  %4266 = vmatpush2.msra.mxu0 %v13316_v54  ;;  %6214 = vmatprep.mubr.msk.f32.mxu1 %vm1145_vm9, %v2116_v47  ;;  %v2117_v19 = vmul.f32 %v7349_v35, %v13319_v6  ;;  %v2983_v11 = vpop.xlane.xlu0 %2982  ;;  %v4046_v45 = vsel %vm1145_vm9, %v11137_v8, 0.0  ;;  %v1429_v55 = vmul.f32 %v7355_v31, %v13320_v18  ;;  %v13321_v54 = vld [vmem:[#allocation62_spill] sm:$0xff]  ;;  %v3149_v35 = vadd.f32 %v11112_v30, %v3148_v36 }
 0x723   :  { %v2054_v42 = vpop.xlane.xlu1 %2053  ;;  %4267 = vmatprep.subr.mxu0 %v13235_v52  ;;  %2308 = vmatmul.mubr.f32.gmra.mxu1 %v2115_v29  ;;  %7380 = vpow2.f32 %v3982_v13  ;;  %v3024_v47 = vsub.f32 %v13321_v54, %v2983_v11  ;;  %v3025_v38 = vsub.f32 %v13322_v21, %v2983_v11  ;;  %v2120_v41 = vmul.f32 %v7361_v24, %v13323_v53 }
 0x724   :  { %v11153_v10 = vpop.eup %7362  ;;  %4268 = vmatpush2.msra.mxu0 %v4149_v14  ;;  %3146 = vadd.xlane.f32.xlu1 %v3145_v32  ;;  %7382 = vpow2.f32 %v3984_v20  ;;  %v4047_v18 = vadd.f32 %v11129_v0, %v4046_v45  ;;  %v13324_v14 = vld [vmem:[#allocation131_spill] sm:$0xff] }
 0x725   :  { %v11157_v6 = vpop.eup %7364  ;;  %6232 = vmatprep.mubr.msk.f32.mxu0 %vm1145_vm9, %v1427_v60  ;;  %4044 = vadd.xlane.f32.xlu0 %v4043_v62  ;;  %v3088_v29 = vmul.f32 1.442695, %v3024_v47  ;;  %v3090_v13 = vmul.f32 1.442695, %v3025_v38  ;;  %7384 = vrcp.f32 %v2054_v42  ;;  %v1428_v32 = vmul.f32 %v7355_v31, %v13324_v14  ;;  %v13325_v60 = vld [vmem:[#allocation97_spill] sm:$0xff]  ;;  %v13326_v62 = vld [vmem:[#allocation112_spill] sm:$0xff] }
 0x726   :  { %v7367_v21 = vpop.eup %7366  ;;  %2517 = vmatmul.mubr.f32.gmra.mxu0 %v1426_v22  ;;  %6215 = vmatprep.mubr.msk.f32.mxu1 %vm1145_vm9, %v2118_v7  ;;  %v3881_v20 = vpop.xlane.xlu0 %3880  ;;  %v3152_v11 = vsel %vm1145_vm9, %v11157_v6, 0.0  ;;  %v2119_v38 = vmul.f32 %v7361_v24, %v13325_v60  ;;  %v13327_v45 = vld [vmem:[#allocation111_spill] sm:$0xff]  ;;  %v13328_v7 = vld [vmem:[#allocation77_spill] sm:$0xff] }
 0x727   :  { %v1365_v36 = vpop.xlane.xlu1 %1364  ;;  %2313 = vmatmul.mubr.f32.gmra.mxu1 %v2117_v19  ;;  %6233 = vmatprep.mubr.msk.f32.mxu0 %vm1145_vm9, %v1429_v55  ;;  %7386 = vpow2.f32 %v3088_v29  ;;  %v3922_v42 = vsub.f32 %v13326_v62, %v3881_v20  ;;  %v3923_v54 = vsub.f32 %v13327_v45, %v3881_v20  ;;  %v3153_v31 = vadd.f32 %v11153_v10, %v3152_v11  ;;  %v13329_v29 = vld [vmem:[#allocation124_spill] sm:$0xff] }
 0x728   :  { %v11169_v22 = vpop.eup %7368  ;;  %3150 = vadd.xlane.f32.xlu1 %v3149_v35  ;;  %7388 = vpow2.f32 %v3090_v13  ;;  %6216 = vmatprep.mubr.msk.f32.mxu1 %vm1145_vm9, %v2120_v41  ;;  %v1431_v47 = vmul.f32 %v7367_v21, %v13328_v7  ;;  %v1430_v14 = vmul.f32 %v7367_v21, %v13329_v29  ;;  %v13330_v13 = vld [vmem:[#allocation115_spill] sm:$0xff]  ;;  %v13331_v21 = vld [vmem:[#allocation50_spill] sm:$0xff]  ;;  %v13332_v62 = vld [vmem:[#allocation104_spill] sm:$0xff] }
 0x729   :  { %v11174_v19 = vpop.eup %7370  ;;  %4048 = vadd.xlane.f32.xlu0 %v4047_v18  ;;  %v3986_v55 = vmul.f32 1.442695, %v3922_v42  ;;  %v3988_v53 = vmul.f32 1.442695, %v3923_v54  ;;  %7390 = vrcp.f32 %v1365_v36 }
 0x72a   :  { %v7373_v24 = vpop.eup %7372  ;;  %2522 = vmatmul.mubr.f32.gmra.mxu0 %v1428_v32  ;;  %v2987_v20 = vpop.xlane.xlu0 %2986  ;;  %v4050_v35 = vsel %vm1145_vm9, %v11174_v19, 0.0 }
 0x72b   :  { %v2058_v60 = vpop.xlane.xlu1 %2057  ;;  %2318 = vmatmul.mubr.f32.gmra.mxu1 %v2119_v38  ;;  %7392 = vpow2.f32 %v3986_v55  ;;  %6234 = vmatprep.mubr.msk.f32.mxu0 %vm1145_vm9, %v1431_v47  ;;  %v3026_v41 = vsub.f32 %v10607_v58, %v2987_v20  ;;  %v3027_v18 = vsub.f32 %v13330_v13, %v2987_v20  ;;  %v4051_v11 = vadd.f32 %v11169_v22, %v4050_v35  ;;  %v13333_v20 = vld [vmem:[#allocation96_spill] sm:$0xff] }
 0x72c   :  { %v11183_v36 = vpop.eup %7374  ;;  %7394 = vpow2.f32 %v3988_v53  ;;  %3154 = vadd.xlane.f32.xlu1 %v3153_v31  ;;  %v2122_v32 = vmul.f32 %v7373_v24, %v13331_v21  ;;  %v2121_v42 = vmul.f32 %v7373_v24, %v13332_v62 }
 0x72d   :  { %v11187_v45 = vpop.eup %7376  ;;  %v3092_v38 = vmul.f32 1.442695, %v3026_v41  ;;  %v3094_v54 = vmul.f32 1.442695, %v3027_v18  ;;  %7396 = vrcp.f32 %v2058_v60  ;;  %4052 = vadd.xlane.f32.xlu0 %v4051_v11  ;;  %v13334_v60 = vld [vmem:[#allocation70_spill] sm:$0xff] }
 0x72e   :  { %v7379_v7 = vpop.eup %7378  ;;  %2527 = vmatmul.mubr.f32.gmra.mxu0 %v1430_v14  ;;  %6217 = vmatprep.mubr.msk.f32.mxu1 %vm1145_vm9, %v2122_v32  ;;  %v3885_v58 = vpop.xlane.xlu0 %3884  ;;  %v3156_v55 = vsel %vm1145_vm9, %v11187_v45, 0.0 }
 0x72f   :  { %v1369_v47 = vpop.xlane.xlu1 %1368  ;;  %7398 = vpow2.f32 %v3092_v38  ;;  %2323 = vmatmul.mubr.f32.gmra.mxu1 %v2121_v42  ;;  %v3924_v31 = vsub.f32 %v10629_v3, %v3885_v58  ;;  %v3925_v53 = vsub.f32 %v10613_v16, %v3885_v58  ;;  %v3157_v24 = vadd.f32 %v11183_v36, %v3156_v55  ;;  %v13336_v58 = vld [vmem:[#allocation148_spill] sm:$0xff] }
 0x730   :  { %v11195_v29 = vpop.eup %7380  ;;  %7400 = vpow2.f32 %v3094_v54  ;;  %v1433_v14 = vmul.f32 %v7379_v7, %v13333_v20  ;;  %v1432_v35 = vmul.f32 %v7379_v7, %v13334_v60  ;;  %v13335_v54 = vld [vmem:[#allocation109_spill] sm:$0xff] }
 0x731   :  { %v11199_v41 = vpop.eup %7382  ;;  %v3990_v13 = vmul.f32 1.442695, %v3924_v31  ;;  %v3992_v18 = vmul.f32 1.442695, %v3925_v53  ;;  %7402 = vrcp.f32 %v1369_v47  ;;  %3158 = vadd.xlane.f32.xlu1 %v3157_v24 }
 0x732   :  { %v7385_v11 = vpop.eup %7384  ;;  %6235 = vmatprep.mubr.msk.f32.mxu0 %vm1145_vm9, %v1433_v14  ;;  %v2991_v3 = vpop.xlane.xlu0 %2990  ;;  %v4054_v21 = vsel %vm1145_vm9, %v11199_v41, 0.0 }
 0x733   :  { %v2062_v16 = vpop.xlane.xlu1 %2061  ;;  %7404 = vpow2.f32 %v3990_v13  ;;  %2532 = vmatmul.mubr.f32.gmra.mxu0 %v1432_v35  ;;  %v3028_v32 = vsub.f32 %v10662_v57, %v2991_v3  ;;  %v3029_v62 = vsub.f32 %v10640_v33, %v2991_v3  ;;  %v4055_v42 = vadd.f32 %v11195_v29, %v4054_v21  ;;  %v13338_v3 = vld [vmem:[#allocation130_spill] sm:$0xff] }
 0x734   :  { %v11207_v38 = vpop.eup %7386  ;;  %7406 = vpow2.f32 %v3992_v18  ;;  %v2124_v7 = vmul.f32 %v7385_v11, %v13335_v54  ;;  %v2123_v47 = vmul.f32 %v7385_v11, %v13336_v58  ;;  %v13337_v18 = vld [vmem:[#allocation54_spill] sm:$0xff] }
 0x735   :  { %v11211_v55 = vpop.eup %7388  ;;  %v3096_v31 = vmul.f32 1.442695, %v3028_v32  ;;  %v3098_v53 = vmul.f32 1.442695, %v3029_v62  ;;  %7408 = vrcp.f32 %v2062_v16  ;;  %4056 = vadd.xlane.f32.xlu0 %v4055_v42 }
 0x736   :  { %v7391_v24 = vpop.eup %7390  ;;  %6218 = vmatprep.mubr.msk.f32.mxu1 %vm1145_vm9, %v2124_v7  ;;  %v3889_v57 = vpop.xlane.xlu0 %3888  ;;  %v3160_v20 = vsel %vm1145_vm9, %v11211_v55, 0.0 }
 0x737   :  { %v1373_v33 = vpop.xlane.xlu1 %1372  ;;  %7410 = vpow2.f32 %v3096_v31  ;;  %2328 = vmatmul.mubr.f32.gmra.mxu1 %v2123_v47  ;;  %v3926_v14 = vsub.f32 %v10684_v49, %v3889_v57  ;;  %v3927_v60 = vsub.f32 %v10668_v1, %v3889_v57  ;;  %v3161_v35 = vadd.f32 %v11207_v38, %v3160_v20  ;;  %v13340_v57 = vld [vmem:[#allocation42_spill] sm:$0xff] }
 0x738   :  { %v11219_v13 = vpop.eup %7392  ;;  %7412 = vpow2.f32 %v3098_v53  ;;  %v1435_v11 = vmul.f32 %v7391_v24, %v13337_v18  ;;  %v1434_v16 = vmul.f32 %v7391_v24, %v13338_v3  ;;  %v13339_v53 = vld [vmem:[#allocation47_spill] sm:$0xff] }
 0x739   :  { %v11223_v21 = vpop.eup %7394  ;;  %v3994_v32 = vmul.f32 1.442695, %v3926_v14  ;;  %v3996_v62 = vmul.f32 1.442695, %v3927_v60  ;;  %7414 = vrcp.f32 %v1373_v33  ;;  %3162 = vadd.xlane.f32.xlu1 %v3161_v35 }
 0x73a   :  { %v7397_v42 = vpop.eup %7396  ;;  %6236 = vmatprep.mubr.msk.f32.mxu0 %vm1145_vm9, %v1435_v11  ;;  %v2995_v49 = vpop.xlane.xlu0 %2994  ;;  %v4058_v54 = vsel %vm1145_vm9, %v11223_v21, 0.0 }
 0x73b   :  { %v2066_v1 = vpop.xlane.xlu1 %2065  ;;  %7416 = vpow2.f32 %v3994_v32  ;;  %2537 = vmatmul.mubr.f32.gmra.mxu0 %v1434_v16  ;;  %v3030_v7 = vsub.f32 %v10710_v12, %v2995_v49  ;;  %v3031_v58 = vsub.f32 %v10692_v2, %v2995_v49  ;;  %v4059_v47 = vadd.f32 %v11219_v13, %v4058_v54  ;;  %v13342_v49 = vld [vmem:[#allocation57_spill] sm:$0xff] }
 0x73c   :  { %v11231_v31 = vpop.eup %7398  ;;  %7418 = vpow2.f32 %v3996_v62  ;;  %v2126_v24 = vmul.f32 %v7397_v42, %v13339_v53  ;;  %v2125_v33 = vmul.f32 %v7397_v42, %v13340_v57  ;;  %v13341_v62 = vld [vmem:[#allocation92_spill] sm:$0xff] }
 0x73d   :  { %v11235_v20 = vpop.eup %7400  ;;  %v3100_v14 = vmul.f32 1.442695, %v3030_v7  ;;  %v3102_v60 = vmul.f32 1.442695, %v3031_v58  ;;  %7420 = vrcp.f32 %v2066_v1  ;;  %4060 = vadd.xlane.f32.xlu0 %v4059_v47  ;;  %v13343_v57 = vld [vmem:[#allocation72_spill] sm:$0xff] }
 0x73e   :  { %v7403_v35 = vpop.eup %7402  ;;  %6219 = vmatprep.mubr.msk.f32.mxu1 %vm1145_vm9, %v2126_v24  ;;  %v3893_v12 = vpop.xlane.xlu0 %3892  ;;  %v3164_v18 = vsel %vm1145_vm9, %v11235_v20, 0.0 }
 0x73f   :  { %v1377_v2 = vpop.xlane.xlu1 %1376  ;;  %7422 = vpow2.f32 %v3100_v14  ;;  %2333 = vmatmul.mubr.f32.gmra.mxu1 %v2125_v33  ;;  %v3928_v11 = vsub.f32 %v10725_v39, %v3893_v12  ;;  %v3929_v3 = vsub.f32 %v10715_v9, %v3893_v12  ;;  %v3165_v16 = vadd.f32 %v11231_v31, %v3164_v18 }
 0x740   :  { %v11243_v32 = vpop.eup %7404  ;;  %7424 = vpow2.f32 %v3102_v60  ;;  %v1437_v42 = vmul.f32 %v7403_v35, %v13341_v62  ;;  %v1436_v1 = vmul.f32 %v7403_v35, %v13342_v49 }
 0x741   :  { %v11247_v54 = vpop.eup %7406  ;;  %v3998_v7 = vmul.f32 1.442695, %v3928_v11  ;;  %v4000_v58 = vmul.f32 1.442695, %v3929_v3  ;;  %7426 = vrcp.f32 %v1377_v2  ;;  %3166 = vadd.xlane.f32.xlu1 %v3165_v16  ;;  %v13344_v3 = vld [vmem:[#allocation89_spill] sm:$0xff] }
 0x742   :  { %v7409_v47 = vpop.eup %7408  ;;  %6237 = vmatprep.mubr.msk.f32.mxu0 %vm1145_vm9, %v1437_v42  ;;  %v1381_v39 = vpop.xlane.xlu0 %1380  ;;  %v4062_v53 = vsel %vm1145_vm9, %v11247_v54, 0.0 }
 0x743   :  { %v2070_v9 = vpop.xlane.xlu1 %2069  ;;  %7428 = vpow2.f32 %v3998_v7  ;;  %2542 = vmatmul.mubr.f32.gmra.mxu0 %v1436_v1  ;;  %v4063_v24 = vadd.f32 %v11243_v32, %v4062_v53  ;;  %v2128_v33 = vmul.f32 %v7409_v47, %v13343_v57  ;;  %v2127_v14 = vmul.f32 %v7409_v47, %v10566_v50 }
 0x744   :  { %v11255_v60 = vpop.eup %7410  ;;  %7430 = vpow2.f32 %v4000_v58 }
 0x745   :  { %v11257_v35 = vpop.eup %7412  ;;  %7432 = vrcp.f32 %v1381_v39  ;;  %4064 = vadd.xlane.f32.xlu0 %v4063_v24  ;;  %6220 = vmatprep.mubr.msk.f32.mxu1 %vm1145_vm9, %v2128_v33 }
 0x746   :  { %v7415_v12 = vpop.eup %7414  ;;  %7434 = vrcp.f32 %v2070_v9  ;;  %2338 = vmatmul.mubr.f32.gmra.mxu1 %v2127_v14  ;;  %v1385_v2 = vpop.xlane.xlu0 %1384  ;;  %v3168_v11 = vsel %vm1145_vm9, %v11257_v35, 0.0  ;;  %v13345_v9 = vld [vmem:[#allocation108_spill] sm:$0xff] }
 0x747   :  { %v2074_v18 = vpop.xlane.xlu1 %2073  ;;  %7436 = vrcp.f32 %v1385_v2  ;;  %v3169_v50 = vadd.f32 %v11255_v60, %v3168_v11  ;;  %v1439_v16 = vmul.f32 %v7415_v12, %v13344_v3  ;;  %v1438_v62 = vmul.f32 %v7415_v12, %v10560_v48 }
 0x748   :  { %v11265_v42 = vpop.eup %7416  ;;  %7438 = vrcp.f32 %v2074_v18 }
 0x749   :  { %v11267_v49 = vpop.eup %7418  ;;  %3170 = vadd.xlane.f32.xlu1 %v3169_v50  ;;  %6238 = vmatprep.mubr.msk.f32.mxu0 %vm1145_vm9, %v1439_v16 }
 0x74a   :  { %v7421_v1 = vpop.eup %7420  ;;  %2547 = vmatmul.mubr.f32.gmra.mxu0 %v1438_v62  ;;  %v1389_v7 = vpop.xlane.xlu0 %1388  ;;  %v4066_v47 = vsel %vm1145_vm9, %v11267_v49, 0.0 }
 0x74b   :  { %v2078_v58 = vpop.xlane.xlu1 %2077  ;;  %7440 = vrcp.f32 %v1389_v7  ;;  %v4067_v39 = vadd.f32 %v11265_v42, %v4066_v47  ;;  %v2130_v48 = vmul.f32 %v7421_v1, %v13345_v9  ;;  %v2129_v53 = vmul.f32 %v7421_v1, %v10589_v26 }
 0x74c   :  { %v11275_v24 = vpop.eup %7422  ;;  %7442 = vrcp.f32 %v2078_v58 }
 0x74d   :  { %v11277_v57 = vpop.eup %7424  ;;  %4068 = vadd.xlane.f32.xlu0 %v4067_v39  ;;  %6221 = vmatprep.mubr.msk.f32.mxu1 %vm1145_vm9, %v2130_v48 }
 0x74e   :  { %v7427_v33 = vpop.eup %7426  ;;  %2343 = vmatmul.mubr.f32.gmra.mxu1 %v2129_v53  ;;  %v1393_v14 = vpop.xlane.xlu0 %1392  ;;  %v3172_v2 = vsel %vm1145_vm9, %v11277_v57, 0.0 }
 0x74f   :  { %v2082_v12 = vpop.xlane.xlu1 %2081  ;;  %7444 = vrcp.f32 %v1393_v14  ;;  %v3173_v18 = vadd.f32 %v11275_v24, %v3172_v2  ;;  %v1441_v26 = vmul.f32 %v7427_v33, %v10698_v43  ;;  %v1440_v11 = vmul.f32 %v7427_v33, %v10717_v61 }
 0x750   :  { %v11285_v50 = vpop.eup %7428  ;;  %7446 = vrcp.f32 %v2082_v12  ;;  %v13346_v12 = vld [vmem:[#allocation123_spill] sm:$0xff] }
 0x751   :  { %v11287_v3 = vpop.eup %7430  ;;  %3174 = vadd.xlane.f32.xlu1 %v3173_v18  ;;  %6239 = vmatprep.mubr.msk.f32.mxu0 %vm1145_vm9, %v1441_v26 }
 0x752   :  { %v7433_v16 = vpop.eup %7432  ;;  %2552 = vmatmul.mubr.f32.gmra.mxu0 %v1440_v11  ;;  %v1397_v62 = vpop.xlane.xlu0 %1396  ;;  %v4070_v7 = vsel %vm1145_vm9, %v11287_v3, 0.0 }
 0x753   :  { %v2086_v1 = vpop.xlane.xlu1 %2085  ;;  %v7435_v58 = vpop.eup %7434  ;;  %7448 = vrcp.f32 %v1397_v62  ;;  %v1443_v43 = vmul.f32 %v7433_v16, %v10721_v15  ;;  %v4071_v61 = vadd.f32 %v11285_v50, %v4070_v7  ;;  %v1442_v48 = vmul.f32 %v7433_v16, %v10733_v44 }
 0x754   :  { %v7437_v47 = vpop.eup %7436  ;;  %7450 = vrcp.f32 %v2086_v1  ;;  %v2132_v39 = vmul.f32 %v7435_v58, %v10647_v5  ;;  %v2131_v9 = vmul.f32 %v7435_v58, %v10618_v4  ;;  %v13350_v1 = vld [vmem:[#allocation58_spill] sm:$0xff] }
 0x755   :  { %v7439_v53 = vpop.eup %7438  ;;  %6240 = vmatprep.mubr.msk.f32.mxu0 %vm1145_vm9, %v1443_v43  ;;  %4072 = vadd.xlane.f32.xlu0 %v4071_v61  ;;  %v1445_v33 = vmul.f32 %v7437_v47, %v10741_v37  ;;  %v1444_v4 = vmul.f32 %v7437_v47, %v10743_v34  ;;  %v13347_v37 = vld [vmem:[#allocation79_spill] sm:$0xff]  ;;  %v13351_v34 = vld [vmem:[#allocation48_spill] sm:$0xff] }
 0x756   :  { %6222 = vmatprep.mubr.msk.f32.mxu1 %vm1145_vm9, %v2132_v39  ;;  %2557 = vmatmul.mubr.f32.gmra.mxu0 %v1442_v48  ;;  %v2134_v15 = vmul.f32 %v7439_v53, %v10675_v63  ;;  %v2133_v5 = vmul.f32 %v7439_v53, %v10652_v51  ;;  %v13348_v63 = vld [vmem:[#allocation69_spill] sm:$0xff]  ;;  %v13352_v61 = vld [vmem:[#allocation84_spill] sm:$0xff] }
 0x757   :  { %2348 = vmatmul.mubr.f32.gmra.mxu1 %v2131_v9  ;;  %6241 = vmatprep.mubr.msk.f32.mxu0 %vm1145_vm9, %v1445_v33  ;;  %v13349_v51 = vld [vmem:[#allocation101_spill] sm:$0xff]  ;;  %v13353_v9 = vld [vmem:[#allocation119_spill] sm:$0xff] }
 0x758   :  { %v7441_v14 = vpop.eup %7440  ;;  %6223 = vmatprep.mubr.msk.f32.mxu1 %vm1145_vm9, %v2134_v15  ;;  %v13354_v33 = vld [vmem:[#allocation99_spill] sm:$0xff] }
 0x759   :  { %v7443_v44 = vpop.eup %7442  ;;  %v1447_v2 = vmul.f32 %v7441_v14, %v13346_v12  ;;  %v1446_v16 = vmul.f32 %v7441_v14, %v13349_v51 }
 0x75a   :  { %2562 = vmatmul.mubr.f32.gmra.mxu0 %v1444_v4  ;;  %v2136_v18 = vmul.f32 %v7443_v44, %v13347_v37  ;;  %v2135_v26 = vmul.f32 %v7443_v44, %v13348_v63  ;;  %v13356_v44 = vld [vmem:[#allocation132_spill] sm:$0xff] }
 0x75b   :  { %2353 = vmatmul.mubr.f32.gmra.mxu1 %v2133_v5  ;;  %6242 = vmatprep.mubr.msk.f32.mxu0 %vm1145_vm9, %v1447_v2  ;;  %v13355_v5 = vld [vmem:[#allocation113_spill] sm:$0xff] }
 0x75c   :  { %v7445_v11 = vpop.eup %7444  ;;  %6224 = vmatprep.mubr.msk.f32.mxu1 %vm1145_vm9, %v2136_v18 }
 0x75d   :  { %v7447_v62 = vpop.eup %7446  ;;  %v1449_v7 = vmul.f32 %v7445_v11, %v13350_v1  ;;  %v1448_v48 = vmul.f32 %v7445_v11, %v13353_v9 }
 0x75e   :  { %2567 = vmatmul.mubr.f32.gmra.mxu0 %v1446_v16  ;;  %v2138_v58 = vmul.f32 %v7447_v62, %v13351_v34  ;;  %v2137_v47 = vmul.f32 %v7447_v62, %v13352_v61 }
 0x75f   :  { %2358 = vmatmul.mubr.f32.gmra.mxu1 %v2135_v26  ;;  %v3107_v43 = vpop.xlane.xlu1 %3106  ;;  %6243 = vmatprep.mubr.msk.f32.mxu0 %vm1145_vm9, %v1449_v7 }
 0x760   :  { %v7449_v39 = vpop.eup %7448  ;;  %7452 = vrcp.f32 %v3107_v43  ;;  %6225 = vmatprep.mubr.msk.f32.mxu1 %vm1145_vm9, %v2138_v58 }
 0x761   :  { %v7451_v53 = vpop.eup %7450  ;;  %v1451_v15 = vmul.f32 %v7449_v39, %v13354_v33  ;;  %v1450_v2 = vmul.f32 %v7449_v39, %v10789_v17  ;;  %v13358_v39 = vld [vmem:[#allocation51_spill] sm:$0xff] }
 0x762   :  { %2572 = vmatmul.mubr.f32.gmra.mxu0 %v1448_v48  ;;  %v2140_v14 = vmul.f32 %v7451_v53, %v13355_v5  ;;  %v2139_v12 = vmul.f32 %v7451_v53, %v13356_v44  ;;  %v13362_v44 = vld [vmem:[#allocation93_spill] sm:$0xff] }
 0x763   :  { %2363 = vmatmul.mubr.f32.gmra.mxu1 %v2137_v47  ;;  %v4005_v4 = vpop.xlane.xlu0 %4004  ;;  %6244 = vmatprep.mubr.msk.f32.mxu0 %vm1145_vm9, %v1451_v15  ;;  %v13360_v15 = vld [vmem:[#allocation94_spill] sm:$0xff] }
 0x764   :  { %7454 = vrcp.f32 %v4005_v4  ;;  %6226 = vmatprep.mubr.msk.f32.mxu1 %vm1145_vm9, %v2140_v14  ;;  %v13361_v14 = vld [vmem:[#allocation90_spill] sm:$0xff] }
 0x766   :  { %2577 = vmatmul.mubr.f32.gmra.mxu0 %v1450_v2  ;;  %v3111_v37 = vpop.xlane.xlu1 %3110 }
 0x767   :  { %2368 = vmatmul.mubr.f32.gmra.mxu1 %v2139_v12  ;;  %7456 = vrcp.f32 %v3111_v37 }
 0x76a   :  { %v4009_v18 = vpop.xlane.xlu0 %4008 }
 0x76b   :  { %7458 = vrcp.f32 %v4009_v18  ;;  %v13363_v18 = vld [vmem:[#allocation98_spill] sm:$0xff] }
 0x76d   :  { %v7453_v63 = vpop.eup %7452 }
 0x76e   :  { %v4013_v26 = vpop.xlane.xlu0 %4012  ;;  %v3115_v11 = vpop.xlane.xlu1 %3114  ;;  %v3195_v51 = vmul.f32 %v7453_v63, %v10805_v46  ;;  %v3194_v16 = vmul.f32 %v7453_v63, %v10803_v23 }
 0x76f   :  { %7460 = vrcp.f32 %v4013_v26  ;;  %v13364_v26 = vld [vmem:[#allocation95_spill] sm:$0xff] }
 0x770   :  { %7462 = vrcp.f32 %v3115_v11  ;;  %6246 = vmatprep.mubr.msk.f32.mxu1 %vm1145_vm9, %v3195_v51 }
 0x771   :  { %v7455_v62 = vpop.eup %7454  ;;  %3372 = vmatmul.mubr.f32.vlgmr.msra.gmra.mxu1 %v3194_v16  ;;  %v13365_v16 = vld [vmem:[#allocation135_spill] sm:$0xff] }
 0x772   :  { %v4017_v17 = vpop.xlane.xlu0 %4016  ;;  %v4093_v1 = vmul.f32 %v7455_v62, %v10816_v28  ;;  %v4092_v7 = vmul.f32 %v7455_v62, %v10812_v56  ;;  %v13357_v56 = vld [vmem:[#allocation107_spill] sm:$0xff] }
 0x773   :  { %7464 = vrcp.f32 %v4017_v17  ;;  %v13366_v17 = vld [vmem:[#allocation105_spill] sm:$0xff] }
 0x774   :  { %v7457_v34 = vpop.eup %7456  ;;  %v3119_v58 = vpop.xlane.xlu1 %3118  ;;  %6265 = vmatprep.mubr.msk.f32.mxu0 %vm1145_vm9, %v4093_v1 }
 0x775   :  { %7466 = vrcp.f32 %v3119_v58  ;;  %4270 = vmatmul.mubr.f32.vlgmr.msra.gmra.mxu0 %v4092_v7  ;;  %v3197_v23 = vmul.f32 %v7457_v34, %v10827_v25  ;;  %v3196_v46 = vmul.f32 %v7457_v34, %v10823_v40  ;;  %v13359_v40 = vld [vmem:[#allocation49_spill] sm:$0xff]  ;;  %v13367_v34 = vld [vmem:[#allocation44_spill] sm:$0xff] }
 0x776   :  { %v4021_v43 = vpop.xlane.xlu0 %4020 }
 0x777   :  { %7468 = vrcp.f32 %v4021_v43  ;;  %6247 = vmatprep.mubr.msk.f32.mxu1 %vm1145_vm9, %v3197_v23  ;;  %v13368_v23 = vld [vmem:[#allocation133_spill] sm:$0xff] }
 0x778   :  { %v7459_v61 = vpop.eup %7458  ;;  %v3123_v47 = vpop.xlane.xlu1 %3122  ;;  %3377 = vmatmul.mubr.f32.gmra.mxu1 %v3196_v46 }
 0x779   :  { %7470 = vrcp.f32 %v3123_v47  ;;  %v4095_v28 = vmul.f32 %v7459_v61, %v13357_v56  ;;  %v4094_v9 = vmul.f32 %v7459_v61, %v13358_v39  ;;  %v13369_v47 = vld [vmem:[#allocation134_spill] sm:$0xff] }
 0x77b   :  { %6266 = vmatprep.mubr.msk.f32.mxu0 %vm1145_vm9, %v4095_v28  ;;  %v13370_v28 = vld [vmem:[#allocation137_spill] sm:$0xff] }
 0x77c   :  { %v7461_v48 = vpop.eup %7460  ;;  %v3127_v53 = vpop.xlane.xlu1 %3126  ;;  %4275 = vmatmul.mubr.f32.gmra.mxu0 %v4094_v9 }
 0x77d   :  { %v7463_v25 = vpop.eup %7462  ;;  %7472 = vrcp.f32 %v3127_v53  ;;  %v4097_v33 = vmul.f32 %v7461_v48, %v13359_v40  ;;  %v4096_v5 = vmul.f32 %v7461_v48, %v13360_v15  ;;  %v13371_v48 = vld [vmem:[#allocation136_spill] sm:$0xff] }
 0x77e   :  { %v3199_v4 = vmul.f32 %v7463_v25, %v13361_v14  ;;  %v3198_v12 = vmul.f32 %v7463_v25, %v13362_v44  ;;  %v13372_v25 = vld [vmem:[#allocation43_spill] sm:$0xff] }
 0x77f   :  { %6267 = vmatprep.mubr.msk.f32.mxu0 %vm1145_vm9, %v4097_v33 }
 0x780   :  { %v7465_v2 = vpop.eup %7464  ;;  %6248 = vmatprep.mubr.msk.f32.mxu1 %vm1145_vm9, %v3199_v4  ;;  %4280 = vmatmul.mubr.f32.gmra.mxu0 %v4096_v5  ;;  %v13373_v5 = vld [vmem:[#allocation80_spill] sm:$0xff]  ;;  %v13374_v4 = vld [vmem:[#allocation75_spill] sm:$0xff] }
 0x781   :  { %v4025_v37 = vpop.xlane.xlu0 %4024  ;;  %3382 = vmatmul.mubr.f32.gmra.mxu1 %v3198_v12  ;;  %v4099_v63 = vmul.f32 %v7465_v2, %v13363_v18  ;;  %v4098_v11 = vmul.f32 %v7465_v2, %v13364_v26 }
 0x782   :  { %v7467_v51 = vpop.eup %7466  ;;  %7474 = vrcp.f32 %v4025_v37  ;;  %v13375_v37 = vld [vmem:[#allocation138_spill] sm:$0xff] }
 0x783   :  { %v3201_v62 = vmul.f32 %v7467_v51, %v13365_v16  ;;  %6268 = vmatprep.mubr.msk.f32.mxu0 %vm1145_vm9, %v4099_v63  ;;  %v3200_v1 = vmul.f32 %v7467_v51, %v13366_v17  ;;  %v13376_v63 = vld [vmem:[#allocation139_spill] sm:$0xff]  ;;  %v13377_v16 = vld [vmem:[#allocation86_spill] sm:$0xff] }
 0x784   :  { %v7469_v7 = vpop.eup %7468  ;;  %4285 = vmatmul.mubr.f32.gmra.mxu0 %v4098_v11  ;;  %v13378_v17 = vld [vmem:[#allocation142_spill] sm:$0xff] }
 0x785   :  { %6249 = vmatprep.mubr.msk.f32.mxu1 %vm1145_vm9, %v3201_v62  ;;  %v4101_v58 = vmul.f32 %v7469_v7, %v13367_v34  ;;  %v4100_v46 = vmul.f32 %v7469_v7, %v13368_v23 }
 0x786   :  { %v7471_v43 = vpop.eup %7470  ;;  %3387 = vmatmul.mubr.f32.gmra.mxu1 %v3200_v1 }
 0x787   :  { %v3131_v61 = vpop.xlane.xlu1 %3130  ;;  %v3203_v56 = vmul.f32 %v7471_v43, %v13369_v47  ;;  %6269 = vmatprep.mubr.msk.f32.mxu0 %vm1145_vm9, %v4101_v58  ;;  %v3202_v39 = vmul.f32 %v7471_v43, %v13370_v28  ;;  %v13379_v58 = vld [vmem:[#allocation141_spill] sm:$0xff]  ;;  %v13381_v28 = vld [vmem:[#allocation143_spill] sm:$0xff] }
 0x788   :  { %7476 = vrcp.f32 %v3131_v61  ;;  %4290 = vmatmul.mubr.f32.gmra.mxu0 %v4100_v46  ;;  %v13380_v46 = vld [vmem:[#allocation68_spill] sm:$0xff] }
 0x789   :  { %6250 = vmatprep.mubr.msk.f32.mxu1 %vm1145_vm9, %v3203_v56  ;;  %v4436_v47 = vld [vmem:[%s12416_s11 + $0x78] sm:$0xff] }
 0x78a   :  { %v7473_v9 = vpop.eup %7472  ;;  %3392 = vmatmul.mubr.f32.gmra.mxu1 %v3202_v39  ;;  %6784 = vmatprep.subr.mxu1 %v4436_v47 }
 0x78b   :  { %v3205_v53 = vmul.f32 %v7473_v9, %v13371_v48  ;;  %v3204_v40 = vmul.f32 %v7473_v9, %v13372_v25  ;;  %v13382_v9 = vld [vmem:[#allocation147_spill] sm:$0xff]  ;;  %6785 = vmatpush3.msra.mxu1 %v4436_v47 }
 0x78c   :  { %v4435_v25 = vld [vmem:[%s12416_s11 + $0x70] sm:$0xff] }
 0x78d   :  { %v4029_v33 = vpop.xlane.xlu0 %4028  ;;  %6251 = vmatprep.mubr.msk.f32.mxu1 %vm1145_vm9, %v3205_v53  ;;  %6786 = vmatprep.subr.mxu1 %v4435_v25 }
 0x78e   :  { %7478 = vrcp.f32 %v4029_v33  ;;  %3397 = vmatmul.mubr.f32.gmra.mxu1 %v3204_v40  ;;  %v4434_v40 = vld [vmem:[%s12416_s11 + $0x68] sm:$0xff] }
 0x78f   :  { %v7475_v15 = vpop.eup %7474  ;;  %6787 = vmatpush3.msra.mxu1 %v4435_v25 }
 0x790   :  { %v4103_v14 = vmul.f32 %v7475_v15, %v13373_v5  ;;  %v4102_v44 = vmul.f32 %v7475_v15, %v13374_v4  ;;  %v4433_v15 = vld [vmem:[%s12416_s11 + $0x60] sm:$0xff]  ;;  %6788 = vmatprep.subr.mxu1 %v4434_v40 }
 0x791   :  { %6789 = vmatpush3.msra.mxu1 %v4434_v40 }
 0x792   :  { %v3135_v12 = vpop.xlane.xlu1 %3134  ;;  %6270 = vmatprep.mubr.msk.f32.mxu0 %vm1145_vm9, %v4103_v14  ;;  %v13383_v14 = vld [vmem:[#allocation145_spill] sm:$0xff]  ;;  %6790 = vmatprep.subr.mxu1 %v4433_v15 }
 0x793   :  { %7480 = vrcp.f32 %v3135_v12  ;;  %4295 = vmatmul.mubr.f32.gmra.mxu0 %v4102_v44  ;;  %v13384_v44 = vld [vmem:[#allocation144_spill] sm:$0xff]  ;;  %6791 = vmatpush3.msra.mxu1 %v4433_v15 }
 0x795   :  { %v7477_v2 = vpop.eup %7476 }
 0x796   :  { %v3207_v18 = vmul.f32 %v7477_v2, %v13375_v37  ;;  %v3206_v26 = vmul.f32 %v7477_v2, %v13376_v63  ;;  %v4432_v2 = vld [vmem:[%s12416_s11 + $0x58] sm:$0xff]  ;;  %v4431_v63 = vld [vmem:[%s12416_s11 + $0x50] sm:$0xff] }
 0x797   :  { %6792 = vmatprep.subr.mxu1 %v4432_v2 }
 0x798   :  { %v4033_v11 = vpop.xlane.xlu0 %4032  ;;  %6252 = vmatprep.mubr.msk.f32.mxu1 %vm1145_vm9, %v3207_v18  ;;  %6793 = vmatpush3.msra.mxu1 %v4432_v2 }
 0x799   :  { %7482 = vrcp.f32 %v4033_v11  ;;  %3402 = vmatmul.mubr.f32.gmra.mxu1 %v3206_v26  ;;  %v4430_v26 = vld [vmem:[%s12416_s11 + $0x48] sm:$0xff]  ;;  %6794 = vmatprep.subr.mxu1 %v4431_v63 }
 0x79a   :  { %6795 = vmatpush3.msra.mxu1 %v4431_v63 }
 0x79b   :  { %v7479_v51 = vpop.eup %7478  ;;  %6796 = vmatprep.subr.mxu1 %v4430_v26 }
 0x79c   :  { %v4105_v62 = vmul.f32 %v7479_v51, %v13377_v16  ;;  %v4104_v1 = vmul.f32 %v7479_v51, %v13378_v17  ;;  %v13385_v16 = vld [vmem:[#allocation140_spill] sm:$0xff]  ;;  %v13386_v17 = vld [vmem:[#allocation91_spill] sm:$0xff]  ;;  %6797 = vmatpush3.msra.mxu1 %v4430_v26  ;;  %v13391_v26 = vld [vmem:[#allocation33_spill] sm:$0xff] }
 0x79d   :  { %v3139_v7 = vpop.xlane.xlu1 %3138 }
 0x79e   :  { %7484 = vrcp.f32 %v3139_v7  ;;  %6271 = vmatprep.mubr.msk.f32.mxu0 %vm1145_vm9, %v4105_v62 }
 0x79f   :  { %4300 = vmatmul.mubr.f32.gmra.mxu0 %v4104_v1 }
 0x7a0   :  { %v7481_v34 = vpop.eup %7480 }
 0x7a1   :  { %v3209_v23 = vmul.f32 %v7481_v34, %v13379_v58  ;;  %v3208_v43 = vmul.f32 %v7481_v34, %v13380_v46  ;;  %v4429_v58 = vld [vmem:[%s12416_s11 + $0x40] sm:$0xff] }
 0x7a2   :  { %6798 = vmatprep.subr.mxu1 %v4429_v58 }
 0x7a3   :  { %v4037_v61 = vpop.xlane.xlu0 %4036  ;;  %6253 = vmatprep.mubr.msk.f32.mxu1 %vm1145_vm9, %v3209_v23  ;;  %6799 = vmatpush3.msra.mxu1 %v4429_v58 }
 0x7a4   :  { %7486 = vrcp.f32 %v4037_v61  ;;  %3407 = vmatmul.mubr.f32.gmra.mxu1 %v3208_v43  ;;  %v4428_v43 = vld [vmem:[%s12416_s11 + $0x38] sm:$0xff] }
 0x7a5   :  { %6800 = vmatprep.subr.mxu1 %v4428_v43 }
 0x7a6   :  { %v7483_v56 = vpop.eup %7482  ;;  %6801 = vmatpush3.msra.mxu1 %v4428_v43 }
 0x7a7   :  { %v4107_v39 = vmul.f32 %v7483_v56, %v13381_v28  ;;  %v4106_v48 = vmul.f32 %v7483_v56, %v13382_v9  ;;  %v13387_v9 = vld [vmem:[#allocation71_spill] sm:$0xff] }
 0x7a8   :  { %v3143_v53 = vpop.xlane.xlu1 %3142 }
 0x7a9   :  { %7488 = vrcp.f32 %v3143_v53  ;;  %6272 = vmatprep.mubr.msk.f32.mxu0 %vm1145_vm9, %v4107_v39  ;;  %v13388_v53 = vld [vmem:[#allocation64_spill] sm:$0xff] }
 0x7aa   :  { %v4041_v33 = vpop.xlane.xlu0 %4040  ;;  %4305 = vmatmul.mubr.f32.gmra.mxu0 %v4106_v48 }
 0x7ab   :  { %v7485_v5 = vpop.eup %7484  ;;  %7490 = vrcp.f32 %v4041_v33  ;;  %v13389_v33 = vld [vmem:[#allocation60_spill] sm:$0xff] }
 0x7ac   :  { %v3211_v4 = vmul.f32 %v7485_v5, %v13383_v14  ;;  %v3210_v12 = vmul.f32 %v7485_v5, %v13384_v44  ;;  %v4426_v44 = vld [vmem:[%s12416_s11 + $0x28] sm:$0xff] }
 0x7ad   :  { %v3147_v37 = vpop.xlane.xlu1 %3146 }
 0x7ae   :  { %7492 = vrcp.f32 %v3147_v37  ;;  %6254 = vmatprep.mubr.msk.f32.mxu1 %vm1145_vm9, %v3211_v4  ;;  %v4045_v18 = vpop.xlane.xlu0 %4044  ;;  %v4427_v4 = vld [vmem:[%s12416_s11 + $0x30] sm:$0xff] }
 0x7af   :  { %3412 = vmatmul.mubr.f32.gmra.mxu1 %v3210_v12  ;;  %7494 = vrcp.f32 %v4045_v18  ;;  %6802 = vmatprep.subr.mxu1 %v4427_v4  ;;  %v13390_v18 = vld [vmem:[#allocation36_spill] sm:$0xff] }
 0x7b0   :  { %6803 = vmatpush3.msra.mxu1 %v4427_v4 }
 0x7b1   :  { %v7487_v11 = vpop.eup %7486  ;;  %v3151_v51 = vpop.xlane.xlu1 %3150  ;;  %6804 = vmatprep.subr.mxu1 %v4426_v44 }
 0x7b2   :  { %v4109_v62 = vmul.f32 %v7487_v11, %v13385_v16  ;;  %v4108_v1 = vmul.f32 %v7487_v11, %v13386_v17  ;;  %7496 = vrcp.f32 %v3151_v51  ;;  %v4049_v7 = vpop.xlane.xlu0 %4048  ;;  %v2284_v34 = vpop.f32.mrf.mxu1  ;;  %v13392_v16 = vld [vmem:[#allocation12_spill] sm:$0xff]  ;;  %v4425_v17 = vld [vmem:[%s12416_s11 + $0x20] sm:$0xff]  ;;  %6805 = vmatpush3.msra.mxu1 %v4426_v44 }
 0x7b3   :  { %7498 = vrcp.f32 %v4049_v7  ;;  %6806 = vmatprep.subr.mxu1 %v4425_v17 }
 0x7b4   :  { %6273 = vmatprep.mubr.msk.f32.mxu0 %vm1145_vm9, %v4109_v62  ;;  %v2286_v23 = vpop.f32.mrf.mxu1  ;;  %v2493_v46 = vpop.f32.mrf.mxu0  ;;  %6807 = vmatpush3.msra.mxu1 %v4425_v17 }
 0x7b5   :  { %4310 = vmatmul.mubr.f32.gmra.mxu0 %v4108_v1  ;;  %v11404_v61 = vadd.f32 %v2493_v46, %v2284_v34  ;;  %v3155_v47 = vpop.xlane.xlu1 %3154  ;;  %v13393_v23 = vld [vmem:[#allocation37_spill] sm:$0xff] }
 0x7b6   :  { %v7489_v56 = vpop.eup %7488  ;;  %7500 = vrcp.f32 %v3155_v47  ;;  %v2495_v28 = vpop.f32.mrf.mxu0 }
 0x7b7   :  { %v4053_v39 = vpop.xlane.xlu0 %4052  ;;  %v3213_v48 = vmul.f32 %v7489_v56, %v13387_v9  ;;  %v3212_v25 = vmul.f32 %v7489_v56, %v13388_v53 }
 0x7b8   :  { %7502 = vrcp.f32 %v4053_v39  ;;  %v7491_v40 = vpop.eup %7490 }
 0x7b9   :  { %6255 = vmatprep.mubr.msk.f32.mxu1 %vm1145_vm9, %v3213_v48  ;;  %v4111_v15 = vmul.f32 %v7491_v40, %v13389_v33  ;;  %v4110_v5 = vmul.f32 %v7491_v40, %v11058_v59  ;;  %v4423_v48 = vld [vmem:[%s12416_s11 + $0x10] sm:$0xff]  ;;  %v4422_v33 = vld [vmem:[%s12416_s11 + $0x8] sm:$0xff] }
 0x7ba   :  { %3417 = vmatmul.mubr.f32.gmra.mxu1 %v3212_v25  ;;  %v3159_v14 = vpop.xlane.xlu1 %3158 }
 0x7bb   :  { %v7493_v12 = vpop.eup %7492  ;;  %6274 = vmatprep.mubr.msk.f32.mxu0 %vm1145_vm9, %v4111_v15  ;;  %v2289_v2 = vpop.f32.mrf.mxu1  ;;  %7504 = vrcp.f32 %v3159_v14 }
 0x7bc   :  { %v7495_v37 = vpop.eup %7494  ;;  %4315 = vmatmul.mubr.f32.gmra.mxu0 %v4110_v5  ;;  %v3215_v59 = vmul.f32 %v7493_v12, %v13390_v18  ;;  %v3214_v63 = vmul.f32 %v7493_v12, %v11073_v27  ;;  %v4424_v27 = vld [vmem:[%s12416_s11 + $0x18] sm:$0xff] }
 0x7bd   :  { %v4113_v11 = vmul.f32 %v7495_v37, %v13391_v26  ;;  %v2291_v51 = vpop.f32.mrf.mxu1  ;;  %v4112_v62 = vmul.f32 %v7495_v37, %v13392_v16  ;;  %6808 = vmatprep.subr.mxu1 %v4424_v27 }
 0x7be   :  { %6256 = vmatprep.mubr.msk.f32.mxu1 %vm1145_vm9, %v3215_v59  ;;  %v4057_v1 = vpop.xlane.xlu0 %4056  ;;  %6809 = vmatpush3.msra.mxu1 %v4424_v27 }
 0x7bf   :  { %v7497_v7 = vpop.eup %7496  ;;  %3422 = vmatmul.mubr.f32.gmra.mxu1 %v3214_v63  ;;  %6275 = vmatprep.mubr.msk.f32.mxu0 %vm1145_vm9, %v4113_v11  ;;  %7506 = vrcp.f32 %v4057_v1 }
 0x7c0   :  { %v7499_v34 = vpop.eup %7498  ;;  %4320 = vmatmul.mubr.f32.gmra.mxu0 %v4112_v62  ;;  %v2498_v58 = vpop.f32.mrf.mxu0  ;;  %v3217_v46 = vmul.f32 %v7497_v7, %v13393_v23  ;;  %v3216_v43 = vmul.f32 %v7497_v7, %v11112_v30  ;;  %6810 = vmatprep.subr.mxu1 %v4423_v48 }
 0x7c1   :  { %v11432_v47 = vadd.f32 %v2498_v58, %v2289_v2  ;;  %v4115_v56 = vmul.f32 %v7499_v34, %v11137_v8  ;;  %v4114_v28 = vmul.f32 %v7499_v34, %v11129_v0  ;;  %6811 = vmatpush3.msra.mxu1 %v4423_v48 }
 0x7c2   :  { %6257 = vmatprep.mubr.msk.f32.mxu1 %vm1145_vm9, %v3217_v46  ;;  %v2500_v39 = vpop.f32.mrf.mxu0  ;;  %v3163_v9 = vpop.xlane.xlu1 %3162  ;;  %6812 = vmatprep.subr.mxu1 %v4422_v33 }
 0x7c3   :  { %v7501_v53 = vpop.eup %7500  ;;  %3427 = vmatmul.mubr.f32.gmra.mxu1 %v3216_v43  ;;  %6276 = vmatprep.mubr.msk.f32.mxu0 %vm1145_vm9, %v4115_v56  ;;  %7508 = vrcp.f32 %v3163_v9 }
 0x7c4   :  { %4325 = vmatmul.mubr.f32.gmra.mxu0 %v4114_v28  ;;  %v3219_v8 = vmul.f32 %v7501_v53, %v11157_v6  ;;  %v3218_v0 = vmul.f32 %v7501_v53, %v11153_v10  ;;  %6813 = vmatpush3.msra.mxu1 %v4422_v33 }
 0x7c5   :  { %v7503_v30 = vpop.eup %7502 }
 0x7c6   :  { %v4117_v25 = vmul.f32 %v7503_v30, %v11174_v19  ;;  %v4116_v40 = vmul.f32 %v7503_v30, %v11169_v22  ;;  %v2294_v15 = vpop.f32.mrf.mxu1  ;;  %6258 = vmatprep.mubr.msk.f32.mxu1 %vm1145_vm9, %v3219_v8  ;;  %v4061_v5 = vpop.xlane.xlu0 %4060  ;;  %v4421_v22 = vld [vmem:[%s12416_s11] sm:$0xff] }
 0x7c7   :  { %3432 = vmatmul.mubr.f32.gmra.mxu1 %v3218_v0  ;;  %7510 = vrcp.f32 %v4061_v5  ;;  %6814 = vmatprep.subr.mxu1 %v4421_v22 }
 0x7c8   :  { %6277 = vmatprep.mubr.msk.f32.mxu0 %vm1145_vm9, %v4117_v25  ;;  %v7505_v10 = vpop.eup %7504  ;;  %v2296_v6 = vpop.f32.mrf.mxu1  ;;  %6815 = vmatpush3.msra.mxu1 %v4421_v22 }
 0x7c9   :  { %4330 = vmatmul.mubr.f32.gmra.mxu0 %v4116_v40  ;;  %v3221_v19 = vmul.f32 %v7505_v10, %v11187_v45  ;;  %v3220_v14 = vmul.f32 %v7505_v10, %v11183_v36 }
 0x7ca   :  { %v3167_v4 = vpop.xlane.xlu1 %3166 }
 0x7cb   :  { %v2503_v44 = vpop.f32.mrf.mxu0  ;;  %7512 = vrcp.f32 %v3167_v4  ;;  %6259 = vmatprep.mubr.msk.f32.mxu1 %vm1145_vm9, %v3221_v19 }
 0x7cc   :  { %v7507_v12 = vpop.eup %7506  ;;  %v11456_v2 = vadd.f32 %v2503_v44, %v2294_v15  ;;  %3437 = vmatmul.mubr.f32.gmra.mxu1 %v3220_v14 }
 0x7cd   :  { %v2505_v37 = vpop.f32.mrf.mxu0  ;;  %v4119_v18 = vmul.f32 %v7507_v12, %v11199_v41  ;;  %v4118_v59 = vmul.f32 %v7507_v12, %v11195_v29 }
 0x7ce   :  { %v4065_v45 = vpop.xlane.xlu0 %4064 }
 0x7cf   :  { %7514 = vrcp.f32 %v4065_v45  ;;  %6278 = vmatprep.mubr.msk.f32.mxu0 %vm1145_vm9, %v4119_v18 }
 0x7d0   :  { %v7509_v36 = vpop.eup %7508  ;;  %4335 = vmatmul.mubr.f32.gmra.mxu0 %v4118_v59 }
 0x7d1   :  { %v2299_v63 = vpop.f32.mrf.mxu1  ;;  %v3223_v26 = vmul.f32 %v7509_v36, %v11211_v55  ;;  %v3222_v11 = vmul.f32 %v7509_v36, %v11207_v38 }
 0x7d2   :  { %v3171_v51 = vpop.xlane.xlu1 %3170 }
 0x7d3   :  { %v2301_v16 = vpop.f32.mrf.mxu1  ;;  %7516 = vrcp.f32 %v3171_v51  ;;  %6260 = vmatprep.mubr.msk.f32.mxu1 %vm1145_vm9, %v3223_v26 }
 0x7d4   :  { %v7511_v62 = vpop.eup %7510  ;;  %3442 = vmatmul.mubr.f32.gmra.mxu1 %v3222_v11 }
 0x7d5   :  { %v4121_v29 = vmul.f32 %v7511_v62, %v11223_v21  ;;  %v4120_v41 = vmul.f32 %v7511_v62, %v11219_v13 }
 0x7d6   :  { %v2508_v17 = vpop.f32.mrf.mxu0  ;;  %v4069_v1 = vpop.xlane.xlu0 %4068 }
 0x7d7   :  { %v11466_v7 = vadd.f32 %v2508_v17, %v2299_v63  ;;  %7518 = vrcp.f32 %v4069_v1  ;;  %6279 = vmatprep.mubr.msk.f32.mxu0 %vm1145_vm9, %v4121_v29 }
 0x7d8   :  { %v7513_v55 = vpop.eup %7512  ;;  %v2510_v38 = vpop.f32.mrf.mxu0  ;;  %4340 = vmatmul.mubr.f32.gmra.mxu0 %v4120_v41 }
 0x7d9   :  { %v3225_v27 = vmul.f32 %v7513_v55, %v11235_v20  ;;  %v3224_v34 = vmul.f32 %v7513_v55, %v11231_v31 }
 0x7da   :  { %v3175_v58 = vpop.xlane.xlu1 %3174 }
 0x7db   :  { %7520 = vrcp.f32 %v3175_v58  ;;  %6261 = vmatprep.mubr.msk.f32.mxu1 %vm1145_vm9, %v3225_v27 }
 0x7dc   :  { %v7515_v21 = vpop.eup %7514  ;;  %v2304_v13 = vpop.f32.mrf.mxu1  ;;  %3447 = vmatmul.mubr.f32.gmra.mxu1 %v3224_v34 }
 0x7dd   :  { %v4123_v23 = vmul.f32 %v7515_v21, %v11247_v54  ;;  %v4122_v46 = vmul.f32 %v7515_v21, %v11243_v32 }
 0x7de   :  { %v2306_v43 = vpop.f32.mrf.mxu1  ;;  %v4073_v56 = vpop.xlane.xlu0 %4072 }
 0x7df   :  { %7522 = vrcp.f32 %v4073_v56  ;;  %6280 = vmatprep.mubr.msk.f32.mxu0 %vm1145_vm9, %v4123_v23 }
 0x7e0   :  { %v7517_v28 = vpop.eup %7516  ;;  %4345 = vmatmul.mubr.f32.gmra.mxu0 %v4122_v46 }
 0x7e1   :  { %v2513_v20 = vpop.f32.mrf.mxu0  ;;  %v3227_v31 = vmul.f32 %v7517_v28, %v11257_v35  ;;  %v3226_v39 = vmul.f32 %v7517_v28, %v11255_v60 }
 0x7e2   :  { %v11477_v9 = vadd.f32 %v2513_v20, %v2304_v13 }
 0x7e3   :  { %v2515_v48 = vpop.f32.mrf.mxu0  ;;  %v2309_v53 = vpop.f32.mrf.mxu1  ;;  %6262 = vmatprep.mubr.msk.f32.mxu1 %vm1145_vm9, %v3227_v31 }
 0x7e4   :  { %v7519_v54 = vpop.eup %7518  ;;  %3452 = vmatmul.mubr.f32.gmra.mxu1 %v3226_v39 }
 0x7e5   :  { %v2311_v32 = vpop.f32.mrf.mxu1  ;;  %v4125_v30 = vmul.f32 %v7519_v54, %v11267_v49  ;;  %v4124_v8 = vmul.f32 %v7519_v54, %v11265_v42 }
 0x7e6   :  { %v2518_v0 = vpop.f32.mrf.mxu0 }
 0x7e7   :  { %v11482_v25 = vadd.f32 %v2518_v0, %v2309_v53  ;;  %v2314_v40 = vpop.f32.mrf.mxu1  ;;  %6281 = vmatprep.mubr.msk.f32.mxu0 %vm1145_vm9, %v4125_v30 }
 0x7e8   :  { %v7521_v60 = vpop.eup %7520  ;;  %v2520_v35 = vpop.f32.mrf.mxu0  ;;  %4350 = vmatmul.mubr.f32.gmra.mxu0 %v4124_v8 }
 0x7e9   :  { %v2316_v33 = vpop.f32.mrf.mxu1  ;;  %v3229_v15 = vmul.f32 %v7521_v60, %v11277_v57  ;;  %v3228_v5 = vmul.f32 %v7521_v60, %v11275_v24 }
 0x7ea   :  { %v2523_v10 = vpop.f32.mrf.mxu0 }
 0x7eb   :  { %v11487_v6 = vadd.f32 %v2523_v10, %v2314_v40  ;;  %v2319_v49 = vpop.f32.mrf.mxu1  ;;  %6263 = vmatprep.mubr.msk.f32.mxu1 %vm1145_vm9, %v3229_v15 }
 0x7ec   :  { %v7523_v42 = vpop.eup %7522  ;;  %v2525_v22 = vpop.f32.mrf.mxu0  ;;  %3457 = vmatmul.mubr.f32.gmra.mxu1 %v3228_v5 }
 0x7ed   :  { %v2321_v19 = vpop.f32.mrf.mxu1  ;;  %v4127_v14 = vmul.f32 %v7523_v42, %v11287_v3  ;;  %v4126_v4 = vmul.f32 %v7523_v42, %v11285_v50 }
 0x7ee   :  { %v2528_v44 = vpop.f32.mrf.mxu0 }
 0x7ef   :  { %v11492_v12 = vadd.f32 %v2528_v44, %v2319_v49  ;;  %v2324_v57 = vpop.f32.mrf.mxu1  ;;  %6282 = vmatprep.mubr.msk.f32.mxu0 %vm1145_vm9, %v4127_v14 }
 0x7f0   :  { %v2530_v24 = vpop.f32.mrf.mxu0  ;;  %4355 = vmatmul.mubr.f32.gmra.mxu0 %v4126_v4 }
 0x7f1   :  { %v2326_v37 = vpop.f32.mrf.mxu1 }
 0x7f3   :  { %v2533_v18 = vpop.f32.mrf.mxu0 }
 0x7f4   :  { %v11495_v59 = vadd.f32 %v2533_v18, %v2324_v57  ;;  %v11519_v57 = vld [vmem:[%s12415_s10] ss:$0 sm:$0xff]  ;;  %v4607_v18 = vld [vmem:[%s12418_s13 + $0x78] sm:$0xff] }
 0x7f5   :  { %v2535_v45 = vpop.f32.mrf.mxu0  ;;  %6843 = vmatprep.subr.mxu0 %v4607_v18 }
 0x7f6   :  { %v4778_v45 = vld [vmem:[%s12417_s12 + $0x78] sm:$0xff]  ;;  %6844 = vmatpush3.msra.mxu0 %v4607_v18 }
 0x7f7   :  { %v2329_v36 = vpop.f32.mrf.mxu1  ;;  %6902 = vmatprep.subr.mxu1 %v4778_v45 }
 0x7f9   :  { %v2331_v63 = vpop.f32.mrf.mxu1 }
 0x7fb   :  { %v2538_v26 = vpop.f32.mrf.mxu0 }
 0x7fc   :  { %v11497_v11 = vadd.f32 %v2538_v26, %v2329_v36  ;;  %v4605_v26 = vld [vmem:[%s12418_s13 + $0x68] sm:$0xff] }
 0x7fd   :  { %v2540_v3 = vpop.f32.mrf.mxu0 }
 0x7ff   :  { %v2334_v50 = vpop.f32.mrf.mxu1 }
 0x801   :  { %v2336_v51 = vpop.f32.mrf.mxu1 }
 0x803   :  { %v2543_v16 = vpop.f32.mrf.mxu0 }
 0x804   :  { %v11499_v62 = vadd.f32 %v2543_v16, %v2334_v50  ;;  %v4604_v16 = vld [vmem:[%s12418_s13 + $0x60] sm:$0xff] }
 0x805   :  { %v2545_v29 = vpop.f32.mrf.mxu0 }
 0x806   :  { %v2339_v41 = vpop.f32.mrf.mxu1 }
 0x808   :  { %v2341_v17 = vpop.f32.mrf.mxu1 }
 0x809   :  { %v4603_v17 = vld [vmem:[%s12418_s13 + $0x58] sm:$0xff] }
 0x80a   :  { %v2548_v1 = vpop.f32.mrf.mxu0 }
 0x80b   :  { %v11501_v55 = vadd.f32 %v2548_v1, %v2339_v41 }
 0x80c   :  { %v2550_v38 = vpop.f32.mrf.mxu0 }
 0x80e   :  { %v2344_v27 = vpop.f32.mrf.mxu1 }
 0x810   :  { %v2346_v34 = vpop.f32.mrf.mxu1 }
 0x812   :  { %v2553_v58 = vpop.f32.mrf.mxu0 }
 0x813   :  { %v11503_v21 = vadd.f32 %v2553_v58, %v2344_v27 }
 0x814   :  { %v2555_v13 = vpop.f32.mrf.mxu0 }
 0x815   :  { %v4601_v13 = vld [vmem:[%s12418_s13 + $0x48] sm:$0xff] }
 0x816   :  { %v2558_v23 = vpop.f32.mrf.mxu0 }
 0x817   :  { %v2349_v46 = vpop.f32.mrf.mxu1 }
 0x818   :  { %v11505_v43 = vadd.f32 %v2558_v23, %v2349_v46  ;;  %v2560_v56 = vpop.f32.mrf.mxu0 }
 0x819   :  { %v2351_v28 = vpop.f32.mrf.mxu1  ;;  %v4777_v56 = vld [vmem:[%s12417_s12 + $0x70] sm:$0xff] }
 0x81a   :  { %v2563_v20 = vpop.f32.mrf.mxu0 }
 0x81b   :  { %v2354_v31 = vpop.f32.mrf.mxu1 }
 0x81c   :  { %v11507_v39 = vadd.f32 %v2563_v20, %v2354_v31  ;;  %v2565_v48 = vpop.f32.mrf.mxu0  ;;  %v4600_v20 = vld [vmem:[%s12418_s13 + $0x40] sm:$0xff] }
 0x81d   :  { %v2356_v53 = vpop.f32.mrf.mxu1 }
 0x81e   :  { %v2568_v54 = vpop.f32.mrf.mxu0  ;;  %v4599_v53 = vld [vmem:[%s12418_s13 + $0x38] sm:$0xff] }
 0x81f   :  { %v2359_v32 = vpop.f32.mrf.mxu1 }
 0x820   :  { %v11509_v30 = vadd.f32 %v2568_v54, %v2359_v32  ;;  %v2570_v8 = vpop.f32.mrf.mxu0 }
 0x821   :  { %v2361_v0 = vpop.f32.mrf.mxu1 }
 0x822   :  { %v2573_v40 = vpop.f32.mrf.mxu0  ;;  %v4775_v0 = vld [vmem:[%s12417_s12 + $0x60] sm:$0xff] }
 0x823   :  { %v2364_v60 = vpop.f32.mrf.mxu1 }
 0x824   :  { %v11511_v35 = vadd.f32 %v2573_v40, %v2364_v60  ;;  %v2575_v33 = vpop.f32.mrf.mxu0 }
 0x825   :  { %v2366_v15 = vpop.f32.mrf.mxu1 }
 0x826   :  { %v2578_v5 = vpop.f32.mrf.mxu0 }
 0x827   :  { %v2369_v10 = vpop.f32.mrf.mxu1 }
 0x828   :  { %v11513_v49 = vadd.f32 %v2578_v5, %v2369_v10  ;;  %v2580_v42 = vpop.f32.mrf.mxu0  ;;  %v4774_v5 = vld [vmem:[%s12417_s12 + $0x58] sm:$0xff]  ;;  %v4598_v10 = vld [vmem:[%s12418_s13 + $0x30] sm:$0xff] }
 0x829   :  { %v2371_v22 = vpop.f32.mrf.mxu1 }
 0x831   :  { %v3373_v19 = vpop.f32.mrf.mxu1 }
 0x832   :  { %v3462_v4 = vadd.f32 %v3373_v19, %v11404_v61  ;;  %v4606_v61 = vld [vmem:[%s12418_s13 + $0x70] sm:$0xff] }
 0x833   :  { %v3375_v14 = vpop.f32.mrf.mxu1  ;;  %6845 = vmatprep.subr.mxu0 %v4606_v61  ;;  %v4773_v19 = vld [vmem:[%s12417_s12 + $0x50] sm:$0xff] }
 0x834   :  { %6846 = vmatpush3.msra.mxu0 %v4606_v61  ;;  %v4597_v14 = vld [vmem:[%s12418_s13 + $0x28] sm:$0xff]  ;;  %v4596_v61 = vld [vmem:[%s12418_s13 + $0x20] sm:$0xff] }
 0x835   :  { %v4271_v44 = vpop.f32.mrf.mxu0  ;;  %6847 = vmatprep.subr.mxu0 %v4605_v26 }
 0x836   :  { %v4360_v24 = vadd.f32 %v4271_v44, %v3462_v4  ;;  %6848 = vmatpush3.msra.mxu0 %v4605_v26  ;;  %v4595_v26 = vld [vmem:[%s12418_s13 + $0x18] sm:$0xff] }
 0x837   :  { %v4273_v37 = vpop.f32.mrf.mxu0  ;;  %6849 = vmatprep.subr.mxu0 %v4604_v16 }
 0x838   :  { %v4385_v36 = vadd.f32 %v11519_v57, %v4360_v24  ;;  %v3378_v63 = vpop.f32.mrf.mxu1  ;;  %6850 = vmatpush3.msra.mxu0 %v4604_v16  ;;  %v4772_v37 = vld [vmem:[%s12417_s12 + $0x48] sm:$0xff] }
 0x839   :  { %v3463_v51 = vadd.f32 %v3378_v63, %v11432_v47  ;;  %v4602_v47 = vld [vmem:[%s12418_s13 + $0x50] sm:$0xff]  ;;  %6851 = vmatprep.subr.mxu0 %v4603_v17 }
 0x83a   :  { %v4403_v3 = vmax.f32 %v4385_v36, 0.0  ;;  %v3380_v50 = vpop.f32.mrf.mxu1  ;;  %6852 = vmatpush3.msra.mxu0 %v4603_v17 }
 0x83b   :  { %6853 = vmatprep.subr.mxu0 %v4602_v47 }
 0x83c   :  { %6816 = vmatprep.mubr.f32.mxu1 %v4403_v3  ;;  %v4276_v29 = vpop.f32.mrf.mxu0  ;;  %6854 = vmatpush3.msra.mxu0 %v4602_v47 }
 0x83d   :  { %v4361_v41 = vadd.f32 %v4276_v29, %v3463_v51  ;;  %6855 = vmatprep.subr.mxu0 %v4601_v13  ;;  %v4770_v51 = vld [vmem:[%s12417_s12 + $0x38] sm:$0xff]  ;;  %v4769_v29 = vld [vmem:[%s12417_s12 + $0x30] sm:$0xff] }
 0x83e   :  { %v4278_v1 = vpop.f32.mrf.mxu0  ;;  %6856 = vmatpush3.msra.mxu0 %v4601_v13  ;;  %v4766_v13 = vld [vmem:[%s12417_s12 + $0x18] sm:$0xff] }
 0x83f   :  { %v4386_v38 = vadd.f32 %v11519_v57, %v4361_v41  ;;  %6857 = vmatprep.subr.mxu0 %v4600_v20  ;;  %v4768_v1 = vld [vmem:[%s12417_s12 + $0x28] sm:$0xff] }
 0x840   :  { %v4281_v27 = vpop.f32.mrf.mxu0  ;;  %6858 = vmatpush3.msra.mxu0 %v4600_v20 }
 0x841   :  { %v4404_v34 = vmax.f32 %v4386_v38, 0.0  ;;  %v3383_v58 = vpop.f32.mrf.mxu1  ;;  %6859 = vmatprep.subr.mxu0 %v4599_v53 }
 0x842   :  { %v3464_v23 = vadd.f32 %v3383_v58, %v11456_v2  ;;  %v4283_v46 = vpop.f32.mrf.mxu0  ;;  %v4776_v2 = vld [vmem:[%s12417_s12 + $0x68] sm:$0xff]  ;;  %6860 = vmatpush3.msra.mxu0 %v4599_v53 }
 0x843   :  { %v3385_v28 = vpop.f32.mrf.mxu1  ;;  %6817 = vmatmul.mubr.f32.vlgmr.msra.gmra.mxu1 %v4404_v34  ;;  %6861 = vmatprep.subr.mxu0 %v4598_v10  ;;  %v4765_v46 = vld [vmem:[%s12417_s12 + $0x10] sm:$0xff] }
 0x844   :  { %v4362_v31 = vadd.f32 %v4281_v27, %v3464_v23  ;;  %v4286_v48 = vpop.f32.mrf.mxu0  ;;  %6903 = vmatpush3.msra.mxu1 %v4778_v45  ;;  %6862 = vmatpush3.msra.mxu0 %v4598_v10  ;;  %v4767_v27 = vld [vmem:[%s12417_s12 + $0x20] sm:$0xff] }
 0x845   :  { %6904 = vmatprep.subr.mxu1 %v4777_v56  ;;  %6863 = vmatprep.subr.mxu0 %v4597_v14 }
 0x846   :  { %v4387_v54 = vadd.f32 %v11519_v57, %v4362_v31  ;;  %v3388_v32 = vpop.f32.mrf.mxu1  ;;  %v4288_v8 = vpop.f32.mrf.mxu0  ;;  %6905 = vmatpush3.msra.mxu1 %v4777_v56  ;;  %6864 = vmatpush3.msra.mxu0 %v4597_v14 }
 0x847   :  { %v3465_v40 = vadd.f32 %v3388_v32, %v11466_v7  ;;  %6906 = vmatprep.subr.mxu1 %v4776_v2  ;;  %6865 = vmatprep.subr.mxu0 %v4596_v61 }
 0x848   :  { %v4405_v60 = vmax.f32 %v4387_v54, 0.0  ;;  %v3390_v33 = vpop.f32.mrf.mxu1  ;;  %v4291_v15 = vpop.f32.mrf.mxu0  ;;  %6907 = vmatpush3.msra.mxu1 %v4776_v2  ;;  %6866 = vmatpush3.msra.mxu0 %v4596_v61 }
 0x849   :  { %v4363_v42 = vadd.f32 %v4286_v48, %v3465_v40  ;;  %6908 = vmatprep.subr.mxu1 %v4775_v0  ;;  %6867 = vmatprep.subr.mxu0 %v4595_v26 }
 0x84a   :  { %v3393_v22 = vpop.f32.mrf.mxu1  ;;  %6819 = vmatprep.mubr.f32.mxu1 %v4405_v60  ;;  %v4293_v7 = vpop.f32.mrf.mxu0  ;;  %6909 = vmatpush3.msra.mxu1 %v4775_v0 }
 0x84b   :  { %v4388_v4 = vadd.f32 %v11519_v57, %v4363_v42  ;;  %v3466_v44 = vadd.f32 %v3393_v22, %v11477_v9  ;;  %6910 = vmatprep.subr.mxu1 %v4774_v5  ;;  %v4771_v9 = vld [vmem:[%s12417_s12 + $0x40] sm:$0xff]  ;;  %6868 = vmatpush3.msra.mxu0 %v4595_v26 }
 0x84c   :  { %v3395_v24 = vpop.f32.mrf.mxu1  ;;  %6911 = vmatpush3.msra.mxu1 %v4774_v5 }
 0x84d   :  { %v4406_v18 = vmax.f32 %v4388_v4, 0.0  ;;  %v4364_v45 = vadd.f32 %v4291_v15, %v3466_v44  ;;  %6912 = vmatprep.subr.mxu1 %v4773_v19 }
 0x84e   :  { %v3398_v36 = vpop.f32.mrf.mxu1  ;;  %6913 = vmatpush3.msra.mxu1 %v4773_v19 }
 0x84f   :  { %v4389_v63 = vadd.f32 %v11519_v57, %v4364_v45  ;;  %6820 = vmatmul.mubr.f32.gmra.mxu1 %v4406_v18  ;;  %6914 = vmatprep.subr.mxu1 %v4772_v37  ;;  %v3467_v3 = vadd.f32 %v3398_v36, %v11482_v25  ;;  %v4594_v25 = vld [vmem:[%s12418_s13 + $0x10] sm:$0xff] }
 0x850   :  { %v3400_v50 = vpop.f32.mrf.mxu1  ;;  %6915 = vmatpush3.msra.mxu1 %v4772_v37  ;;  %6869 = vmatprep.subr.mxu0 %v4594_v25 }
 0x851   :  { %v4407_v16 = vmax.f32 %v4389_v63, 0.0  ;;  %6916 = vmatprep.subr.mxu1 %v4771_v9  ;;  %6870 = vmatpush3.msra.mxu0 %v4594_v25  ;;  %v4764_v50 = vld [vmem:[%s12417_s12 + $0x8] sm:$0xff]  ;;  %v4592_v25 = vld [vmem:[%s12418_s13] sm:$0xff] }
 0x852   :  { %6917 = vmatpush3.msra.mxu1 %v4771_v9 }
 0x853   :  { %v4296_v41 = vpop.f32.mrf.mxu0  ;;  %6822 = vmatprep.mubr.f32.mxu1 %v4407_v16  ;;  %6918 = vmatprep.subr.mxu1 %v4770_v51 }
 0x854   :  { %v4365_v17 = vadd.f32 %v4296_v41, %v3467_v3  ;;  %6919 = vmatpush3.msra.mxu1 %v4770_v51  ;;  %v4763_v41 = vld [vmem:[%s12417_s12] sm:$0xff]  ;;  %s7791_s12 = smov [#allocation8]  }
 0x855   :  { %v4298_v38 = vpop.f32.mrf.mxu0  ;;  %6920 = vmatprep.subr.mxu1 %v4769_v29 }
 0x856   :  { %v4390_v47 = vadd.f32 %v11519_v57, %v4365_v17  ;;  %6921 = vmatpush3.msra.mxu1 %v4769_v29 }
 0x857   :  { %6922 = vmatprep.subr.mxu1 %v4768_v1 }
 0x858   :  { %v4408_v34 = vmax.f32 %v4390_v47, 0.0  ;;  %6923 = vmatpush3.msra.mxu1 %v4768_v1 }
 0x859   :  { %v3403_v58 = vpop.f32.mrf.mxu1  ;;  %6924 = vmatprep.subr.mxu1 %v4767_v27 }
 0x85a   :  { %6823 = vmatmul.mubr.f32.gmra.mxu1 %v4408_v34  ;;  %v3468_v56 = vadd.f32 %v3403_v58, %v11487_v6 }
 0x85b   :  { %v3405_v23 = vpop.f32.mrf.mxu1  ;;  %6925 = vmatpush3.msra.mxu1 %v4767_v27 }
 0x85c   :  { %6926 = vmatprep.subr.mxu1 %v4766_v13 }
 0x85d   :  { %6927 = vmatpush3.msra.mxu1 %v4766_v13 }
 0x85e   :  { %6928 = vmatprep.subr.mxu1 %v4765_v46 }
 0x85f   :  { %v4301_v28 = vpop.f32.mrf.mxu0  ;;  %6929 = vmatpush3.msra.mxu1 %v4765_v46 }
 0x860   :  { %v4366_v20 = vadd.f32 %v4301_v28, %v3468_v56  ;;  %6930 = vmatprep.subr.mxu1 %v4764_v50 }
 0x861   :  { %v4303_v31 = vpop.f32.mrf.mxu0  ;;  %6931 = vmatpush3.msra.mxu1 %v4764_v50 }
 0x862   :  { %v4391_v48 = vadd.f32 %v11519_v57, %v4366_v20  ;;  %6932 = vmatprep.subr.mxu1 %v4763_v41 }
 0x863   :  { %6933 = vmatpush3.msra.mxu1 %v4763_v41 }
 0x864   :  { %v4409_v2 = vmax.f32 %v4391_v48, 0.0  ;;  %v3408_v53 = vpop.f32.mrf.mxu1  ;;  %5772 = vmatprep.subr.mxu1 %v13235_v52 }
 0x865   :  { %v3469_v32 = vadd.f32 %v3408_v53, %v11492_v12 }
 0x866   :  { %v3410_v54 = vpop.f32.mrf.mxu1  ;;  %6825 = vmatprep.mubr.f32.mxu1 %v4409_v2 }
 0x86a   :  { %v4306_v8 = vpop.f32.mrf.mxu0 }
 0x86b   :  { %v4367_v0 = vadd.f32 %v4306_v8, %v3469_v32 }
 0x86c   :  { %v4308_v40 = vpop.f32.mrf.mxu0 }
 0x86d   :  { %v4392_v60 = vadd.f32 %v11519_v57, %v4367_v0 }
 0x86f   :  { %v4410_v33 = vmax.f32 %v4392_v60, 0.0  ;;  %v3413_v6 = vpop.f32.mrf.mxu1 }
 0x870   :  { %v3470_v5 = vadd.f32 %v3413_v6, %v11495_v59 }
 0x871   :  { %v3415_v15 = vpop.f32.mrf.mxu1  ;;  %6826 = vmatmul.mubr.f32.gmra.mxu1 %v4410_v33 }
 0x875   :  { %v4311_v10 = vpop.f32.mrf.mxu0 }
 0x876   :  { %v4368_v42 = vadd.f32 %v4311_v10, %v3470_v5 }
 0x877   :  { %v4313_v22 = vpop.f32.mrf.mxu0 }
 0x878   :  { %v4393_v7 = vadd.f32 %v11519_v57, %v4368_v42 }
 0x87a   :  { %v4411_v19 = vmax.f32 %v4393_v7, 0.0  ;;  %v3418_v14 = vpop.f32.mrf.mxu1 }
 0x87b   :  { %v3471_v12 = vadd.f32 %v3418_v14, %v11497_v11  ;;  %v4593_v11 = vld [vmem:[%s12418_s13 + $0x8] sm:$0xff]  ;;  %s6177_s13 = sshll.u32 %s7791_s12, 4  ;;  %s6178_s13 = int_to_ptr.vmem [resolvable:$true] %s6177_s13 }
 0x87c   :  { %v3420_v4 = vpop.f32.mrf.mxu1  ;;  %6828 = vmatprep.mubr.f32.mxu1 %v4411_v19  ;;  %v4316_v44 = vpop.f32.mrf.mxu0  ;;  %6871 = vmatprep.subr.mxu0 %v4593_v11  ;;  %s7756_s11 = scalar_lea.vmem %s6178_s13, 32  ;;  %p7757_p11 = scmp.lt.s32.totalorder %s6178_s13, %s6178_s13 }
 0x87d   :  { %v4369_v24 = vadd.f32 %v4316_v44, %v3471_v12  ;;  %6872 = vmatpush3.msra.mxu0 %v4593_v11 }
 0x87e   :  { %v4318_v37 = vpop.f32.mrf.mxu0  ;;  %6873 = vmatprep.subr.mxu0 %v4592_v25 }
 0x87f   :  { %v4394_v18 = vadd.f32 %v11519_v57, %v4369_v24  ;;  %v3423_v45 = vpop.f32.mrf.mxu1  ;;  %6874 = vmatpush3.msra.mxu0 %v4592_v25 }
 0x880   :  { %v3472_v61 = vadd.f32 %v3423_v45, %v11499_v62  ;;  %v4321_v59 = vpop.f32.mrf.mxu0  ;;  %5607 = vmatprep.subr.mxu0 %v13235_v52 }
 0x881   :  { %v4412_v36 = vmax.f32 %v4394_v18, 0.0  ;;  %v3425_v9 = vpop.f32.mrf.mxu1 }
 0x882   :  { %v4370_v63 = vadd.f32 %v4321_v59, %v3472_v61  ;;  %v4323_v26 = vpop.f32.mrf.mxu0 }
 0x883   :  { %6829 = vmatmul.mubr.f32.gmra.mxu1 %v4412_v36  ;;  %v3428_v3 = vpop.f32.mrf.mxu1 }
 0x884   :  { %v4395_v51 = vadd.f32 %v11519_v57, %v4370_v63  ;;  %v3473_v16 = vadd.f32 %v3428_v3, %v11501_v55  ;;  %v4326_v62 = vpop.f32.mrf.mxu0 }
 0x885   :  { %v3430_v29 = vpop.f32.mrf.mxu1 }
 0x886   :  { %v4413_v17 = vmax.f32 %v4395_v51, 0.0  ;;  %v4371_v1 = vadd.f32 %v4326_v62, %v3473_v16  ;;  %v4328_v38 = vpop.f32.mrf.mxu0 }
 0x887   :  { %v3433_v55 = vpop.f32.mrf.mxu1 }
 0x888   :  { %6831 = vmatprep.mubr.f32.mxu1 %v4413_v17  ;;  %v4396_v47 = vadd.f32 %v11519_v57, %v4371_v1  ;;  %v3474_v27 = vadd.f32 %v3433_v55, %v11503_v21 }
 0x889   :  { %v4331_v34 = vpop.f32.mrf.mxu0  ;;  %v3435_v58 = vpop.f32.mrf.mxu1 }
 0x88a   :  { %v4414_v13 = vmax.f32 %v4396_v47, 0.0  ;;  %v4372_v23 = vadd.f32 %v4331_v34, %v3474_v27 }
 0x88b   :  { %v4333_v46 = vpop.f32.mrf.mxu0 }
 0x88c   :  { %6832 = vmatmul.mubr.f32.gmra.mxu1 %v4414_v13  ;;  %v4397_v56 = vadd.f32 %v11519_v57, %v4372_v23  ;;  %v3438_v28 = vpop.f32.mrf.mxu1 }
 0x88d   :  { %v3475_v48 = vadd.f32 %v3438_v28, %v11505_v43 }
 0x88e   :  { %v4415_v20 = vmax.f32 %v4397_v56, 0.0  ;;  %v3440_v31 = vpop.f32.mrf.mxu1 }
 0x890   :  { %6834 = vmatprep.mubr.f32.mxu1 %v4415_v20  ;;  %v4336_v2 = vpop.f32.mrf.mxu0 }
 0x891   :  { %v4373_v21 = vadd.f32 %v4336_v2, %v3475_v48 }
 0x892   :  { %v4338_v53 = vpop.f32.mrf.mxu0 }
 0x893   :  { %v4398_v54 = vadd.f32 %v11519_v57, %v4373_v21 }
 0x894   :  { %v3443_v32 = vpop.f32.mrf.mxu1 }
 0x895   :  { %v4416_v8 = vmax.f32 %v4398_v54, 0.0  ;;  %v3476_v40 = vadd.f32 %v3443_v32, %v11507_v39 }
 0x896   :  { %v3445_v0 = vpop.f32.mrf.mxu1 }
 0x897   :  { %6835 = vmatmul.mubr.f32.gmra.mxu1 %v4416_v8 }
 0x898   :  { %v4341_v60 = vpop.f32.mrf.mxu0 }
 0x899   :  { %v4374_v33 = vadd.f32 %v4341_v60, %v3476_v40 }
 0x89a   :  { %v4343_v6 = vpop.f32.mrf.mxu0 }
 0x89b   :  { %v4399_v15 = vadd.f32 %v11519_v57, %v4374_v33 }
 0x89c   :  { %v3448_v5 = vpop.f32.mrf.mxu1 }
 0x89d   :  { %v4417_v10 = vmax.f32 %v4399_v15, 0.0  ;;  %v3477_v42 = vadd.f32 %v3448_v5, %v11509_v30 }
 0x89e   :  { %v3450_v43 = vpop.f32.mrf.mxu1 }
 0x89f   :  { %6837 = vmatprep.mubr.f32.mxu1 %v4417_v10 }
 0x8a0   :  { %v4346_v22 = vpop.f32.mrf.mxu0 }
 0x8a1   :  { %v4375_v7 = vadd.f32 %v4346_v22, %v3477_v42 }
 0x8a2   :  { %v4348_v19 = vpop.f32.mrf.mxu0 }
 0x8a3   :  { %v4400_v14 = vadd.f32 %v11519_v57, %v4375_v7 }
 0x8a4   :  { %v3453_v12 = vpop.f32.mrf.mxu1 }
 0x8a5   :  { %v4418_v4 = vmax.f32 %v4400_v14, 0.0  ;;  %v3478_v44 = vadd.f32 %v3453_v12, %v11511_v35 }
 0x8a6   :  { %v3455_v39 = vpop.f32.mrf.mxu1 }
 0x8a7   :  { %6838 = vmatmul.mubr.f32.gmra.mxu1 %v4418_v4 }
 0x8a8   :  { %v4351_v24 = vpop.f32.mrf.mxu0 }
 0x8a9   :  { %v4376_v37 = vadd.f32 %v4351_v24, %v3478_v44 }
 0x8aa   :  { %v4353_v18 = vpop.f32.mrf.mxu0 }
 0x8ab   :  { %v4401_v45 = vadd.f32 %v11519_v57, %v4376_v37 }
 0x8ac   :  { %v3458_v61 = vpop.f32.mrf.mxu1 }
 0x8ad   :  { %v4419_v59 = vmax.f32 %v4401_v45, 0.0  ;;  %v3479_v36 = vadd.f32 %v3458_v61, %v11513_v49 }
 0x8ae   :  { %v3460_v30 = vpop.f32.mrf.mxu1 }
 0x8af   :  { %6840 = vmatprep.mubr.f32.mxu1 %v4419_v59 }
 0x8b0   :  { %v4356_v9 = vpop.f32.mrf.mxu0 }
 0x8b1   :  { %v4377_v63 = vadd.f32 %v4356_v9, %v3479_v36 }
 0x8b2   :  { %v4358_v26 = vpop.f32.mrf.mxu0 }
 0x8b3   :  { %v4402_v3 = vadd.f32 %v11519_v57, %v4377_v63 }
 0x8b5   :  { %v4420_v11 = vmax.f32 %v4402_v3, 0.0 }
 0x8b7   :  { %6841 = vmatmul.mubr.f32.gmra.mxu1 %v4420_v11 }
 0x903   :  { %v11654_v35 = vpop.f32.mrf.mxu1 }
 0x905   :  { %v11656_v50 = vpop.f32.mrf.mxu1 }
 0x906   :  { %6875 = vmatprep.mubr.f32.mxu0 %v11656_v50  ;;  %6934 = vmatprep.mubr.f32.mxu1 %v11656_v50 }
 0x907   :  { %6876 = vmatmul.mubr.f32.vlgmr.msra.gmra.mxu0 %v11654_v35  ;;  %6935 = vmatmul.mubr.f32.vlgmr.msra.gmra.mxu1 %v11654_v35 }
 0x90f   :  { %v11662_v49 = vpop.f32.mrf.mxu1 }
 0x911   :  { %v11664_v51 = vpop.f32.mrf.mxu1 }
 0x912   :  { %6878 = vmatprep.mubr.f32.mxu0 %v11664_v51  ;;  %6937 = vmatprep.mubr.f32.mxu1 %v11664_v51 }
 0x913   :  { %6879 = vmatmul.mubr.f32.gmra.mxu0 %v11662_v49  ;;  %6938 = vmatmul.mubr.f32.gmra.mxu1 %v11662_v49 }
 0x91a   :  { %v6824_v57 = vpop.f32.mrf.mxu1 }
 0x91c   :  { %v4523_v16 = vpop.f32.mrf.mxu1 }
 0x91d   :  { %6881 = vmatprep.mubr.f32.mxu0 %v4523_v16  ;;  %6940 = vmatprep.mubr.f32.mxu1 %v4523_v16 }
 0x91e   :  { %6882 = vmatmul.mubr.f32.gmra.mxu0 %v6824_v57  ;;  %6941 = vmatmul.mubr.f32.gmra.mxu1 %v6824_v57 }
 0x931   :  { %v6827_v62 = vpop.f32.mrf.mxu1 }
 0x933   :  { %v4533_v29 = vpop.f32.mrf.mxu1 }
 0x934   :  { %6884 = vmatprep.mubr.f32.mxu0 %v4533_v29  ;;  %6943 = vmatprep.mubr.f32.mxu1 %v4533_v29 }
 0x935   :  { %6885 = vmatmul.mubr.f32.gmra.mxu0 %v6827_v62  ;;  %6944 = vmatmul.mubr.f32.gmra.mxu1 %v6827_v62 }
 0x943   :  { %v6830_v25 = vpop.f32.mrf.mxu1 }
 0x945   :  { %v4543_v41 = vpop.f32.mrf.mxu1 }
 0x946   :  { %6887 = vmatprep.mubr.f32.mxu0 %v4543_v41  ;;  %6946 = vmatprep.mubr.f32.mxu1 %v4543_v41 }
 0x947   :  { %6888 = vmatmul.mubr.f32.gmra.mxu0 %v6830_v25  ;;  %6947 = vmatmul.mubr.f32.gmra.mxu1 %v6830_v25 }
 0x94c   :  { %v6833_v17 = vpop.f32.mrf.mxu1 }
 0x94e   :  { %v4553_v1 = vpop.f32.mrf.mxu1 }
 0x94f   :  { %6890 = vmatprep.mubr.f32.mxu0 %v4553_v1  ;;  %6949 = vmatprep.mubr.f32.mxu1 %v4553_v1 }
 0x950   :  { %6891 = vmatmul.mubr.f32.gmra.mxu0 %v6833_v17  ;;  %6950 = vmatmul.mubr.f32.gmra.mxu1 %v6833_v17 }
 0x957   :  { %v6836_v38 = vpop.f32.mrf.mxu1 }
 0x959   :  { %v4563_v55 = vpop.f32.mrf.mxu1 }
 0x95a   :  { %6893 = vmatprep.mubr.f32.mxu0 %v4563_v55  ;;  %6952 = vmatprep.mubr.f32.mxu1 %v4563_v55 }
 0x95b   :  { %6894 = vmatmul.mubr.f32.gmra.mxu0 %v6836_v38  ;;  %6953 = vmatmul.mubr.f32.gmra.mxu1 %v6836_v38 }
 0x967   :  { %v6839_v47 = vpop.f32.mrf.mxu1 }
 0x968   :  { %5608 = vmatpush1.msra.mxu0 %v6839_v47 }
 0x969   :  { %v4573_v27 = vpop.f32.mrf.mxu1  ;;  %5609 = vmatprep.subr.mxu0 %v13235_v52 }
 0x96a   :  { %6896 = vmatprep.mubr.f32.mxu0 %v4573_v27  ;;  %6955 = vmatprep.mubr.f32.mxu1 %v4573_v27 }
 0x96b   :  { %5610 = vmatpush1.msra.mxu0 %v4573_v27  ;;  %6956 = vmatmul.mubr.f32.gmra.mxu1 %v6839_v47 }
 0x96c   :  { %6897 = vmatmul.mubr.f32.gmra.mxu0 %v6839_v47  ;;  %5611 = vmatprep.subr.mxu0 %v13235_v52 }
 0x96d   :  { %5612 = vmatpush1.msra.mxu0 %v6836_v38 }
 0x96e   :  { %5613 = vmatprep.subr.mxu0 %v13235_v52 }
 0x96f   :  { %5614 = vmatpush1.msra.mxu0 %v4563_v55 }
 0x970   :  { %5615 = vmatprep.subr.mxu0 %v13235_v52 }
 0x971   :  { %5616 = vmatpush1.msra.mxu0 %v6833_v17 }
 0x972   :  { %5617 = vmatprep.subr.mxu0 %v13235_v52 }
 0x973   :  { %5618 = vmatpush1.msra.mxu0 %v4553_v1 }
 0x974   :  { %5619 = vmatprep.subr.mxu0 %v13235_v52 }
 0x975   :  { %5620 = vmatpush1.msra.mxu0 %v6830_v25 }
 0x976   :  { %5621 = vmatprep.subr.mxu0 %v13235_v52 }
 0x977   :  { %5622 = vmatpush1.msra.mxu0 %v4543_v41  ;;  %v6842_v34 = vpop.f32.mrf.mxu1 }
 0x978   :  { %5623 = vmatprep.subr.mxu0 %v13235_v52 }
 0x979   :  { %5624 = vmatpush1.msra.mxu0 %v6827_v62  ;;  %v4583_v58 = vpop.f32.mrf.mxu1 }
 0x97a   :  { %5625 = vmatprep.subr.mxu0 %v13235_v52  ;;  %6899 = vmatprep.mubr.f32.mxu0 %v4583_v58 }
 0x97b   :  { %6958 = vmatprep.mubr.f32.mxu1 %v4583_v58  ;;  %5626 = vmatpush1.msra.mxu0 %v4533_v29 }
 0x97c   :  { %6900 = vmatmul.mubr.f32.gmra.mxu0 %v6842_v34  ;;  %6959 = vmatmul.mubr.f32.gmra.mxu1 %v6842_v34 }
 0x97d   :  { %5627 = vmatprep.subr.mxu0 %v13235_v52 }
 0x97e   :  { %5628 = vmatpush1.msra.mxu0 %v6824_v57 }
 0x97f   :  { %5629 = vmatprep.subr.mxu0 %v13235_v52 }
 0x980   :  { %5630 = vmatpush1.msra.mxu0 %v4523_v16  ;;  %v13394_v16 = vld [vmem:[#allocation106_spill] sm:$0xff] }
 0x981   :  { %5631 = vmatprep.subr.mxu0 %v13235_v52 }
 0x982   :  { %5632 = vmatpush1.msra.mxu0 %v11662_v49 }
 0x983   :  { %5633 = vmatprep.subr.mxu0 %v13235_v52 }
 0x984   :  { %5634 = vmatpush1.msra.mxu0 %v11664_v51 }
 0x985   :  { %5635 = vmatprep.subr.mxu0 %v13235_v52 }
 0x986   :  { %5636 = vmatpush1.msra.mxu0 %v11654_v35 }
 0x987   :  { %5637 = vmatprep.subr.mxu0 %v13235_v52 }
 0x988   :  { %5638 = vmatpush1.msra.mxu0 %v11656_v50 }
 0x989   :  { %5667 = vmatprep.subr.mxu0 %v13235_v52 }
 0x98a   :  { %5668 = vmatpush2.msra.mxu0 %v6842_v34 }
 0x98b   :  { %5669 = vmatprep.subr.mxu0 %v13235_v52 }
 0x98c   :  { %5670 = vmatpush2.msra.mxu0 %v4583_v58 }
 0x9c7   :  { %v6877_v13 = vpop.f32.mrf.mxu0  ;;  %v6936_v53 = vpop.f32.mrf.mxu1 }
 0x9c8   :  { %5005 = vperm.xlu0 %7090, %v6877_v13  }
 0x9c9   :  { %v4674_v23 = vpop.f32.mrf.mxu0  ;;  %v4845_v32 = vpop.f32.mrf.mxu1 }
 0x9ca   :  { %5000 = vperm.xlu1 %7091, %v4674_v23  }
 0x9d3   :  { %v6880_v46 = vpop.f32.mrf.mxu0  ;;  %v6939_v0 = vpop.f32.mrf.mxu1 }
 0x9d4   :  { %5015 = vperm.xlu1 %7091, %v6880_v46  }
 0x9d5   :  { %v4684_v56 = vpop.f32.mrf.mxu0  ;;  %v4855_v40 = vpop.f32.mrf.mxu1 }
 0x9d8   :  { %5010 = vperm.xlu1 %7091, %v4684_v56  }
 0x9de   :  { %v6883_v28 = vpop.f32.mrf.mxu0  ;;  %v6942_v33 = vpop.f32.mrf.mxu1 }
 0x9df   :  { %5025 = vperm.xlu1 %7091, %v6883_v28  }
 0x9e0   :  { %v4694_v20 = vpop.f32.mrf.mxu0  ;;  %v4865_v15 = vpop.f32.mrf.mxu1 }
 0x9e3   :  { %5020 = vperm.xlu1 %7091, %v4694_v20  }
 0x9f5   :  { %v6886_v31 = vpop.f32.mrf.mxu0  ;;  %v6945_v5 = vpop.f32.mrf.mxu1 }
 0x9f6   :  { %5035 = vperm.xlu0 %7090, %v6886_v31  }
 0x9f7   :  { %v4704_v48 = vpop.f32.mrf.mxu0  ;;  %v4875_v10 = vpop.f32.mrf.mxu1 }
 0x9f8   :  { %5030 = vperm.xlu1 %7091, %v4704_v48  }
 0xa07   :  { %v6889_v2 = vpop.f32.mrf.mxu0  ;;  %v6948_v42 = vpop.f32.mrf.mxu1 }
 0xa08   :  { %5045 = vperm.xlu1 %7091, %v6889_v2  }
 0xa09   :  { %v4714_v21 = vpop.f32.mrf.mxu0  ;;  %v4885_v7 = vpop.f32.mrf.mxu1 }
 0xa0c   :  { %5040 = vperm.xlu1 %7091, %v4714_v21  }
 0xa10   :  { %v6892_v54 = vpop.f32.mrf.mxu0  ;;  %v6951_v19 = vpop.f32.mrf.mxu1 }
 0xa11   :  { %5055 = vperm.xlu1 %7091, %v6892_v54  }
 0xa12   :  { %v4724_v8 = vpop.f32.mrf.mxu0  ;;  %v4895_v14 = vpop.f32.mrf.mxu1 }
 0xa14   :  { %4934 = vxpose.xlu0.b32.start [1/16] (narrow) %v4845_v32, 8 }
 0xa15   :  { %5050 = vperm.xlu1 %7091, %v4724_v8  }
 0xa18   :  { %4935 = vxpose.xlu0.b32.cont [2/16] (narrow) %v6936_v53, 8 }
 0xa1b   :  { %v6895_v60 = vpop.f32.mrf.mxu0  ;;  %v6954_v12 = vpop.f32.mrf.mxu1 }
 0xa1c   :  { %4936 = vxpose.xlu0.b32.cont [3/16] (narrow) %v4855_v40, 8  ;;  %5065 = vperm.xlu1 %7091, %v6895_v60  }
 0xa1d   :  { %v4734_v6 = vpop.f32.mrf.mxu0  ;;  %v4905_v4 = vpop.f32.mrf.mxu1 }
 0xa20   :  { %4937 = vxpose.xlu0.b32.cont [4/16] (narrow) %v6939_v0, 8  ;;  %5060 = vperm.xlu1 %7091, %v4734_v6  }
 0xa24   :  { %4938 = vxpose.xlu0.b32.cont [5/16] (narrow) %v4865_v15, 8  ;;  %v7674_v15 = vld [vmem:[%s12409_s4 + $0x18] sm:$0xff] }
 0xa28   :  { %4939 = vxpose.xlu0.b32.cont [6/16] (narrow) %v6942_v33, 8 }
 0xa2b   :  { %v6957_v39 = vpop.f32.mrf.mxu1 }
 0xa2c   :  { %4940 = vxpose.xlu0.b32.cont [7/16] (narrow) %v4875_v10, 8  ;;  %v6898_v43 = vpop.f32.mrf.mxu0  ;;  %v7675_v10 = vld [vmem:[%s12409_s4 + $0x8] sm:$0xff] }
 0xa2d   :  { %5075 = vperm.xlu1 %7091, %v6898_v43   ;;  %v4915_v44 = vpop.f32.mrf.mxu1 }
 0xa2e   :  { %v4744_v22 = vpop.f32.mrf.mxu0 }
 0xa30   :  { %4941 = vxpose.xlu0.b32.cont [8/16] (narrow) %v6945_v5, 8 }
 0xa31   :  { %5070 = vperm.xlu1 %7091, %v4744_v22  }
 0xa34   :  { %4942 = vxpose.xlu0.b32.cont [9/16] (narrow) %v4885_v7, 8 }
 0xa38   :  { %4943 = vxpose.xlu0.b32.cont [10/16] (narrow) %v6948_v42, 8  ;;  %v7676_v42 = vld [vmem:[%s12409_s4 + $0x48] sm:$0xff] }
 0xa3c   :  { %4944 = vxpose.xlu0.b32.cont [11/16] (narrow) %v4895_v14, 8  ;;  %v6960_v24 = vpop.f32.mrf.mxu1 }
 0xa3e   :  { %v4925_v37 = vpop.f32.mrf.mxu1 }
 0xa40   :  { %4945 = vxpose.xlu0.b32.cont [12/16] (narrow) %v6951_v19, 8  ;;  %v7677_v19 = vld [vmem:[%s12409_s4 + $0x10] sm:$0xff] }
 0xa43   :  { %v5006_v35 = vpop.permute.xlu0 %5005 }
 0xa44   :  { %4946 = vxpose.xlu0.b32.cont [13/16] (narrow) %v4905_v4, 8 }
 0xa45   :  { %v5001_v18 = vpop.permute.xlu1 %5000 }
 0xa48   :  { %4947 = vxpose.xlu0.b32.cont [14/16] (narrow) %v6954_v12, 8  ;;  %v7678_v12 = vld [vmem:[%s12409_s4] sm:$0xff] }
 0xa4c   :  { %4948 = vxpose.xlu0.b32.cont [15/16] (narrow) %v4915_v44, 8  ;;  %v7679_v44 = vld [vmem:[%s12409_s4 + $0x28] sm:$0xff] }
 0xa4f   :  { %v5016_v45 = vpop.permute.xlu1 %5015 }
 0xa50   :  { %4949 = vxpose.xlu0.b32.end [16/16] (narrow) %v6957_v39, 8 }
 0xa53   :  { %v5011_v61 = vpop.permute.xlu1 %5010 }
 0xa5a   :  { %4966 = vxpose.xlu1.b32.start [1/2] (short) (narrow) %v4925_v37, 8  ;;  %v11691_v59 = vpop.permute.xlu1 %5025 }
 0xa5e   :  { %4967 = vxpose.xlu1.b32.end [2/2] (short) (narrow) %v6960_v24, 8  ;;  %v5021_v30 = vpop.permute.xlu1 %5020 }
 0xa71   :  { %v11707_v49 = vpop.permute.xlu0 %5035 }
 0xa73   :  { %v11693_v36 = vpop.permute.xlu1 %5030 }
 0xa83   :  { %v11695_v9 = vpop.permute.xlu1 %5045 }
 0xa87   :  { %v11697_v63 = vpop.permute.xlu1 %5040 }
 0xa8c   :  { %v11699_v26 = vpop.permute.xlu1 %5055 }
 0xa90   :  { %v11701_v3 = vpop.permute.xlu1 %5050  ;;  %v4950_v57 = vpop.trf.xlu0 }
 0xa91   :  { %v11712_v62 = vrot.slane %v4950_v57, %v13394_v16  ;;  %v7680_v57 = vld [vmem:[%s12409_s4 + $0x38] sm:$0xff] }
 0xa93   :  { %v5098_v25 = vadd.f32 %v11712_v62, %v5006_v35  ;;  %v5096_v41 = vadd.f32 %v11712_v62, %v5001_v18  ;;  %v5104_v1 = vadd.f32 %v11712_v62, %v5021_v30  ;;  %v5100_v38 = vadd.f32 %v11712_v62, %v5011_v61 }
 0xa94   :  { %v5102_v28 = vadd.f32 %v11712_v62, %v5016_v45 }
 0xa95   :  { %v5134_v47 = vmul.f32 0.2, %v5098_v25  ;;  %v5132_v27 = vmul.f32 0.2, %v5096_v41  ;;  %v5140_v46 = vmul.f32 0.2, %v5104_v1 }
 0xa96   :  { %v5136_v56 = vmul.f32 0.2, %v5100_v38  ;;  %v5138_v6 = vmul.f32 0.2, %v5102_v28 }
 0xa97   :  { %v11703_v11 = vpop.permute.xlu1 %5065  ;;  %v5170_v21 = vmax.f32 %v5098_v25, %v5134_v47  ;;  %v5168_v53 = vmax.f32 %v5096_v41, %v5132_v27  ;;  %v5176_v60 = vmax.f32 %v5104_v1, %v5140_v46  ;;  %v7681_v25 = vld [vmem:[%s12409_s4 + $0x40] sm:$0xff]  ;;  %v6901_v46 = vpop.f32.mrf.mxu0 }
 0xa98   :  { %v5172_v39 = vmax.f32 %v5100_v38, %v5136_v56  ;;  %v5174_v38 = vmax.f32 %v5102_v28, %v5138_v6 }
 0xa99   :  { %v11747_v14 = vadd.f32 %v7677_v19, %v5170_v21  ;;  %v11752_v4 = vadd.f32 %v7678_v12, %v5168_v53  ;;  %v11777_v41 = vadd.f32 %v7681_v25, %v5176_v60  ;;  %v4754_v56 = vpop.f32.mrf.mxu0  ;;  %v5114_v53 = vadd.f32 %v11712_v62, %v11695_v9  ;;  %v7686_v25 = vld [vmem:[%s12409_s4 + $0x58] sm:$0xff] }
 0xa9b   :  { %v11705_v50 = vpop.permute.xlu1 %5060  ;;  %v5150_v6 = vmul.f32 0.2, %v5114_v53 }
 0xaa8   :  { %v11709_v51 = vpop.permute.xlu1 %5075 }
 0xaac   :  { %v11714_v29 = vpop.permute.xlu1 %5070 }
 0xad6   :  { %v4982_v17 = vpop.trf.xlu1 }
 0xad7   :  { %v11721_v55 = vrot.slane %v4982_v17, %v13394_v16  ;;  %v7682_v17 = vld [vmem:[%s12409_s4 + $0x20] sm:$0xff] }
 0xad8   :  { %v11782_v1 = vadd.f32 %v7682_v17, %v5172_v39 }
 0xad9   :  { %v5099_v34 = vadd.f32 %v11721_v55, %v5006_v35  ;;  %v5097_v58 = vadd.f32 %v11721_v55, %v5001_v18  ;;  %v5105_v13 = vadd.f32 %v11721_v55, %v5021_v30  ;;  %v5101_v23 = vadd.f32 %v11721_v55, %v5011_v61 }
 0xada   :  { %v5103_v20 = vadd.f32 %v11721_v55, %v5016_v45  ;;  %v5109_v28 = vadd.f32 %v11721_v55, %v11693_v36  ;;  %v5111_v60 = vadd.f32 %v11721_v55, %v11707_v49  ;;  %v5123_v12 = vadd.f32 %v11721_v55, %v11703_v11 }
 0xadb   :  { %v5135_v31 = vmul.f32 0.2, %v5099_v34  ;;  %v5133_v48 = vmul.f32 0.2, %v5097_v58  ;;  %v5141_v2 = vmul.f32 0.2, %v5105_v13  ;;  %v5113_v39 = vadd.f32 %v11721_v55, %v11697_v63 }
 0xadc   :  { %v5137_v54 = vmul.f32 0.2, %v5101_v23  ;;  %v5139_v32 = vmul.f32 0.2, %v5103_v20  ;;  %v5147_v19 = vmul.f32 0.2, %v5111_v60 }
 0xadd   :  { %v5171_v8 = vmax.f32 %v5099_v34, %v5135_v31  ;;  %v5169_v0 = vmax.f32 %v5097_v58, %v5133_v48  ;;  %v5177_v40 = vmax.f32 %v5105_v13, %v5141_v2  ;;  %v7683_v58 = vld [vmem:[%s12409_s4 + $0x30] sm:$0xff]  ;;  %v5115_v31 = vadd.f32 %v11721_v55, %v11695_v9 }
 0xade   :  { %v5173_v33 = vmax.f32 %v5101_v23, %v5137_v54  ;;  %v5175_v7 = vmax.f32 %v5103_v20, %v5139_v32  ;;  %v11791_v13 = vadd.f32 %v7683_v58, %v5174_v38  ;;  %v5145_v20 = vmul.f32 0.2, %v5109_v28 }
 0xadf   :  { %v11732_v5 = vadd.f32 %v7674_v15, %v5171_v8  ;;  %v11737_v43 = vadd.f32 %v7675_v10, %v5169_v0  ;;  %v11742_v22 = vadd.f32 %v7676_v42, %v5177_v40  ;;  %v5107_v48 = vadd.f32 %v11721_v55, %v11691_v59 }
 0xae0   :  { %v11757_v24 = vadd.f32 %v7679_v44, %v5173_v33  ;;  %v11772_v16 = vadd.f32 %v7680_v57, %v5175_v7  ;;  %v5108_v2 = vadd.f32 %v11712_v62, %v11693_v36  ;;  %v5181_v21 = vmax.f32 %v5109_v28, %v5145_v20  ;;  %v7684_v36 = vld [vmem:[%s12409_s4 + $0x68] sm:$0xff] }
 0xae1   :  { %v5244_v37 = vsel %vm1145_vm9, %v11732_v5, -inf  ;;  %v5240_v18 = vsel %vm1145_vm9, %v11737_v43, -inf  ;;  %v5256_v30 = vsel %vm1145_vm9, %v11742_v22, -inf  ;;  %v5151_v54 = vmul.f32 0.2, %v5115_v31 }
 0xae2   :  { %v5245_v45 = vmax.f32 %v11747_v14, %v5244_v37  ;;  %v5241_v61 = vmax.f32 %v11752_v4, %v5240_v18  ;;  %v5248_v35 = vsel %vm1145_vm9, %v11757_v24, -inf  ;;  %v5257_v47 = vmax.f32 %v11777_v41, %v5256_v30  ;;  %v7685_v30 = vld [vmem:[%s12409_s4 + $0x98] sm:$0xff] }
 0xae3   :  { %v5249_v27 = vmax.f32 %v11782_v1, %v5248_v35  ;;  %v5252_v34 = vsel %vm1145_vm9, %v11772_v16, -inf  ;;  %v5106_v32 = vadd.f32 %v11712_v62, %v11691_v59  ;;  %v5143_v8 = vmul.f32 0.2, %v5107_v48 }
 0xae4   :  { %5246 = vmax.xlane.f32.xlu0 %v5245_v45  ;;  %5242 = vmax.xlane.f32.xlu1 %v5241_v61  ;;  %v5253_v23 = vmax.f32 %v11791_v13, %v5252_v34  ;;  %v5119_v0 = vadd.f32 %v11721_v55, %v11699_v26  ;;  %v5144_v40 = vmul.f32 0.2, %v5108_v2  ;;  %v5118_v33 = vadd.f32 %v11712_v62, %v11699_v26 }
 0xae5   :  { %v11815_v9 = vadd.f32 %v7684_v36, %v5181_v21  ;;  %v5187_v15 = vmax.f32 %v5115_v31, %v5151_v54  ;;  %v5142_v59 = vmul.f32 0.2, %v5106_v32  ;;  %v5179_v10 = vmax.f32 %v5107_v48, %v5143_v8 }
 0xae6   :  { %v5155_v42 = vmul.f32 0.2, %v5119_v0  ;;  %v5180_v7 = vmax.f32 %v5108_v2, %v5144_v40  ;;  %v5154_v26 = vmul.f32 0.2, %v5118_v33  ;;  %v11823_v44 = vadd.f32 %v11712_v62, %v11701_v3 }
 0xae7   :  { %v11827_v37 = vadd.f32 %v11712_v62, %v11703_v11  ;;  %v5110_v18 = vadd.f32 %v11712_v62, %v11707_v49  ;;  %v5264_v45 = vsel %vm1145_vm9, %v11815_v9, -inf  ;;  %v5186_v61 = vmax.f32 %v5114_v53, %v5150_v6 }
 0xae8   :  { %5258 = vmax.xlane.f32.xlu0 %v5257_v47  ;;  %5250 = vmax.xlane.f32.xlu1 %v5249_v27  ;;  %v11836_v35 = vadd.f32 %v7685_v30, %v5187_v15  ;;  %v5178_v57 = vmax.f32 %v5106_v32, %v5142_v59  ;;  %v11841_v11 = vadd.f32 %v7686_v25, %v5179_v10  ;;  %v7687_v47 = vld [vmem:[%s12409_s4 + $0x60] sm:$0xff]  ;;  %v5159_v58 = vmul.f32 0.2, %v5123_v12 }
 0xae9   :  { %v5191_v17 = vmax.f32 %v5119_v0, %v5155_v42  ;;  %v5127_v49 = vadd.f32 %v11721_v55, %v11709_v51  ;;  %v5117_v38 = vadd.f32 %v11721_v55, %v11701_v3  ;;  %v11850_v27 = vadd.f32 %v7687_v47, %v5180_v7  ;;  %v7688_v3 = vld [vmem:[%s12409_s4 + $0x90] sm:$0xff] }
 0xaea   :  { %v5183_v34 = vmax.f32 %v5111_v60, %v5147_v19  ;;  %v5146_v28 = vmul.f32 0.2, %v5110_v18  ;;  %v11855_v20 = vadd.f32 %v11712_v62, %v11697_v63  ;;  %v11861_v48 = vadd.f32 %v7688_v3, %v5186_v61  ;;  %v7689_v63 = vld [vmem:[%s12409_s4 + $0xb8] sm:$0xff]  ;;  %v7690_v0 = vld [vmem:[%s12409_s4 + $0x50] sm:$0xff] }
 0xaeb   :  { %v5265_v31 = vmax.f32 %v11850_v27, %v5264_v45  ;;  %v5276_v2 = vsel %vm1145_vm9, %v11836_v35, -inf  ;;  %v11867_v21 = vadd.f32 %v11721_v55, %v11705_v50  ;;  %v5260_v53 = vsel %vm1145_vm9, %v11841_v11, -inf  ;;  %v7691_v60 = vld [vmem:[%s12409_s4 + $0x78] sm:$0xff]  ;;  %v7692_v7 = vld [vmem:[%s12409_s4 + $0xb0] sm:$0xff] }
 0xaec   :  { %5254 = vmax.xlane.f32.xlu1 %v5253_v23  ;;  %v5149_v23 = vmul.f32 0.2, %v5113_v39  ;;  %v11874_v54 = vadd.f32 %v7689_v63, %v5191_v17  ;;  %v5163_v32 = vmul.f32 0.2, %v5127_v49  ;;  %v5153_v8 = vmul.f32 0.2, %v5117_v38 }
 0xaed   :  { %v11879_v40 = vadd.f32 %v7690_v0, %v5178_v57  ;;  %v5195_v36 = vmax.f32 %v5123_v12, %v5159_v58  ;;  %v5152_v15 = vmul.f32 0.2, %v11823_v44  ;;  %v5126_v59 = vadd.f32 %v11712_v62, %v11709_v51  ;;  %v7693_v57 = vld [vmem:[%s12409_s4 + $0xd8] sm:$0xff] }
 0xaee   :  { %v5185_v6 = vmax.f32 %v5113_v39, %v5149_v23  ;;  %v5182_v10 = vmax.f32 %v5110_v18, %v5146_v28  ;;  %v5148_v42 = vmul.f32 0.2, %v11855_v20  ;;  %v5277_v12 = vmax.f32 %v11861_v48, %v5276_v2  ;;  %v7697_v3 = vld [vmem:[%s12409_s4 + $0xf8] sm:$0xff] }
 0xaef   :  { %v5261_v39 = vmax.f32 %v11879_v40, %v5260_v53  ;;  %v5284_v45 = vsel %vm1145_vm9, %v11874_v54, -inf  ;;  %v5199_v51 = vmax.f32 %v5127_v49, %v5163_v32  ;;  %v5189_v61 = vmax.f32 %v5117_v38, %v5153_v8 }
 0xaf0   :  { %v5157_v18 = vmul.f32 0.2, %v11867_v21  ;;  %v11906_v25 = vadd.f32 %v7693_v57, %v5195_v36  ;;  %v5125_v49 = vadd.f32 %v11721_v55, %v11714_v29  ;;  %v5120_v38 = vadd.f32 %v11712_v62, %v11705_v50 }
 0xaf1   :  { %v5162_v47 = vmul.f32 0.2, %v5126_v59  ;;  %v5184_v23 = vmax.f32 %v11855_v20, %v5148_v42  ;;  %v11934_v2 = vadd.f32 %v7697_v3, %v5199_v51  ;;  %v5124_v36 = vadd.f32 %v11712_v62, %v11714_v29  ;;  %v7700_v29 = vld [vmem:[%s12409_s4 + $0xc8] sm:$0xff]  ;;  %v7702_v51 = vld [vmem:[%s12409_s4 + $0xf0] sm:$0xff] }
 0xaf2   :  { %v5292_v53 = vsel %vm1145_vm9, %v11906_v25, -inf  ;;  %v5193_v32 = vmax.f32 %v11867_v21, %v5157_v18  ;;  %v5161_v8 = vmul.f32 0.2, %v5125_v49  ;;  %v5156_v0 = vmul.f32 0.2, %v5120_v38 }
 0xaf3   :  { %v5300_v21 = vsel %vm1145_vm9, %v11934_v2, -inf  ;;  %v5160_v18 = vmul.f32 0.2, %v5124_v36 }
 0xafd   :  { %5080 = vperm.xlu1 %7091, %v4754_v56   ;;  %v5158_v56 = vmul.f32 0.2, %v11827_v37 }
 0xafe   :  { %5085 = vperm.xlu0 %7090, %v6901_v46   ;;  %v5190_v46 = vmax.f32 %v5118_v33, %v5154_v26  ;;  %v11884_v33 = vadd.f32 %v7691_v60, %v5183_v34  ;;  %v7695_v34 = vld [vmem:[%s12409_s4 + $0x70] sm:$0xff]  ;;  %v5198_v60 = vmax.f32 %v5126_v59, %v5162_v47  ;;  %v7704_v47 = vld [vmem:[%s12409_s4 + $0xc0] sm:$0xff] }
 0xaff   :  { %v5194_v26 = vmax.f32 %v11827_v37, %v5158_v56  ;;  %v7694_v37 = vld [vmem:[%s12409_s4 + $0x88] sm:$0xff]  ;;  %v11920_v58 = vadd.f32 %v7695_v34, %v5182_v10  ;;  %v7696_v56 = vld [vmem:[%s12409_s4 + $0xd0] sm:$0xff] }
 0xb00   :  { %v11893_v19 = vadd.f32 %v7692_v7, %v5190_v46  ;;  %v5268_v30 = vsel %vm1145_vm9, %v11884_v33, -inf  ;;  %v11911_v17 = vadd.f32 %v7694_v37, %v5185_v6  ;;  %v5188_v46 = vmax.f32 %v11823_v44, %v5152_v15  ;;  %v7698_v44 = vld [vmem:[%s12409_s4 + $0xa8] sm:$0xff]  ;;  %v7699_v6 = vld [vmem:[%s12409_s4 + $0x80] sm:$0xff] }
 0xb01   :  { %v11927_v28 = vadd.f32 %v7696_v56, %v5194_v26  ;;  %v11939_v20 = vadd.f32 %v7698_v44, %v5189_v61  ;;  %v11951_v15 = vadd.f32 %v7699_v6, %v5184_v23  ;;  %v11962_v7 = vadd.f32 %v7700_v29, %v5193_v32 }
 0xb02   :  { %v5285_v50 = vmax.f32 %v11893_v19, %v5284_v45  ;;  %v5272_v63 = vsel %vm1145_vm9, %v11911_v17, -inf  ;;  %v5197_v26 = vmax.f32 %v5125_v49, %v5161_v8  ;;  %v5192_v45 = vmax.f32 %v5120_v38, %v5156_v0  ;;  %v7703_v49 = vld [vmem:[%s12409_s4 + $0xe8] sm:$0xff] }
 0xb03   :  { %v5293_v10 = vmax.f32 %v11927_v28, %v5292_v53  ;;  %v5273_v42 = vmax.f32 %v11951_v15, %v5272_v63  ;;  %v5280_v59 = vsel %vm1145_vm9, %v11939_v20, -inf  ;;  %v11972_v61 = vadd.f32 %v7702_v51, %v5198_v60 }
 0xb04   :  { %v5288_v37 = vsel %vm1145_vm9, %v11962_v7, -inf  ;;  %v11981_v38 = vadd.f32 %v7703_v49, %v5197_v26  ;;  %v11986_v34 = vadd.f32 %v7704_v47, %v5192_v45  ;;  %v5196_v23 = vmax.f32 %v5124_v36, %v5160_v18 }
 0xb06   :  { %v5296_v56 = vsel %vm1145_vm9, %v11981_v38, -inf }
 0xb1d   :  { %5266 = vmax.xlane.f32.xlu0 %v5265_v31  ;;  %v5269_v31 = vmax.f32 %v11920_v58, %v5268_v30  ;;  %v5301_v30 = vmax.f32 %v11972_v61, %v5300_v21 }
 0xb21   :  { %5278 = vmax.xlane.f32.xlu0 %v5277_v12  ;;  %5262 = vmax.xlane.f32.xlu1 %v5261_v39  ;;  %v7701_v12 = vld [vmem:[%s12409_s4 + $0xa0] sm:$0xff] }
 0xb22   :  { %v11967_v39 = vadd.f32 %v7701_v12, %v5188_v46  ;;  %v5289_v46 = vmax.f32 %v11986_v34, %v5288_v37 }
 0xb24   :  { %v5281_v57 = vmax.f32 %v11967_v39, %v5280_v59 }
 0xb25   :  { %5286 = vmax.xlane.f32.xlu0 %v5285_v50  ;;  %5270 = vmax.xlane.f32.xlu1 %v5269_v31  ;;  %v7705_v50 = vld [vmem:[%s12409_s4 + $0xe0] sm:$0xff] }
 0xb26   :  { %v11994_v31 = vadd.f32 %v7705_v50, %v5196_v23 }
 0xb28   :  { %v5297_v3 = vmax.f32 %v11994_v31, %v5296_v56 }
 0xb29   :  { %5294 = vmax.xlane.f32.xlu0 %v5293_v10  ;;  %5274 = vmax.xlane.f32.xlu1 %v5273_v42 }
 0xb2d   :  { %5302 = vmax.xlane.f32.xlu0 %v5301_v30  ;;  %5282 = vmax.xlane.f32.xlu1 %v5281_v57 }
 0xb31   :  { %5290 = vmax.xlane.f32.xlu1 %v5289_v46 }
 0xb35   :  { %5298 = vmax.xlane.f32.xlu1 %v5297_v3 }
 0xb6d   :  { %v5247_v44 = vpop.xlane.xlu0 %5246  ;;  %v5243_v53 = vpop.xlane.xlu1 %5242 }
 0xb6e   :  { %v5315_v63 = vsub.f32 %v11732_v5, %v5247_v44  ;;  %v5312_v32 = vsub.f32 %v11752_v4, %v5243_v53  ;;  %v5313_v8 = vsub.f32 %v11737_v43, %v5243_v53  ;;  %v5314_v0 = vsub.f32 %v11747_v14, %v5247_v44 }
 0xb70   :  { %v5354_v60 = vmul.f32 1.442695, %v5315_v63  ;;  %v5348_v36 = vmul.f32 1.442695, %v5312_v32  ;;  %v5350_v6 = vmul.f32 1.442695, %v5313_v8 }
 0xb71   :  { %v5251_v10 = vpop.xlane.xlu1 %5250  ;;  %v5259_v42 = vpop.xlane.xlu0 %5258  ;;  %v5352_v59 = vmul.f32 1.442695, %v5314_v0  ;;  %v7707_v63 = vld [vmem:[%s12409_s4 + $0x118] sm:$0xff]  ;;  %v7708_v8 = vld [vmem:[%s12409_s4 + $0x108] sm:$0xff] }
 0xb72   :  { %7524 = vpow2.f32 %v5354_v60  ;;  %v5317_v21 = vsub.f32 %v11757_v24, %v5251_v10  ;;  %v5316_v29 = vsub.f32 %v11782_v1, %v5251_v10  ;;  %v5321_v5 = vsub.f32 %v11742_v22, %v5259_v42  ;;  %v7709_v10 = vld [vmem:[%s12409_s4 + $0x110] sm:$0xff] }
 0xb73   :  { %7526 = vpow2.f32 %v5348_v36  ;;  %v5320_v12 = vsub.f32 %v11777_v41, %v5259_v42 }
 0xb74   :  { %7528 = vpow2.f32 %v5350_v6  ;;  %v5358_v4 = vmul.f32 1.442695, %v5317_v21  ;;  %v5356_v45 = vmul.f32 1.442695, %v5316_v29  ;;  %v5366_v24 = vmul.f32 1.442695, %v5321_v5 }
 0xb75   :  { %v5255_v26 = vpop.xlane.xlu1 %5254  ;;  %7530 = vpow2.f32 %v5352_v59 }
 0xb76   :  { %v5318_v43 = vsub.f32 %v11791_v13, %v5255_v26  ;;  %v5319_v14 = vsub.f32 %v11772_v16, %v5255_v26  ;;  %7532 = vpow2.f32 %v5358_v4  ;;  %v5364_v13 = vmul.f32 1.442695, %v5320_v12 }
 0xb78   :  { %v5360_v51 = vmul.f32 1.442695, %v5318_v43  ;;  %v5362_v18 = vmul.f32 1.442695, %v5319_v14 }
 0xb79   :  { %v5086_v30 = vpop.permute.xlu0 %5085  ;;  %v5081_v57 = vpop.permute.xlu1 %5080 }
 0xb7a   :  { %7534 = vpow2.f32 %v5360_v51  ;;  %v5130_v1 = vadd.f32 %v11712_v62, %v5086_v30  ;;  %v5131_v22 = vadd.f32 %v11721_v55, %v5086_v30  ;;  %v5128_v37 = vadd.f32 %v11712_v62, %v5081_v57  ;;  %v7706_v62 = vld [vmem:[%s12409_s4 + $0x100] sm:$0xff] }
 0xb7b   :  { %7536 = vpow2.f32 %v5362_v18  ;;  %v5129_v16 = vadd.f32 %v11721_v55, %v5081_v57 }
 0xb7c   :  { %7538 = vpow2.f32 %v5356_v45  ;;  %v5166_v41 = vmul.f32 0.2, %v5130_v1  ;;  %v5167_v49 = vmul.f32 0.2, %v5131_v22  ;;  %v5164_v47 = vmul.f32 0.2, %v5128_v37 }
 0xb7d   :  { %7540 = vpow2.f32 %v5366_v24  ;;  %v5165_v23 = vmul.f32 0.2, %v5129_v16 }
 0xb7e   :  { %v5203_v46 = vmax.f32 %v5131_v22, %v5167_v49  ;;  %v5200_v56 = vmax.f32 %v5128_v37, %v5164_v47  ;;  %7542 = vpow2.f32 %v5364_v13  ;;  %v5202_v44 = vmax.f32 %v5130_v1, %v5166_v41 }
 0xb7f   :  { %v5201_v50 = vmax.f32 %v5129_v16, %v5165_v23  ;;  %v12011_v3 = vpop.eup %7524 }
 0xb80   :  { %v12016_v53 = vadd.f32 %v7706_v62, %v5200_v56  ;;  %v12018_v55 = vpop.eup %7526  ;;  %v12023_v32 = vadd.f32 %v7707_v63, %v5203_v46  ;;  %v12039_v42 = vadd.f32 %v7709_v10, %v5202_v44  ;;  %v5424_v5 = vsel %vm1145_vm9, %v12011_v3, 0.0 }
 0xb81   :  { %v12028_v0 = vadd.f32 %v7708_v8, %v5201_v50  ;;  %v12030_v60 = vpop.eup %7528 }
 0xb82   :  { %v5420_v36 = vsel %vm1145_vm9, %v12030_v60, 0.0  ;;  %v12043_v29 = vpop.eup %7530  ;;  %v5308_v4 = vsel %vm1145_vm9, %v12023_v32, -inf }
 0xb83   :  { %v5304_v6 = vsel %vm1145_vm9, %v12028_v0, -inf  ;;  %v5421_v21 = vadd.f32 %v12018_v55, %v5420_v36  ;;  %v12049_v26 = vpop.eup %7532  ;;  %v5425_v12 = vadd.f32 %v12043_v29, %v5424_v5  ;;  %v5309_v45 = vmax.f32 %v12039_v42, %v5308_v4 }
 0xb84   :  { %v5305_v59 = vmax.f32 %v12016_v53, %v5304_v6  ;;  %v5428_v24 = vsel %vm1145_vm9, %v12049_v26, 0.0 }
 0xb85   :  { %5422 = vadd.xlane.f32.xlu0 %v5421_v21 }
 0xb86   :  { %5306 = vmax.xlane.f32.xlu1 %v5305_v59 }
 0xb87   :  { %v12051_v43 = vpop.eup %7534 }
 0xb88   :  { %v12053_v14 = vpop.eup %7536 }
 0xb89   :  { %v12057_v51 = vpop.eup %7538  ;;  %v5432_v18 = vsel %vm1145_vm9, %v12053_v14, 0.0  ;;  %5426 = vadd.xlane.f32.xlu0 %v5425_v12 }
 0xb8a   :  { %v12063_v30 = vpop.eup %7540  ;;  %5310 = vmax.xlane.f32.xlu1 %v5309_v45  ;;  %v5433_v57 = vadd.f32 %v12051_v43, %v5432_v18  ;;  %v5429_v1 = vadd.f32 %v12057_v51, %v5428_v24 }
 0xb8b   :  { %v12067_v22 = vpop.eup %7542  ;;  %v5436_v37 = vsel %vm1145_vm9, %v12063_v30, 0.0 }
 0xb8c   :  { %v5437_v13 = vadd.f32 %v12067_v22, %v5436_v37 }
 0xb8d   :  { %5434 = vadd.xlane.f32.xlu0 %v5433_v57 }
 0xb8e   :  { %5430 = vadd.xlane.f32.xlu1 %v5429_v1 }
 0xb92   :  { %5438 = vadd.xlane.f32.xlu1 %v5437_v13 }
 0xba6   :  { %v5267_v16 = vpop.xlane.xlu0 %5266 }
 0xba7   :  { %v5324_v41 = vsub.f32 %v11850_v27, %v5267_v16  ;;  %v5325_v49 = vsub.f32 %v11815_v9, %v5267_v16 }
 0xba9   :  { %v5372_v47 = vmul.f32 1.442695, %v5324_v41  ;;  %v5374_v23 = vmul.f32 1.442695, %v5325_v49 }
 0xbaa   :  { %v5279_v46 = vpop.xlane.xlu0 %5278  ;;  %v5263_v56 = vpop.xlane.xlu1 %5262 }
 0xbab   :  { %7544 = vpow2.f32 %v5372_v47  ;;  %v5330_v50 = vsub.f32 %v11861_v48, %v5279_v46  ;;  %v5322_v44 = vsub.f32 %v11879_v40, %v5263_v56  ;;  %v5331_v62 = vsub.f32 %v11836_v35, %v5279_v46 }
 0xbac   :  { %7546 = vpow2.f32 %v5374_v23  ;;  %v5323_v63 = vsub.f32 %v11841_v11, %v5263_v56 }
 0xbad   :  { %v5368_v8 = vmul.f32 1.442695, %v5322_v44  ;;  %v5384_v10 = vmul.f32 1.442695, %v5330_v50  ;;  %v5386_v59 = vmul.f32 1.442695, %v5331_v62 }
 0xbae   :  { %v5370_v36 = vmul.f32 1.442695, %v5323_v63  ;;  %v5287_v6 = vpop.xlane.xlu0 %5286  ;;  %v5271_v27 = vpop.xlane.xlu1 %5270 }
 0xbaf   :  { %v5334_v9 = vsub.f32 %v11893_v19, %v5287_v6  ;;  %v5326_v21 = vsub.f32 %v11920_v58, %v5271_v27  ;;  %v5335_v5 = vsub.f32 %v11874_v54, %v5287_v6  ;;  %v5327_v48 = vsub.f32 %v11884_v33, %v5271_v27 }
 0xbb0   :  { %7548 = vpow2.f32 %v5368_v8 }
 0xbb1   :  { %v5376_v40 = vmul.f32 1.442695, %v5326_v21  ;;  %7550 = vpow2.f32 %v5370_v36  ;;  %v5378_v35 = vmul.f32 1.442695, %v5327_v48  ;;  %v5392_v12 = vmul.f32 1.442695, %v5334_v9 }
 0xbb2   :  { %v5295_v4 = vpop.xlane.xlu0 %5294  ;;  %v5275_v11 = vpop.xlane.xlu1 %5274  ;;  %7552 = vpow2.f32 %v5384_v10  ;;  %v5394_v19 = vmul.f32 1.442695, %v5335_v5 }
 0xbb3   :  { %v5338_v45 = vsub.f32 %v11927_v28, %v5295_v4  ;;  %v5328_v18 = vsub.f32 %v11951_v15, %v5275_v11  ;;  %7554 = vpow2.f32 %v5386_v59  ;;  %v5339_v58 = vsub.f32 %v11906_v25, %v5295_v4 }
 0xbb4   :  { %v5329_v54 = vsub.f32 %v11911_v17, %v5275_v11  ;;  %7556 = vpow2.f32 %v5376_v40 }
 0xbb5   :  { %v5380_v33 = vmul.f32 1.442695, %v5328_v18  ;;  %7558 = vpow2.f32 %v5378_v35  ;;  %v5400_v1 = vmul.f32 1.442695, %v5338_v45  ;;  %v5402_v28 = vmul.f32 1.442695, %v5339_v58 }
 0xbb6   :  { %v5382_v24 = vmul.f32 1.442695, %v5329_v54  ;;  %v5283_v57 = vpop.xlane.xlu1 %5282  ;;  %7560 = vpow2.f32 %v5392_v12  ;;  %v5303_v37 = vpop.xlane.xlu0 %5302 }
 0xbb7   :  { %v5332_v13 = vsub.f32 %v11967_v39, %v5283_v57  ;;  %7562 = vpow2.f32 %v5394_v19  ;;  %v5333_v15 = vsub.f32 %v11939_v20, %v5283_v57  ;;  %v5343_v17 = vsub.f32 %v11934_v2, %v5303_v37 }
 0xbb8   :  { %v12087_v16 = vpop.eup %7544  ;;  %7564 = vpow2.f32 %v5380_v33  ;;  %v5342_v20 = vsub.f32 %v11972_v61, %v5303_v37 }
 0xbb9   :  { %v12090_v41 = vpop.eup %7546  ;;  %v5388_v25 = vmul.f32 1.442695, %v5332_v13  ;;  %7566 = vpow2.f32 %v5382_v24  ;;  %v5390_v49 = vmul.f32 1.442695, %v5333_v15  ;;  %v5410_v62 = vmul.f32 1.442695, %v5343_v17 }
 0xbba   :  { %v5291_v47 = vpop.xlane.xlu1 %5290  ;;  %v5444_v23 = vsel %vm1145_vm9, %v12090_v41, 0.0  ;;  %7568 = vpow2.f32 %v5400_v1  ;;  %v5408_v27 = vmul.f32 1.442695, %v5342_v20 }
 0xbbb   :  { %v5336_v39 = vsub.f32 %v11986_v34, %v5291_v47  ;;  %v5337_v46 = vsub.f32 %v11962_v7, %v5291_v47  ;;  %v5445_v56 = vadd.f32 %v12087_v16, %v5444_v23  ;;  %7570 = vpow2.f32 %v5402_v28 }
 0xbbc   :  { %7572 = vpow2.f32 %v5388_v25 }
 0xbbd   :  { %v5396_v50 = vmul.f32 1.442695, %v5336_v39  ;;  %v5398_v44 = vmul.f32 1.442695, %v5337_v46  ;;  %5446 = vadd.xlane.f32.xlu1 %v5445_v56  ;;  %v12099_v2 = vpop.eup %7548  ;;  %7574 = vpow2.f32 %v5390_v49 }
 0xbbe   :  { %v5299_v63 = vpop.xlane.xlu1 %5298  ;;  %v12101_v8 = vpop.eup %7550 }
 0xbbf   :  { %7576 = vpow2.f32 %v5396_v50  ;;  %v5340_v34 = vsub.f32 %v11994_v31, %v5299_v63  ;;  %v5341_v7 = vsub.f32 %v11981_v38, %v5299_v63  ;;  %v12105_v36 = vpop.eup %7552  ;;  %v5440_v61 = vsel %vm1145_vm9, %v12101_v8, 0.0 }
 0xbc0   :  { %7578 = vpow2.f32 %v5398_v44  ;;  %v12109_v6 = vpop.eup %7554  ;;  %v5441_v21 = vadd.f32 %v12099_v2, %v5440_v61 }
 0xbc1   :  { %v5404_v10 = vmul.f32 1.442695, %v5340_v34  ;;  %v5406_v9 = vmul.f32 1.442695, %v5341_v7  ;;  %v12112_v59 = vpop.eup %7556  ;;  %7580 = vpow2.f32 %v5410_v62  ;;  %v5456_v4 = vsel %vm1145_vm9, %v12109_v6, 0.0 }
 0xbc2   :  { %v12114_v5 = vpop.eup %7558  ;;  %5442 = vadd.xlane.f32.xlu0 %v5441_v21  ;;  %v5457_v19 = vadd.f32 %v12105_v36, %v5456_v4 }
 0xbc3   :  { %7582 = vpow2.f32 %v5404_v10  ;;  %v12116_v38 = vpop.eup %7560  ;;  %v5448_v31 = vsel %vm1145_vm9, %v12114_v5, 0.0 }
 0xbc4   :  { %7584 = vpow2.f32 %v5406_v9  ;;  %v12120_v48 = vpop.eup %7562  ;;  %v5449_v40 = vadd.f32 %v12112_v59, %v5448_v31 }
 0xbc5   :  { %7586 = vpow2.f32 %v5408_v27  ;;  %v12123_v35 = vpop.eup %7564  ;;  %v5464_v33 = vsel %vm1145_vm9, %v12120_v48, 0.0 }
 0xbc6   :  { %v12127_v11 = vpop.eup %7566  ;;  %5450 = vadd.xlane.f32.xlu0 %v5449_v40  ;;  %v5465_v13 = vadd.f32 %v12116_v38, %v5464_v33 }
 0xbc7   :  { %v12129_v12 = vpop.eup %7568  ;;  %v5452_v45 = vsel %vm1145_vm9, %v12127_v11, 0.0 }
 0xbc8   :  { %v12133_v18 = vpop.eup %7570  ;;  %v5453_v58 = vadd.f32 %v12123_v35, %v5452_v45 }
 0xbc9   :  { %v12137_v54 = vpop.eup %7572  ;;  %v5472_v15 = vsel %vm1145_vm9, %v12133_v18, 0.0 }
 0xbca   :  { %v12141_v24 = vpop.eup %7574  ;;  %5458 = vadd.xlane.f32.xlu0 %v5457_v19  ;;  %5454 = vadd.xlane.f32.xlu1 %v5453_v58  ;;  %v5473_v39 = vadd.f32 %v12129_v12, %v5472_v15 }
 0xbcb   :  { %v5460_v1 = vsel %vm1145_vm9, %v12141_v24, 0.0 }
 0xbcc   :  { %v12143_v57 = vpop.eup %7576  ;;  %v5461_v28 = vadd.f32 %v12137_v54, %v5460_v1 }
 0xbcd   :  { %v12147_v37 = vpop.eup %7578 }
 0xbce   :  { %v5468_v25 = vsel %vm1145_vm9, %v12147_v37, 0.0  ;;  %v12155_v17 = vpop.eup %7580  ;;  %5466 = vadd.xlane.f32.xlu0 %v5465_v13  ;;  %5462 = vadd.xlane.f32.xlu1 %v5461_v28 }
 0xbcf   :  { %v5469_v49 = vadd.f32 %v12143_v57, %v5468_v25  ;;  %v5480_v56 = vsel %vm1145_vm9, %v12155_v17, 0.0 }
 0xbd0   :  { %v12158_v47 = vpop.eup %7582 }
 0xbd1   :  { %v12160_v23 = vpop.eup %7584 }
 0xbd2   :  { %v12163_v46 = vpop.eup %7586  ;;  %v5476_v20 = vsel %vm1145_vm9, %v12160_v23, 0.0  ;;  %5474 = vadd.xlane.f32.xlu0 %v5473_v39  ;;  %5470 = vadd.xlane.f32.xlu1 %v5469_v49 }
 0xbd3   :  { %v5477_v50 = vadd.f32 %v12158_v47, %v5476_v20  ;;  %v5481_v44 = vadd.f32 %v12163_v46, %v5480_v56 }
 0xbd6   :  { %5482 = vadd.xlane.f32.xlu0 %v5481_v44  ;;  %5478 = vadd.xlane.f32.xlu1 %v5477_v50 }
 0xc0e   :  { %v5423_v62 = vpop.xlane.xlu0 %5422 }
 0xc0f   :  { %v5307_v63 = vpop.xlane.xlu1 %5306  ;;  %7588 = vrcp.f32 %v5423_v62 }
 0xc10   :  { %v5344_v34 = vsub.f32 %v12016_v53, %v5307_v63  ;;  %v5345_v7 = vsub.f32 %v12028_v0, %v5307_v63 }
 0xc12   :  { %v5412_v61 = vmul.f32 1.442695, %v5344_v34  ;;  %v5414_v27 = vmul.f32 1.442695, %v5345_v7  ;;  %v5427_v10 = vpop.xlane.xlu0 %5426 }
 0xc13   :  { %v5311_v9 = vpop.xlane.xlu1 %5310 }
 0xc14   :  { %7590 = vpow2.f32 %v5412_v61  ;;  %v5346_v21 = vsub.f32 %v12039_v42, %v5311_v9  ;;  %v5347_v31 = vsub.f32 %v12023_v32, %v5311_v9 }
 0xc15   :  { %7592 = vpow2.f32 %v5414_v27 }
 0xc16   :  { %7594 = vrcp.f32 %v5427_v10  ;;  %v5416_v40 = vmul.f32 1.442695, %v5346_v21  ;;  %v5418_v4 = vmul.f32 1.442695, %v5347_v31  ;;  %v5435_v45 = vpop.xlane.xlu0 %5434 }
 0xc17   :  { %v5431_v19 = vpop.xlane.xlu1 %5430 }
 0xc18   :  { %7596 = vpow2.f32 %v5416_v40 }
 0xc19   :  { %7598 = vpow2.f32 %v5418_v4 }
 0xc1a   :  { %7600 = vrcp.f32 %v5435_v45 }
 0xc1b   :  { %7602 = vrcp.f32 %v5431_v19  ;;  %v5439_v53 = vpop.xlane.xlu1 %5438 }
 0xc1c   :  { %v7589_v0 = vpop.eup %7588  ;;  %7604 = vrcp.f32 %v5439_v53 }
 0xc1d   :  { %v5510_v58 = vmul.f32 %v7589_v0, %v12018_v55  ;;  %v5511_v33 = vmul.f32 %v7589_v0, %v12030_v60 }
 0xc1f   :  { %6285 = vmatprep.mubr.msk.f32.mxu0 %vm1145_vm9, %v5511_v33 }
 0xc20   :  { %5672 = vmatmul.mubr.f32.vlgmr.msra.gmra.mxu0 %v5510_v58 }
 0xc21   :  { %v12178_v32 = vpop.eup %7590 }
 0xc22   :  { %v12180_v42 = vpop.eup %7592 }
 0xc23   :  { %v7595_v1 = vpop.eup %7594  ;;  %v5484_v13 = vsel %vm1145_vm9, %v12180_v42, 0.0 }
 0xc24   :  { %v5513_v28 = vmul.f32 %v7595_v1, %v12011_v3  ;;  %v5512_v15 = vmul.f32 %v7595_v1, %v12043_v29  ;;  %v5485_v55 = vadd.f32 %v12178_v32, %v5484_v13 }
 0xc25   :  { %v12187_v25 = vpop.eup %7596 }
 0xc26   :  { %v12189_v60 = vpop.eup %7598  ;;  %6286 = vmatprep.mubr.msk.f32.mxu0 %vm1145_vm9, %v5513_v28  ;;  %5486 = vadd.xlane.f32.xlu1 %v5485_v55 }
 0xc27   :  { %v7601_v49 = vpop.eup %7600  ;;  %5677 = vmatmul.mubr.f32.gmra.mxu0 %v5512_v15  ;;  %v5488_v39 = vsel %vm1145_vm9, %v12189_v60, 0.0 }
 0xc28   :  { %v7603_v56 = vpop.eup %7602  ;;  %v5489_v20 = vadd.f32 %v12187_v25, %v5488_v39  ;;  %v5517_v50 = vmul.f32 %v7601_v49, %v12053_v14  ;;  %v5516_v62 = vmul.f32 %v7601_v49, %v12051_v43 }
 0xc29   :  { %v5515_v3 = vmul.f32 %v7603_v56, %v12049_v26  ;;  %v5514_v29 = vmul.f32 %v7603_v56, %v12057_v51  ;;  %v7605_v44 = vpop.eup %7604 }
 0xc2a   :  { %5490 = vadd.xlane.f32.xlu0 %v5489_v20  ;;  %v5519_v63 = vmul.f32 %v7605_v44, %v12063_v30  ;;  %v5518_v26 = vmul.f32 %v7605_v44, %v12067_v22 }
 0xc2b   :  { %6287 = vmatprep.mubr.msk.f32.mxu0 %vm1145_vm9, %v5515_v3 }
 0xc2c   :  { %5682 = vmatmul.mubr.f32.gmra.mxu0 %v5514_v29 }
 0xc2d   :  { %6288 = vmatprep.mubr.msk.f32.mxu0 %vm1145_vm9, %v5517_v50 }
 0xc30   :  { %5687 = vmatmul.mubr.f32.gmra.mxu0 %v5516_v62 }
 0xc31   :  { %6289 = vmatprep.mubr.msk.f32.mxu0 %vm1145_vm9, %v5519_v63 }
 0xc34   :  { %5692 = vmatmul.mubr.f32.gmra.mxu0 %v5518_v26 }
 0xc46   :  { %v5447_v51 = vpop.xlane.xlu1 %5446 }
 0xc47   :  { %7606 = vrcp.f32 %v5447_v51  ;;  %v5763_v51 = vld [vmem:[%s12410_s5 + $0x8] sm:$0xff] }
 0xc48   :  { %6303 = vmatprep.mubr.msk.f32.mxu1 %vm1145_vm9, %v5763_v51  ;;  %v5765_v51 = vld [vmem:[%s12410_s5 + $0x18] sm:$0xff] }
 0xc4b   :  { %v5443_v34 = vpop.xlane.xlu0 %5442 }
 0xc4c   :  { %7608 = vrcp.f32 %v5443_v34  ;;  %v5862_v34 = vld [vmem:[%s12420_s15 + $0x78] sm:$0xff] }
 0xc4d   :  { %6996 = vmatprep.subr.mxu0 %v5862_v34 }
 0xc4e   :  { %6997 = vmatpush3.msra.mxu0 %v5862_v34  ;;  %v5877_v34 = vld [vmem:[%s12421_s16 + $0x70] sm:$0xff] }
 0xc4f   :  { %v5451_v7 = vpop.xlane.xlu0 %5450 }
 0xc50   :  { %7610 = vrcp.f32 %v5451_v7  ;;  %v5861_v7 = vld [vmem:[%s12420_s15 + $0x70] sm:$0xff] }
 0xc51   :  { %6998 = vmatprep.subr.mxu0 %v5861_v7 }
 0xc52   :  { %6999 = vmatpush3.msra.mxu0 %v5861_v7  ;;  %v5764_v7 = vld [vmem:[%s12410_s5 + $0x10] sm:$0xff] }
 0xc53   :  { %v5455_v14 = vpop.xlane.xlu1 %5454  ;;  %v5459_v61 = vpop.xlane.xlu0 %5458 }
 0xc54   :  { %7612 = vrcp.f32 %v5455_v14  ;;  %v7607_v27 = vpop.eup %7606  ;;  %v5860_v14 = vld [vmem:[%s12420_s15 + $0x68] sm:$0xff] }
 0xc55   :  { %7614 = vrcp.f32 %v5459_v61  ;;  %v5523_v22 = vmul.f32 %v7607_v27, %v12090_v41  ;;  %v5522_v40 = vmul.f32 %v7607_v27, %v12087_v16  ;;  %v5859_v61 = vld [vmem:[%s12420_s15 + $0x60] sm:$0xff]  ;;  %7000 = vmatprep.subr.mxu0 %v5860_v14  ;;  %v5858_v27 = vld [vmem:[%s12420_s15 + $0x58] sm:$0xff] }
 0xc56   :  { %7001 = vmatpush3.msra.mxu0 %v5860_v14  ;;  %v5875_v14 = vld [vmem:[%s12421_s16 + $0x60] sm:$0xff] }
 0xc57   :  { %v5463_v10 = vpop.xlane.xlu1 %5462  ;;  %v5467_v31 = vpop.xlane.xlu0 %5466  ;;  %7002 = vmatprep.subr.mxu0 %v5859_v61 }
 0xc58   :  { %7616 = vrcp.f32 %v5463_v10  ;;  %7003 = vmatpush3.msra.mxu0 %v5859_v61  ;;  %v5856_v10 = vld [vmem:[%s12420_s15 + $0x48] sm:$0xff]  ;;  %v5874_v61 = vld [vmem:[%s12421_s16 + $0x58] sm:$0xff] }
 0xc59   :  { %v7609_v43 = vpop.eup %7608  ;;  %7618 = vrcp.f32 %v5467_v31  ;;  %7004 = vmatprep.subr.mxu0 %v5858_v27 }
 0xc5a   :  { %v5521_v30 = vmul.f32 %v7609_v43, %v12101_v8  ;;  %v5520_v9 = vmul.f32 %v7609_v43, %v12099_v2  ;;  %v5857_v43 = vld [vmem:[%s12420_s15 + $0x50] sm:$0xff]  ;;  %7005 = vmatpush3.msra.mxu0 %v5858_v27 }
 0xc5b   :  { %v5471_v45 = vpop.xlane.xlu1 %5470  ;;  %v5475_v53 = vpop.xlane.xlu0 %5474  ;;  %7006 = vmatprep.subr.mxu0 %v5857_v43  ;;  %v5873_v27 = vld [vmem:[%s12421_s16 + $0x50] sm:$0xff] }
 0xc5c   :  { %6290 = vmatprep.mubr.msk.f32.mxu0 %vm1145_vm9, %v5521_v30  ;;  %7620 = vrcp.f32 %v5471_v45  ;;  %7007 = vmatpush3.msra.mxu0 %v5857_v43  ;;  %v5855_v30 = vld [vmem:[%s12420_s15 + $0x40] sm:$0xff]  ;;  %v5872_v43 = vld [vmem:[%s12421_s16 + $0x48] sm:$0xff] }
 0xc5d   :  { %v7611_v21 = vpop.eup %7610  ;;  %5697 = vmatmul.mubr.f32.gmra.mxu0 %v5520_v9  ;;  %7622 = vrcp.f32 %v5475_v53  ;;  %7008 = vmatprep.subr.mxu0 %v5856_v10  ;;  %v5854_v9 = vld [vmem:[%s12420_s15 + $0x38] sm:$0xff]  ;;  %v5851_v45 = vld [vmem:[%s12420_s15 + $0x20] sm:$0xff] }
 0xc5e   :  { %6291 = vmatprep.mubr.msk.f32.mxu0 %vm1145_vm9, %v5523_v22  ;;  %v5525_v4 = vmul.f32 %v7611_v21, %v12114_v5  ;;  %v5524_v2 = vmul.f32 %v7611_v21, %v12112_v59  ;;  %7009 = vmatpush3.msra.mxu0 %v5856_v10  ;;  %v5853_v21 = vld [vmem:[%s12420_s15 + $0x30] sm:$0xff]  ;;  %v5871_v10 = vld [vmem:[%s12421_s16 + $0x40] sm:$0xff] }
 0xc5f   :  { %v5479_v58 = vpop.xlane.xlu1 %5478  ;;  %v5483_v1 = vpop.xlane.xlu0 %5482  ;;  %7010 = vmatprep.subr.mxu0 %v5855_v30 }
 0xc60   :  { %7624 = vrcp.f32 %v5479_v58  ;;  %7011 = vmatpush3.msra.mxu0 %v5855_v30  ;;  %v5870_v30 = vld [vmem:[%s12421_s16 + $0x38] sm:$0xff] }
 0xc61   :  { %5702 = vmatmul.mubr.f32.gmra.mxu0 %v5522_v40  ;;  %v7613_v8 = vpop.eup %7612  ;;  %7626 = vrcp.f32 %v5483_v1  ;;  %7012 = vmatprep.subr.mxu0 %v5854_v9  ;;  %v5852_v40 = vld [vmem:[%s12420_s15 + $0x28] sm:$0xff] }
 0xc62   :  { %6292 = vmatprep.mubr.msk.f32.mxu0 %vm1145_vm9, %v5525_v4  ;;  %v5527_v41 = vmul.f32 %v7613_v8, %v12127_v11  ;;  %v7615_v19 = vpop.eup %7614  ;;  %v5526_v16 = vmul.f32 %v7613_v8, %v12123_v35  ;;  %7013 = vmatpush3.msra.mxu0 %v5854_v9  ;;  %v5869_v9 = vld [vmem:[%s12421_s16 + $0x30] sm:$0xff] }
 0xc63   :  { %v5529_v5 = vmul.f32 %v7615_v19, %v12109_v6  ;;  %v5528_v59 = vmul.f32 %v7615_v19, %v12105_v36  ;;  %7014 = vmatprep.subr.mxu0 %v5853_v21  ;;  %v5849_v19 = vld [vmem:[%s12420_s15 + $0x10] sm:$0xff] }
 0xc64   :  { %7015 = vmatpush3.msra.mxu0 %v5853_v21  ;;  %v5867_v21 = vld [vmem:[%s12421_s16 + $0x20] sm:$0xff] }
 0xc65   :  { %5707 = vmatmul.mubr.f32.gmra.mxu0 %v5524_v2  ;;  %v7617_v0 = vpop.eup %7616  ;;  %7016 = vmatprep.subr.mxu0 %v5852_v40  ;;  %v5850_v2 = vld [vmem:[%s12420_s15 + $0x18] sm:$0xff] }
 0xc66   :  { %6293 = vmatprep.mubr.msk.f32.mxu0 %vm1145_vm9, %v5527_v41  ;;  %v5531_v11 = vmul.f32 %v7617_v0, %v12141_v24  ;;  %v7619_v33 = vpop.eup %7618  ;;  %v5530_v35 = vmul.f32 %v7617_v0, %v12137_v54  ;;  %7017 = vmatpush3.msra.mxu0 %v5852_v40  ;;  %v5865_v40 = vld [vmem:[%s12421_s16 + $0x10] sm:$0xff] }
 0xc67   :  { %v5533_v6 = vmul.f32 %v7619_v33, %v12120_v48  ;;  %v5532_v28 = vmul.f32 %v7619_v33, %v12116_v38  ;;  %7018 = vmatprep.subr.mxu0 %v5851_v45 }
 0xc68   :  { %7019 = vmatpush3.msra.mxu0 %v5851_v45  ;;  %v5847_v45 = vld [vmem:[%s12420_s15] sm:$0xff] }
 0xc69   :  { %5712 = vmatmul.mubr.f32.gmra.mxu0 %v5526_v16  ;;  %v7621_v13 = vpop.eup %7620  ;;  %7020 = vmatprep.subr.mxu0 %v5850_v2  ;;  %v5848_v16 = vld [vmem:[%s12420_s15 + $0x8] sm:$0xff]  ;;  %s7790_s15 = smov 1  }
 0xc6a   :  { %6294 = vmatprep.mubr.msk.f32.mxu0 %vm1145_vm9, %v5529_v5  ;;  %v5535_v36 = vmul.f32 %v7621_v13, %v12147_v37  ;;  %v7623_v15 = vpop.eup %7622  ;;  %v5534_v24 = vmul.f32 %v7621_v13, %v12143_v57  ;;  %7021 = vmatpush3.msra.mxu0 %v5850_v2  ;;  %v7711_v2 = vld [vmem:[%s12744_s23 + $0x8] sm:$0xff] }
 0xc6b   :  { %v5537_v55 = vmul.f32 %v7623_v15, %v12133_v18  ;;  %v5536_v48 = vmul.f32 %v7623_v15, %v12129_v12  ;;  %7022 = vmatprep.subr.mxu0 %v5849_v19 }
 0xc6c   :  { %7023 = vmatpush3.msra.mxu0 %v5849_v19 }
 0xc6d   :  { %5717 = vmatmul.mubr.f32.gmra.mxu0 %v5528_v59  ;;  %v7625_v54 = vpop.eup %7624  ;;  %7024 = vmatprep.subr.mxu0 %v5848_v16 }
 0xc6e   :  { %6295 = vmatprep.mubr.msk.f32.mxu0 %vm1145_vm9, %v5531_v11  ;;  %v5539_v49 = vmul.f32 %v7625_v54, %v12160_v23  ;;  %v7627_v39 = vpop.eup %7626  ;;  %v5538_v38 = vmul.f32 %v7625_v54, %v12158_v47  ;;  %7025 = vmatpush3.msra.mxu0 %v5848_v16 }
 0xc6f   :  { %v5541_v37 = vmul.f32 %v7627_v39, %v12155_v17  ;;  %v5540_v18 = vmul.f32 %v7627_v39, %v12163_v46  ;;  %v7710_v46 = vld [vmem:[%s12744_s23] sm:$0xff]  ;;  %7026 = vmatprep.subr.mxu0 %v5847_v45 }
 0xc70   :  { %7027 = vmatpush3.msra.mxu0 %v5847_v45 }
 0xc71   :  { %5722 = vmatmul.mubr.f32.gmra.mxu0 %v5530_v35 }
 0xc72   :  { %6296 = vmatprep.mubr.msk.f32.mxu0 %vm1145_vm9, %v5533_v6 }
 0xc75   :  { %5727 = vmatmul.mubr.f32.gmra.mxu0 %v5532_v28 }
 0xc76   :  { %6297 = vmatprep.mubr.msk.f32.mxu0 %vm1145_vm9, %v5535_v36 }
 0xc79   :  { %5732 = vmatmul.mubr.f32.gmra.mxu0 %v5534_v24 }
 0xc7a   :  { %6298 = vmatprep.mubr.msk.f32.mxu0 %vm1145_vm9, %v5537_v55  ;;  %v6284_v55 = vld [vmem:[#allocation6] ss:$0 sm:$0xff] }
 0xc7d   :  { %5737 = vmatmul.mubr.f32.gmra.mxu0 %v5536_v48 }
 0xc7e   :  { %6299 = vmatprep.mubr.msk.f32.mxu0 %vm1145_vm9, %v5539_v49 }
 0xc81   :  { %5742 = vmatmul.mubr.f32.gmra.mxu0 %v5538_v38 }
 0xc82   :  { %6300 = vmatprep.mubr.msk.f32.mxu0 %vm1145_vm9, %v5541_v37 }
 0xc85   :  { %5747 = vmatmul.mubr.f32.gmra.mxu0 %v5540_v18 }
 0xcaf   :  { %v5487_v57 = vpop.xlane.xlu1 %5486 }
 0xcb0   :  { %7628 = vrcp.f32 %v5487_v57 }
 0xcb3   :  { %v5491_v56 = vpop.xlane.xlu0 %5490 }
 0xcb4   :  { %7630 = vrcp.f32 %v5491_v56 }
 0xcbd   :  { %v7629_v12 = vpop.eup %7628 }
 0xcbe   :  { %v5543_v23 = vmul.f32 %v7629_v12, %v12180_v42  ;;  %v5542_v20 = vmul.f32 %v7629_v12, %v12178_v32 }
 0xcc0   :  { %6301 = vmatprep.mubr.msk.f32.mxu0 %vm1145_vm9, %v5543_v23 }
 0xcc1   :  { %v7631_v47 = vpop.eup %7630  ;;  %5752 = vmatmul.mubr.f32.gmra.mxu0 %v5542_v20 }
 0xcc2   :  { %v5545_v17 = vmul.f32 %v7631_v47, %v12189_v60  ;;  %v5544_v3 = vmul.f32 %v7631_v47, %v12187_v25 }
 0xcc4   :  { %6302 = vmatprep.mubr.msk.f32.mxu0 %vm1145_vm9, %v5545_v17 }
 0xcc5   :  { %5757 = vmatmul.mubr.f32.gmra.mxu0 %v5544_v3 }
 0xcc6   :  { %7028 = vmatprep.mubr.f32.mxu0 %v7710_v46 }
 0xcc9   :  { %7029 = vmatmul.mubr.f32.vlgmr.msra.gmra.mxu0 %v7711_v2 }
 0xce0   :  { %v12246_v29 = vpop.f32.mrf.mxu0 }
 0xce2   :  { %v5675_v42 = vpop.f32.mrf.mxu0 }
 0xce7   :  { %v12248_v32 = vpop.f32.mrf.mxu0 }
 0xce8   :  { %v5679_v42 = vadd.f32 %v6284_v55, %v12248_v32  ;;  %v5762_v32 = vld [vmem:[%s12410_s5] sm:$0xff] }
 0xce9   :  { %v5680_v50 = vpop.f32.mrf.mxu0 }
 0xcea   :  { %v5674_v50 = vadd.f32 %v6284_v55, %v12246_v29  ;;  %v5878_v29 = vld [vmem:[%s12421_s16 + $0x78] sm:$0xff] }
 0xcec   :  { %v12250_v44 = vpop.f32.mrf.mxu0 }
 0xced   :  { %v5684_v46 = vadd.f32 %v6284_v55, %v12250_v44 }
 0xcee   :  { %v5685_v62 = vpop.f32.mrf.mxu0 }
 0xcf0   :  { %v12252_v60 = vpop.f32.mrf.mxu0 }
 0xcf1   :  { %v5689_v3 = vadd.f32 %v6284_v55, %v12252_v60 }
 0xcf2   :  { %v5690_v25 = vpop.f32.mrf.mxu0 }
 0xcf4   :  { %v12254_v63 = vpop.f32.mrf.mxu0 }
 0xcf5   :  { %v5694_v17 = vadd.f32 %v6284_v55, %v12254_v63 }
 0xcf6   :  { %v5695_v26 = vpop.f32.mrf.mxu0 }
 0xd1d   :  { %v12287_v22 = vpop.f32.mrf.mxu0 }
 0xd1e   :  { %v5699_v47 = vadd.f32 %v6284_v55, %v12287_v22  ;;  %v5868_v22 = vld [vmem:[%s12421_s16 + $0x28] sm:$0xff] }
 0xd1f   :  { %v5700_v31 = vpop.f32.mrf.mxu0 }
 0xd20   :  { %v5866_v31 = vld [vmem:[%s12421_s16 + $0x18] sm:$0xff] }
 0xd21   :  { %v5703_v4 = vpop.f32.mrf.mxu0 }
 0xd22   :  { %v5704_v20 = vadd.f32 %v6284_v55, %v5703_v4  ;;  %v5864_v4 = vld [vmem:[%s12421_s16 + $0x8] sm:$0xff] }
 0xd23   :  { %v5705_v8 = vpop.f32.mrf.mxu0 }
 0xd24   :  { %v5863_v8 = vld [vmem:[%s12421_s16] sm:$0xff] }
 0xd25   :  { %v5708_v41 = vpop.f32.mrf.mxu0 }
 0xd26   :  { %v5709_v23 = vadd.f32 %v6284_v55, %v5708_v41 }
 0xd27   :  { %v5710_v53 = vpop.f32.mrf.mxu0 }
 0xd29   :  { %v5713_v5 = vpop.f32.mrf.mxu0 }
 0xd2a   :  { %v5714_v12 = vadd.f32 %v6284_v55, %v5713_v5  ;;  %v6038_v5 = vld [vmem:[#allocation3] sm:$0xff] }
 0xd2b   :  { %v5715_v0 = vpop.f32.mrf.mxu0 }
 0xd2d   :  { %v5718_v58 = vpop.f32.mrf.mxu0 }
 0xd2e   :  { %v5719_v56 = vadd.f32 %v6284_v55, %v5718_v58 }
 0xd2f   :  { %v5720_v59 = vpop.f32.mrf.mxu0 }
 0xd30   :  { %v6305_v59 = vld [vmem:[#allocation2] ss:$0 sm:$0xff] }
 0xd31   :  { %v5723_v11 = vpop.f32.mrf.mxu0 }
 0xd32   :  { %v5724_v57 = vadd.f32 %v6284_v55, %v5723_v11 }
 0xd33   :  { %v5725_v33 = vpop.f32.mrf.mxu0 }
 0xd35   :  { %v5728_v1 = vpop.f32.mrf.mxu0 }
 0xd36   :  { %v5729_v18 = vadd.f32 %v6284_v55, %v5728_v1 }
 0xd37   :  { %v5730_v35 = vpop.f32.mrf.mxu0 }
 0xd39   :  { %v5733_v6 = vpop.f32.mrf.mxu0 }
 0xd3a   :  { %v5734_v37 = vadd.f32 %v6284_v55, %v5733_v6 }
 0xd3b   :  { %v5735_v13 = vpop.f32.mrf.mxu0 }
 0xd3d   :  { %v5738_v28 = vpop.f32.mrf.mxu0 }
 0xd3e   :  { %v5739_v38 = vadd.f32 %v6284_v55, %v5738_v28  ;;  %v6039_v28 = vld [vmem:[#allocation3 + $0x8] sm:$0xff] }
 0xd3f   :  { %v5740_v36 = vpop.f32.mrf.mxu0 }
 0xd41   :  { %v5743_v15 = vpop.f32.mrf.mxu0 }
 0xd42   :  { %v5744_v39 = vadd.f32 %v6284_v55, %v5743_v15 }
 0xd43   :  { %v5745_v24 = vpop.f32.mrf.mxu0 }
 0xd45   :  { %v5748_v54 = vpop.f32.mrf.mxu0 }
 0xd46   :  { %v5749_v48 = vadd.f32 %v6284_v55, %v5748_v54 }
 0xd47   :  { %v5750_v49 = vpop.f32.mrf.mxu0 }
 0xd48   :  { %5773 = vmatpush1.msra.mxu1 %v5749_v48 }
 0xd49   :  { %5774 = vmatprep.subr.mxu1 %v13235_v52 }
 0xd4a   :  { %5775 = vmatpush1.msra.mxu1 %v5744_v39 }
 0xd4b   :  { %5776 = vmatprep.subr.mxu1 %v13235_v52 }
 0xd4c   :  { %5777 = vmatpush1.msra.mxu1 %v5739_v38 }
 0xd4d   :  { %5778 = vmatprep.subr.mxu1 %v13235_v52 }
 0xd4e   :  { %5779 = vmatpush1.msra.mxu1 %v5734_v37 }
 0xd4f   :  { %5780 = vmatprep.subr.mxu1 %v13235_v52 }
 0xd50   :  { %5781 = vmatpush1.msra.mxu1 %v5729_v18 }
 0xd51   :  { %5782 = vmatprep.subr.mxu1 %v13235_v52 }
 0xd52   :  { %5783 = vmatpush1.msra.mxu1 %v5724_v57 }
 0xd53   :  { %5784 = vmatprep.subr.mxu1 %v13235_v52 }
 0xd54   :  { %5785 = vmatpush1.msra.mxu1 %v5719_v56 }
 0xd55   :  { %5786 = vmatprep.subr.mxu1 %v13235_v52 }
 0xd56   :  { %5787 = vmatpush1.msra.mxu1 %v5714_v12 }
 0xd57   :  { %5788 = vmatprep.subr.mxu1 %v13235_v52 }
 0xd58   :  { %5789 = vmatpush1.msra.mxu1 %v5709_v23 }
 0xd59   :  { %5790 = vmatprep.subr.mxu1 %v13235_v52 }
 0xd5a   :  { %5791 = vmatpush1.msra.mxu1 %v5704_v20 }
 0xd5b   :  { %5792 = vmatprep.subr.mxu1 %v13235_v52 }
 0xd5c   :  { %5793 = vmatpush1.msra.mxu1 %v5699_v47 }
 0xd5d   :  { %5794 = vmatprep.subr.mxu1 %v13235_v52 }
 0xd5e   :  { %5795 = vmatpush1.msra.mxu1 %v5694_v17 }
 0xd5f   :  { %5796 = vmatprep.subr.mxu1 %v13235_v52 }
 0xd60   :  { %5797 = vmatpush1.msra.mxu1 %v5689_v3 }
 0xd61   :  { %5798 = vmatprep.subr.mxu1 %v13235_v52 }
 0xd62   :  { %5799 = vmatpush1.msra.mxu1 %v5684_v46 }
 0xd63   :  { %5800 = vmatprep.subr.mxu1 %v13235_v52 }
 0xd64   :  { %5801 = vmatpush1.msra.mxu1 %v5679_v42 }
 0xd65   :  { %5802 = vmatprep.subr.mxu1 %v13235_v52 }
 0xd66   :  { %5803 = vmatpush1.msra.mxu1 %v5674_v50 }
 0xd67   :  { %5832 = vmatprep.subr.mxu1 %v13235_v52 }
 0xd81   :  { %v5753_v62 = vpop.f32.mrf.mxu0 }
 0xd82   :  { %v5754_v26 = vadd.f32 %v6284_v55, %v5753_v62 }
 0xd83   :  { %v5755_v60 = vpop.f32.mrf.mxu0 }
 0xd85   :  { %v5758_v25 = vpop.f32.mrf.mxu0 }
 0xd86   :  { %v5759_v44 = vadd.f32 %v6284_v55, %v5758_v25 }
 0xd87   :  { %v5760_v63 = vpop.f32.mrf.mxu0 }
 0xd88   :  { %5833 = vmatpush2.msra.mxu1 %v5759_v44 }
 0xd89   :  { %5834 = vmatprep.subr.mxu1 %v13235_v52  ;;  %v5876_v52 = vld [vmem:[%s12421_s16 + $0x68] sm:$0xff]  ;;  %v7030_v0 = vpop.f32.mrf.mxu0 }
 0xd8a   :  { %5835 = vmatpush2.msra.mxu1 %v5754_v26 }
 0xd8b   :  { %5837 = vmatmul.mubr.f32.vlgmr.msra.gmra.mxu1 %v5762_v32  ;;  %6961 = vmatprep.subr.mxu1 %v5878_v29  ;;  %v6020_v33 = vpop.f32.mrf.mxu0 }
 0xd8c   :  { %6304 = vmatprep.mubr.msk.f32.mxu1 %vm1145_vm9, %v5765_v51  ;;  %6962 = vmatpush3.msra.mxu1 %v5878_v29 }
 0xd8d   :  { %6963 = vmatprep.subr.mxu1 %v5877_v34 }
 0xd8e   :  { %6964 = vmatpush3.msra.mxu1 %v5877_v34 }
 0xd8f   :  { %5842 = vmatmul.mubr.f32.gmra.mxu1 %v5764_v7  ;;  %6965 = vmatprep.subr.mxu1 %v5876_v52 }
 0xd90   :  { %6966 = vmatpush3.msra.mxu1 %v5876_v52 }
 0xd91   :  { %6967 = vmatprep.subr.mxu1 %v5875_v14 }
 0xd92   :  { %6968 = vmatpush3.msra.mxu1 %v5875_v14 }
 0xd93   :  { %6969 = vmatprep.subr.mxu1 %v5874_v61 }
 0xd94   :  { %6970 = vmatpush3.msra.mxu1 %v5874_v61 }
 0xd95   :  { %6971 = vmatprep.subr.mxu1 %v5873_v27 }
 0xd96   :  { %6972 = vmatpush3.msra.mxu1 %v5873_v27 }
 0xd97   :  { %6973 = vmatprep.subr.mxu1 %v5872_v43 }
 0xd98   :  { %6974 = vmatpush3.msra.mxu1 %v5872_v43 }
 0xd99   :  { %6975 = vmatprep.subr.mxu1 %v5871_v10 }
 0xd9a   :  { %6976 = vmatpush3.msra.mxu1 %v5871_v10 }
 0xd9b   :  { %6977 = vmatprep.subr.mxu1 %v5870_v30 }
 0xd9c   :  { %6978 = vmatpush3.msra.mxu1 %v5870_v30 }
 0xd9d   :  { %6979 = vmatprep.subr.mxu1 %v5869_v9 }
 0xd9e   :  { %6980 = vmatpush3.msra.mxu1 %v5869_v9 }
 0xd9f   :  { %6981 = vmatprep.subr.mxu1 %v5868_v22 }
 0xda0   :  { %6982 = vmatpush3.msra.mxu1 %v5868_v22 }
 0xda1   :  { %6983 = vmatprep.subr.mxu1 %v5867_v21 }
 0xda2   :  { %6984 = vmatpush3.msra.mxu1 %v5867_v21 }
 0xda3   :  { %6985 = vmatprep.subr.mxu1 %v5866_v31 }
 0xda4   :  { %6986 = vmatpush3.msra.mxu1 %v5866_v31 }
 0xda5   :  { %6987 = vmatprep.subr.mxu1 %v5865_v40 }
 0xda6   :  { %6988 = vmatpush3.msra.mxu1 %v5865_v40 }
 0xda7   :  { %6989 = vmatprep.subr.mxu1 %v5864_v4 }
 0xda8   :  { %6990 = vmatpush3.msra.mxu1 %v5864_v4 }
 0xda9   :  { %6991 = vmatprep.subr.mxu1 %v5863_v8 }
 0xdaa   :  { %6992 = vmatpush3.msra.mxu1 %v5863_v8 }
 0xe4b   :  { %v5838_v41 = vpop.f32.mrf.mxu1 }
 0xe4c   :  { %6993 = vmatprep.mubr.f32.mxu1 %v5838_v41 }
 0xe4d   :  { %v5840_v19 = vpop.f32.mrf.mxu1 }
 0xe4f   :  { %v5843_v53 = vpop.f32.mrf.mxu1 }
 0xe50   :  { %6994 = vmatmul.mubr.f32.vlgmr.msra.gmra.mxu1 %v5843_v53 }
 0xe51   :  { %v5845_v16 = vpop.f32.mrf.mxu1  ;;  %7035 = vmatprep.mubr.msk.f32.mxu1 %vm1145_vm9, %v6038_v5 }
 0xf10   :  { %v6995_v58 = vpop.f32.mrf.mxu1 }
 0xf11   :  { %v6026_v11 = vadd.f32 %v7030_v0, %v6995_v58 }
 0xf12   :  { %v5945_v1 = vpop.f32.mrf.mxu1 }
 0xf13   :  { %v6037_v35 = vadd.f32 %v6305_v59, %v6026_v11  ;;  %v6021_v6 = vadd.f32 %v6020_v33, %v5945_v1 }
 0xf15   :  { %v6036_v13 = vadd.f32 %v6305_v59, %v6021_v6  ;;  %7031 = vmatprep.subr.mxu1 %v6037_v35 }
 0xf16   :  { %7032 = vmatpush3.msra.mxu1 %v6037_v35 }
 0xf17   :  { %7033 = vmatprep.subr.mxu1 %v6036_v13 }
 0xf18   :  { %7034 = vmatpush3.msra.mxu1 %v6036_v13 }
 0xf19   :  { %7036 = vmatmul.mubr.msk.f32.vlgmr.msra.gmra.mxu1 %vm1145_vm9, %v6039_v28 }
 0xfd9   :  { %v7037_v36 = vpop.f32.mrf.mxu1 }
 0xfdb   :  { %v6112_v15 = vpop.f32.mrf.mxu1 }
 0xfdc   :  { %v6121_v24 = vmax.f32 %v6112_v15, %v7037_v36 }
 0xfde   :  { %v6122_v55 = vsub.f32 %v6112_v15, %v6121_v24  ;;  %v6125_v54 = vsub.f32 %v7037_v36, %v6121_v24 }
 0xfe0   :  { %v6123_v48 = vmul.f32 1.442695, %v6122_v55  ;;  %v6126_v49 = vmul.f32 1.442695, %v6125_v54 }
 0xfe2   :  { %7632 = vpow2.f32 %v6123_v48 }
 0xfe3   :  { %7634 = vpow2.f32 %v6126_v49 }
 0xfef   :  { %v7633_v39 = vpop.eup %7632 }
 0xff0   :  { %v7635_v38 = vpop.eup %7634 }
 0xff1   :  { %v6128_v37 = vadd.f32 %v7635_v38, %v7633_v39 }
 0xff3   :  { %7636 = vrcp.f32 %v6128_v37 }
0x1000   :  { %v7637_v18 = vpop.eup %7636 }
0x1001   :  { %v6132_v57 = vmul.f32 %v7637_v18, %v7635_v38  ;;  %v6131_v56 = vmul.f32 %v7637_v18, %v7633_v39 }
0x1003   :  { %v6153_v12 = vmax.f32 %v6132_v57, 0.0  ;;  %v6141_v23 = vsub.f32 1.0, %v6131_v56 }
0x1005   :  { %v6154_v20 = vsel %vm6137_vm10, %v6153_v12, 0.0  ;;  %v6142_v47 = vsel %vm6137_vm10, %v6141_v23, 0.0 }
0x1006   :  { %6155 = vadd.xlane.f32.xlu0 %v6154_v20  ;;  %6143 = vadd.xlane.f32.xlu1 %v6142_v47 }
0x1017   :  { %6134 = vrot.lane.b32.xlu1 %v6132_v57, %s7790_s15 }
0x108f   :  { %v6156_v17 = vpop.xlane.xlu0 %6155  ;;  %v6144_v3 = vpop.xlane.xlu1 %6143 }
0x1090   :  { %v6157_v46 = vrot.slane %v6156_v17, 4  ;;  %v6145_v42 = vrot.slane %v6144_v3, 4 }
0x1092   :  { %v6158_v50 = vadd.f32 %v6157_v46, %v6156_v17  ;;  %v6146_v62 = vadd.f32 %v6145_v42, %v6144_v3 }
0x1093   :  { %v6135_v60 = vpop.permute.xlu1 %6134 }
0x1094   :  { %v6159_v25 = vrot.slane %v6158_v50, 2  ;;  %v6147_v44 = vrot.slane %v6146_v62, 2  ;;  %v6138_v63 = vsel %vm6137_vm10, %v6131_v56, %v6135_v60 }
0x1095   :  { %6140 = vst.msk [vmem:[%s12423_s18] sm:$0xff] %vm6139_vm11, %v6138_v63  ;;  %s7752_s18 = scalar_lea.vmem %s6178_s13, 16 }
0x1096   :  { %v6160_v26 = vadd.f32 %v6159_v25, %v6158_v50  ;;  %v6148_v32 = vadd.f32 %v6147_v44, %v6146_v62  ;;  %p7753_p10 = scmp.ne.s32.totalorder %s6178_s13, %s7752_s18  ;;  %p7758_p12 = scmp.lt.s32.totalorder %s7756_s11, %s7752_s18 }
0x1098   :  { %v6149_v29 = vrot.slane %v6148_v32, 1  ;;  %v6161_v51 = vrot.slane %v6160_v26, 1  ;;  %p7759_p13 = por %p7758_p12, %p7757_p11 }
0x109a   :  { %v6150_v34 = vadd.f32 %v6149_v29, %v6148_v32  ;;  %v6162_v7 = vadd.f32 %v6161_v51, %v6160_v26  ;;  %p7760_p0 = pnand %p7759_p13, %p7753_p10 }
0x109c   :  { %7038 = vpush %v6150_v34 }
0x109d   :  { %7040 = vpush %v6162_v7 }
0x10cd   :  { %s7039_s5 = spop %7038 }
0x10ce   :  { %v6152_v52 = vstv %s7039_s5  ;;  %s7041_s4 = spop %7040 }
0x10cf   :  { %v6164_v14 = vstv %s7041_s4 }
0x10d0   :  { %v6165_v61 = vadd.f32 %v6164_v14, %v6152_v52 }
0x10d2   :  { %v6166_v27 = vmul.f32 0.0625, %v6165_v61 }
0x10d4   :  { %6168 = vst.msk [vmem:[#allocation8] sm:$0x1] %vm6167_vm12, %v6166_v27 }
0x10d5   :  { %7763 = shalt.err (!%p7760_p0)
}
0x10d6   :  { %6180 = dma.vmem_to_hbm [thread:$0]  %s6178_s13, 16, %s12424_s19, [#allocation5]  }
0x10d7   :  { %7776 = dma.done.wait [#allocation5], 16  }
0x10d8   :  { %7777 = vsyncadd [#allocation5], 4294967280 }
0x10d9   :  { %6186 = vsyncpa [#allocation4], 1 }
0x10da   :  { %6187 = vsyncpa [#allocation7], 1 }
0x10db   :  { %6188 = vsyncpa [#allocation5], 1 }

</bundles_post_ra>
